<compile_context>
chip_gen: v7x
topology: tpu7x:2x2x1
jax: 0.10.0
libtpu: 0.0.40
codegen_flags: <defaults>
</compile_context>

<pallas_src>
import math
import numpy as np
import jax
import jax.numpy as jnp
from jax.experimental import pallas as pl
from jax.experimental.pallas import tpu as pltpu

# ---------------- HashGrid hyper-parameters (small but structurally faithful) ----
INPUT_DIM = 3
NUM_LEVELS = 4
LEVEL_DIM = 2
PER_LEVEL_SCALE = 2
BASE_RESOLUTION = 4
LOG2_HASHMAP_SIZE = 12
MAX_PARAMS = 2 ** LOG2_HASHMAP_SIZE

PRIMES = (1, 2654435761, 805459861, 3674653429, 2097192037, 1434869437,
          2165219737, 122420729, 163227661, 217636919, 290182597)

N_NEIGH = 1 << INPUT_DIM
OUTPUT_DIM = NUM_LEVELS * LEVEL_DIM


def _level_layout():
    offsets, offset = [], 0
    for i in range(NUM_LEVELS):
        res = int(np.ceil(BASE_RESOLUTION * PER_LEVEL_SCALE ** i))
        params = min(MAX_PARAMS, res ** INPUT_DIM)
        params = int(np.ceil(params / 32) * 32)
        offset += params
        offsets.append(offset)
    return offsets


OFFSETS = _level_layout()                      # e.g. [64, 576, 4672, 8768]
TOTAL_ROWS = OFFSETS[-1]
LEVEL_SIZES = [OFFSETS[0]] + [OFFSETS[i] - OFFSETS[i - 1] for i in range(1, NUM_LEVELS)]
LEVEL_RES = [int(np.ceil(BASE_RESOLUTION * PER_LEVEL_SCALE ** i)) for i in range(NUM_LEVELS)]

# Chunk of selection rows processed per MXU step (64-128 keeps the 8-neighbor
# accumulation in registers; 128 keeps every table block exactly one lane tile).
CHUNK = 128

PADDED_SIZES = [((s + CHUNK - 1) // CHUNK) * CHUNK for s in LEVEL_SIZES]   # 128,512,4096,4096
PADDED_OFFS = [0]
for _s in PADDED_SIZES[:-1]:
    PADDED_OFFS.append(PADDED_OFFS[-1] + _s)
PADDED_TOTAL = PADDED_OFFS[-1] + PADDED_SIZES[-1]                          # multiple of 128
N_BLOCKS = PADDED_TOTAL // CHUNK
LEVEL_BASE_BLOCK = [o // CHUNK for o in PADDED_OFFS]
LEVEL_N_BLOCKS = [s // CHUNK for s in PADDED_SIZES]

BIN_MASK_NP = ((np.arange(N_NEIGH)[:, None] & (1 << np.arange(INPUT_DIM))[None, :]) == 0)


# ---------------------------------- kernel ---------------------------------------
def _hash_grid_kernel(x_ref, emb_ref, o_ref):
    # x_ref:   [INPUT_DIM, TB]                 batch on lanes (lane-dense)
    # emb_ref: [N_BLOCKS, OUTPUT_DIM, CHUNK]   block-diagonal packed hash table
    # o_ref:   [OUTPUT_DIM, TB]                single unmasked full-tile store
    tb = x_ref.shape[1]
    x = x_ref[...]                                               # [D, TB] f32

    acc = jnp.zeros((OUTPUT_DIM, tb), jnp.float32)               # all levels accumulate here

    for lvl in range(NUM_LEVELS):
        res = LEVEL_RES[lvl]
        size = LEVEL_SIZES[lvl]
        base_blk = LEVEL_BASE_BLOCK[lvl]
        n_blocks = LEVEL_N_BLOCKS[lvl]

        xs = x * float(res)
        xif = jnp.floor(xs)                                      # inputs >= 0 -> floor == trunc
        xf = xs - xif                                            # [D, TB]
        xi = xif.astype(jnp.int32)                               # [D, TB]

        # Per-dimension hash terms and interpolation weights (2 choices per dim).
        hterm, wterm = [], []
        for d in range(INPUT_DIM):
            bu = xi[d:d + 1, :].astype(jnp.uint32)               # [1, TB]
            p = jnp.uint32(PRIMES[d] & 0xFFFFFFFF)
            h0 = bu if PRIMES[d] == 1 else bu * p                # PRIMES[0]==1 -> skip multiply
            h1 = h0 + p                                          # (xi+1)*p == xi*p + p (wraps)
            hterm.append((h0, h1))
            fd = xf[d:d + 1, :]
            wterm.append((1.0 - fd, fd))

        # Per-neighbor local hash index (in [0, size)) and trilinear weight, [1, TB] each.
        locals_w = []
        for n in range(N_NEIGH):
            bits = [(n >> d) & 1 for d in range(INPUT_DIM)]
            h = hterm[0][bits[0]]
            w = wterm[0][bits[0]]
            for d in range(1, INPUT_DIM):
                h = h ^ hterm[d][bits[d]]
                w = w * wterm[d][bits[d]]
            if size & (size - 1) == 0:                           # power-of-two level size
                local = (h & jnp.uint32(size - 1)).astype(jnp.int32)
            else:                                                # non-pow2 fallback (unused here)
                local = (h % jnp.uint32(size)).astype(jnp.int32)
            locals_w.append((local, w))

        # Chunked weighted-selection build fused with MXU accumulation:
        #   s_chunk (<= 32 vregs) never round-trips through VMEM per neighbor.
        def chunk_step(c, acc):
            row0 = c * CHUNK
            # Chunk-local row iota, regenerated in-register (no big hoisted iota).
            iota = jax.lax.broadcasted_iota(jnp.int32, (CHUNK, tb), 0) + row0
            s = None
            for local, w in locals_w:
                contrib = jnp.where(iota == local, w, jnp.float32(0.0))   # [CHUNK, TB] f32
                s = contrib if s is None else s + contrib
            tab = emb_ref[base_blk + c]                          # [OUTPUT_DIM, CHUNK] lane tile
            # One MXU matmul per chunk = gather + trilinear weighted sum.
            return acc + jnp.dot(tab, s, preferred_element_type=jnp.float32)

        if n_blocks == 1:
            acc = chunk_step(0, acc)
        else:
            acc = jax.lax.fori_loop(0, n_blocks, chunk_step, acc)

    o_ref[...] = acc.astype(o_ref.dtype)                         # one full-tile unmasked vst


# --------------------------------- wrapper ---------------------------------------
def hash_grid_forward(inputs, embeddings, *, batch_tile=256):
    B, D = inputs.shape
    assert D == INPUT_DIM
    assert embeddings.shape == (TOTAL_ROWS, LEVEL_DIM)

    bt = min(batch_tile, B)
    B_pad = ((B + bt - 1) // bt) * bt

    # Lane-dense input layout (layout plumbing lives in the wrapper).
    x_t = inputs.T                                               # [D, B]
    if B_pad != B:
        x_t = jnp.pad(x_t, ((0, 0), (0, B_pad - B)))

    # Block-diagonal transposed table: level l occupies feature rows [2l, 2l+2) of
    # its padded column range. Packed as [N_BLOCKS, OUTPUT_DIM, CHUNK] so every
    # per-chunk fetch in the kernel is a dynamic first-axis index of one lane tile.
    emb_bd = jnp.zeros((OUTPUT_DIM, PADDED_TOTAL), jnp.float32)
    for lvl in range(NUM_LEVELS):
        off = 0 if lvl == 0 else OFFSETS[lvl - 1]
        size = LEVEL_SIZES[lvl]
        p_off = PADDED_OFFS[lvl]
        emb_bd = emb_bd.at[lvl * LEVEL_DIM:(lvl + 1) * LEVEL_DIM,
                           p_off:p_off + size].set(embeddings[off:off + size, :].T
                                                   .astype(jnp.float32))
    emb_packed = emb_bd.reshape(OUTPUT_DIM, N_BLOCKS, CHUNK).transpose(1, 0, 2)

    grid = (B_pad // bt,)
    flops = 2 * B_pad * OUTPUT_DIM * PADDED_TOTAL
    bytes_accessed = 4 * (B_pad * INPUT_DIM + N_BLOCKS * OUTPUT_DIM * CHUNK
                          + B_pad * OUTPUT_DIM)

    out_t = pl.pallas_call(
        _hash_grid_kernel,
        out_shape=jax.ShapeDtypeStruct((OUTPUT_DIM, B_pad), jnp.float32),
        grid=grid,
        in_specs=[
            pl.BlockSpec((INPUT_DIM, bt), lambda i: (0, i)),
            pl.BlockSpec((N_BLOCKS, OUTPUT_DIM, CHUNK), lambda i: (0, 0, 0)),
        ],
        out_specs=pl.BlockSpec((OUTPUT_DIM, bt), lambda i: (0, i)),
        compiler_params=pltpu.CompilerParams(
            dimension_semantics=("parallel",),
            vmem_limit_bytes=32 * 1024 * 1024,
        ),
        cost_estimate=pl.CostEstimate(flops=flops, transcendentals=0,
                                      bytes_accessed=bytes_accessed),
    )(x_t, emb_packed)

    return out_t[:, :B].T                                        # [B, OUTPUT_DIM]


# ------------------------ pure-JAX reference (for validation) --------------------
def hash_grid_reference(inputs, embeddings):
    bin_mask = jnp.asarray(BIN_MASK_NP)                          # [8, 3] bool
    primes = jnp.array([p & 0xFFFFFFFF for p in PRIMES[:INPUT_DIM]], dtype=jnp.uint32)
    outs = []
    for lvl in range(NUM_LEVELS):
        res = LEVEL_RES[lvl]
        off = 0 if lvl == 0 else OFFSETS[lvl - 1]
        size = LEVEL_SIZES[lvl]

        xs = inputs * float(res)
        xif = jnp.floor(xs)
        xf = xs - xif
        xi = xif.astype(jnp.int32)

        neigs = jnp.where(bin_mask[None], xi[:, None, :], xi[:, None, :] + 1)   # [B, 8, 3]
        h = neigs.astype(jnp.uint32) * primes[None, None, :]
        hid = h[..., 0]
        for d in range(1, INPUT_DIM):
            hid = hid ^ h[..., d]
        ids = (hid % jnp.uint32(size)).astype(jnp.int32) + off                  # [B, 8]

        feats = jnp.take(embeddings, ids, axis=0)                               # [B, 8, 2]
        weights = jnp.where(bin_mask[None], 1.0 - xf[:, None, :], xf[:, None, :])
        w = jnp.prod(weights, axis=-1, keepdims=True)                           # [B, 8, 1]
        outs.append(jnp.sum(feats * w, axis=-2))
    return jnp.concatenate(outs, axis=-1)


# ----------------------------------- main ----------------------------------------
if __name__ == "__main__":
    B = 512                       # 2 grid steps of 256 -> even grid, both v7x TCs busy
    key = jax.random.PRNGKey(0)
    k_emb, k_x = jax.random.split(key)

    # deterministic xavier_uniform-style init for embeddings (offset, level_dim)
    bound = math.sqrt(6.0 / (TOTAL_ROWS + LEVEL_DIM))
    embeddings = jax.random.uniform(k_emb, (TOTAL_ROWS, LEVEL_DIM), jnp.float32,
                                    minval=-bound, maxval=bound)
    inputs = jax.random.uniform(k_x, (B, INPUT_DIM), jnp.float32)   # in [0, 1)

    out = hash_grid_forward(inputs, embeddings)
    out = jax.block_until_ready(out)
    assert out.shape == (B, OUTPUT_DIM)

    ref = hash_grid_reference(inputs, embeddings)
    if not jnp.allclose(out, ref, rtol=1e-4, atol=1e-5):
        raise AssertionError("Pallas HashGrid kernel does not match reference")

    print("KERNEL_OK")
</pallas_src>

<mosaic_0001>
module attributes {stable_mosaic.version = 11 : i64} {
  func.func @_hash_grid_kernel(%arg0: i32, %arg1: memref<3x256xf32, #tpu.memory_space<vmem>>, %arg2: memref<69x8x128xf32, #tpu.memory_space<vmem>>, %arg3: memref<8x256xf32, #tpu.memory_space<vmem>>) attributes {dimension_semantics = [#tpu.dimension_semantics<parallel>], iteration_bounds = array<i64: 2>, scalar_prefetch = 0 : i64, scratch_operands = 0 : i64, tpu.core_type = #tpu.core_type<tc>, window_params = [{transform_indices = @transform_0, window_bounds = array<i64: 3, 256>}, {pipeline_mode = #tpu.pipeline_mode<synchronous>, transform_indices = @transform_1, window_bounds = array<i64: 69, 8, 128>}, {transform_indices = @transform_2, window_bounds = array<i64: 8, 256>}]} {
    %c0 = arith.constant 0 : index
    %c0_0 = arith.constant 0 : index
    %0 = vector.load %arg1[%c0, %c0_0] : memref<3x256xf32, #tpu.memory_space<vmem>>, vector<3x256xf32>
    %cst = arith.constant 0.000000e+00 : f32
    %1 = vector.broadcast %cst : f32 to vector<8x256xf32>
    %cst_1 = arith.constant 4.000000e+00 : f32
    %2 = vector.broadcast %cst_1 : f32 to vector<3x256xf32>
    %3 = arith.mulf %0, %2 : vector<3x256xf32>
    %4 = math.floor %3 : vector<3x256xf32>
    %5 = arith.subf %3, %4 : vector<3x256xf32>
    %6 = arith.fptosi %4 : vector<3x256xf32> to vector<3x256xi32>
    %7 = vector.extract_strided_slice %6 {offsets = [0, 0], sizes = [1, 256], strides = [1, 1]} : vector<3x256xi32> to vector<1x256xi32>
    %c1_i32 = arith.constant 1 : i32
    %8 = vector.broadcast %c1_i32 : i32 to vector<1x256xi32>
    %9 = arith.addi %7, %8 : vector<1x256xi32>
    %10 = vector.extract_strided_slice %5 {offsets = [0, 0], sizes = [1, 256], strides = [1, 1]} : vector<3x256xf32> to vector<1x256xf32>
    %cst_2 = arith.constant 1.000000e+00 : f32
    %11 = vector.broadcast %cst_2 : f32 to vector<1x256xf32>
    %12 = arith.subf %11, %10 : vector<1x256xf32>
    %13 = vector.extract_strided_slice %6 {offsets = [1, 0], sizes = [1, 256], strides = [1, 1]} : vector<3x256xi32> to vector<1x256xi32>
    %c-1640531535_i32 = arith.constant -1640531535 : i32
    %14 = vector.broadcast %c-1640531535_i32 : i32 to vector<1x256xi32>
    %15 = arith.muli %13, %14 : vector<1x256xi32>
    %c-1640531535_i32_3 = arith.constant -1640531535 : i32
    %16 = vector.broadcast %c-1640531535_i32_3 : i32 to vector<1x256xi32>
    %17 = arith.addi %15, %16 : vector<1x256xi32>
    %18 = vector.extract_strided_slice %5 {offsets = [1, 0], sizes = [1, 256], strides = [1, 1]} : vector<3x256xf32> to vector<1x256xf32>
    %cst_4 = arith.constant 1.000000e+00 : f32
    %19 = vector.broadcast %cst_4 : f32 to vector<1x256xf32>
    %20 = arith.subf %19, %18 : vector<1x256xf32>
    %21 = vector.extract_strided_slice %6 {offsets = [2, 0], sizes = [1, 256], strides = [1, 1]} : vector<3x256xi32> to vector<1x256xi32>
    %c805459861_i32 = arith.constant 805459861 : i32
    %22 = vector.broadcast %c805459861_i32 : i32 to vector<1x256xi32>
    %23 = arith.muli %21, %22 : vector<1x256xi32>
    %c805459861_i32_5 = arith.constant 805459861 : i32
    %24 = vector.broadcast %c805459861_i32_5 : i32 to vector<1x256xi32>
    %25 = arith.addi %23, %24 : vector<1x256xi32>
    %26 = vector.extract_strided_slice %5 {offsets = [2, 0], sizes = [1, 256], strides = [1, 1]} : vector<3x256xf32> to vector<1x256xf32>
    %cst_6 = arith.constant 1.000000e+00 : f32
    %27 = vector.broadcast %cst_6 : f32 to vector<1x256xf32>
    %28 = arith.subf %27, %26 : vector<1x256xf32>
    %29 = arith.xori %7, %15 : vector<1x256xi32>
    %30 = arith.mulf %12, %20 : vector<1x256xf32>
    %31 = arith.xori %29, %23 : vector<1x256xi32>
    %32 = arith.mulf %30, %28 : vector<1x256xf32>
    %c63_i32 = arith.constant 63 : i32
    %33 = vector.broadcast %c63_i32 : i32 to vector<1x256xi32>
    %34 = arith.andi %31, %33 : vector<1x256xi32>
    %35 = arith.xori %9, %15 : vector<1x256xi32>
    %36 = arith.mulf %10, %20 : vector<1x256xf32>
    %37 = arith.xori %35, %23 : vector<1x256xi32>
    %38 = arith.mulf %36, %28 : vector<1x256xf32>
    %c63_i32_7 = arith.constant 63 : i32
    %39 = vector.broadcast %c63_i32_7 : i32 to vector<1x256xi32>
    %40 = arith.andi %37, %39 : vector<1x256xi32>
    %41 = arith.xori %7, %17 : vector<1x256xi32>
    %42 = arith.mulf %12, %18 : vector<1x256xf32>
    %43 = arith.xori %41, %23 : vector<1x256xi32>
    %44 = arith.mulf %42, %28 : vector<1x256xf32>
    %c63_i32_8 = arith.constant 63 : i32
    %45 = vector.broadcast %c63_i32_8 : i32 to vector<1x256xi32>
    %46 = arith.andi %43, %45 : vector<1x256xi32>
    %47 = arith.xori %9, %17 : vector<1x256xi32>
    %48 = arith.mulf %10, %18 : vector<1x256xf32>
    %49 = arith.xori %47, %23 : vector<1x256xi32>
    %50 = arith.mulf %48, %28 : vector<1x256xf32>
    %c63_i32_9 = arith.constant 63 : i32
    %51 = vector.broadcast %c63_i32_9 : i32 to vector<1x256xi32>
    %52 = arith.andi %49, %51 : vector<1x256xi32>
    %53 = arith.xori %7, %15 : vector<1x256xi32>
    %54 = arith.mulf %12, %20 : vector<1x256xf32>
    %55 = arith.xori %53, %25 : vector<1x256xi32>
    %56 = arith.mulf %54, %26 : vector<1x256xf32>
    %c63_i32_10 = arith.constant 63 : i32
    %57 = vector.broadcast %c63_i32_10 : i32 to vector<1x256xi32>
    %58 = arith.andi %55, %57 : vector<1x256xi32>
    %59 = arith.xori %9, %15 : vector<1x256xi32>
    %60 = arith.mulf %10, %20 : vector<1x256xf32>
    %61 = arith.xori %59, %25 : vector<1x256xi32>
    %62 = arith.mulf %60, %26 : vector<1x256xf32>
    %c63_i32_11 = arith.constant 63 : i32
    %63 = vector.broadcast %c63_i32_11 : i32 to vector<1x256xi32>
    %64 = arith.andi %61, %63 : vector<1x256xi32>
    %65 = arith.xori %7, %17 : vector<1x256xi32>
    %66 = arith.mulf %12, %18 : vector<1x256xf32>
    %67 = arith.xori %65, %25 : vector<1x256xi32>
    %68 = arith.mulf %66, %26 : vector<1x256xf32>
    %c63_i32_12 = arith.constant 63 : i32
    %69 = vector.broadcast %c63_i32_12 : i32 to vector<1x256xi32>
    %70 = arith.andi %67, %69 : vector<1x256xi32>
    %71 = arith.xori %9, %17 : vector<1x256xi32>
    %72 = arith.mulf %10, %18 : vector<1x256xf32>
    %73 = arith.xori %71, %25 : vector<1x256xi32>
    %74 = arith.mulf %72, %26 : vector<1x256xf32>
    %c63_i32_13 = arith.constant 63 : i32
    %75 = vector.broadcast %c63_i32_13 : i32 to vector<1x256xi32>
    %76 = arith.andi %73, %75 : vector<1x256xi32>
    %77 = tpu.iota {dimensions = array<i32: 0>} : vector<128x256xi32>
    %c0_i32 = arith.constant 0 : i32
    %78 = vector.broadcast %c0_i32 : i32 to vector<128x256xi32>
    %79 = arith.addi %77, %78 : vector<128x256xi32>
    %80 = vector.broadcast %34 : vector<1x256xi32> to vector<128x256xi32>
    %81 = arith.cmpi eq, %79, %80 : vector<128x256xi32>
    %cst_14 = arith.constant 0.000000e+00 : f32
    %82 = vector.shape_cast %32 : vector<1x256xf32> to vector<1x256xf32>
    %83 = vector.broadcast %82 : vector<1x256xf32> to vector<128x256xf32>
    %84 = vector.broadcast %cst_14 : f32 to vector<128x256xf32>
    %85 = arith.select %81, %83, %84 : vector<128x256xi1>, vector<128x256xf32>
    %86 = vector.broadcast %40 : vector<1x256xi32> to vector<128x256xi32>
    %87 = arith.cmpi eq, %79, %86 : vector<128x256xi32>
    %cst_15 = arith.constant 0.000000e+00 : f32
    %88 = vector.shape_cast %38 : vector<1x256xf32> to vector<1x256xf32>
    %89 = vector.broadcast %88 : vector<1x256xf32> to vector<128x256xf32>
    %90 = vector.broadcast %cst_15 : f32 to vector<128x256xf32>
    %91 = arith.select %87, %89, %90 : vector<128x256xi1>, vector<128x256xf32>
    %92 = arith.addf %85, %91 : vector<128x256xf32>
    %93 = vector.broadcast %46 : vector<1x256xi32> to vector<128x256xi32>
    %94 = arith.cmpi eq, %79, %93 : vector<128x256xi32>
    %cst_16 = arith.constant 0.000000e+00 : f32
    %95 = vector.shape_cast %44 : vector<1x256xf32> to vector<1x256xf32>
    %96 = vector.broadcast %95 : vector<1x256xf32> to vector<128x256xf32>
    %97 = vector.broadcast %cst_16 : f32 to vector<128x256xf32>
    %98 = arith.select %94, %96, %97 : vector<128x256xi1>, vector<128x256xf32>
    %99 = arith.addf %92, %98 : vector<128x256xf32>
    %100 = vector.broadcast %52 : vector<1x256xi32> to vector<128x256xi32>
    %101 = arith.cmpi eq, %79, %100 : vector<128x256xi32>
    %cst_17 = arith.constant 0.000000e+00 : f32
    %102 = vector.shape_cast %50 : vector<1x256xf32> to vector<1x256xf32>
    %103 = vector.broadcast %102 : vector<1x256xf32> to vector<128x256xf32>
    %104 = vector.broadcast %cst_17 : f32 to vector<128x256xf32>
    %105 = arith.select %101, %103, %104 : vector<128x256xi1>, vector<128x256xf32>
    %106 = arith.addf %99, %105 : vector<128x256xf32>
    %107 = vector.broadcast %58 : vector<1x256xi32> to vector<128x256xi32>
    %108 = arith.cmpi eq, %79, %107 : vector<128x256xi32>
    %cst_18 = arith.constant 0.000000e+00 : f32
    %109 = vector.shape_cast %56 : vector<1x256xf32> to vector<1x256xf32>
    %110 = vector.broadcast %109 : vector<1x256xf32> to vector<128x256xf32>
    %111 = vector.broadcast %cst_18 : f32 to vector<128x256xf32>
    %112 = arith.select %108, %110, %111 : vector<128x256xi1>, vector<128x256xf32>
    %113 = arith.addf %106, %112 : vector<128x256xf32>
    %114 = vector.broadcast %64 : vector<1x256xi32> to vector<128x256xi32>
    %115 = arith.cmpi eq, %79, %114 : vector<128x256xi32>
    %cst_19 = arith.constant 0.000000e+00 : f32
    %116 = vector.shape_cast %62 : vector<1x256xf32> to vector<1x256xf32>
    %117 = vector.broadcast %116 : vector<1x256xf32> to vector<128x256xf32>
    %118 = vector.broadcast %cst_19 : f32 to vector<128x256xf32>
    %119 = arith.select %115, %117, %118 : vector<128x256xi1>, vector<128x256xf32>
    %120 = arith.addf %113, %119 : vector<128x256xf32>
    %121 = vector.broadcast %70 : vector<1x256xi32> to vector<128x256xi32>
    %122 = arith.cmpi eq, %79, %121 : vector<128x256xi32>
    %cst_20 = arith.constant 0.000000e+00 : f32
    %123 = vector.shape_cast %68 : vector<1x256xf32> to vector<1x256xf32>
    %124 = vector.broadcast %123 : vector<1x256xf32> to vector<128x256xf32>
    %125 = vector.broadcast %cst_20 : f32 to vector<128x256xf32>
    %126 = arith.select %122, %124, %125 : vector<128x256xi1>, vector<128x256xf32>
    %127 = arith.addf %120, %126 : vector<128x256xf32>
    %128 = vector.broadcast %76 : vector<1x256xi32> to vector<128x256xi32>
    %129 = arith.cmpi eq, %79, %128 : vector<128x256xi32>
    %cst_21 = arith.constant 0.000000e+00 : f32
    %130 = vector.shape_cast %74 : vector<1x256xf32> to vector<1x256xf32>
    %131 = vector.broadcast %130 : vector<1x256xf32> to vector<128x256xf32>
    %132 = vector.broadcast %cst_21 : f32 to vector<128x256xf32>
    %133 = arith.select %129, %131, %132 : vector<128x256xi1>, vector<128x256xf32>
    %134 = arith.addf %127, %133 : vector<128x256xf32>
    %c0_22 = arith.constant 0 : index
    %c0_23 = arith.constant 0 : index
    %c0_24 = arith.constant 0 : index
    %135 = vector.load %arg2[%c0_22, %c0_23, %c0_24] : memref<69x8x128xf32, #tpu.memory_space<vmem>>, vector<1x8x128xf32>
    %136 = vector.shape_cast %135 : vector<1x8x128xf32> to vector<8x128xf32>
    %cst_25 = arith.constant dense<0.000000e+00> : vector<8x256xf32>
    %137 = tpu.matmul %136, %134, %cst_25 {dimension_numbers = #tpu.dot_dimension_numbers<[1], [0], [0], [1], [0, 0, 1, 1], [], []>} : vector<8x128xf32>, vector<128x256xf32>, vector<8x256xf32> -> vector<8x256xf32>
    %138 = arith.addf %1, %137 : vector<8x256xf32>
    %cst_26 = arith.constant 8.000000e+00 : f32
    %139 = vector.broadcast %cst_26 : f32 to vector<3x256xf32>
    %140 = arith.mulf %0, %139 : vector<3x256xf32>
    %141 = math.floor %140 : vector<3x256xf32>
    %142 = arith.subf %140, %141 : vector<3x256xf32>
    %143 = arith.fptosi %141 : vector<3x256xf32> to vector<3x256xi32>
    %144 = vector.extract_strided_slice %143 {offsets = [0, 0], sizes = [1, 256], strides = [1, 1]} : vector<3x256xi32> to vector<1x256xi32>
    %c1_i32_27 = arith.constant 1 : i32
    %145 = vector.broadcast %c1_i32_27 : i32 to vector<1x256xi32>
    %146 = arith.addi %144, %145 : vector<1x256xi32>
    %147 = vector.extract_strided_slice %142 {offsets = [0, 0], sizes = [1, 256], strides = [1, 1]} : vector<3x256xf32> to vector<1x256xf32>
    %cst_28 = arith.constant 1.000000e+00 : f32
    %148 = vector.broadcast %cst_28 : f32 to vector<1x256xf32>
    %149 = arith.subf %148, %147 : vector<1x256xf32>
    %150 = vector.extract_strided_slice %143 {offsets = [1, 0], sizes = [1, 256], strides = [1, 1]} : vector<3x256xi32> to vector<1x256xi32>
    %c-1640531535_i32_29 = arith.constant -1640531535 : i32
    %151 = vector.broadcast %c-1640531535_i32_29 : i32 to vector<1x256xi32>
    %152 = arith.muli %150, %151 : vector<1x256xi32>
    %c-1640531535_i32_30 = arith.constant -1640531535 : i32
    %153 = vector.broadcast %c-1640531535_i32_30 : i32 to vector<1x256xi32>
    %154 = arith.addi %152, %153 : vector<1x256xi32>
    %155 = vector.extract_strided_slice %142 {offsets = [1, 0], sizes = [1, 256], strides = [1, 1]} : vector<3x256xf32> to vector<1x256xf32>
    %cst_31 = arith.constant 1.000000e+00 : f32
    %156 = vector.broadcast %cst_31 : f32 to vector<1x256xf32>
    %157 = arith.subf %156, %155 : vector<1x256xf32>
    %158 = vector.extract_strided_slice %143 {offsets = [2, 0], sizes = [1, 256], strides = [1, 1]} : vector<3x256xi32> to vector<1x256xi32>
    %c805459861_i32_32 = arith.constant 805459861 : i32
    %159 = vector.broadcast %c805459861_i32_32 : i32 to vector<1x256xi32>
    %160 = arith.muli %158, %159 : vector<1x256xi32>
    %c805459861_i32_33 = arith.constant 805459861 : i32
    %161 = vector.broadcast %c805459861_i32_33 : i32 to vector<1x256xi32>
    %162 = arith.addi %160, %161 : vector<1x256xi32>
    %163 = vector.extract_strided_slice %142 {offsets = [2, 0], sizes = [1, 256], strides = [1, 1]} : vector<3x256xf32> to vector<1x256xf32>
    %cst_34 = arith.constant 1.000000e+00 : f32
    %164 = vector.broadcast %cst_34 : f32 to vector<1x256xf32>
    %165 = arith.subf %164, %163 : vector<1x256xf32>
    %166 = arith.xori %144, %152 : vector<1x256xi32>
    %167 = arith.mulf %149, %157 : vector<1x256xf32>
    %168 = arith.xori %166, %160 : vector<1x256xi32>
    %169 = arith.mulf %167, %165 : vector<1x256xf32>
    %c511_i32 = arith.constant 511 : i32
    %170 = vector.broadcast %c511_i32 : i32 to vector<1x256xi32>
    %171 = arith.andi %168, %170 : vector<1x256xi32>
    %172 = arith.xori %146, %152 : vector<1x256xi32>
    %173 = arith.mulf %147, %157 : vector<1x256xf32>
    %174 = arith.xori %172, %160 : vector<1x256xi32>
    %175 = arith.mulf %173, %165 : vector<1x256xf32>
    %c511_i32_35 = arith.constant 511 : i32
    %176 = vector.broadcast %c511_i32_35 : i32 to vector<1x256xi32>
    %177 = arith.andi %174, %176 : vector<1x256xi32>
    %178 = arith.xori %144, %154 : vector<1x256xi32>
    %179 = arith.mulf %149, %155 : vector<1x256xf32>
    %180 = arith.xori %178, %160 : vector<1x256xi32>
    %181 = arith.mulf %179, %165 : vector<1x256xf32>
    %c511_i32_36 = arith.constant 511 : i32
    %182 = vector.broadcast %c511_i32_36 : i32 to vector<1x256xi32>
    %183 = arith.andi %180, %182 : vector<1x256xi32>
    %184 = arith.xori %146, %154 : vector<1x256xi32>
    %185 = arith.mulf %147, %155 : vector<1x256xf32>
    %186 = arith.xori %184, %160 : vector<1x256xi32>
    %187 = arith.mulf %185, %165 : vector<1x256xf32>
    %c511_i32_37 = arith.constant 511 : i32
    %188 = vector.broadcast %c511_i32_37 : i32 to vector<1x256xi32>
    %189 = arith.andi %186, %188 : vector<1x256xi32>
    %190 = arith.xori %144, %152 : vector<1x256xi32>
    %191 = arith.mulf %149, %157 : vector<1x256xf32>
    %192 = arith.xori %190, %162 : vector<1x256xi32>
    %193 = arith.mulf %191, %163 : vector<1x256xf32>
    %c511_i32_38 = arith.constant 511 : i32
    %194 = vector.broadcast %c511_i32_38 : i32 to vector<1x256xi32>
    %195 = arith.andi %192, %194 : vector<1x256xi32>
    %196 = arith.xori %146, %152 : vector<1x256xi32>
    %197 = arith.mulf %147, %157 : vector<1x256xf32>
    %198 = arith.xori %196, %162 : vector<1x256xi32>
    %199 = arith.mulf %197, %163 : vector<1x256xf32>
    %c511_i32_39 = arith.constant 511 : i32
    %200 = vector.broadcast %c511_i32_39 : i32 to vector<1x256xi32>
    %201 = arith.andi %198, %200 : vector<1x256xi32>
    %202 = arith.xori %144, %154 : vector<1x256xi32>
    %203 = arith.mulf %149, %155 : vector<1x256xf32>
    %204 = arith.xori %202, %162 : vector<1x256xi32>
    %205 = arith.mulf %203, %163 : vector<1x256xf32>
    %c511_i32_40 = arith.constant 511 : i32
    %206 = vector.broadcast %c511_i32_40 : i32 to vector<1x256xi32>
    %207 = arith.andi %204, %206 : vector<1x256xi32>
    %208 = arith.xori %146, %154 : vector<1x256xi32>
    %209 = arith.mulf %147, %155 : vector<1x256xf32>
    %210 = arith.xori %208, %162 : vector<1x256xi32>
    %211 = arith.mulf %209, %163 : vector<1x256xf32>
    %c511_i32_41 = arith.constant 511 : i32
    %212 = vector.broadcast %c511_i32_41 : i32 to vector<1x256xi32>
    %213 = arith.andi %210, %212 : vector<1x256xi32>
    %c0_i32_42 = arith.constant 0 : i32
    %c4_i32 = arith.constant 4 : i32
    %214 = arith.addi %c0_i32_42, %c4_i32 : i32
    %c1_i32_43 = arith.constant 1 : i32
    %215 = scf.for %arg4 = %c0_i32_42 to %214 step %c1_i32_43 iter_args(%arg5 = %138) -> (vector<8x256xf32>)  : i32 {
      %c128_i32 = arith.constant 128 : i32
      %371 = arith.muli %arg4, %c128_i32 : i32
      %372 = tpu.iota {dimensions = array<i32: 0>} : vector<128x256xi32>
      %373 = vector.broadcast %371 : i32 to vector<128x256xi32>
      %374 = arith.addi %372, %373 : vector<128x256xi32>
      %375 = vector.broadcast %171 : vector<1x256xi32> to vector<128x256xi32>
      %376 = arith.cmpi eq, %374, %375 : vector<128x256xi32>
      %cst_87 = arith.constant 0.000000e+00 : f32
      %377 = vector.shape_cast %169 : vector<1x256xf32> to vector<1x256xf32>
      %378 = vector.broadcast %377 : vector<1x256xf32> to vector<128x256xf32>
      %379 = vector.broadcast %cst_87 : f32 to vector<128x256xf32>
      %380 = arith.select %376, %378, %379 : vector<128x256xi1>, vector<128x256xf32>
      %381 = vector.broadcast %177 : vector<1x256xi32> to vector<128x256xi32>
      %382 = arith.cmpi eq, %374, %381 : vector<128x256xi32>
      %cst_88 = arith.constant 0.000000e+00 : f32
      %383 = vector.shape_cast %175 : vector<1x256xf32> to vector<1x256xf32>
      %384 = vector.broadcast %383 : vector<1x256xf32> to vector<128x256xf32>
      %385 = vector.broadcast %cst_88 : f32 to vector<128x256xf32>
      %386 = arith.select %382, %384, %385 : vector<128x256xi1>, vector<128x256xf32>
      %387 = arith.addf %380, %386 : vector<128x256xf32>
      %388 = vector.broadcast %183 : vector<1x256xi32> to vector<128x256xi32>
      %389 = arith.cmpi eq, %374, %388 : vector<128x256xi32>
      %cst_89 = arith.constant 0.000000e+00 : f32
      %390 = vector.shape_cast %181 : vector<1x256xf32> to vector<1x256xf32>
      %391 = vector.broadcast %390 : vector<1x256xf32> to vector<128x256xf32>
      %392 = vector.broadcast %cst_89 : f32 to vector<128x256xf32>
      %393 = arith.select %389, %391, %392 : vector<128x256xi1>, vector<128x256xf32>
      %394 = arith.addf %387, %393 : vector<128x256xf32>
      %395 = vector.broadcast %189 : vector<1x256xi32> to vector<128x256xi32>
      %396 = arith.cmpi eq, %374, %395 : vector<128x256xi32>
      %cst_90 = arith.constant 0.000000e+00 : f32
      %397 = vector.shape_cast %187 : vector<1x256xf32> to vector<1x256xf32>
      %398 = vector.broadcast %397 : vector<1x256xf32> to vector<128x256xf32>
      %399 = vector.broadcast %cst_90 : f32 to vector<128x256xf32>
      %400 = arith.select %396, %398, %399 : vector<128x256xi1>, vector<128x256xf32>
      %401 = arith.addf %394, %400 : vector<128x256xf32>
      %402 = vector.broadcast %195 : vector<1x256xi32> to vector<128x256xi32>
      %403 = arith.cmpi eq, %374, %402 : vector<128x256xi32>
      %cst_91 = arith.constant 0.000000e+00 : f32
      %404 = vector.shape_cast %193 : vector<1x256xf32> to vector<1x256xf32>
      %405 = vector.broadcast %404 : vector<1x256xf32> to vector<128x256xf32>
      %406 = vector.broadcast %cst_91 : f32 to vector<128x256xf32>
      %407 = arith.select %403, %405, %406 : vector<128x256xi1>, vector<128x256xf32>
      %408 = arith.addf %401, %407 : vector<128x256xf32>
      %409 = vector.broadcast %201 : vector<1x256xi32> to vector<128x256xi32>
      %410 = arith.cmpi eq, %374, %409 : vector<128x256xi32>
      %cst_92 = arith.constant 0.000000e+00 : f32
      %411 = vector.shape_cast %199 : vector<1x256xf32> to vector<1x256xf32>
      %412 = vector.broadcast %411 : vector<1x256xf32> to vector<128x256xf32>
      %413 = vector.broadcast %cst_92 : f32 to vector<128x256xf32>
      %414 = arith.select %410, %412, %413 : vector<128x256xi1>, vector<128x256xf32>
      %415 = arith.addf %408, %414 : vector<128x256xf32>
      %416 = vector.broadcast %207 : vector<1x256xi32> to vector<128x256xi32>
      %417 = arith.cmpi eq, %374, %416 : vector<128x256xi32>
      %cst_93 = arith.constant 0.000000e+00 : f32
      %418 = vector.shape_cast %205 : vector<1x256xf32> to vector<1x256xf32>
      %419 = vector.broadcast %418 : vector<1x256xf32> to vector<128x256xf32>
      %420 = vector.broadcast %cst_93 : f32 to vector<128x256xf32>
      %421 = arith.select %417, %419, %420 : vector<128x256xi1>, vector<128x256xf32>
      %422 = arith.addf %415, %421 : vector<128x256xf32>
      %423 = vector.broadcast %213 : vector<1x256xi32> to vector<128x256xi32>
      %424 = arith.cmpi eq, %374, %423 : vector<128x256xi32>
      %cst_94 = arith.constant 0.000000e+00 : f32
      %425 = vector.shape_cast %211 : vector<1x256xf32> to vector<1x256xf32>
      %426 = vector.broadcast %425 : vector<1x256xf32> to vector<128x256xf32>
      %427 = vector.broadcast %cst_94 : f32 to vector<128x256xf32>
      %428 = arith.select %424, %426, %427 : vector<128x256xi1>, vector<128x256xf32>
      %429 = arith.addf %422, %428 : vector<128x256xf32>
      %c1_i32_95 = arith.constant 1 : i32
      %430 = arith.addi %c1_i32_95, %arg4 : i32
      %431 = arith.index_cast %430 : i32 to index
      %c0_96 = arith.constant 0 : index
      %c0_97 = arith.constant 0 : index
      %432 = vector.load %arg2[%431, %c0_96, %c0_97] : memref<69x8x128xf32, #tpu.memory_space<vmem>>, vector<1x8x128xf32>
      %433 = vector.shape_cast %432 : vector<1x8x128xf32> to vector<8x128xf32>
      %cst_98 = arith.constant dense<0.000000e+00> : vector<8x256xf32>
      %434 = tpu.matmul %433, %429, %cst_98 {dimension_numbers = #tpu.dot_dimension_numbers<[1], [0], [0], [1], [0, 0, 1, 1], [], []>} : vector<8x128xf32>, vector<128x256xf32>, vector<8x256xf32> -> vector<8x256xf32>
      %435 = arith.addf %arg5, %434 : vector<8x256xf32>
      scf.yield %435 : vector<8x256xf32>
    }
    %c4_i32_44 = arith.constant 4 : i32
    %cst_45 = arith.constant 1.600000e+01 : f32
    %216 = vector.broadcast %cst_45 : f32 to vector<3x256xf32>
    %217 = arith.mulf %0, %216 : vector<3x256xf32>
    %218 = math.floor %217 : vector<3x256xf32>
    %219 = arith.subf %217, %218 : vector<3x256xf32>
    %220 = arith.fptosi %218 : vector<3x256xf32> to vector<3x256xi32>
    %221 = vector.extract_strided_slice %220 {offsets = [0, 0], sizes = [1, 256], strides = [1, 1]} : vector<3x256xi32> to vector<1x256xi32>
    %c1_i32_46 = arith.constant 1 : i32
    %222 = vector.broadcast %c1_i32_46 : i32 to vector<1x256xi32>
    %223 = arith.addi %221, %222 : vector<1x256xi32>
    %224 = vector.extract_strided_slice %219 {offsets = [0, 0], sizes = [1, 256], strides = [1, 1]} : vector<3x256xf32> to vector<1x256xf32>
    %cst_47 = arith.constant 1.000000e+00 : f32
    %225 = vector.broadcast %cst_47 : f32 to vector<1x256xf32>
    %226 = arith.subf %225, %224 : vector<1x256xf32>
    %227 = vector.extract_strided_slice %220 {offsets = [1, 0], sizes = [1, 256], strides = [1, 1]} : vector<3x256xi32> to vector<1x256xi32>
    %c-1640531535_i32_48 = arith.constant -1640531535 : i32
    %228 = vector.broadcast %c-1640531535_i32_48 : i32 to vector<1x256xi32>
    %229 = arith.muli %227, %228 : vector<1x256xi32>
    %c-1640531535_i32_49 = arith.constant -1640531535 : i32
    %230 = vector.broadcast %c-1640531535_i32_49 : i32 to vector<1x256xi32>
    %231 = arith.addi %229, %230 : vector<1x256xi32>
    %232 = vector.extract_strided_slice %219 {offsets = [1, 0], sizes = [1, 256], strides = [1, 1]} : vector<3x256xf32> to vector<1x256xf32>
    %cst_50 = arith.constant 1.000000e+00 : f32
    %233 = vector.broadcast %cst_50 : f32 to vector<1x256xf32>
    %234 = arith.subf %233, %232 : vector<1x256xf32>
    %235 = vector.extract_strided_slice %220 {offsets = [2, 0], sizes = [1, 256], strides = [1, 1]} : vector<3x256xi32> to vector<1x256xi32>
    %c805459861_i32_51 = arith.constant 805459861 : i32
    %236 = vector.broadcast %c805459861_i32_51 : i32 to vector<1x256xi32>
    %237 = arith.muli %235, %236 : vector<1x256xi32>
    %c805459861_i32_52 = arith.constant 805459861 : i32
    %238 = vector.broadcast %c805459861_i32_52 : i32 to vector<1x256xi32>
    %239 = arith.addi %237, %238 : vector<1x256xi32>
    %240 = vector.extract_strided_slice %219 {offsets = [2, 0], sizes = [1, 256], strides = [1, 1]} : vector<3x256xf32> to vector<1x256xf32>
    %cst_53 = arith.constant 1.000000e+00 : f32
    %241 = vector.broadcast %cst_53 : f32 to vector<1x256xf32>
    %242 = arith.subf %241, %240 : vector<1x256xf32>
    %243 = arith.xori %221, %229 : vector<1x256xi32>
    %244 = arith.mulf %226, %234 : vector<1x256xf32>
    %245 = arith.xori %243, %237 : vector<1x256xi32>
    %246 = arith.mulf %244, %242 : vector<1x256xf32>
    %c4095_i32 = arith.constant 4095 : i32
    %247 = vector.broadcast %c4095_i32 : i32 to vector<1x256xi32>
    %248 = arith.andi %245, %247 : vector<1x256xi32>
    %249 = arith.xori %223, %229 : vector<1x256xi32>
    %250 = arith.mulf %224, %234 : vector<1x256xf32>
    %251 = arith.xori %249, %237 : vector<1x256xi32>
    %252 = arith.mulf %250, %242 : vector<1x256xf32>
    %c4095_i32_54 = arith.constant 4095 : i32
    %253 = vector.broadcast %c4095_i32_54 : i32 to vector<1x256xi32>
    %254 = arith.andi %251, %253 : vector<1x256xi32>
    %255 = arith.xori %221, %231 : vector<1x256xi32>
    %256 = arith.mulf %226, %232 : vector<1x256xf32>
    %257 = arith.xori %255, %237 : vector<1x256xi32>
    %258 = arith.mulf %256, %242 : vector<1x256xf32>
    %c4095_i32_55 = arith.constant 4095 : i32
    %259 = vector.broadcast %c4095_i32_55 : i32 to vector<1x256xi32>
    %260 = arith.andi %257, %259 : vector<1x256xi32>
    %261 = arith.xori %223, %231 : vector<1x256xi32>
    %262 = arith.mulf %224, %232 : vector<1x256xf32>
    %263 = arith.xori %261, %237 : vector<1x256xi32>
    %264 = arith.mulf %262, %242 : vector<1x256xf32>
    %c4095_i32_56 = arith.constant 4095 : i32
    %265 = vector.broadcast %c4095_i32_56 : i32 to vector<1x256xi32>
    %266 = arith.andi %263, %265 : vector<1x256xi32>
    %267 = arith.xori %221, %229 : vector<1x256xi32>
    %268 = arith.mulf %226, %234 : vector<1x256xf32>
    %269 = arith.xori %267, %239 : vector<1x256xi32>
    %270 = arith.mulf %268, %240 : vector<1x256xf32>
    %c4095_i32_57 = arith.constant 4095 : i32
    %271 = vector.broadcast %c4095_i32_57 : i32 to vector<1x256xi32>
    %272 = arith.andi %269, %271 : vector<1x256xi32>
    %273 = arith.xori %223, %229 : vector<1x256xi32>
    %274 = arith.mulf %224, %234 : vector<1x256xf32>
    %275 = arith.xori %273, %239 : vector<1x256xi32>
    %276 = arith.mulf %274, %240 : vector<1x256xf32>
    %c4095_i32_58 = arith.constant 4095 : i32
    %277 = vector.broadcast %c4095_i32_58 : i32 to vector<1x256xi32>
    %278 = arith.andi %275, %277 : vector<1x256xi32>
    %279 = arith.xori %221, %231 : vector<1x256xi32>
    %280 = arith.mulf %226, %232 : vector<1x256xf32>
    %281 = arith.xori %279, %239 : vector<1x256xi32>
    %282 = arith.mulf %280, %240 : vector<1x256xf32>
    %c4095_i32_59 = arith.constant 4095 : i32
    %283 = vector.broadcast %c4095_i32_59 : i32 to vector<1x256xi32>
    %284 = arith.andi %281, %283 : vector<1x256xi32>
    %285 = arith.xori %223, %231 : vector<1x256xi32>
    %286 = arith.mulf %224, %232 : vector<1x256xf32>
    %287 = arith.xori %285, %239 : vector<1x256xi32>
    %288 = arith.mulf %286, %240 : vector<1x256xf32>
    %c4095_i32_60 = arith.constant 4095 : i32
    %289 = vector.broadcast %c4095_i32_60 : i32 to vector<1x256xi32>
    %290 = arith.andi %287, %289 : vector<1x256xi32>
    %c0_i32_61 = arith.constant 0 : i32
    %c32_i32 = arith.constant 32 : i32
    %291 = arith.addi %c0_i32_61, %c32_i32 : i32
    %c1_i32_62 = arith.constant 1 : i32
    %292 = scf.for %arg4 = %c0_i32_61 to %291 step %c1_i32_62 iter_args(%arg5 = %215) -> (vector<8x256xf32>)  : i32 {
      %c128_i32 = arith.constant 128 : i32
      %371 = arith.muli %arg4, %c128_i32 : i32
      %372 = tpu.iota {dimensions = array<i32: 0>} : vector<128x256xi32>
      %373 = vector.broadcast %371 : i32 to vector<128x256xi32>
      %374 = arith.addi %372, %373 : vector<128x256xi32>
      %375 = vector.broadcast %248 : vector<1x256xi32> to vector<128x256xi32>
      %376 = arith.cmpi eq, %374, %375 : vector<128x256xi32>
      %cst_87 = arith.constant 0.000000e+00 : f32
      %377 = vector.shape_cast %246 : vector<1x256xf32> to vector<1x256xf32>
      %378 = vector.broadcast %377 : vector<1x256xf32> to vector<128x256xf32>
      %379 = vector.broadcast %cst_87 : f32 to vector<128x256xf32>
      %380 = arith.select %376, %378, %379 : vector<128x256xi1>, vector<128x256xf32>
      %381 = vector.broadcast %254 : vector<1x256xi32> to vector<128x256xi32>
      %382 = arith.cmpi eq, %374, %381 : vector<128x256xi32>
      %cst_88 = arith.constant 0.000000e+00 : f32
      %383 = vector.shape_cast %252 : vector<1x256xf32> to vector<1x256xf32>
      %384 = vector.broadcast %383 : vector<1x256xf32> to vector<128x256xf32>
      %385 = vector.broadcast %cst_88 : f32 to vector<128x256xf32>
      %386 = arith.select %382, %384, %385 : vector<128x256xi1>, vector<128x256xf32>
      %387 = arith.addf %380, %386 : vector<128x256xf32>
      %388 = vector.broadcast %260 : vector<1x256xi32> to vector<128x256xi32>
      %389 = arith.cmpi eq, %374, %388 : vector<128x256xi32>
      %cst_89 = arith.constant 0.000000e+00 : f32
      %390 = vector.shape_cast %258 : vector<1x256xf32> to vector<1x256xf32>
      %391 = vector.broadcast %390 : vector<1x256xf32> to vector<128x256xf32>
      %392 = vector.broadcast %cst_89 : f32 to vector<128x256xf32>
      %393 = arith.select %389, %391, %392 : vector<128x256xi1>, vector<128x256xf32>
      %394 = arith.addf %387, %393 : vector<128x256xf32>
      %395 = vector.broadcast %266 : vector<1x256xi32> to vector<128x256xi32>
      %396 = arith.cmpi eq, %374, %395 : vector<128x256xi32>
      %cst_90 = arith.constant 0.000000e+00 : f32
      %397 = vector.shape_cast %264 : vector<1x256xf32> to vector<1x256xf32>
      %398 = vector.broadcast %397 : vector<1x256xf32> to vector<128x256xf32>
      %399 = vector.broadcast %cst_90 : f32 to vector<128x256xf32>
      %400 = arith.select %396, %398, %399 : vector<128x256xi1>, vector<128x256xf32>
      %401 = arith.addf %394, %400 : vector<128x256xf32>
      %402 = vector.broadcast %272 : vector<1x256xi32> to vector<128x256xi32>
      %403 = arith.cmpi eq, %374, %402 : vector<128x256xi32>
      %cst_91 = arith.constant 0.000000e+00 : f32
      %404 = vector.shape_cast %270 : vector<1x256xf32> to vector<1x256xf32>
      %405 = vector.broadcast %404 : vector<1x256xf32> to vector<128x256xf32>
      %406 = vector.broadcast %cst_91 : f32 to vector<128x256xf32>
      %407 = arith.select %403, %405, %406 : vector<128x256xi1>, vector<128x256xf32>
      %408 = arith.addf %401, %407 : vector<128x256xf32>
      %409 = vector.broadcast %278 : vector<1x256xi32> to vector<128x256xi32>
      %410 = arith.cmpi eq, %374, %409 : vector<128x256xi32>
      %cst_92 = arith.constant 0.000000e+00 : f32
      %411 = vector.shape_cast %276 : vector<1x256xf32> to vector<1x256xf32>
      %412 = vector.broadcast %411 : vector<1x256xf32> to vector<128x256xf32>
      %413 = vector.broadcast %cst_92 : f32 to vector<128x256xf32>
      %414 = arith.select %410, %412, %413 : vector<128x256xi1>, vector<128x256xf32>
      %415 = arith.addf %408, %414 : vector<128x256xf32>
      %416 = vector.broadcast %284 : vector<1x256xi32> to vector<128x256xi32>
      %417 = arith.cmpi eq, %374, %416 : vector<128x256xi32>
      %cst_93 = arith.constant 0.000000e+00 : f32
      %418 = vector.shape_cast %282 : vector<1x256xf32> to vector<1x256xf32>
      %419 = vector.broadcast %418 : vector<1x256xf32> to vector<128x256xf32>
      %420 = vector.broadcast %cst_93 : f32 to vector<128x256xf32>
      %421 = arith.select %417, %419, %420 : vector<128x256xi1>, vector<128x256xf32>
      %422 = arith.addf %415, %421 : vector<128x256xf32>
      %423 = vector.broadcast %290 : vector<1x256xi32> to vector<128x256xi32>
      %424 = arith.cmpi eq, %374, %423 : vector<128x256xi32>
      %cst_94 = arith.constant 0.000000e+00 : f32
      %425 = vector.shape_cast %288 : vector<1x256xf32> to vector<1x256xf32>
      %426 = vector.broadcast %425 : vector<1x256xf32> to vector<128x256xf32>
      %427 = vector.broadcast %cst_94 : f32 to vector<128x256xf32>
      %428 = arith.select %424, %426, %427 : vector<128x256xi1>, vector<128x256xf32>
      %429 = arith.addf %422, %428 : vector<128x256xf32>
      %c5_i32 = arith.constant 5 : i32
      %430 = arith.addi %c5_i32, %arg4 : i32
      %431 = arith.index_cast %430 : i32 to index
      %c0_95 = arith.constant 0 : index
      %c0_96 = arith.constant 0 : index
      %432 = vector.load %arg2[%431, %c0_95, %c0_96] : memref<69x8x128xf32, #tpu.memory_space<vmem>>, vector<1x8x128xf32>
      %433 = vector.shape_cast %432 : vector<1x8x128xf32> to vector<8x128xf32>
      %cst_97 = arith.constant dense<0.000000e+00> : vector<8x256xf32>
      %434 = tpu.matmul %433, %429, %cst_97 {dimension_numbers = #tpu.dot_dimension_numbers<[1], [0], [0], [1], [0, 0, 1, 1], [], []>} : vector<8x128xf32>, vector<128x256xf32>, vector<8x256xf32> -> vector<8x256xf32>
      %435 = arith.addf %arg5, %434 : vector<8x256xf32>
      scf.yield %435 : vector<8x256xf32>
    }
    %c32_i32_63 = arith.constant 32 : i32
    %cst_64 = arith.constant 3.200000e+01 : f32
    %293 = vector.broadcast %cst_64 : f32 to vector<3x256xf32>
    %294 = arith.mulf %0, %293 : vector<3x256xf32>
    %295 = math.floor %294 : vector<3x256xf32>
    %296 = arith.subf %294, %295 : vector<3x256xf32>
    %297 = arith.fptosi %295 : vector<3x256xf32> to vector<3x256xi32>
    %298 = vector.extract_strided_slice %297 {offsets = [0, 0], sizes = [1, 256], strides = [1, 1]} : vector<3x256xi32> to vector<1x256xi32>
    %c1_i32_65 = arith.constant 1 : i32
    %299 = vector.broadcast %c1_i32_65 : i32 to vector<1x256xi32>
    %300 = arith.addi %298, %299 : vector<1x256xi32>
    %301 = vector.extract_strided_slice %296 {offsets = [0, 0], sizes = [1, 256], strides = [1, 1]} : vector<3x256xf32> to vector<1x256xf32>
    %cst_66 = arith.constant 1.000000e+00 : f32
    %302 = vector.broadcast %cst_66 : f32 to vector<1x256xf32>
    %303 = arith.subf %302, %301 : vector<1x256xf32>
    %304 = vector.extract_strided_slice %297 {offsets = [1, 0], sizes = [1, 256], strides = [1, 1]} : vector<3x256xi32> to vector<1x256xi32>
    %c-1640531535_i32_67 = arith.constant -1640531535 : i32
    %305 = vector.broadcast %c-1640531535_i32_67 : i32 to vector<1x256xi32>
    %306 = arith.muli %304, %305 : vector<1x256xi32>
    %c-1640531535_i32_68 = arith.constant -1640531535 : i32
    %307 = vector.broadcast %c-1640531535_i32_68 : i32 to vector<1x256xi32>
    %308 = arith.addi %306, %307 : vector<1x256xi32>
    %309 = vector.extract_strided_slice %296 {offsets = [1, 0], sizes = [1, 256], strides = [1, 1]} : vector<3x256xf32> to vector<1x256xf32>
    %cst_69 = arith.constant 1.000000e+00 : f32
    %310 = vector.broadcast %cst_69 : f32 to vector<1x256xf32>
    %311 = arith.subf %310, %309 : vector<1x256xf32>
    %312 = vector.extract_strided_slice %297 {offsets = [2, 0], sizes = [1, 256], strides = [1, 1]} : vector<3x256xi32> to vector<1x256xi32>
    %c805459861_i32_70 = arith.constant 805459861 : i32
    %313 = vector.broadcast %c805459861_i32_70 : i32 to vector<1x256xi32>
    %314 = arith.muli %312, %313 : vector<1x256xi32>
    %c805459861_i32_71 = arith.constant 805459861 : i32
    %315 = vector.broadcast %c805459861_i32_71 : i32 to vector<1x256xi32>
    %316 = arith.addi %314, %315 : vector<1x256xi32>
    %317 = vector.extract_strided_slice %296 {offsets = [2, 0], sizes = [1, 256], strides = [1, 1]} : vector<3x256xf32> to vector<1x256xf32>
    %cst_72 = arith.constant 1.000000e+00 : f32
    %318 = vector.broadcast %cst_72 : f32 to vector<1x256xf32>
    %319 = arith.subf %318, %317 : vector<1x256xf32>
    %320 = arith.xori %298, %306 : vector<1x256xi32>
    %321 = arith.mulf %303, %311 : vector<1x256xf32>
    %322 = arith.xori %320, %314 : vector<1x256xi32>
    %323 = arith.mulf %321, %319 : vector<1x256xf32>
    %c4095_i32_73 = arith.constant 4095 : i32
    %324 = vector.broadcast %c4095_i32_73 : i32 to vector<1x256xi32>
    %325 = arith.andi %322, %324 : vector<1x256xi32>
    %326 = arith.xori %300, %306 : vector<1x256xi32>
    %327 = arith.mulf %301, %311 : vector<1x256xf32>
    %328 = arith.xori %326, %314 : vector<1x256xi32>
    %329 = arith.mulf %327, %319 : vector<1x256xf32>
    %c4095_i32_74 = arith.constant 4095 : i32
    %330 = vector.broadcast %c4095_i32_74 : i32 to vector<1x256xi32>
    %331 = arith.andi %328, %330 : vector<1x256xi32>
    %332 = arith.xori %298, %308 : vector<1x256xi32>
    %333 = arith.mulf %303, %309 : vector<1x256xf32>
    %334 = arith.xori %332, %314 : vector<1x256xi32>
    %335 = arith.mulf %333, %319 : vector<1x256xf32>
    %c4095_i32_75 = arith.constant 4095 : i32
    %336 = vector.broadcast %c4095_i32_75 : i32 to vector<1x256xi32>
    %337 = arith.andi %334, %336 : vector<1x256xi32>
    %338 = arith.xori %300, %308 : vector<1x256xi32>
    %339 = arith.mulf %301, %309 : vector<1x256xf32>
    %340 = arith.xori %338, %314 : vector<1x256xi32>
    %341 = arith.mulf %339, %319 : vector<1x256xf32>
    %c4095_i32_76 = arith.constant 4095 : i32
    %342 = vector.broadcast %c4095_i32_76 : i32 to vector<1x256xi32>
    %343 = arith.andi %340, %342 : vector<1x256xi32>
    %344 = arith.xori %298, %306 : vector<1x256xi32>
    %345 = arith.mulf %303, %311 : vector<1x256xf32>
    %346 = arith.xori %344, %316 : vector<1x256xi32>
    %347 = arith.mulf %345, %317 : vector<1x256xf32>
    %c4095_i32_77 = arith.constant 4095 : i32
    %348 = vector.broadcast %c4095_i32_77 : i32 to vector<1x256xi32>
    %349 = arith.andi %346, %348 : vector<1x256xi32>
    %350 = arith.xori %300, %306 : vector<1x256xi32>
    %351 = arith.mulf %301, %311 : vector<1x256xf32>
    %352 = arith.xori %350, %316 : vector<1x256xi32>
    %353 = arith.mulf %351, %317 : vector<1x256xf32>
    %c4095_i32_78 = arith.constant 4095 : i32
    %354 = vector.broadcast %c4095_i32_78 : i32 to vector<1x256xi32>
    %355 = arith.andi %352, %354 : vector<1x256xi32>
    %356 = arith.xori %298, %308 : vector<1x256xi32>
    %357 = arith.mulf %303, %309 : vector<1x256xf32>
    %358 = arith.xori %356, %316 : vector<1x256xi32>
    %359 = arith.mulf %357, %317 : vector<1x256xf32>
    %c4095_i32_79 = arith.constant 4095 : i32
    %360 = vector.broadcast %c4095_i32_79 : i32 to vector<1x256xi32>
    %361 = arith.andi %358, %360 : vector<1x256xi32>
    %362 = arith.xori %300, %308 : vector<1x256xi32>
    %363 = arith.mulf %301, %309 : vector<1x256xf32>
    %364 = arith.xori %362, %316 : vector<1x256xi32>
    %365 = arith.mulf %363, %317 : vector<1x256xf32>
    %c4095_i32_80 = arith.constant 4095 : i32
    %366 = vector.broadcast %c4095_i32_80 : i32 to vector<1x256xi32>
    %367 = arith.andi %364, %366 : vector<1x256xi32>
    %c0_i32_81 = arith.constant 0 : i32
    %c32_i32_82 = arith.constant 32 : i32
    %368 = arith.addi %c0_i32_81, %c32_i32_82 : i32
    %c1_i32_83 = arith.constant 1 : i32
    %369 = scf.for %arg4 = %c0_i32_81 to %368 step %c1_i32_83 iter_args(%arg5 = %292) -> (vector<8x256xf32>)  : i32 {
      %c128_i32 = arith.constant 128 : i32
      %371 = arith.muli %arg4, %c128_i32 : i32
      %372 = tpu.iota {dimensions = array<i32: 0>} : vector<128x256xi32>
      %373 = vector.broadcast %371 : i32 to vector<128x256xi32>
      %374 = arith.addi %372, %373 : vector<128x256xi32>
      %375 = vector.broadcast %325 : vector<1x256xi32> to vector<128x256xi32>
      %376 = arith.cmpi eq, %374, %375 : vector<128x256xi32>
      %cst_87 = arith.constant 0.000000e+00 : f32
      %377 = vector.shape_cast %323 : vector<1x256xf32> to vector<1x256xf32>
      %378 = vector.broadcast %377 : vector<1x256xf32> to vector<128x256xf32>
      %379 = vector.broadcast %cst_87 : f32 to vector<128x256xf32>
      %380 = arith.select %376, %378, %379 : vector<128x256xi1>, vector<128x256xf32>
      %381 = vector.broadcast %331 : vector<1x256xi32> to vector<128x256xi32>
      %382 = arith.cmpi eq, %374, %381 : vector<128x256xi32>
      %cst_88 = arith.constant 0.000000e+00 : f32
      %383 = vector.shape_cast %329 : vector<1x256xf32> to vector<1x256xf32>
      %384 = vector.broadcast %383 : vector<1x256xf32> to vector<128x256xf32>
      %385 = vector.broadcast %cst_88 : f32 to vector<128x256xf32>
      %386 = arith.select %382, %384, %385 : vector<128x256xi1>, vector<128x256xf32>
      %387 = arith.addf %380, %386 : vector<128x256xf32>
      %388 = vector.broadcast %337 : vector<1x256xi32> to vector<128x256xi32>
      %389 = arith.cmpi eq, %374, %388 : vector<128x256xi32>
      %cst_89 = arith.constant 0.000000e+00 : f32
      %390 = vector.shape_cast %335 : vector<1x256xf32> to vector<1x256xf32>
      %391 = vector.broadcast %390 : vector<1x256xf32> to vector<128x256xf32>
      %392 = vector.broadcast %cst_89 : f32 to vector<128x256xf32>
      %393 = arith.select %389, %391, %392 : vector<128x256xi1>, vector<128x256xf32>
      %394 = arith.addf %387, %393 : vector<128x256xf32>
      %395 = vector.broadcast %343 : vector<1x256xi32> to vector<128x256xi32>
      %396 = arith.cmpi eq, %374, %395 : vector<128x256xi32>
      %cst_90 = arith.constant 0.000000e+00 : f32
      %397 = vector.shape_cast %341 : vector<1x256xf32> to vector<1x256xf32>
      %398 = vector.broadcast %397 : vector<1x256xf32> to vector<128x256xf32>
      %399 = vector.broadcast %cst_90 : f32 to vector<128x256xf32>
      %400 = arith.select %396, %398, %399 : vector<128x256xi1>, vector<128x256xf32>
      %401 = arith.addf %394, %400 : vector<128x256xf32>
      %402 = vector.broadcast %349 : vector<1x256xi32> to vector<128x256xi32>
      %403 = arith.cmpi eq, %374, %402 : vector<128x256xi32>
      %cst_91 = arith.constant 0.000000e+00 : f32
      %404 = vector.shape_cast %347 : vector<1x256xf32> to vector<1x256xf32>
      %405 = vector.broadcast %404 : vector<1x256xf32> to vector<128x256xf32>
      %406 = vector.broadcast %cst_91 : f32 to vector<128x256xf32>
      %407 = arith.select %403, %405, %406 : vector<128x256xi1>, vector<128x256xf32>
      %408 = arith.addf %401, %407 : vector<128x256xf32>
      %409 = vector.broadcast %355 : vector<1x256xi32> to vector<128x256xi32>
      %410 = arith.cmpi eq, %374, %409 : vector<128x256xi32>
      %cst_92 = arith.constant 0.000000e+00 : f32
      %411 = vector.shape_cast %353 : vector<1x256xf32> to vector<1x256xf32>
      %412 = vector.broadcast %411 : vector<1x256xf32> to vector<128x256xf32>
      %413 = vector.broadcast %cst_92 : f32 to vector<128x256xf32>
      %414 = arith.select %410, %412, %413 : vector<128x256xi1>, vector<128x256xf32>
      %415 = arith.addf %408, %414 : vector<128x256xf32>
      %416 = vector.broadcast %361 : vector<1x256xi32> to vector<128x256xi32>
      %417 = arith.cmpi eq, %374, %416 : vector<128x256xi32>
      %cst_93 = arith.constant 0.000000e+00 : f32
      %418 = vector.shape_cast %359 : vector<1x256xf32> to vector<1x256xf32>
      %419 = vector.broadcast %418 : vector<1x256xf32> to vector<128x256xf32>
      %420 = vector.broadcast %cst_93 : f32 to vector<128x256xf32>
      %421 = arith.select %417, %419, %420 : vector<128x256xi1>, vector<128x256xf32>
      %422 = arith.addf %415, %421 : vector<128x256xf32>
      %423 = vector.broadcast %367 : vector<1x256xi32> to vector<128x256xi32>
      %424 = arith.cmpi eq, %374, %423 : vector<128x256xi32>
      %cst_94 = arith.constant 0.000000e+00 : f32
      %425 = vector.shape_cast %365 : vector<1x256xf32> to vector<1x256xf32>
      %426 = vector.broadcast %425 : vector<1x256xf32> to vector<128x256xf32>
      %427 = vector.broadcast %cst_94 : f32 to vector<128x256xf32>
      %428 = arith.select %424, %426, %427 : vector<128x256xi1>, vector<128x256xf32>
      %429 = arith.addf %422, %428 : vector<128x256xf32>
      %c37_i32 = arith.constant 37 : i32
      %430 = arith.addi %c37_i32, %arg4 : i32
      %431 = arith.index_cast %430 : i32 to index
      %c0_95 = arith.constant 0 : index
      %c0_96 = arith.constant 0 : index
      %432 = vector.load %arg2[%431, %c0_95, %c0_96] : memref<69x8x128xf32, #tpu.memory_space<vmem>>, vector<1x8x128xf32>
      %433 = vector.shape_cast %432 : vector<1x8x128xf32> to vector<8x128xf32>
      %cst_97 = arith.constant dense<0.000000e+00> : vector<8x256xf32>
      %434 = tpu.matmul %433, %429, %cst_97 {dimension_numbers = #tpu.dot_dimension_numbers<[1], [0], [0], [1], [0, 0, 1, 1], [], []>} : vector<8x128xf32>, vector<128x256xf32>, vector<8x256xf32> -> vector<8x256xf32>
      %435 = arith.addf %arg5, %434 : vector<8x256xf32>
      scf.yield %435 : vector<8x256xf32>
    }
    %c32_i32_84 = arith.constant 32 : i32
    %c0_85 = arith.constant 0 : index
    %c0_86 = arith.constant 0 : index
    %370 = vector.load %arg3[%c0_85, %c0_86] : memref<8x256xf32, #tpu.memory_space<vmem>>, vector<8x256xf32>
    tpu.vector_store %arg3[%c0_85, %c0_86], %369 {strides = array<i32>} : memref<8x256xf32, #tpu.memory_space<vmem>>, vector<8x256xf32>,
    return
  }
  func.func @transform_0(%arg0: i32) -> (i32, i32) {
    %c0_i32 = arith.constant 0 : i32
    %c0_i32_0 = arith.constant 0 : i32
    return %c0_i32, %arg0 : i32, i32
  }
  func.func @transform_1(%arg0: i32) -> (i32, i32, i32) {
    %c0_i32 = arith.constant 0 : i32
    %c0_i32_0 = arith.constant 0 : i32
    %c0_i32_1 = arith.constant 0 : i32
    %c0_i32_2 = arith.constant 0 : i32
    return %c0_i32, %c0_i32_0, %c0_i32_1 : i32, i32, i32
  }
  func.func @transform_2(%arg0: i32) -> (i32, i32) {
    %c0_i32 = arith.constant 0 : i32
    %c0_i32_0 = arith.constant 0 : i32
    return %c0_i32, %arg0 : i32, i32
  }
}

</mosaic_0001>

<bundles_post_ra>
// kernel: tpu_custom_call.1
= control target key start
LH: loop header
LB: loop body
LE: loop exit
PB: predicated region body
PF: predicated region fallthrough
CT: control target
= control target key end

     0   :  { %7 = vsyncpa [#allocation3], 0  ;;  %s9946_s0 = inlined_call_operand.hbm [shape: f32[3,512], index: 0, kind: input, shape index: {}]   ;;  %s9947_s1 = inlined_call_operand.hbm [shape: f32[69,8,128], index: 1, kind: input, shape index: {}]   ;;  %s9948_s2 = inlined_call_operand.hbm [shape: f32[8,512], index: 2, kind: output, shape index: {}]  }
   0x1   :  { %9 = vsyncpa [#allocation3 + $0x1], 0 }
   0x2   :  { %10 = vsyncpa [#allocation6], 0 }
   0x3   :  { %11 = vsyncpa [#allocation4], 0 }
   0x4   :  { %13 = vsyncpa [#allocation4 + $0x1], 0  ;;  %s5559_s9 = smov 0   ;;  %s5561_s10 = smov 0  }
   0x5   :  { %s5563_s11 = smov 0   ;;  %s5565_s12 = smov 0  }
   0x6 LB: > { %s5580_s13 = sadd.s32 4294967295, %s5497_s12   ;;  %s5035_s14 = sadd.s32 4294967294, %s5497_s12   ;;  %s5497_s12 = sphi %s5565_s12, %s10211_s12   ;;  %s5493_s11 = sphi %s5563_s11, %s10210_s11   ;;  %s5489_s10 = sphi %s5561_s10, %s10209_s10   ;;  %s5485_s9 = sphi %s5559_s9, %s10208_s9  }
   0x7   : > { %p39_p0 = scmp.ne.s32.totalorder %s5489_s10, %s5485_s9  ;;  %p9949_p1 = scmp.eq.s32.totalorder %s5580_s13, 0 }
   0x8   : > { %p90_p3 = scmp.eq.s32.totalorder %s5035_s14, 1  ;;  %p5036_p5 = scmp.ge.s32.totalorder %s5497_s12, 1 }
   0x9   : > { %p5589_p4 = por %p9949_p1, %p39_p0  ;;  %p97_p7 = scmp.lt.s32.totalorder %s5497_s12, 3 }
   0xa   : > { %p5594_p6 = por %p90_p3, %p39_p0  ;;  %s5535_s18 = smov [#allocation5]  }
   0xb   : > { %s10028_s15 = scalar_select %p5589_p4, 1, 0 }
   0xc   : > { %s10029_s16 = scalar_select %p5594_p6, 1, 0 }
   0xd   : > { %p5599_p8 = pnand %p5036_p5, %p97_p7  ;;  %s109_s19 = sshll.u32 %s5535_s18, 4  ;;  %s5603_s19 = int_to_ptr.vmem [resolvable:$true] %s109_s19 }
   0xe   : > { %s5615_s21 = sadd.s32 1, %s5497_s12   ;;  %s26_s22 = sadd.s32 1, %s5493_s11 }
   0xf   : > { %s10030_s17 = scalar_select %p5599_p8, 1, 0 }
  0x10   : > { %p5206_p9 = pneg %p5599_p8  ;;  %s23_s23 = ssub.s32 %s5497_s12, %s5615_s21 }
  0x11   : > { %s5333_s26 = scalar_lea.hbm %s9947_s1, 8832 }
  0x12   : > { %p5610_p11 = pnand %p5206_p9, %p9949_p1  ;;  %p5334_p12 = scmp.ne.s32.totalorder %s9947_s1, %s5333_s26 }
  0x13   : > { %p5340_p5 = scmp.lt.u32.totalorder %s5333_s26, %s9947_s1 }
  0x14   : > { %p5335_p13 = pneg %p5610_p11 }
  0x16   : > { %p5336_p0 = pnand %p5335_p13, %p5334_p12 }
  0x18   : > { %p5337_p3 = pneg %p5336_p0 }
  0x1a   : > { %p5342_p7 = pnand %p5340_p5, %p5337_p3 }
  0x1c   : > { %5345 = shalt.err (!%p5342_p7)
}
  0x1d   : > { %s5346_s3 = scalar_lea.vmem %s5603_s19, 8832  ;;  %p5354_p2 = scmp.lt.s32.totalorder %s5603_s19, %s5603_s19 }
  0x1e   : > { %p5347_p9 = scmp.ne.s32.totalorder %s5603_s19, %s5346_s3  ;;  %p5355_p6 = scmp.lt.s32.totalorder %s5346_s3, %s5346_s3 }
  0x20   : > { %p5349_p10 = pnand %p5347_p9, %p5335_p13  ;;  %p5356_p4 = por %p5355_p6, %p5354_p2 }
  0x22   : > { %p5350_p1 = pneg %p5349_p10 }
  0x24   : > { %p5357_p8 = pnand %p5356_p4, %p5350_p1 }
  0x26   : > { %5360 = shalt.err (!%p5357_p8)
}
  0x27   : > { %s5536_s4 = smov 128   ;;  %s5537_s5 = smov 8  }
  0x28   : > { %5209 = dma.hbm_to_vmem [thread:$0]  (!%p5610_p11), %s9947_s1, 8832, %s5603_s19, [#allocation6], %s5536_s4, %s5536_s4, %s5537_s5  }
  0x29   : > { %p24_p2 = scmp.eq.s32.totalorder %s23_s23, 0  ;;  %p33_p1 = scmp.ne.s32.totalorder %s5493_s11, %s5489_s10 }
  0x2a   : > { %p34_p4 = scmp.eq.s32.totalorder %s5497_s12, 0  ;;  %p5219_p6 = scmp.lt.s32.totalorder %s5497_s12, 2 }
  0x2b   : > { %s5646_s8 = scalar_select %p24_p2, %s5493_s11, %s26_s22  }
  0x2c   : > { %p35_p8 = por %p34_p4, %p33_p1  ;;  %p10032_p10 = scmp.eq.s32.totalorder %s5580_s13, 1 }
  0x2d   : > { %s123_s18 = sand.u32 1, %s5493_s11   ;;  %s5060_s24 = sshll.u32 %s5497_s12, 7 }
  0x2e   : > { %p5650_p12 = por %p10032_p10, %p33_p1  ;;  %s5039_s25 = sshll.u32 %s123_s18, 3 }
  0x2f   : > { %s5659_s27 = scalar_lea.hbm %s9946_s0, %s5060_s24  ;;  %s127_s19 = scalar_lea.vmem [#allocation2], %s5039_s25 }
  0x30   : > { %s135_s22 = sshll.u32 %s127_s19, 4  ;;  %p5661_p11 = pnand %p5219_p6, %p35_p8  ;;  %s5665_s22 = int_to_ptr.vmem [resolvable:$true] %s135_s22 }
  0x31   : > { %s124_s28 = scalar_lea.sflag [#allocation3], %s123_s18  ;;  %s5361_s29 = scalar_lea.hbm %s5659_s27, 128 }
  0x32   : > { %p5362_p13 = scmp.ne.s32.totalorder %s5659_s27, %s5361_s29  ;;  %p5363_p0 = pneg %p5661_p11 }
  0x33   : > { %s5366_s4 = scalar_lea.hbm %s9946_s0, 256  ;;  %p5367_p7 = scmp.lt.u32.totalorder %s5659_s27, %s9946_s0 }
  0x34   : > { %p5364_p3 = pnand %p5363_p0, %p5362_p13  ;;  %p5368_p9 = scmp.lt.u32.totalorder %s5366_s4, %s5361_s29 }
  0x35   : > { %p5370_p1 = scmp.lt.u32.totalorder %s5361_s29, %s5659_s27 }
  0x36   : > { %p5365_p5 = pneg %p5364_p3  ;;  %p5369_p2 = por %p5368_p9, %p5367_p7 }
  0x38   : > { %p5371_p4 = por %p5370_p1, %p5369_p2 }
  0x3a   : > { %p5372_p6 = pnand %p5371_p4, %p5365_p5 }
  0x3c   : > { %5375 = shalt.err (!%p5372_p6)
}
  0x3d   : > { %s5376_s7 = scalar_lea.vmem %s5665_s22, 128  ;;  %s5538_s18 = smov [#allocation2]  }
  0x3e   : > { %p5377_p8 = scmp.ne.s32.totalorder %s5665_s22, %s5376_s7  ;;  %s5381_s24 = sshll.u32 %s5538_s18, 4  ;;  %s5382_s24 = int_to_ptr.vmem [resolvable:$false] %s5381_s24 }
  0x3f   : > { %s5383_s25 = scalar_lea.vmem %s5382_s24, 256  ;;  %p5384_p3 = scmp.lt.s32.totalorder %s5665_s22, %s5382_s24 }
  0x40   : > { %p5379_p10 = pnand %p5377_p8, %p5363_p0  ;;  %p5385_p7 = scmp.lt.s32.totalorder %s5383_s25, %s5376_s7 }
  0x42   : > { %p5380_p13 = pneg %p5379_p10  ;;  %p5386_p9 = por %p5385_p7, %p5384_p3 }
  0x44   : > { %p5387_p2 = pnand %p5386_p9, %p5380_p13 }
  0x46   : > { %5390 = shalt.err (!%p5387_p2)
}
  0x47   : > { %5213 = dma.hbm_to_vmem [thread:$0]  (!%p5661_p11), %s5659_s27, 128, %s5665_s22, %s124_s28  }
  0x48   : > { %p10035_p5 = scmp.ne.s32.totalorder %s10030_s17, 0 }
  0x4a   : > { %144 = sbr.rel (%p10035_p5) target bundleno = 1907 (0x773), region = 28 }
  0x51   : > { %s5695_s20 = sand.u32 1, %s5489_s10   ;;  %p10036_p0 = scmp.ne.s32.totalorder %s10028_s15, 0 }
  0x52   : > { %s5043_s26 = sshll.u32 %s5695_s20, 3  ;;  %s147_s19 = scalar_lea.sflag [#allocation3], %s5695_s20 }
  0x53   : > { %s150_s29 = scalar_lea.vmem [#allocation2], %s5043_s26 }
  0x54   : > { %5472 = dma.done.wait (%p10036_p0), %s147_s19, 128  }
  0x55   : > { %5474 = vsyncadd (%p10036_p0), %s147_s19, 4294967168  ;;  %p10037_p1 = scmp.eq.s32.totalorder %s5580_s13, 0 }
  0x57   : > { %5476 = dma.done.wait (%p10037_p1), [#allocation6], 8832   ;;  %p10038_p11 = pmov %p10037_p1 }
  0x58   : > { %s5045_s17 = sshll.u32 %s5695_s20, 4  ;;  %v242_v0 = vlaneseq  ;;  %v5710_v2 = vld [vmem:[%s150_s29] sm:$0x77]  ;;  %s6745_s27 = smov 0  }
  0x59   : > { %5478 = vsyncadd (%p10038_p11), [#allocation6], 4294958464  ;;  %10040 = vst [vmem:[#allocation12_spill] sm:$0xff] %v5710_v2  ;;  %v178_v3 = vmul.f32 4.0, %v5710_v2  ;;  %v1347_v4 = vmul.f32 8.0, %v5710_v2  ;;  %s6739_s15 = scalar_lea.vmem [#allocation7], %s5045_s17 }
  0x5a   : > { %v5708_v1 = vshrl.u32 %v242_v0, 7 }
  0x5b   : > { %v179_v6 = vfloor.f32 %v178_v3  ;;  %v1348_v8 = vfloor.f32 %v1347_v4 }
  0x5c   : > { %10039 = vst [vmem:[#allocation11_spill] sm:$0xff] %v5708_v1  ;;  %v5715_v5 = vsub.s32 0, %v5708_v1  ;;  %v5718_v7 = vsub.s32 4, %v5708_v1  ;;  %v5721_v9 = vadd.s32 8, %v5708_v1  ;;  %v5724_v10 = vadd.s32 16, %v5708_v1 }
  0x5d   : > { %v5727_v11 = vadd.s32 24, %v5708_v1  ;;  %v5730_v12 = vadd.s32 32, %v5708_v1  ;;  %v5733_v13 = vadd.s32 40, %v5708_v1  ;;  %v180_v14 = vsub.f32 %v178_v3, %v179_v6 }
  0x5e   : > { %10041 = vst [vmem:[#allocation13_spill] sm:$0xff] %v5715_v5  ;;  %10042 = vst [vmem:[#allocation14_spill] sm:$0xff] %v5718_v7  ;;  %v5190_v15 = vtrunc.f32 %v179_v6  ;;  %v5735_v16 = vsub.f32 %v1347_v4, %v1348_v8  ;;  %v5192_v17 = vtrunc.f32 %v1348_v8  ;;  %v5738_v18 = vadd.s32 48, %v5708_v1 }
  0x5f   : > { %10043 = vst [vmem:[#allocation15_spill] sm:$0xff] %v5721_v9  ;;  %10044 = vst [vmem:[#allocation16_spill] sm:$0xff] %v5724_v10  ;;  %v5741_v19 = vadd.s32 56, %v5708_v1  ;;  %v5744_v20 = vadd.s32 64, %v5708_v1  ;;  %v5747_v21 = vadd.s32 72, %v5708_v1  ;;  %v183_v23 = vsub.f32 1.0, %v180_v14 }
  0x60   : > { %10045 = vst [vmem:[#allocation17_spill] sm:$0xff] %v5727_v11  ;;  %10046 = vst [vmem:[#allocation18_spill] sm:$0xff] %v5730_v12  ;;  %v5191_v22 = vcvt.f32.s32 %v5190_v15  ;;  %v213_v24 = vrot.slane %v180_v14, 5  ;;  %v228_v25 = vrot.slane %v180_v14, 6  ;;  %v5749_v26 = vcvt.f32.s32 %v5192_v17 }
  0x61   : > { %10047 = vst [vmem:[#allocation19_spill] sm:$0xff] %v5733_v13  ;;  %10048 = vst [vmem:[#allocation20_spill] sm:$0xff] %v5738_v18  ;;  %v5752_v27 = vsub.f32 1.0, %v5735_v16  ;;  %v1382_v28 = vrot.slane %v5735_v16, 5  ;;  %v192_v33 = vrot.slane %v183_v23, 5  ;;  %v199_v34 = vrot.slane %v183_v23, 6 }
  0x62   : > { %10049 = vst [vmem:[#allocation21_spill] sm:$0xff] %v5741_v19  ;;  %10050 = vst [vmem:[#allocation22_spill] sm:$0xff] %v5744_v20  ;;  %v182_v30 = vadd.s32 1, %v5191_v22  ;;  %v184_v31 = vmul.u32 2654435761, %v5191_v22  ;;  %v214_v35 = vrot.slane %v213_v24, 4 }
  0x63   : > { %10051 = vst [vmem:[#allocation23_spill] sm:$0xff] %v5747_v21  ;;  %v186_v32 = vmul.u32 805459861, %v5191_v22  ;;  %v229_v36 = vrot.slane %v228_v25, 4  ;;  %v5757_v37 = vadd.s32 1, %v5749_v26  ;;  %v193_v41 = vrot.slane %v192_v33, 4 }
  0x64   : > { %v185_v38 = vadd.s32 2654435761, %v184_v31  ;;  %v188_v40 = vrot.slane %v184_v31, 5  ;;  %v200_v43 = vrot.slane %v199_v34, 4  ;;  %v216_v44 = vmul.f32 %v214_v35, %v183_v23 }
  0x65   : > { %v187_v39 = vadd.s32 805459861, %v186_v32  ;;  %v196_v42 = vrot.slane %v186_v32, 6  ;;  %v221_v45 = vmul.f32 %v214_v35, %v180_v14  ;;  %v195_v47 = vmul.f32 %v193_v41, %v183_v23 }
  0x66   : > { %v189_v46 = vrot.slane %v188_v40, 4  ;;  %v205_v48 = vmul.f32 %v193_v41, %v180_v14  ;;  %v209_v49 = vrot.slane %v185_v38, 5  ;;  %v218_v51 = vmul.f32 %v216_v44, %v200_v43 }
  0x67   : > { %v197_v50 = vrot.slane %v196_v42, 4  ;;  %v5759_v52 = vmul.f32 %v221_v45, %v200_v43  ;;  %v225_v53 = vrot.slane %v187_v39, 6  ;;  %v202_v55 = vmul.f32 %v200_v43, %v195_v47 }
  0x68   : > { %v190_v54 = vxor.u32 %v5191_v22, %v189_v46  ;;  %v204_v56 = vxor.u32 %v189_v46, %v182_v30  ;;  %v207_v57 = vmul.f32 %v205_v48, %v200_v43  ;;  %v210_v58 = vrot.slane %v209_v49, 4 }
  0x69   : > { %v226_v59 = vrot.slane %v225_v53, 4  ;;  %v231_v60 = vmul.f32 %v229_v36, %v195_v47  ;;  %v5761_v61 = vmul.f32 %v229_v36, %v205_v48  ;;  %v5763_v0 = vmul.f32 %v229_v36, %v216_v44 }
  0x6a   : > { %v198_v62 = vxor.u32 %v197_v50, %v190_v54  ;;  %v206_v63 = vxor.u32 %v204_v56, %v197_v50  ;;  %v5765_v3 = vmul.f32 %v229_v36, %v221_v45  ;;  %v211_v4 = vxor.u32 %v5191_v22, %v210_v58 }
  0x6b   : > { %v220_v6 = vxor.u32 %v210_v58, %v182_v30  ;;  %v227_v8 = vxor.u32 %v226_v59, %v190_v54  ;;  %v233_v14 = vxor.u32 %v226_v59, %v204_v56  ;;  %v311_v23 = vrot.slane %v202_v55, %v5715_v5 }
  0x6c   : > { %v203_v15 = vand.u32 63, %v198_v62  ;;  %v208_v17 = vand.u32 63, %v206_v63  ;;  %v315_v24 = vrot.slane %v202_v55, %v5718_v7  ;;  %v217_v25 = vxor.u32 %v211_v4, %v197_v50 }
  0x6d   : > { %v222_v31 = vxor.u32 %v220_v6, %v197_v50  ;;  %v232_v32 = vand.u32 63, %v227_v8  ;;  %v235_v33 = vand.u32 63, %v233_v14  ;;  %v236_v34 = vxor.u32 %v226_v59, %v211_v4 }
  0x6e   : > { %v239_v35 = vxor.u32 %v226_v59, %v220_v6  ;;  %v262_v38 = vrot.slane %v203_v15, %v5715_v5  ;;  %v266_v36 = vrot.slane %v203_v15, %v5718_v7  ;;  %v219_v22 = vand.u32 63, %v217_v25 }
  0x6f   : > { %v224_v30 = vand.u32 63, %v222_v31  ;;  %v5772_v39 = vrot.slane %v311_v23, %v5715_v5  ;;  %v5775_v40 = vrot.slane %v315_v24, %v5715_v5  ;;  %v238_v41 = vand.u32 63, %v236_v34 }
  0x70   : > { %v241_v42 = vand.u32 63, %v239_v35  ;;  %v5778_v43 = vrot.slane %v262_v38, %v5715_v5  ;;  %v5781_v44 = vrot.slane %v266_v36, %v5715_v5  ;;  %v361_v45 = vrot.slane %v208_v17, %v5715_v5 }
  0x71   : > { %v365_v46 = vrot.slane %v208_v17, %v5718_v7  ;;  %v410_v47 = vrot.slane %v207_v57, %v5715_v5  ;;  %v414_v48 = vrot.slane %v207_v57, %v5718_v7  ;;  %v492_v49 = vrot.slane %v219_v22, %v5715_v5 }
  0x72   : > { %v496_v50 = vrot.slane %v219_v22, %v5718_v7  ;;  %v541_v53 = vrot.slane %v218_v51, %v5715_v5  ;;  %v545_v54 = vrot.slane %v218_v51, %v5718_v7  ;;  %v5792_v55 = vrot.slane %v361_v45, %v5715_v5 }
  0x73   : > { %v5795_v56 = vrot.slane %v365_v46, %v5715_v5  ;;  %v5798_v58 = vrot.slane %v410_v47, %v5715_v5  ;;  %v5801_v59 = vrot.slane %v414_v48, %v5715_v5  ;;  %v5804_v57 = vrot.slane %v492_v49, %v5715_v5 }
  0x74   : > { %v5807_v62 = vrot.slane %v496_v50, %v5715_v5  ;;  %v5810_v51 = vrot.slane %v541_v53, %v5715_v5  ;;  %v5813_v63 = vrot.slane %v545_v54, %v5715_v5  ;;  %v623_v4 = vrot.slane %v224_v30, %v5715_v5 }
  0x75   : > { %v627_v6 = vrot.slane %v224_v30, %v5718_v7  ;;  %v672_v8 = vrot.slane %v5759_v52, %v5715_v5  ;;  %v676_v14 = vrot.slane %v5759_v52, %v5718_v7  ;;  %v754_v15 = vrot.slane %v232_v32, %v5715_v5 }
  0x76   : > { %v758_v17 = vrot.slane %v232_v32, %v5718_v7  ;;  %v803_v23 = vrot.slane %v231_v60, %v5715_v5  ;;  %v807_v24 = vrot.slane %v231_v60, %v5718_v7  ;;  %v5826_v25 = vrot.slane %v623_v4, %v5715_v5 }
  0x77   : > { %v5829_v31 = vrot.slane %v627_v6, %v5715_v5  ;;  %v5832_v34 = vrot.slane %v672_v8, %v5715_v5  ;;  %v5835_v35 = vrot.slane %v676_v14, %v5715_v5  ;;  %v5838_v52 = vrot.slane %v754_v15, %v5715_v5 }
  0x78   : > { %v5841_v32 = vrot.slane %v758_v17, %v5715_v5  ;;  %v5844_v60 = vrot.slane %v803_v23, %v5715_v5  ;;  %v5847_v38 = vrot.slane %v807_v24, %v5715_v5  ;;  %v885_v36 = vrot.slane %v235_v33, %v5715_v5 }
  0x79   : > { %v889_v22 = vrot.slane %v235_v33, %v5718_v7  ;;  %v934_v30 = vrot.slane %v5761_v61, %v5715_v5  ;;  %v938_v45 = vrot.slane %v5761_v61, %v5718_v7  ;;  %v1016_v46 = vrot.slane %v238_v41, %v5715_v5 }
  0x7a   : > { %v1020_v47 = vrot.slane %v238_v41, %v5718_v7  ;;  %v1065_v48 = vrot.slane %v5763_v0, %v5715_v5  ;;  %v1069_v49 = vrot.slane %v5763_v0, %v5718_v7  ;;  %v5862_v50 = vrot.slane %v885_v36, %v5715_v5 }
  0x7b   : > { %v5865_v33 = vrot.slane %v889_v22, %v5715_v5  ;;  %v5868_v53 = vrot.slane %v934_v30, %v5715_v5  ;;  %v5871_v61 = vrot.slane %v938_v45, %v5715_v5  ;;  %v5874_v41 = vrot.slane %v1016_v46, %v5715_v5 }
  0x7c   : > { %v5877_v54 = vrot.slane %v1020_v47, %v5715_v5  ;;  %v5880_v0 = vrot.slane %v1065_v48, %v5715_v5  ;;  %v5883_v4 = vrot.slane %v1069_v49, %v5715_v5  ;;  %v1147_v6 = vrot.slane %v241_v42, %v5715_v5 }
  0x7d   : > { %v1151_v8 = vrot.slane %v241_v42, %v5718_v7  ;;  %v1196_v14 = vrot.slane %v5765_v3, %v5715_v5  ;;  %v1200_v15 = vrot.slane %v5765_v3, %v5718_v7  ;;  %v1353_v17 = vmul.u32 2654435761, %v5749_v26 }
  0x7e   : > { %v1355_v23 = vmul.u32 805459861, %v5749_v26  ;;  %v1361_v24 = vrot.slane %v5752_v27, 5  ;;  %v1368_v36 = vrot.slane %v5752_v27, 6  ;;  %v5896_v22 = vrot.slane %v1147_v6, %v5715_v5 }
  0x7f   : > { %v5899_v30 = vrot.slane %v1151_v8, %v5715_v5  ;;  %v5902_v42 = vrot.slane %v1196_v14, %v5715_v5  ;;  %v5905_v45 = vrot.slane %v1200_v15, %v5715_v5  ;;  %v1354_v3 = vadd.s32 2654435761, %v1353_v17 }
  0x80   : > { %v1356_v46 = vadd.s32 805459861, %v1355_v23  ;;  %v1357_v47 = vrot.slane %v1353_v17, 5  ;;  %v1362_v48 = vrot.slane %v1361_v24, 4  ;;  %v1365_v49 = vrot.slane %v1355_v23, 6 }
  0x81   : > { %v1369_v29 = vrot.slane %v1368_v36, 4  ;;  %v1383_v2 = vrot.slane %v1382_v28, 4  ;;  %v10052_v6 = vrot.slane %v5735_v16, 6  ;;  %v1378_v20 = vrot.slane %v1354_v3, 5 }
  0x82   : > { %v1358_v8 = vrot.slane %v1357_v47, 4  ;;  %v1364_v21 = vmul.f32 %v1362_v48, %v5752_v27  ;;  %v1374_v14 = vmul.f32 %v1362_v48, %v5735_v16  ;;  %v1366_v15 = vrot.slane %v1365_v49, 4 }
  0x83   : > { %v1398_v7 = vrot.slane %v10052_v6, 4  ;;  %v1385_v5 = vmul.f32 %v1383_v2, %v5752_v27  ;;  %v1390_v17 = vmul.f32 %v1383_v2, %v5735_v16  ;;  %v1394_v24 = vrot.slane %v1356_v46, 6 }
  0x84   : > { %v1359_v23 = vxor.u32 %v5749_v26, %v1358_v8  ;;  %v5916_v36 = vmul.f32 %v1369_v29, %v1364_v21  ;;  %v1373_v28 = vxor.u32 %v1358_v8, %v5757_v37  ;;  %v5919_v19 = vmul.f32 %v1374_v14, %v1369_v29 }
  0x85   : > { %v1379_v47 = vrot.slane %v1378_v20, 4  ;;  %v5921_v6 = vmul.f32 %v1385_v5, %v1369_v29  ;;  %v5923_v18 = vmul.f32 %v1390_v17, %v1369_v29  ;;  %v1395_v3 = vrot.slane %v1394_v24, 4 }
  0x86   : > { %10053 = vst [vmem:[#allocation24_spill] sm:$0xff] %v5916_v36  ;;  %10054 = vst [vmem:[#allocation25_spill] sm:$0xff] %v5919_v19  ;;  %v1367_v48 = vxor.u32 %v1366_v15, %v1359_v23  ;;  %v1375_v49 = vxor.u32 %v1373_v28, %v1366_v15  ;;  %v5925_v27 = vmul.f32 %v1398_v7, %v1364_v21 }
  0x87   : > { %10055 = vst [vmem:[#allocation26_spill] sm:$0xff] %v5921_v6  ;;  %10056 = vst [vmem:[#allocation27_spill] sm:$0xff] %v5923_v18  ;;  %v5927_v2 = vmul.f32 %v1398_v7, %v1374_v14  ;;  %v1380_v16 = vxor.u32 %v5749_v26, %v1379_v47  ;;  %v1389_v46 = vxor.u32 %v1379_v47, %v5757_v37 }
  0x88   : > { %10057 = vst [vmem:[#allocation28_spill] sm:$0xff] %v5925_v27  ;;  %v1396_v36 = vxor.u32 %v1395_v3, %v1359_v23  ;;  %v1402_v8 = vxor.u32 %v1395_v3, %v1373_v28  ;;  %v5931_v13 = vand.u32 511, %v1367_v48  ;;  %v5933_v20 = vand.u32 511, %v1375_v49 }
  0x89   : > { %10058 = vst [vmem:[#allocation29_spill] sm:$0xff] %v5927_v2  ;;  %v5935_v6 = vmul.f32 %v1398_v7, %v1385_v5  ;;  %v5937_v29 = vmul.f32 %v1398_v7, %v1390_v17  ;;  %v1386_v24 = vxor.u32 %v1380_v16, %v1366_v15  ;;  %v1391_v18 = vxor.u32 %v1389_v46, %v1366_v15 }
  0x8a   : > { %10059 = vst [vmem:[#allocation30_spill] sm:$0xff] %v5931_v13  ;;  %10060 = vst [vmem:[#allocation31_spill] sm:$0xff] %v5933_v20  ;;  %v5939_v21 = vand.u32 511, %v1396_v36  ;;  %v5941_v14 = vand.u32 511, %v1402_v8  ;;  %v1405_v2 = vxor.u32 %v1395_v3, %v1380_v16  ;;  %v1408_v26 = vxor.u32 %v1395_v3, %v1389_v46 }
  0x8b   : > { %10061 = vst [vmem:[#allocation32_spill] sm:$0xff] %v5935_v6  ;;  %10062 = vst [vmem:[#allocation33_spill] sm:$0xff] %v5937_v29  ;;  %vm276_vm0 = vcmp.eq.s32.totalorder %v5708_v1, %v5781_v44  ;;  %vm278_vm1 = vcmp.eq.s32.totalorder %v5721_v9, %v5781_v44  ;;  %v5947_v37 = vand.u32 511, %v1386_v24  ;;  %v5949_v5 = vand.u32 511, %v1391_v18 }
  0x8c   : > { %10063 = vst [vmem:[#allocation34_spill] sm:$0xff] %v5939_v21  ;;  %10064 = vst [vmem:[#allocation35_spill] sm:$0xff] %v5941_v14  ;;  %v327_v7 = vsel %vm276_vm0, %v5775_v40, 0.0  ;;  %v329_v15 = vsel %vm278_vm1, %v5775_v40, 0.0  ;;  %v5953_v17 = vand.u32 511, %v1405_v2  ;;  %v5955_v23 = vand.u32 511, %v1408_v26 }
  0x8d   : > { %10065 = vst [vmem:[#allocation36_spill] sm:$0xff] %v5947_v37  ;;  %10066 = vst [vmem:[#allocation37_spill] sm:$0xff] %v5949_v5  ;;  %vm375_vm2 = vcmp.eq.s32.totalorder %v5708_v1, %v5795_v56  ;;  %vm377_vm3 = vcmp.eq.s32.totalorder %v5721_v9, %v5795_v56  ;;  %vm506_vm4 = vcmp.eq.s32.totalorder %v5708_v1, %v5807_v62 }
  0x8e   : > { %10067 = vst [vmem:[#allocation38_spill] sm:$0xff] %v5953_v17  ;;  %10068 = vst [vmem:[#allocation39_spill] sm:$0xff] %v5955_v23  ;;  %v426_v36 = vsel %vm375_vm2, %v5801_v59, 0.0  ;;  %v428_v28 = vsel %vm377_vm3, %v5801_v59, 0.0  ;;  %vm508_vm5 = vcmp.eq.s32.totalorder %v5721_v9, %v5807_v62  ;;  %v557_v3 = vsel %vm506_vm4, %v5813_v63, 0.0 }
  0x8f   : > { %v458_v18 = vadd.f32 %v426_v36, %v327_v7  ;;  %v460_v47 = vadd.f32 %v428_v28, %v329_v15  ;;  %v559_v48 = vsel %vm508_vm5, %v5813_v63, 0.0  ;;  %vm637_vm6 = vcmp.eq.s32.totalorder %v5708_v1, %v5829_v31 }
  0x90   : > { %vm639_vm7 = vcmp.eq.s32.totalorder %v5721_v9, %v5829_v31  ;;  %vm768_vm8 = vcmp.eq.s32.totalorder %v5708_v1, %v5841_v32  ;;  %vm770_vm9 = vcmp.eq.s32.totalorder %v5721_v9, %v5841_v32  ;;  %v688_v16 = vsel %vm637_vm6, %v5835_v35, 0.0 }
  0x91   : > { %v589_v49 = vadd.f32 %v557_v3, %v458_v18  ;;  %v591_v2 = vadd.f32 %v559_v48, %v460_v47  ;;  %v690_v46 = vsel %vm639_vm7, %v5835_v35, 0.0  ;;  %v819_v8 = vsel %vm768_vm8, %v5847_v38, 0.0 }
  0x92   : > { %v821_v24 = vsel %vm770_vm9, %v5847_v38, 0.0  ;;  %vm899_vm10 = vcmp.eq.s32.totalorder %v5708_v1, %v5865_v33  ;;  %vm901_vm11 = vcmp.eq.s32.totalorder %v5721_v9, %v5865_v33  ;;  %vm1030_vm12 = vcmp.eq.s32.totalorder %v5708_v1, %v5877_v54 }
  0x93   : > { %v720_v26 = vadd.f32 %v688_v16, %v589_v49  ;;  %v722_v7 = vadd.f32 %v690_v46, %v591_v2  ;;  %v950_v15 = vsel %vm899_vm10, %v5871_v61, 0.0  ;;  %v952_v36 = vsel %vm901_vm11, %v5871_v61, 0.0 }
  0x94   : > { %vm1032_vm13 = vcmp.eq.s32.totalorder %v5721_v9, %v5877_v54  ;;  %vm1161_vm14 = vcmp.eq.s32.totalorder %v5708_v1, %v5899_v30  ;;  %vm1163_vm15 = vcmp.eq.s32.totalorder %v5721_v9, %v5899_v30  ;;  %v1081_v47 = vsel %vm1030_vm12, %v5883_v4, 0.0 }
  0x95   : > { %v851_v28 = vadd.f32 %v819_v8, %v720_v26  ;;  %v853_v18 = vadd.f32 %v821_v24, %v722_v7  ;;  %v1083_v3 = vsel %vm1032_vm13, %v5883_v4, 0.0  ;;  %v1212_v48 = vsel %vm1161_vm14, %v5905_v45, 0.0 }
  0x96   : > { %v1214_v49 = vsel %vm1163_vm15, %v5905_v45, 0.0  ;;  %vm275_vm0 = vcmp.eq.s32.totalorder %v5708_v1, %v5778_v43  ;;  %vm277_vm1 = vcmp.eq.s32.totalorder %v5721_v9, %v5778_v43  ;;  %vm374_vm2 = vcmp.eq.s32.totalorder %v5708_v1, %v5792_v55 }
  0x97   : > { %v982_v2 = vadd.f32 %v950_v15, %v851_v28  ;;  %v984_v16 = vadd.f32 %v952_v36, %v853_v18  ;;  %v326_v46 = vsel %vm275_vm0, %v5772_v39, 0.0  ;;  %v328_v8 = vsel %vm277_vm1, %v5772_v39, 0.0 }
  0x98   : > { %vm376_vm3 = vcmp.eq.s32.totalorder %v5721_v9, %v5792_v55  ;;  %vm505_vm4 = vcmp.eq.s32.totalorder %v5708_v1, %v5804_v57  ;;  %vm507_vm5 = vcmp.eq.s32.totalorder %v5721_v9, %v5804_v57  ;;  %v425_v7 = vsel %vm374_vm2, %v5798_v58, 0.0 }
  0x99   : > { %v1113_v24 = vadd.f32 %v1081_v47, %v982_v2  ;;  %v1115_v26 = vadd.f32 %v1083_v3, %v984_v16  ;;  %v427_v15 = vsel %vm376_vm3, %v5798_v58, 0.0  ;;  %v457_v36 = vadd.f32 %v425_v7, %v326_v46 }
  0x9a   : > { %v459_v28 = vadd.f32 %v427_v15, %v328_v8  ;;  %v556_v18 = vsel %vm505_vm4, %v5810_v51, 0.0  ;;  %v558_v29 = vsel %vm507_vm5, %v5810_v51, 0.0  ;;  %vm636_vm6 = vcmp.eq.s32.totalorder %v5708_v1, %v5826_v25 }
  0x9b   : > { %v1244_v23 = vadd.f32 %v1212_v48, %v1113_v24  ;;  %v1246_v6 = vadd.f32 %v1214_v49, %v1115_v26  ;;  %vm638_vm7 = vcmp.eq.s32.totalorder %v5721_v9, %v5826_v25  ;;  %v588_v47 = vadd.f32 %v556_v18, %v457_v36 }
  0x9c   : > { %v590_v3 = vadd.f32 %v558_v29, %v459_v28  ;;  %v687_v2 = vsel %vm636_vm6, %v5832_v34, 0.0  ;;  %v689_v16 = vsel %vm638_vm7, %v5832_v34, 0.0  ;;  %vm767_vm8 = vcmp.eq.s32.totalorder %v5708_v1, %v5838_v52 }
  0x9d   : > { %v5062_v46 = vpack.c.bf16 %v1246_v6, %v1244_v23  ;;  %vm769_vm9 = vcmp.eq.s32.totalorder %v5721_v9, %v5838_v52  ;;  %vm898_vm10 = vcmp.eq.s32.totalorder %v5708_v1, %v5862_v50  ;;  %v719_v48 = vadd.f32 %v687_v2, %v588_v47 }
  0x9e   : > { %v721_v49 = vadd.f32 %v689_v16, %v590_v3  ;;  %v818_v8 = vsel %vm767_vm8, %v5844_v60, 0.0  ;;  %v820_v29 = vsel %vm769_vm9, %v5844_v60, 0.0  ;;  %vm900_vm11 = vcmp.eq.s32.totalorder %v5721_v9, %v5862_v50 }
  0x9f   : > { %5063 = vmatprep.subr.bf16.mxu0 %v5062_v46  ;;  %v949_v6 = vsel %vm898_vm10, %v5868_v53, 0.0  ;;  %vm1029_vm12 = vcmp.eq.s32.totalorder %v5708_v1, %v5874_v41  ;;  %vm1031_vm13 = vcmp.eq.s32.totalorder %v5721_v9, %v5874_v41  ;;  %v850_v23 = vadd.f32 %v818_v8, %v719_v48 }
  0xa0   : > { %v852_v24 = vadd.f32 %v820_v29, %v721_v49  ;;  %v951_v26 = vsel %vm900_vm11, %v5868_v53, 0.0  ;;  %v1080_v7 = vsel %vm1029_vm12, %v5880_v0, 0.0  ;;  %v1082_v15 = vsel %vm1031_vm13, %v5880_v0, 0.0 }
  0xa1   : > { %vm1160_vm14 = vcmp.eq.s32.totalorder %v5708_v1, %v5896_v22  ;;  %vm1162_vm15 = vcmp.eq.s32.totalorder %v5721_v9, %v5896_v22  ;;  %vm280_vm0 = vcmp.eq.s32.totalorder %v5724_v10, %v5781_v44  ;;  %v981_v36 = vadd.f32 %v949_v6, %v850_v23 }
  0xa2   : > { %v983_v28 = vadd.f32 %v951_v26, %v852_v24  ;;  %v1211_v18 = vsel %vm1160_vm14, %v5902_v42, 0.0  ;;  %v1213_v47 = vsel %vm1162_vm15, %v5902_v42, 0.0  ;;  %vm282_vm1 = vcmp.eq.s32.totalorder %v5727_v11, %v5781_v44 }
  0xa3   : > { %v331_v3 = vsel %vm280_vm0, %v5775_v40, 0.0  ;;  %vm379_vm2 = vcmp.eq.s32.totalorder %v5724_v10, %v5795_v56  ;;  %vm381_vm3 = vcmp.eq.s32.totalorder %v5727_v11, %v5795_v56  ;;  %v1112_v2 = vadd.f32 %v1080_v7, %v981_v36 }
  0xa4   : > { %v1114_v16 = vadd.f32 %v1082_v15, %v983_v28  ;;  %v333_v46 = vsel %vm282_vm1, %v5775_v40, 0.0  ;;  %v430_v48 = vsel %vm379_vm2, %v5801_v59, 0.0  ;;  %v432_v49 = vsel %vm381_vm3, %v5801_v59, 0.0 }
  0xa5   : > { %v462_v8 = vadd.f32 %v430_v48, %v331_v3  ;;  %vm510_vm4 = vcmp.eq.s32.totalorder %v5724_v10, %v5807_v62  ;;  %vm512_vm5 = vcmp.eq.s32.totalorder %v5727_v11, %v5807_v62  ;;  %v1243_v29 = vadd.f32 %v1211_v18, %v1112_v2 }
  0xa6   : > { %v1245_v6 = vadd.f32 %v1213_v47, %v1114_v16  ;;  %v464_v23 = vadd.f32 %v432_v49, %v333_v46  ;;  %v561_v24 = vsel %vm510_vm4, %v5813_v63, 0.0  ;;  %v563_v26 = vsel %vm512_vm5, %v5813_v63, 0.0 }
  0xa7   : > { %v593_v7 = vadd.f32 %v561_v24, %v462_v8  ;;  %vm641_vm6 = vcmp.eq.s32.totalorder %v5724_v10, %v5829_v31  ;;  %vm643_vm7 = vcmp.eq.s32.totalorder %v5727_v11, %v5829_v31  ;;  %vm772_vm8 = vcmp.eq.s32.totalorder %v5724_v10, %v5841_v32 }
  0xa8   : > { %v5064_v15 = vpack.c.bf16 %v1245_v6, %v1243_v29  ;;  %v595_v36 = vadd.f32 %v563_v26, %v464_v23  ;;  %v692_v28 = vsel %vm641_vm6, %v5835_v35, 0.0  ;;  %v694_v3 = vsel %vm643_vm7, %v5835_v35, 0.0 }
  0xa9   : > { %v724_v18 = vadd.f32 %v692_v28, %v593_v7  ;;  %vm774_vm9 = vcmp.eq.s32.totalorder %v5727_v11, %v5841_v32  ;;  %vm903_vm10 = vcmp.eq.s32.totalorder %v5724_v10, %v5865_v33  ;;  %v823_v2 = vsel %vm772_vm8, %v5847_v38, 0.0 }
  0xaa   : > { %5065 = vmatpush1.bf16.msra.mxu0 %v5064_v15  ;;  %v726_v47 = vadd.f32 %v694_v3, %v595_v36  ;;  %v825_v16 = vsel %vm774_vm9, %v5847_v38, 0.0  ;;  %vm905_vm11 = vcmp.eq.s32.totalorder %v5727_v11, %v5865_v33  ;;  %v954_v48 = vsel %vm903_vm10, %v5871_v61, 0.0 }
  0xab   : > { %v855_v46 = vadd.f32 %v823_v2, %v724_v18  ;;  %v956_v49 = vsel %vm905_vm11, %v5871_v61, 0.0  ;;  %vm1034_vm12 = vcmp.eq.s32.totalorder %v5724_v10, %v5877_v54  ;;  %vm1036_vm13 = vcmp.eq.s32.totalorder %v5727_v11, %v5877_v54 }
  0xac   : > { %v857_v8 = vadd.f32 %v825_v16, %v726_v47  ;;  %v1085_v29 = vsel %vm1034_vm12, %v5883_v4, 0.0  ;;  %vm1165_vm14 = vcmp.eq.s32.totalorder %v5724_v10, %v5899_v30  ;;  %v1087_v23 = vsel %vm1036_vm13, %v5883_v4, 0.0 }
  0xad   : > { %v986_v6 = vadd.f32 %v954_v48, %v855_v46  ;;  %vm1167_vm15 = vcmp.eq.s32.totalorder %v5727_v11, %v5899_v30  ;;  %v1216_v24 = vsel %vm1165_vm14, %v5905_v45, 0.0  ;;  %vm279_vm0 = vcmp.eq.s32.totalorder %v5724_v10, %v5778_v43 }
  0xae   : > { %v988_v26 = vadd.f32 %v956_v49, %v857_v8  ;;  %v1218_v7 = vsel %vm1167_vm15, %v5905_v45, 0.0  ;;  %vm281_vm1 = vcmp.eq.s32.totalorder %v5727_v11, %v5778_v43  ;;  %v330_v36 = vsel %vm279_vm0, %v5772_v39, 0.0 }
  0xaf   : > { %v1117_v15 = vadd.f32 %v1085_v29, %v986_v6  ;;  %v332_v28 = vsel %vm281_vm1, %v5772_v39, 0.0  ;;  %vm378_vm2 = vcmp.eq.s32.totalorder %v5724_v10, %v5792_v55  ;;  %vm380_vm3 = vcmp.eq.s32.totalorder %v5727_v11, %v5792_v55 }
  0xb0   : > { %v1119_v3 = vadd.f32 %v1087_v23, %v988_v26  ;;  %v429_v18 = vsel %vm378_vm2, %v5798_v58, 0.0  ;;  %vm509_vm4 = vcmp.eq.s32.totalorder %v5724_v10, %v5804_v57  ;;  %v431_v2 = vsel %vm380_vm3, %v5798_v58, 0.0 }
  0xb1   : > { %v1248_v47 = vadd.f32 %v1216_v24, %v1117_v15  ;;  %v461_v16 = vadd.f32 %v429_v18, %v330_v36  ;;  %vm511_vm5 = vcmp.eq.s32.totalorder %v5727_v11, %v5804_v57  ;;  %v463_v48 = vadd.f32 %v431_v2, %v332_v28 }
  0xb2   : > { %v1250_v46 = vadd.f32 %v1218_v7, %v1119_v3  ;;  %v560_v49 = vsel %vm509_vm4, %v5810_v51, 0.0  ;;  %v562_v8 = vsel %vm511_vm5, %v5810_v51, 0.0  ;;  %vm640_vm6 = vcmp.eq.s32.totalorder %v5724_v10, %v5826_v25 }
  0xb3   : > { %v592_v29 = vadd.f32 %v560_v49, %v461_v16  ;;  %vm642_vm7 = vcmp.eq.s32.totalorder %v5727_v11, %v5826_v25  ;;  %vm771_vm8 = vcmp.eq.s32.totalorder %v5724_v10, %v5838_v52  ;;  %v594_v23 = vadd.f32 %v562_v8, %v463_v48 }
  0xb4   : > { %v5066_v6 = vpack.c.bf16 %v1250_v46, %v1248_v47  ;;  %v691_v24 = vsel %vm640_vm6, %v5832_v34, 0.0  ;;  %v693_v26 = vsel %vm642_vm7, %v5832_v34, 0.0  ;;  %vm773_vm9 = vcmp.eq.s32.totalorder %v5727_v11, %v5838_v52 }
  0xb5   : > { %v723_v7 = vadd.f32 %v691_v24, %v592_v29  ;;  %v822_v15 = vsel %vm771_vm8, %v5844_v60, 0.0  ;;  %vm902_vm10 = vcmp.eq.s32.totalorder %v5724_v10, %v5862_v50  ;;  %v725_v36 = vadd.f32 %v693_v26, %v594_v23 }
  0xb6   : > { %5067 = vmatprep.subr.bf16.mxu0 %v5066_v6  ;;  %v824_v28 = vsel %vm773_vm9, %v5844_v60, 0.0  ;;  %vm904_vm11 = vcmp.eq.s32.totalorder %v5727_v11, %v5862_v50  ;;  %v953_v3 = vsel %vm902_vm10, %v5868_v53, 0.0  ;;  %vm1033_vm12 = vcmp.eq.s32.totalorder %v5724_v10, %v5874_v41  ;;  %v10069_v6 = vld [vmem:[#allocation19_spill] sm:$0xff] }
  0xb7   : > { %v854_v18 = vadd.f32 %v822_v15, %v723_v7  ;;  %v955_v47 = vsel %vm904_vm11, %v5868_v53, 0.0  ;;  %vm1035_vm13 = vcmp.eq.s32.totalorder %v5727_v11, %v5874_v41  ;;  %v856_v2 = vadd.f32 %v824_v28, %v725_v36 }
  0xb8   : > { %v1084_v16 = vsel %vm1033_vm12, %v5880_v0, 0.0  ;;  %v1086_v46 = vsel %vm1035_vm13, %v5880_v0, 0.0  ;;  %vm1164_vm14 = vcmp.eq.s32.totalorder %v5724_v10, %v5896_v22  ;;  %vm1166_vm15 = vcmp.eq.s32.totalorder %v5727_v11, %v5896_v22 }
  0xb9   : > { %v985_v48 = vadd.f32 %v953_v3, %v854_v18  ;;  %v1215_v49 = vsel %vm1164_vm14, %v5902_v42, 0.0  ;;  %vm284_vm0 = vcmp.eq.s32.totalorder %v5730_v12, %v5781_v44  ;;  %v987_v8 = vadd.f32 %v955_v47, %v856_v2 }
  0xba   : > { %v1217_v29 = vsel %vm1166_vm15, %v5902_v42, 0.0  ;;  %vm286_vm1 = vcmp.eq.s32.totalorder %v10069_v6, %v5781_v44  ;;  %v335_v23 = vsel %vm284_vm0, %v5775_v40, 0.0  ;;  %vm383_vm2 = vcmp.eq.s32.totalorder %v5730_v12, %v5795_v56 }
  0xbb   : > { %v1116_v24 = vadd.f32 %v1084_v16, %v985_v48  ;;  %v337_v26 = vsel %vm286_vm1, %v5775_v40, 0.0  ;;  %vm385_vm3 = vcmp.eq.s32.totalorder %v10069_v6, %v5795_v56  ;;  %v1118_v7 = vadd.f32 %v1086_v46, %v987_v8 }
  0xbc   : > { %v434_v15 = vsel %vm383_vm2, %v5801_v59, 0.0  ;;  %v436_v36 = vsel %vm385_vm3, %v5801_v59, 0.0  ;;  %vm514_vm4 = vcmp.eq.s32.totalorder %v5730_v12, %v5807_v62  ;;  %vm516_vm5 = vcmp.eq.s32.totalorder %v10069_v6, %v5807_v62 }
  0xbd   : > { %v1247_v28 = vadd.f32 %v1215_v49, %v1116_v24  ;;  %v466_v3 = vadd.f32 %v434_v15, %v335_v23  ;;  %v468_v18 = vadd.f32 %v436_v36, %v337_v26  ;;  %v1249_v47 = vadd.f32 %v1217_v29, %v1118_v7 }
  0xbe   : > { %v565_v2 = vsel %vm514_vm4, %v5813_v63, 0.0  ;;  %v567_v16 = vsel %vm516_vm5, %v5813_v63, 0.0  ;;  %vm645_vm6 = vcmp.eq.s32.totalorder %v5730_v12, %v5829_v31  ;;  %vm647_vm7 = vcmp.eq.s32.totalorder %v10069_v6, %v5829_v31 }
  0xbf   : > { %v597_v46 = vadd.f32 %v565_v2, %v466_v3  ;;  %v599_v48 = vadd.f32 %v567_v16, %v468_v18  ;;  %v696_v49 = vsel %vm645_vm6, %v5835_v35, 0.0  ;;  %v5068_v8 = vpack.c.bf16 %v1249_v47, %v1247_v28 }
  0xc0   : > { %v698_v23 = vsel %vm647_vm7, %v5835_v35, 0.0  ;;  %vm776_vm8 = vcmp.eq.s32.totalorder %v5730_v12, %v5841_v32  ;;  %vm778_vm9 = vcmp.eq.s32.totalorder %v10069_v6, %v5841_v32  ;;  %vm907_vm10 = vcmp.eq.s32.totalorder %v5730_v12, %v5865_v33 }
  0xc1   : > { %v728_v29 = vadd.f32 %v696_v49, %v597_v46  ;;  %v730_v24 = vadd.f32 %v698_v23, %v599_v48  ;;  %v827_v26 = vsel %vm776_vm8, %v5847_v38, 0.0  ;;  %v829_v7 = vsel %vm778_vm9, %v5847_v38, 0.0  ;;  %5069 = vmatpush1.bf16.msra.mxu0 %v5068_v8 }
  0xc2   : > { %vm909_vm11 = vcmp.eq.s32.totalorder %v10069_v6, %v5865_v33  ;;  %vm1038_vm12 = vcmp.eq.s32.totalorder %v5730_v12, %v5877_v54  ;;  %vm1040_vm13 = vcmp.eq.s32.totalorder %v10069_v6, %v5877_v54  ;;  %v958_v28 = vsel %vm907_vm10, %v5871_v61, 0.0 }
  0xc3   : > { %v859_v15 = vadd.f32 %v827_v26, %v728_v29  ;;  %v861_v36 = vadd.f32 %v829_v7, %v730_v24  ;;  %v960_v3 = vsel %vm909_vm11, %v5871_v61, 0.0  ;;  %v1089_v18 = vsel %vm1038_vm12, %v5883_v4, 0.0 }
  0xc4   : > { %v1091_v47 = vsel %vm1040_vm13, %v5883_v4, 0.0  ;;  %vm1169_vm14 = vcmp.eq.s32.totalorder %v5730_v12, %v5899_v30  ;;  %vm1171_vm15 = vcmp.eq.s32.totalorder %v10069_v6, %v5899_v30  ;;  %vm283_vm0 = vcmp.eq.s32.totalorder %v5730_v12, %v5778_v43 }
  0xc5   : > { %v990_v2 = vadd.f32 %v958_v28, %v859_v15  ;;  %v992_v16 = vadd.f32 %v960_v3, %v861_v36  ;;  %v1220_v46 = vsel %vm1169_vm14, %v5905_v45, 0.0  ;;  %v1222_v48 = vsel %vm1171_vm15, %v5905_v45, 0.0 }
  0xc6   : > { %vm285_vm1 = vcmp.eq.s32.totalorder %v10069_v6, %v5778_v43  ;;  %vm382_vm2 = vcmp.eq.s32.totalorder %v5730_v12, %v5792_v55  ;;  %vm384_vm3 = vcmp.eq.s32.totalorder %v10069_v6, %v5792_v55  ;;  %v334_v23 = vsel %vm283_vm0, %v5772_v39, 0.0 }
  0xc7   : > { %v1121_v49 = vadd.f32 %v1089_v18, %v990_v2  ;;  %v1123_v8 = vadd.f32 %v1091_v47, %v992_v16  ;;  %v336_v29 = vsel %vm285_vm1, %v5772_v39, 0.0  ;;  %v433_v24 = vsel %vm382_vm2, %v5798_v58, 0.0 }
  0xc8   : > { %v435_v26 = vsel %vm384_vm3, %v5798_v58, 0.0  ;;  %vm513_vm4 = vcmp.eq.s32.totalorder %v5730_v12, %v5804_v57  ;;  %vm515_vm5 = vcmp.eq.s32.totalorder %v10069_v6, %v5804_v57  ;;  %v465_v36 = vadd.f32 %v433_v24, %v334_v23 }
  0xc9   : > { %v1252_v7 = vadd.f32 %v1220_v46, %v1121_v49  ;;  %v1254_v15 = vadd.f32 %v1222_v48, %v1123_v8  ;;  %v467_v28 = vadd.f32 %v435_v26, %v336_v29  ;;  %v564_v3 = vsel %vm513_vm4, %v5810_v51, 0.0 }
  0xca   : > { %v566_v18 = vsel %vm515_vm5, %v5810_v51, 0.0  ;;  %vm644_vm6 = vcmp.eq.s32.totalorder %v5730_v12, %v5826_v25  ;;  %vm646_vm7 = vcmp.eq.s32.totalorder %v10069_v6, %v5826_v25  ;;  %v596_v2 = vadd.f32 %v564_v3, %v465_v36  ;;  %v10070_v36 = vld [vmem:[#allocation20_spill] sm:$0xff] }
  0xcb   : > { %v5070_v47 = vpack.c.bf16 %v1254_v15, %v1252_v7  ;;  %v598_v16 = vadd.f32 %v566_v18, %v467_v28  ;;  %v695_v11 = vsel %vm644_vm6, %v5832_v34, 0.0  ;;  %v697_v46 = vsel %vm646_vm7, %v5832_v34, 0.0 }
  0xcc   : > { %vm775_vm8 = vcmp.eq.s32.totalorder %v5730_v12, %v5838_v52  ;;  %vm777_vm9 = vcmp.eq.s32.totalorder %v10069_v6, %v5838_v52  ;;  %vm906_vm10 = vcmp.eq.s32.totalorder %v5730_v12, %v5862_v50  ;;  %v727_v48 = vadd.f32 %v695_v11, %v596_v2  ;;  %v10071_v2 = vld [vmem:[#allocation21_spill] sm:$0xff] }
  0xcd   : > { %5071 = vmatprep.subr.bf16.mxu0 %v5070_v47  ;;  %v729_v49 = vadd.f32 %v697_v46, %v598_v16  ;;  %v826_v8 = vsel %vm775_vm8, %v5844_v60, 0.0  ;;  %v828_v23 = vsel %vm777_vm9, %v5844_v60, 0.0  ;;  %vm908_vm11 = vcmp.eq.s32.totalorder %v10069_v6, %v5862_v50 }
  0xce   : > { %v957_v29 = vsel %vm906_vm10, %v5868_v53, 0.0  ;;  %vm1037_vm12 = vcmp.eq.s32.totalorder %v5730_v12, %v5874_v41  ;;  %vm1039_vm13 = vcmp.eq.s32.totalorder %v10069_v6, %v5874_v41  ;;  %v858_v24 = vadd.f32 %v826_v8, %v727_v48 }
  0xcf   : > { %v860_v26 = vadd.f32 %v828_v23, %v729_v49  ;;  %v959_v11 = vsel %vm908_vm11, %v5868_v53, 0.0  ;;  %v1088_v7 = vsel %vm1037_vm12, %v5880_v0, 0.0  ;;  %v1090_v15 = vsel %vm1039_vm13, %v5880_v0, 0.0 }
  0xd0   : > { %vm1168_vm14 = vcmp.eq.s32.totalorder %v5730_v12, %v5896_v22  ;;  %vm1170_vm15 = vcmp.eq.s32.totalorder %v10069_v6, %v5896_v22  ;;  %vm288_vm0 = vcmp.eq.s32.totalorder %v10070_v36, %v5781_v44  ;;  %v989_v28 = vadd.f32 %v957_v29, %v858_v24 }
  0xd1   : > { %v991_v3 = vadd.f32 %v959_v11, %v860_v26  ;;  %v1219_v18 = vsel %vm1168_vm14, %v5902_v42, 0.0  ;;  %v1221_v47 = vsel %vm1170_vm15, %v5902_v42, 0.0  ;;  %vm290_vm1 = vcmp.eq.s32.totalorder %v10071_v2, %v5781_v44 }
  0xd2   : > { %v339_v16 = vsel %vm288_vm0, %v5775_v40, 0.0  ;;  %vm387_vm2 = vcmp.eq.s32.totalorder %v10070_v36, %v5795_v56  ;;  %vm389_vm3 = vcmp.eq.s32.totalorder %v10071_v2, %v5795_v56  ;;  %v1120_v6 = vadd.f32 %v1088_v7, %v989_v28 }
  0xd3   : > { %v1122_v46 = vadd.f32 %v1090_v15, %v991_v3  ;;  %v341_v48 = vsel %vm290_vm1, %v5775_v40, 0.0  ;;  %v438_v49 = vsel %vm387_vm2, %v5801_v59, 0.0  ;;  %v440_v8 = vsel %vm389_vm3, %v5801_v59, 0.0 }
  0xd4   : > { %v470_v23 = vadd.f32 %v438_v49, %v339_v16  ;;  %vm518_vm4 = vcmp.eq.s32.totalorder %v10070_v36, %v5807_v62  ;;  %vm520_vm5 = vcmp.eq.s32.totalorder %v10071_v2, %v5807_v62  ;;  %v1251_v29 = vadd.f32 %v1219_v18, %v1120_v6 }
  0xd5   : > { %v1253_v24 = vadd.f32 %v1221_v47, %v1122_v46  ;;  %v472_v26 = vadd.f32 %v440_v8, %v341_v48  ;;  %v569_v11 = vsel %vm518_vm4, %v5813_v63, 0.0  ;;  %v571_v7 = vsel %vm520_vm5, %v5813_v63, 0.0 }
  0xd6   : > { %v601_v15 = vadd.f32 %v569_v11, %v470_v23  ;;  %vm649_vm6 = vcmp.eq.s32.totalorder %v10070_v36, %v5829_v31  ;;  %vm651_vm7 = vcmp.eq.s32.totalorder %v10071_v2, %v5829_v31  ;;  %vm780_vm8 = vcmp.eq.s32.totalorder %v10070_v36, %v5841_v32 }
  0xd7   : > { %v5072_v28 = vpack.c.bf16 %v1253_v24, %v1251_v29  ;;  %v603_v3 = vadd.f32 %v571_v7, %v472_v26  ;;  %v700_v16 = vsel %vm649_vm6, %v5835_v35, 0.0  ;;  %v702_v49 = vsel %vm651_vm7, %v5835_v35, 0.0 }
  0xd8   : > { %v732_v18 = vadd.f32 %v700_v16, %v601_v15  ;;  %vm782_vm9 = vcmp.eq.s32.totalorder %v10071_v2, %v5841_v32  ;;  %vm911_vm10 = vcmp.eq.s32.totalorder %v10070_v36, %v5865_v33  ;;  %v831_v6 = vsel %vm780_vm8, %v5847_v38, 0.0 }
  0xd9   : > { %5073 = vmatpush1.bf16.msra.mxu0 %v5072_v28  ;;  %v734_v47 = vadd.f32 %v702_v49, %v603_v3  ;;  %v833_v46 = vsel %vm782_vm9, %v5847_v38, 0.0  ;;  %vm913_vm11 = vcmp.eq.s32.totalorder %v10071_v2, %v5865_v33  ;;  %v962_v8 = vsel %vm911_vm10, %v5871_v61, 0.0 }
  0xda   : > { %v863_v48 = vadd.f32 %v831_v6, %v732_v18  ;;  %v964_v23 = vsel %vm913_vm11, %v5871_v61, 0.0  ;;  %vm1042_vm12 = vcmp.eq.s32.totalorder %v10070_v36, %v5877_v54  ;;  %vm1044_vm13 = vcmp.eq.s32.totalorder %v10071_v2, %v5877_v54 }
  0xdb   : > { %v865_v29 = vadd.f32 %v833_v46, %v734_v47  ;;  %v1093_v24 = vsel %vm1042_vm12, %v5883_v4, 0.0  ;;  %vm1173_vm14 = vcmp.eq.s32.totalorder %v10070_v36, %v5899_v30  ;;  %v1095_v11 = vsel %vm1044_vm13, %v5883_v4, 0.0 }
  0xdc   : > { %v994_v26 = vadd.f32 %v962_v8, %v863_v48  ;;  %vm1175_vm15 = vcmp.eq.s32.totalorder %v10071_v2, %v5899_v30  ;;  %v1224_v7 = vsel %vm1173_vm14, %v5905_v45, 0.0  ;;  %vm287_vm0 = vcmp.eq.s32.totalorder %v10070_v36, %v5778_v43 }
  0xdd   : > { %v996_v15 = vadd.f32 %v964_v23, %v865_v29  ;;  %v1226_v28 = vsel %vm1175_vm15, %v5905_v45, 0.0  ;;  %vm289_vm1 = vcmp.eq.s32.totalorder %v10071_v2, %v5778_v43  ;;  %v338_v16 = vsel %vm287_vm0, %v5772_v39, 0.0 }
  0xde   : > { %v1125_v3 = vadd.f32 %v1093_v24, %v994_v26  ;;  %v340_v49 = vsel %vm289_vm1, %v5772_v39, 0.0  ;;  %vm386_vm2 = vcmp.eq.s32.totalorder %v10070_v36, %v5792_v55  ;;  %vm388_vm3 = vcmp.eq.s32.totalorder %v10071_v2, %v5792_v55 }
  0xdf   : > { %v1127_v18 = vadd.f32 %v1095_v11, %v996_v15  ;;  %v437_v47 = vsel %vm386_vm2, %v5798_v58, 0.0  ;;  %vm517_vm4 = vcmp.eq.s32.totalorder %v10070_v36, %v5804_v57  ;;  %v439_v46 = vsel %vm388_vm3, %v5798_v58, 0.0 }
  0xe0   : > { %v1256_v6 = vadd.f32 %v1224_v7, %v1125_v3  ;;  %v469_v48 = vadd.f32 %v437_v47, %v338_v16  ;;  %vm519_vm5 = vcmp.eq.s32.totalorder %v10071_v2, %v5804_v57  ;;  %v471_v23 = vadd.f32 %v439_v46, %v340_v49 }
  0xe1   : > { %v1258_v8 = vadd.f32 %v1226_v28, %v1127_v18  ;;  %v568_v29 = vsel %vm517_vm4, %v5810_v51, 0.0  ;;  %v570_v24 = vsel %vm519_vm5, %v5810_v51, 0.0  ;;  %vm648_vm6 = vcmp.eq.s32.totalorder %v10070_v36, %v5826_v25 }
  0xe2   : > { %v600_v26 = vadd.f32 %v568_v29, %v469_v48  ;;  %vm650_vm7 = vcmp.eq.s32.totalorder %v10071_v2, %v5826_v25  ;;  %vm779_vm8 = vcmp.eq.s32.totalorder %v10070_v36, %v5838_v52  ;;  %v602_v7 = vadd.f32 %v570_v24, %v471_v23 }
  0xe3   : > { %v5074_v11 = vpack.c.bf16 %v1258_v8, %v1256_v6  ;;  %v699_v15 = vsel %vm648_vm6, %v5832_v34, 0.0  ;;  %v701_v28 = vsel %vm650_vm7, %v5832_v34, 0.0  ;;  %vm781_vm9 = vcmp.eq.s32.totalorder %v10071_v2, %v5838_v52 }
  0xe4   : > { %v731_v3 = vadd.f32 %v699_v15, %v600_v26  ;;  %v830_v16 = vsel %vm779_vm8, %v5844_v60, 0.0  ;;  %vm910_vm10 = vcmp.eq.s32.totalorder %v10070_v36, %v5862_v50  ;;  %v733_v49 = vadd.f32 %v701_v28, %v602_v7  ;;  %v10072_v26 = vld [vmem:[#allocation22_spill] sm:$0xff]  ;;  %v10073_v15 = vld [vmem:[#allocation23_spill] sm:$0xff] }
  0xe5   : > { %5075 = vmatprep.subr.bf16.mxu0 %v5074_v11  ;;  %v832_v18 = vsel %vm781_vm9, %v5844_v60, 0.0  ;;  %vm912_vm11 = vcmp.eq.s32.totalorder %v10071_v2, %v5862_v50  ;;  %v961_v47 = vsel %vm910_vm10, %v5868_v53, 0.0  ;;  %vm1041_vm12 = vcmp.eq.s32.totalorder %v10070_v36, %v5874_v41 }
  0xe6   : > { %v862_v6 = vadd.f32 %v830_v16, %v731_v3  ;;  %v963_v46 = vsel %vm912_vm11, %v5868_v53, 0.0  ;;  %vm1043_vm13 = vcmp.eq.s32.totalorder %v10071_v2, %v5874_v41  ;;  %v864_v48 = vadd.f32 %v832_v18, %v733_v49 }
  0xe7   : > { %v1092_v8 = vsel %vm1041_vm12, %v5880_v0, 0.0  ;;  %v1094_v23 = vsel %vm1043_vm13, %v5880_v0, 0.0  ;;  %vm1172_vm14 = vcmp.eq.s32.totalorder %v10070_v36, %v5896_v22  ;;  %vm1174_vm15 = vcmp.eq.s32.totalorder %v10071_v2, %v5896_v22 }
  0xe8   : > { %v993_v29 = vadd.f32 %v961_v47, %v862_v6  ;;  %v1223_v24 = vsel %vm1172_vm14, %v5902_v42, 0.0  ;;  %vm292_vm0 = vcmp.eq.s32.totalorder %v10072_v26, %v5781_v44  ;;  %v995_v11 = vadd.f32 %v963_v46, %v864_v48 }
  0xe9   : > { %v1225_v7 = vsel %vm1174_vm15, %v5902_v42, 0.0  ;;  %vm294_vm1 = vcmp.eq.s32.totalorder %v10073_v15, %v5781_v44  ;;  %v343_v28 = vsel %vm292_vm0, %v5775_v40, 0.0  ;;  %vm391_vm2 = vcmp.eq.s32.totalorder %v10072_v26, %v5795_v56 }
  0xea   : > { %v1124_v3 = vadd.f32 %v1092_v8, %v993_v29  ;;  %v345_v36 = vsel %vm294_vm1, %v5775_v40, 0.0  ;;  %vm393_vm3 = vcmp.eq.s32.totalorder %v10073_v15, %v5795_v56  ;;  %v1126_v2 = vadd.f32 %v1094_v23, %v995_v11 }
  0xeb   : > { %v442_v16 = vsel %vm391_vm2, %v5801_v59, 0.0  ;;  %v444_v49 = vsel %vm393_vm3, %v5801_v59, 0.0  ;;  %vm522_vm4 = vcmp.eq.s32.totalorder %v10072_v26, %v5807_v62  ;;  %vm524_vm5 = vcmp.eq.s32.totalorder %v10073_v15, %v5807_v62 }
  0xec   : > { %v1255_v18 = vadd.f32 %v1223_v24, %v1124_v3  ;;  %v474_v47 = vadd.f32 %v442_v16, %v343_v28  ;;  %v476_v6 = vadd.f32 %v444_v49, %v345_v36  ;;  %v1257_v46 = vadd.f32 %v1225_v7, %v1126_v2 }
  0xed   : > { %v573_v48 = vsel %vm522_vm4, %v5813_v63, 0.0  ;;  %v575_v8 = vsel %vm524_vm5, %v5813_v63, 0.0  ;;  %vm653_vm6 = vcmp.eq.s32.totalorder %v10072_v26, %v5829_v31  ;;  %vm655_vm7 = vcmp.eq.s32.totalorder %v10073_v15, %v5829_v31 }
  0xee   : > { %v605_v23 = vadd.f32 %v573_v48, %v474_v47  ;;  %v607_v29 = vadd.f32 %v575_v8, %v476_v6  ;;  %v704_v24 = vsel %vm653_vm6, %v5835_v35, 0.0  ;;  %v5076_v11 = vpack.c.bf16 %v1257_v46, %v1255_v18 }
  0xef   : > { %v706_v28 = vsel %vm655_vm7, %v5835_v35, 0.0  ;;  %vm784_vm8 = vcmp.eq.s32.totalorder %v10072_v26, %v5841_v32  ;;  %vm786_vm9 = vcmp.eq.s32.totalorder %v10073_v15, %v5841_v32  ;;  %vm915_vm10 = vcmp.eq.s32.totalorder %v10072_v26, %v5865_v33 }
  0xf0   : > { %v736_v7 = vadd.f32 %v704_v24, %v605_v23  ;;  %v738_v3 = vadd.f32 %v706_v28, %v607_v29  ;;  %v835_v36 = vsel %vm784_vm8, %v5847_v38, 0.0  ;;  %v837_v2 = vsel %vm786_vm9, %v5847_v38, 0.0  ;;  %5077 = vmatpush1.bf16.msra.mxu0 %v5076_v11 }
  0xf1   : > { %vm917_vm11 = vcmp.eq.s32.totalorder %v10073_v15, %v5865_v33  ;;  %vm1046_vm12 = vcmp.eq.s32.totalorder %v10072_v26, %v5877_v54  ;;  %vm1048_vm13 = vcmp.eq.s32.totalorder %v10073_v15, %v5877_v54  ;;  %v966_v18 = vsel %vm915_vm10, %v5871_v61, 0.0 }
  0xf2   : > { %v867_v16 = vadd.f32 %v835_v36, %v736_v7  ;;  %v869_v49 = vadd.f32 %v837_v2, %v738_v3  ;;  %v968_v47 = vsel %vm917_vm11, %v5871_v61, 0.0  ;;  %v1097_v6 = vsel %vm1046_vm12, %v5883_v4, 0.0 }
  0xf3   : > { %v1099_v46 = vsel %vm1048_vm13, %v5883_v4, 0.0  ;;  %vm1177_vm14 = vcmp.eq.s32.totalorder %v10072_v26, %v5899_v30  ;;  %vm1179_vm15 = vcmp.eq.s32.totalorder %v10073_v15, %v5899_v30  ;;  %vm291_vm0 = vcmp.eq.s32.totalorder %v10072_v26, %v5778_v43 }
  0xf4   : > { %v998_v48 = vadd.f32 %v966_v18, %v867_v16  ;;  %v1000_v8 = vadd.f32 %v968_v47, %v869_v49  ;;  %v1228_v23 = vsel %vm1177_vm14, %v5905_v45, 0.0  ;;  %v1230_v29 = vsel %vm1179_vm15, %v5905_v45, 0.0 }
  0xf5   : > { %vm293_vm1 = vcmp.eq.s32.totalorder %v10073_v15, %v5778_v43  ;;  %vm390_vm2 = vcmp.eq.s32.totalorder %v10072_v26, %v5792_v55  ;;  %vm392_vm3 = vcmp.eq.s32.totalorder %v10073_v15, %v5792_v55  ;;  %v342_v28 = vsel %vm291_vm0, %v5772_v39, 0.0 }
  0xf6   : > { %v1129_v24 = vadd.f32 %v1097_v6, %v998_v48  ;;  %v1131_v11 = vadd.f32 %v1099_v46, %v1000_v8  ;;  %v344_v7 = vsel %vm293_vm1, %v5772_v39, 0.0  ;;  %v441_v3 = vsel %vm390_vm2, %v5798_v58, 0.0 }
  0xf7   : > { %v443_v36 = vsel %vm392_vm3, %v5798_v58, 0.0  ;;  %vm521_vm4 = vcmp.eq.s32.totalorder %v10072_v26, %v5804_v57  ;;  %vm523_vm5 = vcmp.eq.s32.totalorder %v10073_v15, %v5804_v57  ;;  %v473_v49 = vadd.f32 %v441_v3, %v342_v28 }
  0xf8   : > { %v1260_v2 = vadd.f32 %v1228_v23, %v1129_v24  ;;  %v1262_v16 = vadd.f32 %v1230_v29, %v1131_v11  ;;  %v475_v18 = vadd.f32 %v443_v36, %v344_v7  ;;  %v572_v47 = vsel %vm521_vm4, %v5810_v51, 0.0 }
  0xf9   : > { %v574_v6 = vsel %vm523_vm5, %v5810_v51, 0.0  ;;  %vm652_vm6 = vcmp.eq.s32.totalorder %v10072_v26, %v5826_v25  ;;  %vm654_vm7 = vcmp.eq.s32.totalorder %v10073_v15, %v5826_v25  ;;  %v604_v48 = vadd.f32 %v572_v47, %v473_v49 }
  0xfa   : > { %v5078_v46 = vpack.c.bf16 %v1262_v16, %v1260_v2  ;;  %v606_v8 = vadd.f32 %v574_v6, %v475_v18  ;;  %v703_v12 = vsel %vm652_vm6, %v5832_v34, 0.0  ;;  %v705_v23 = vsel %vm654_vm7, %v5832_v34, 0.0 }
  0xfb   : > { %vm783_vm8 = vcmp.eq.s32.totalorder %v10072_v26, %v5838_v52  ;;  %vm785_vm9 = vcmp.eq.s32.totalorder %v10073_v15, %v5838_v52  ;;  %vm914_vm10 = vcmp.eq.s32.totalorder %v10072_v26, %v5862_v50  ;;  %v735_v29 = vadd.f32 %v703_v12, %v604_v48 }
  0xfc   : > { %5079 = vmatprep.subr.bf16.mxu0 %v5078_v46  ;;  %v737_v24 = vadd.f32 %v705_v23, %v606_v8  ;;  %v834_v11 = vsel %vm783_vm8, %v5844_v60, 0.0  ;;  %v836_v28 = vsel %vm785_vm9, %v5844_v60, 0.0  ;;  %vm916_vm11 = vcmp.eq.s32.totalorder %v10073_v15, %v5862_v50 }
  0xfd   : > { %v965_v7 = vsel %vm914_vm10, %v5868_v53, 0.0  ;;  %vm1045_vm12 = vcmp.eq.s32.totalorder %v10072_v26, %v5874_v41  ;;  %vm1047_vm13 = vcmp.eq.s32.totalorder %v10073_v15, %v5874_v41  ;;  %v866_v3 = vadd.f32 %v834_v11, %v735_v29 }
  0xfe   : > { %v868_v36 = vadd.f32 %v836_v28, %v737_v24  ;;  %v967_v12 = vsel %vm916_vm11, %v5868_v53, 0.0  ;;  %v1096_v2 = vsel %vm1045_vm12, %v5880_v0, 0.0  ;;  %v1098_v16 = vsel %vm1047_vm13, %v5880_v0, 0.0 }
  0xff   : > { %vm1176_vm14 = vcmp.eq.s32.totalorder %v10072_v26, %v5896_v22  ;;  %vm1178_vm15 = vcmp.eq.s32.totalorder %v10073_v15, %v5896_v22  ;;  %v6430_v49 = vadd.s32 80, %v5708_v1  ;;  %v997_v18 = vadd.f32 %v965_v7, %v866_v3 }
 0x100   : > { %v999_v47 = vadd.f32 %v967_v12, %v868_v36  ;;  %v1227_v6 = vsel %vm1176_vm14, %v5902_v42, 0.0  ;;  %v1229_v46 = vsel %vm1178_vm15, %v5902_v42, 0.0  ;;  %v6435_v48 = vadd.s32 88, %v5708_v1 }
 0x101   : > { %10074 = vst [vmem:[#allocation40_spill] sm:$0xff] %v6430_v49  ;;  %vm296_vm0 = vcmp.eq.s32.totalorder %v6430_v49, %v5781_v44  ;;  %vm395_vm1 = vcmp.eq.s32.totalorder %v6430_v49, %v5795_v56  ;;  %vm526_vm2 = vcmp.eq.s32.totalorder %v6430_v49, %v5807_v62  ;;  %v1128_v26 = vadd.f32 %v1096_v2, %v997_v18 }
 0x102   : > { %10075 = vst [vmem:[#allocation41_spill] sm:$0xff] %v6435_v48  ;;  %v1130_v15 = vadd.f32 %v1098_v16, %v999_v47  ;;  %v347_v8 = vsel %vm296_vm0, %v5775_v40, 0.0  ;;  %v446_v23 = vsel %vm395_vm1, %v5801_v59, 0.0  ;;  %vm298_vm3 = vcmp.eq.s32.totalorder %v6435_v48, %v5781_v44 }
 0x103   : > { %vm397_vm4 = vcmp.eq.s32.totalorder %v6435_v48, %v5795_v56  ;;  %v478_v29 = vadd.f32 %v446_v23, %v347_v8  ;;  %vm528_vm5 = vcmp.eq.s32.totalorder %v6435_v48, %v5807_v62  ;;  %v1259_v24 = vadd.f32 %v1227_v6, %v1128_v26 }
 0x104   : > { %v1261_v11 = vadd.f32 %v1229_v46, %v1130_v15  ;;  %v349_v28 = vsel %vm298_vm3, %v5775_v40, 0.0  ;;  %v448_v7 = vsel %vm397_vm4, %v5801_v59, 0.0  ;;  %v577_v36 = vsel %vm526_vm2, %v5813_v63, 0.0 }
 0x105   : > { %v480_v3 = vadd.f32 %v448_v7, %v349_v28  ;;  %v579_v12 = vsel %vm528_vm5, %v5813_v63, 0.0  ;;  %vm657_vm6 = vcmp.eq.s32.totalorder %v6430_v49, %v5829_v31  ;;  %v609_v16 = vadd.f32 %v577_v36, %v478_v29 }
 0x106   : > { %v5080_v2 = vpack.c.bf16 %v1261_v11, %v1259_v24  ;;  %vm659_vm7 = vcmp.eq.s32.totalorder %v6435_v48, %v5829_v31  ;;  %v708_v18 = vsel %vm657_vm6, %v5835_v35, 0.0  ;;  %vm788_vm8 = vcmp.eq.s32.totalorder %v6430_v49, %v5841_v32 }
 0x107   : > { %v611_v47 = vadd.f32 %v579_v12, %v480_v3  ;;  %v710_v6 = vsel %vm659_vm7, %v5835_v35, 0.0  ;;  %vm790_vm9 = vcmp.eq.s32.totalorder %v6435_v48, %v5841_v32  ;;  %v740_v46 = vadd.f32 %v708_v18, %v609_v16 }
 0x108   : > { %5081 = vmatpush1.bf16.msra.mxu0 %v5080_v2  ;;  %v839_v26 = vsel %vm788_vm8, %v5847_v38, 0.0  ;;  %v841_v15 = vsel %vm790_vm9, %v5847_v38, 0.0  ;;  %vm919_vm10 = vcmp.eq.s32.totalorder %v6430_v49, %v5865_v33  ;;  %vm921_vm11 = vcmp.eq.s32.totalorder %v6435_v48, %v5865_v33 }
 0x109   : > { %v742_v8 = vadd.f32 %v710_v6, %v611_v47  ;;  %v970_v23 = vsel %vm919_vm10, %v5871_v61, 0.0  ;;  %vm1050_vm12 = vcmp.eq.s32.totalorder %v6430_v49, %v5877_v54  ;;  %v871_v29 = vadd.f32 %v839_v26, %v740_v46 }
 0x10a   : > { %v972_v24 = vsel %vm921_vm11, %v5871_v61, 0.0  ;;  %vm1052_vm13 = vcmp.eq.s32.totalorder %v6435_v48, %v5877_v54  ;;  %v1101_v11 = vsel %vm1050_vm12, %v5883_v4, 0.0  ;;  %vm1181_vm14 = vcmp.eq.s32.totalorder %v6430_v49, %v5899_v30 }
 0x10b   : > { %v873_v28 = vadd.f32 %v841_v15, %v742_v8  ;;  %v1103_v7 = vsel %vm1052_vm13, %v5883_v4, 0.0  ;;  %vm1183_vm15 = vcmp.eq.s32.totalorder %v6435_v48, %v5899_v30  ;;  %v1002_v3 = vadd.f32 %v970_v23, %v871_v29 }
 0x10c   : > { %v1232_v36 = vsel %vm1181_vm14, %v5905_v45, 0.0  ;;  %v1234_v12 = vsel %vm1183_vm15, %v5905_v45, 0.0  ;;  %vm295_vm0 = vcmp.eq.s32.totalorder %v6430_v49, %v5778_v43  ;;  %vm297_vm1 = vcmp.eq.s32.totalorder %v6435_v48, %v5778_v43 }
 0x10d   : > { %v1004_v2 = vadd.f32 %v972_v24, %v873_v28  ;;  %v346_v16 = vsel %vm295_vm0, %v5772_v39, 0.0  ;;  %vm394_vm2 = vcmp.eq.s32.totalorder %v6430_v49, %v5792_v55  ;;  %v1133_v18 = vadd.f32 %v1101_v11, %v1002_v3 }
 0x10e   : > { %v348_v47 = vsel %vm297_vm1, %v5772_v39, 0.0  ;;  %vm396_vm3 = vcmp.eq.s32.totalorder %v6435_v48, %v5792_v55  ;;  %v445_v6 = vsel %vm394_vm2, %v5798_v58, 0.0  ;;  %vm525_vm4 = vcmp.eq.s32.totalorder %v6430_v49, %v5804_v57 }
 0x10f   : > { %v1135_v46 = vadd.f32 %v1103_v7, %v1004_v2  ;;  %v447_v26 = vsel %vm396_vm3, %v5798_v58, 0.0  ;;  %v477_v15 = vadd.f32 %v445_v6, %v346_v16  ;;  %v1264_v8 = vadd.f32 %v1232_v36, %v1133_v18 }
 0x110   : > { %v479_v23 = vadd.f32 %v447_v26, %v348_v47  ;;  %vm527_vm5 = vcmp.eq.s32.totalorder %v6435_v48, %v5804_v57  ;;  %v576_v29 = vsel %vm525_vm4, %v5810_v51, 0.0  ;;  %vm656_vm6 = vcmp.eq.s32.totalorder %v6430_v49, %v5826_v25 }
 0x111   : > { %v1266_v24 = vadd.f32 %v1234_v12, %v1135_v46  ;;  %v578_v11 = vsel %vm527_vm5, %v5810_v51, 0.0  ;;  %v608_v28 = vadd.f32 %v576_v29, %v477_v15  ;;  %vm658_vm7 = vcmp.eq.s32.totalorder %v6435_v48, %v5826_v25 }
 0x112   : > { %v610_v7 = vadd.f32 %v578_v11, %v479_v23  ;;  %v707_v3 = vsel %vm656_vm6, %v5832_v34, 0.0  ;;  %vm787_vm8 = vcmp.eq.s32.totalorder %v6430_v49, %v5838_v52  ;;  %v709_v2 = vsel %vm658_vm7, %v5832_v34, 0.0 }
 0x113   : > { %v5082_v36 = vpack.c.bf16 %v1266_v24, %v1264_v8  ;;  %v739_v16 = vadd.f32 %v707_v3, %v608_v28  ;;  %vm789_vm9 = vcmp.eq.s32.totalorder %v6435_v48, %v5838_v52  ;;  %v838_v18 = vsel %vm787_vm8, %v5844_v60, 0.0 }
 0x114   : > { %v741_v12 = vadd.f32 %v709_v2, %v610_v7  ;;  %v840_v47 = vsel %vm789_vm9, %v5844_v60, 0.0  ;;  %vm918_vm10 = vcmp.eq.s32.totalorder %v6430_v49, %v5862_v50  ;;  %vm920_vm11 = vcmp.eq.s32.totalorder %v6435_v48, %v5862_v50 }
 0x115   : > { %5083 = vmatprep.subr.bf16.mxu0 %v5082_v36  ;;  %v870_v6 = vadd.f32 %v838_v18, %v739_v16  ;;  %v969_v46 = vsel %vm918_vm10, %v5868_v53, 0.0  ;;  %vm1049_vm12 = vcmp.eq.s32.totalorder %v6430_v49, %v5874_v41  ;;  %v971_v15 = vsel %vm920_vm11, %v5868_v53, 0.0 }
 0x116   : > { %v872_v26 = vadd.f32 %v840_v47, %v741_v12  ;;  %vm1051_vm13 = vcmp.eq.s32.totalorder %v6435_v48, %v5874_v41  ;;  %v1100_v8 = vsel %vm1049_vm12, %v5880_v0, 0.0  ;;  %vm1180_vm14 = vcmp.eq.s32.totalorder %v6430_v49, %v5896_v22 }
 0x117   : > { %v1001_v23 = vadd.f32 %v969_v46, %v870_v6  ;;  %v1102_v29 = vsel %vm1051_vm13, %v5880_v0, 0.0  ;;  %vm1182_vm15 = vcmp.eq.s32.totalorder %v6435_v48, %v5896_v22  ;;  %v1231_v11 = vsel %vm1180_vm14, %v5902_v42, 0.0 }
 0x118   : > { %v1003_v24 = vadd.f32 %v971_v15, %v872_v26  ;;  %v1233_v28 = vsel %vm1182_vm15, %v5902_v42, 0.0  ;;  %v6534_v7 = vadd.s32 96, %v5708_v1  ;;  %v6537_v36 = vadd.s32 104, %v5708_v1 }
 0x119   : > { %v1132_v3 = vadd.f32 %v1100_v8, %v1001_v23  ;;  %v6540_v2 = vadd.s32 112, %v5708_v1  ;;  %v6543_v16 = vadd.s32 120, %v5708_v1 }
 0x11a   : > { %v1134_v12 = vadd.f32 %v1102_v29, %v1003_v24  ;;  %vm300_vm0 = vcmp.eq.s32.totalorder %v6534_v7, %v5781_v44  ;;  %vm399_vm1 = vcmp.eq.s32.totalorder %v6534_v7, %v5795_v56  ;;  %vm530_vm2 = vcmp.eq.s32.totalorder %v6534_v7, %v5807_v62 }
 0x11b   : > { %v1263_v18 = vadd.f32 %v1231_v11, %v1132_v3  ;;  %vm302_vm3 = vcmp.eq.s32.totalorder %v6537_v36, %v5781_v44  ;;  %v351_v47 = vsel %vm300_vm0, %v5775_v40, 0.0  ;;  %vm401_vm4 = vcmp.eq.s32.totalorder %v6537_v36, %v5795_v56 }
 0x11c   : > { %v1265_v6 = vadd.f32 %v1233_v28, %v1134_v12  ;;  %v353_v46 = vsel %vm302_vm3, %v5775_v40, 0.0  ;;  %v450_v26 = vsel %vm399_vm1, %v5801_v59, 0.0  ;;  %v452_v15 = vsel %vm401_vm4, %v5801_v59, 0.0 }
 0x11d   : > { %v482_v8 = vadd.f32 %v450_v26, %v351_v47  ;;  %v484_v23 = vadd.f32 %v452_v15, %v353_v46  ;;  %vm532_vm5 = vcmp.eq.s32.totalorder %v6537_v36, %v5807_v62  ;;  %v581_v29 = vsel %vm530_vm2, %v5813_v63, 0.0 }
 0x11e   : > { %v5084_v24 = vpack.c.bf16 %v1265_v6, %v1263_v18  ;;  %v583_v11 = vsel %vm532_vm5, %v5813_v63, 0.0  ;;  %vm661_vm6 = vcmp.eq.s32.totalorder %v6534_v7, %v5829_v31  ;;  %vm663_vm7 = vcmp.eq.s32.totalorder %v6537_v36, %v5829_v31 }
 0x11f   : > { %v613_v28 = vadd.f32 %v581_v29, %v482_v8  ;;  %v615_v3 = vadd.f32 %v583_v11, %v484_v23  ;;  %v712_v12 = vsel %vm661_vm6, %v5835_v35, 0.0  ;;  %v714_v47 = vsel %vm663_vm7, %v5835_v35, 0.0 }
 0x120   : > { %5085 = vmatpush1.bf16.msra.mxu0 %v5084_v24  ;;  %vm792_vm8 = vcmp.eq.s32.totalorder %v6534_v7, %v5841_v32  ;;  %vm794_vm9 = vcmp.eq.s32.totalorder %v6537_v36, %v5841_v32  ;;  %vm923_vm10 = vcmp.eq.s32.totalorder %v6534_v7, %v5865_v33  ;;  %vm925_vm11 = vcmp.eq.s32.totalorder %v6537_v36, %v5865_v33 }
 0x121   : > { %v744_v18 = vadd.f32 %v712_v12, %v613_v28  ;;  %v746_v6 = vadd.f32 %v714_v47, %v615_v3  ;;  %v843_v46 = vsel %vm792_vm8, %v5847_v38, 0.0  ;;  %v845_v26 = vsel %vm794_vm9, %v5847_v38, 0.0 }
 0x122   : > { %v974_v15 = vsel %vm923_vm10, %v5871_v61, 0.0  ;;  %v976_v8 = vsel %vm925_vm11, %v5871_v61, 0.0  ;;  %vm1054_vm12 = vcmp.eq.s32.totalorder %v6534_v7, %v5877_v54  ;;  %vm1056_vm13 = vcmp.eq.s32.totalorder %v6537_v36, %v5877_v54 }
 0x123   : > { %v875_v23 = vadd.f32 %v843_v46, %v744_v18  ;;  %v877_v29 = vadd.f32 %v845_v26, %v746_v6  ;;  %v1105_v24 = vsel %vm1054_vm12, %v5883_v4, 0.0  ;;  %v1107_v11 = vsel %vm1056_vm13, %v5883_v4, 0.0 }
 0x124   : > { %vm1185_vm14 = vcmp.eq.s32.totalorder %v6534_v7, %v5899_v30  ;;  %vm1187_vm15 = vcmp.eq.s32.totalorder %v6537_v36, %v5899_v30  ;;  %vm299_vm0 = vcmp.eq.s32.totalorder %v6534_v7, %v5778_v43  ;;  %vm301_vm1 = vcmp.eq.s32.totalorder %v6537_v36, %v5778_v43 }
 0x125   : > { %v1006_v28 = vadd.f32 %v974_v15, %v875_v23  ;;  %v1008_v3 = vadd.f32 %v976_v8, %v877_v29  ;;  %v1236_v12 = vsel %vm1185_vm14, %v5905_v45, 0.0  ;;  %v1238_v47 = vsel %vm1187_vm15, %v5905_v45, 0.0 }
 0x126   : > { %v350_v18 = vsel %vm299_vm0, %v5772_v39, 0.0  ;;  %v352_v6 = vsel %vm301_vm1, %v5772_v39, 0.0  ;;  %vm398_vm2 = vcmp.eq.s32.totalorder %v6534_v7, %v5792_v55  ;;  %vm400_vm3 = vcmp.eq.s32.totalorder %v6537_v36, %v5792_v55 }
 0x127   : > { %v1137_v46 = vadd.f32 %v1105_v24, %v1006_v28  ;;  %v1139_v26 = vadd.f32 %v1107_v11, %v1008_v3  ;;  %v449_v48 = vsel %vm398_vm2, %v5798_v58, 0.0  ;;  %v451_v15 = vsel %vm400_vm3, %v5798_v58, 0.0 }
 0x128   : > { %v481_v8 = vadd.f32 %v449_v48, %v350_v18  ;;  %v483_v23 = vadd.f32 %v451_v15, %v352_v6  ;;  %vm529_vm4 = vcmp.eq.s32.totalorder %v6534_v7, %v5804_v57  ;;  %vm531_vm5 = vcmp.eq.s32.totalorder %v6537_v36, %v5804_v57 }
 0x129   : > { %v1268_v29 = vadd.f32 %v1236_v12, %v1137_v46  ;;  %v1270_v49 = vadd.f32 %v1238_v47, %v1139_v26  ;;  %v580_v10 = vsel %vm529_vm4, %v5810_v51, 0.0  ;;  %v582_v17 = vsel %vm531_vm5, %v5810_v51, 0.0 }
 0x12a   : > { %v612_v24 = vadd.f32 %v580_v10, %v481_v8  ;;  %v614_v11 = vadd.f32 %v582_v17, %v483_v23  ;;  %vm660_vm6 = vcmp.eq.s32.totalorder %v6534_v7, %v5826_v25  ;;  %vm662_vm7 = vcmp.eq.s32.totalorder %v6537_v36, %v5826_v25 }
 0x12b   : > { %v5086_v48 = vpack.c.bf16 %v1270_v49, %v1268_v29  ;;  %v711_v28 = vsel %vm660_vm6, %v5832_v34, 0.0  ;;  %v713_v3 = vsel %vm662_vm7, %v5832_v34, 0.0  ;;  %vm791_vm8 = vcmp.eq.s32.totalorder %v6534_v7, %v5838_v52 }
 0x12c   : > { %v743_v12 = vadd.f32 %v711_v28, %v612_v24  ;;  %v745_v47 = vadd.f32 %v713_v3, %v614_v11  ;;  %vm793_vm9 = vcmp.eq.s32.totalorder %v6537_v36, %v5838_v52  ;;  %v842_v10 = vsel %vm791_vm8, %v5844_v60, 0.0 }
 0x12d   : > { %5087 = vmatprep.subr.bf16.mxu0 %v5086_v48  ;;  %v844_v17 = vsel %vm793_vm9, %v5844_v60, 0.0  ;;  %vm922_vm10 = vcmp.eq.s32.totalorder %v6534_v7, %v5862_v50  ;;  %vm924_vm11 = vcmp.eq.s32.totalorder %v6537_v36, %v5862_v50  ;;  %vm1053_vm12 = vcmp.eq.s32.totalorder %v6534_v7, %v5874_v41 }
 0x12e   : > { %v874_v49 = vadd.f32 %v842_v10, %v743_v12  ;;  %v876_v18 = vadd.f32 %v844_v17, %v745_v47  ;;  %v973_v6 = vsel %vm922_vm10, %v5868_v53, 0.0  ;;  %v975_v46 = vsel %vm924_vm11, %v5868_v53, 0.0 }
 0x12f   : > { %vm1055_vm13 = vcmp.eq.s32.totalorder %v6537_v36, %v5874_v41  ;;  %v1104_v26 = vsel %vm1053_vm12, %v5880_v0, 0.0  ;;  %vm1184_vm14 = vcmp.eq.s32.totalorder %v6534_v7, %v5896_v22  ;;  %vm1186_vm15 = vcmp.eq.s32.totalorder %v6537_v36, %v5896_v22 }
 0x130   : > { %v1005_v15 = vadd.f32 %v973_v6, %v874_v49  ;;  %v1007_v8 = vadd.f32 %v975_v46, %v876_v18  ;;  %v1106_v23 = vsel %vm1055_vm13, %v5880_v0, 0.0  ;;  %v1235_v29 = vsel %vm1184_vm14, %v5902_v42, 0.0 }
 0x131   : > { %v1237_v24 = vsel %vm1186_vm15, %v5902_v42, 0.0  ;;  %vm304_vm0 = vcmp.eq.s32.totalorder %v6540_v2, %v5781_v44  ;;  %vm306_vm1 = vcmp.eq.s32.totalorder %v6543_v16, %v5781_v44  ;;  %vm403_vm2 = vcmp.eq.s32.totalorder %v6540_v2, %v5795_v56 }
 0x132   : > { %v1136_v11 = vadd.f32 %v1104_v26, %v1005_v15  ;;  %v1138_v48 = vadd.f32 %v1106_v23, %v1007_v8  ;;  %v355_v28 = vsel %vm304_vm0, %v5775_v40, 0.0  ;;  %v357_v3 = vsel %vm306_vm1, %v5775_v40, 0.0 }
 0x133   : > { %vm405_vm3 = vcmp.eq.s32.totalorder %v6543_v16, %v5795_v56  ;;  %v454_v12 = vsel %vm403_vm2, %v5801_v59, 0.0  ;;  %vm534_vm4 = vcmp.eq.s32.totalorder %v6540_v2, %v5807_v62  ;;  %vm536_vm5 = vcmp.eq.s32.totalorder %v6543_v16, %v5807_v62 }
 0x134   : > { %v1267_v44 = vadd.f32 %v1235_v29, %v1136_v11  ;;  %v1269_v47 = vadd.f32 %v1237_v24, %v1138_v48  ;;  %v456_v10 = vsel %vm405_vm3, %v5801_v59, 0.0  ;;  %v486_v17 = vadd.f32 %v454_v12, %v355_v28 }
 0x135   : > { %v488_v49 = vadd.f32 %v456_v10, %v357_v3  ;;  %v585_v18 = vsel %vm534_vm4, %v5813_v63, 0.0  ;;  %v587_v40 = vsel %vm536_vm5, %v5813_v63, 0.0  ;;  %vm665_vm6 = vcmp.eq.s32.totalorder %v6540_v2, %v5829_v31 }
 0x136   : > { %v5088_v56 = vpack.c.bf16 %v1269_v47, %v1267_v44  ;;  %v617_v6 = vadd.f32 %v585_v18, %v486_v17  ;;  %vm667_vm7 = vcmp.eq.s32.totalorder %v6543_v16, %v5829_v31  ;;  %v716_v62 = vsel %vm665_vm6, %v5835_v35, 0.0 }
 0x137   : > { %v619_v46 = vadd.f32 %v587_v40, %v488_v49  ;;  %v718_v26 = vsel %vm667_vm7, %v5835_v35, 0.0  ;;  %vm796_vm8 = vcmp.eq.s32.totalorder %v6540_v2, %v5841_v32  ;;  %vm798_vm9 = vcmp.eq.s32.totalorder %v6543_v16, %v5841_v32 }
 0x138   : > { %5089 = vmatpush1.bf16.msra.mxu0 %v5088_v56  ;;  %v748_v59 = vadd.f32 %v716_v62, %v617_v6  ;;  %v847_v63 = vsel %vm796_vm8, %v5847_v38, 0.0  ;;  %v849_v15 = vsel %vm798_vm9, %v5847_v38, 0.0  ;;  %vm927_vm10 = vcmp.eq.s32.totalorder %v6540_v2, %v5865_v33 }
 0x139   : > { %v750_v31 = vadd.f32 %v718_v26, %v619_v46  ;;  %vm929_vm11 = vcmp.eq.s32.totalorder %v6543_v16, %v5865_v33  ;;  %v978_v35 = vsel %vm927_vm10, %v5871_v61, 0.0  ;;  %vm1058_vm12 = vcmp.eq.s32.totalorder %v6540_v2, %v5877_v54 }
 0x13a   : > { %v879_v8 = vadd.f32 %v847_v63, %v748_v59  ;;  %v980_v32 = vsel %vm929_vm11, %v5871_v61, 0.0  ;;  %vm1060_vm13 = vcmp.eq.s32.totalorder %v6543_v16, %v5877_v54  ;;  %v1109_v38 = vsel %vm1058_vm12, %v5883_v4, 0.0 }
 0x13b   : > { %v881_v23 = vadd.f32 %v849_v15, %v750_v31  ;;  %v1111_v29 = vsel %vm1060_vm13, %v5883_v4, 0.0  ;;  %vm1189_vm14 = vcmp.eq.s32.totalorder %v6540_v2, %v5899_v30  ;;  %vm1191_vm15 = vcmp.eq.s32.totalorder %v6543_v16, %v5899_v30 }
 0x13c   : > { %v1010_v33 = vadd.f32 %v978_v35, %v879_v8  ;;  %v1240_v24 = vsel %vm1189_vm14, %v5905_v45, 0.0  ;;  %v1242_v11 = vsel %vm1191_vm15, %v5905_v45, 0.0  ;;  %vm303_vm0 = vcmp.eq.s32.totalorder %v6540_v2, %v5778_v43 }
 0x13d   : > { %v1012_v61 = vadd.f32 %v980_v32, %v881_v23  ;;  %vm305_vm1 = vcmp.eq.s32.totalorder %v6543_v16, %v5778_v43  ;;  %v354_v54 = vsel %vm303_vm0, %v5772_v39, 0.0  ;;  %vm402_vm2 = vcmp.eq.s32.totalorder %v6540_v2, %v5792_v55 }
 0x13e   : > { %v1141_v4 = vadd.f32 %v1109_v38, %v1010_v33  ;;  %v356_v30 = vsel %vm305_vm1, %v5772_v39, 0.0  ;;  %vm404_vm3 = vcmp.eq.s32.totalorder %v6543_v16, %v5792_v55  ;;  %v453_v45 = vsel %vm402_vm2, %v5798_v58, 0.0 }
 0x13f   : > { %v1143_v48 = vadd.f32 %v1111_v29, %v1012_v61  ;;  %v455_v28 = vsel %vm404_vm3, %v5798_v58, 0.0  ;;  %v485_v3 = vadd.f32 %v453_v45, %v354_v54  ;;  %vm533_vm4 = vcmp.eq.s32.totalorder %v6540_v2, %v5804_v57 }
 0x140   : > { %v1272_v43 = vadd.f32 %v1240_v24, %v1141_v4  ;;  %v487_v12 = vadd.f32 %v455_v28, %v356_v30  ;;  %vm535_vm5 = vcmp.eq.s32.totalorder %v6543_v16, %v5804_v57  ;;  %v584_v44 = vsel %vm533_vm4, %v5810_v51, 0.0 }
 0x141   : > { %v1274_v39 = vadd.f32 %v1242_v11, %v1143_v48  ;;  %v586_v47 = vsel %vm535_vm5, %v5810_v51, 0.0  ;;  %v616_v55 = vadd.f32 %v584_v44, %v485_v3  ;;  %vm664_vm6 = vcmp.eq.s32.totalorder %v6540_v2, %v5826_v25 }
 0x142   : > { %v618_v10 = vadd.f32 %v586_v47, %v487_v12  ;;  %vm666_vm7 = vcmp.eq.s32.totalorder %v6543_v16, %v5826_v25  ;;  %v715_v58 = vsel %vm664_vm6, %v5832_v34, 0.0  ;;  %vm795_vm8 = vcmp.eq.s32.totalorder %v6540_v2, %v5838_v52 }
 0x143   : > { %v5090_v17 = vpack.c.bf16 %v1274_v39, %v1272_v43  ;;  %v717_v57 = vsel %vm666_vm7, %v5832_v34, 0.0  ;;  %v747_v49 = vadd.f32 %v715_v58, %v616_v55  ;;  %vm797_vm9 = vcmp.eq.s32.totalorder %v6543_v16, %v5838_v52 }
 0x144   : > { %v749_v51 = vadd.f32 %v717_v57, %v618_v10  ;;  %v846_v18 = vsel %vm795_vm8, %v5844_v60, 0.0  ;;  %v848_v40 = vsel %vm797_vm9, %v5844_v60, 0.0  ;;  %vm926_vm10 = vcmp.eq.s32.totalorder %v6540_v2, %v5862_v50 }
 0x145   : > { %5091 = vmatprep.subr.bf16.mxu0 %v5090_v17  ;;  %v878_v25 = vadd.f32 %v846_v18, %v747_v49  ;;  %vm928_vm11 = vcmp.eq.s32.totalorder %v6543_v16, %v5862_v50  ;;  %v977_v56 = vsel %vm926_vm10, %v5868_v53, 0.0  ;;  %vm1057_vm12 = vcmp.eq.s32.totalorder %v6540_v2, %v5874_v41 }
 0x146   : > { %v880_v34 = vadd.f32 %v848_v40, %v749_v51  ;;  %v979_v52 = vsel %vm928_vm11, %v5868_v53, 0.0  ;;  %vm1059_vm13 = vcmp.eq.s32.totalorder %v6543_v16, %v5874_v41  ;;  %v1108_v60 = vsel %vm1057_vm12, %v5880_v0, 0.0 }
 0x147   : > { %v1009_v6 = vadd.f32 %v977_v56, %v878_v25  ;;  %v1110_v62 = vsel %vm1059_vm13, %v5880_v0, 0.0  ;;  %vm1188_vm14 = vcmp.eq.s32.totalorder %v6540_v2, %v5896_v22  ;;  %vm1190_vm15 = vcmp.eq.s32.totalorder %v6543_v16, %v5896_v22  ;;  %v1275_v0 = vld [vmem:[#allocation5] sm:$0xff] }
 0x148   : > { %v1011_v50 = vadd.f32 %v979_v52, %v880_v34  ;;  %v1239_v46 = vsel %vm1188_vm14, %v5902_v42, 0.0  ;;  %v1241_v53 = vsel %vm1190_vm15, %v5902_v42, 0.0  ;;  %v5539_v59 = vmov 0.0  }
 0x149   : > { %v1140_v26 = vadd.f32 %v1108_v60, %v1009_v6  ;;  %1340 = vmatprep.mubr.f32.mxu0 %v5539_v59 }
 0x14a   : > { %v1142_v41 = vadd.f32 %v1110_v62, %v1011_v50 }
 0x14b   : > { %v1271_v63 = vadd.f32 %v1239_v46, %v1140_v26 }
 0x14c   : > { %v1273_v15 = vadd.f32 %v1241_v53, %v1142_v41 }
 0x14e   : > { %v5092_v31 = vpack.c.bf16 %v1273_v15, %v1271_v63 }
 0x150   : > { %5093 = vmatpush1.bf16.msra.mxu0 %v5092_v31 }
 0x153   : > { %1341 = vmatmul.mubr.f32.vlgmr.msra.gmra.mrb[0].mxu0 %v1275_v0 }
 0x226   : > { %v1342_v35 = vpop.f32.mrb[0].mxu0  }
 0x227   : > { %v1344_v8 = vpop.f32.mrb[1].mxu0  }
 0x228 LB: >> { %v10076_v37 = vld [vmem:[#allocation36_spill] sm:$0xff]  ;;  %v10078_v21 = vld [vmem:[#allocation34_spill] sm:$0xff]  ;;  %v10079_v20 = vld [vmem:[#allocation31_spill] sm:$0xff]  ;;  %s5046_s22 = sshll.u32 %s5509_s27, 7  ;;  %s5047_s23 = sshll.u32 %s5509_s27, 3  ;;  %v5505_v35 = vphi %v1342_v35, %v10108_v35   ;;  %v5501_v8 = vphi %v1344_v8, %v10107_v8   ;;  %s5509_s27 = sphi %s6745_s27, %s1416_s27  }
 0x229   : >> { %v10077_v27 = vld [vmem:[#allocation28_spill] sm:$0xff]  ;;  %v10080_v19 = vld [vmem:[#allocation25_spill] sm:$0xff]  ;;  %v10081_v14 = vld [vmem:[#allocation35_spill] sm:$0xff]  ;;  %v6785_v43 = vstv %s5046_s22  ;;  %s4953_s28 = scalar_lea.vmem [#allocation5], %s5047_s23  ;;  %s1416_s27 = sadd.s32 1, %s5509_s27  }
 0x22a   : >> { %v10082_v13 = vld [vmem:[#allocation30_spill] sm:$0xff]  ;;  %v10083_v5 = vld [vmem:[#allocation37_spill] sm:$0xff]  ;;  %v10085_v32 = vld [vmem:[#allocation24_spill] sm:$0xff]  ;;  %v6798_v47 = vadd.s32 %v6785_v43, %v5708_v1  ;;  %p1413_p4 = scmp.ge.s32.totalorder %s1416_s27, 4  }
 0x22b   : >> { %v10084_v22 = vld [vmem:[#allocation14_spill] sm:$0xff]  ;;  %v10087_v54 = vld [vmem:[#allocation27_spill] sm:$0xff]  ;;  %v10088_v30 = vld [vmem:[#allocation13_spill] sm:$0xff]  ;;  %s7812_s30 = smov (%p1413_p4), 0  }
 0x22c   : >> { %v1444_v42 = vrot.slane %v10082_v13, %v10084_v22  ;;  %v1493_v38 = vrot.slane %v10085_v32, %v10084_v22  ;;  %v1543_v23 = vrot.slane %v10079_v20, %v10084_v22  ;;  %v1592_v29 = vrot.slane %v10080_v19, %v10084_v22  ;;  %v10086_v24 = vld [vmem:[#allocation26_spill] sm:$0xff]  ;;  %v10089_v9 = vld [vmem:[#allocation15_spill] sm:$0xff]  ;;  %v10090_v49 = vld [vmem:[#allocation29_spill] sm:$0xff] }
 0x22d   : >> { %v1674_v33 = vrot.slane %v10076_v37, %v10084_v22  ;;  %v1723_v11 = vrot.slane %v10086_v24, %v10084_v22  ;;  %v1805_v61 = vrot.slane %v10083_v5, %v10084_v22  ;;  %v1854_v4 = vrot.slane %v10087_v54, %v10084_v22  ;;  %v10091_v18 = vld [vmem:[#allocation38_spill] sm:$0xff] }
 0x22e   : >> { %v6774_v45 = vrot.slane %v1444_v42, %v10088_v30  ;;  %v6777_v48 = vrot.slane %v1493_v38, %v10088_v30  ;;  %v6780_v28 = vrot.slane %v1543_v23, %v10088_v30  ;;  %v6783_v3 = vrot.slane %v1592_v29, %v10088_v30  ;;  %v10092_v23 = vld [vmem:[#allocation32_spill] sm:$0xff] }
 0x22f   : >> { %v6788_v12 = vrot.slane %v1674_v33, %v10088_v30  ;;  %v6791_v44 = vrot.slane %v1723_v11, %v10088_v30  ;;  %v6794_v39 = vrot.slane %v1805_v61, %v10088_v30  ;;  %v6802_v55 = vadd.s32 %v6785_v43, %v10089_v9 }
 0x230   : >> { %v6805_v10 = vrot.slane %v1854_v4, %v10088_v30  ;;  %v1936_v58 = vrot.slane %v10078_v21, %v10084_v22  ;;  %v1985_v17 = vrot.slane %v10077_v27, %v10084_v22  ;;  %v2067_v57 = vrot.slane %v10081_v14, %v10084_v22 }
 0x231   : >> { %v2116_v51 = vrot.slane %v10090_v49, %v10084_v22  ;;  %v2198_v40 = vrot.slane %v10091_v18, %v10084_v22  ;;  %vm1454_vm0 = vcmp.eq.s32.totalorder %v6798_v47, %v6774_v45  ;;  %vm1456_vm1 = vcmp.eq.s32.totalorder %v6802_v55, %v6774_v45 }
 0x232   : >> { %vm1553_vm2 = vcmp.eq.s32.totalorder %v6798_v47, %v6780_v28  ;;  %vm1555_vm3 = vcmp.eq.s32.totalorder %v6802_v55, %v6780_v28  ;;  %v1505_v25 = vsel %vm1454_vm0, %v6777_v48, 0.0  ;;  %v1507_v56 = vsel %vm1456_vm1, %v6777_v48, 0.0 }
 0x233   : >> { %v1604_v34 = vsel %vm1553_vm2, %v6783_v3, 0.0  ;;  %v1606_v52 = vsel %vm1555_vm3, %v6783_v3, 0.0  ;;  %vm1684_vm4 = vcmp.eq.s32.totalorder %v6798_v47, %v6788_v12  ;;  %vm1686_vm5 = vcmp.eq.s32.totalorder %v6802_v55, %v6788_v12 }
 0x234   : >> { %v1636_v60 = vadd.f32 %v1604_v34, %v1505_v25  ;;  %v1638_v6 = vadd.f32 %v1606_v52, %v1507_v56  ;;  %v1735_v62 = vsel %vm1684_vm4, %v6791_v44, 0.0  ;;  %v1737_v50 = vsel %vm1686_vm5, %v6791_v44, 0.0  ;;  %v10094_v25 = vld [vmem:[#allocation33_spill] sm:$0xff] }
 0x235   : >> { %vm1815_vm6 = vcmp.eq.s32.totalorder %v6798_v47, %v6794_v39  ;;  %vm1817_vm7 = vcmp.eq.s32.totalorder %v6802_v55, %v6794_v39  ;;  %v6842_v41 = vrot.slane %v1936_v58, %v10088_v30  ;;  %v6845_v63 = vrot.slane %v1985_v17, %v10088_v30 }
 0x236   : >> { %v1767_v46 = vadd.f32 %v1735_v62, %v1636_v60  ;;  %v1769_v26 = vadd.f32 %v1737_v50, %v1638_v6  ;;  %v1866_v53 = vsel %vm1815_vm6, %v6805_v10, 0.0  ;;  %v1868_v59 = vsel %vm1817_vm7, %v6805_v10, 0.0 }
 0x237   : >> { %v6848_v15 = vrot.slane %v2067_v57, %v10088_v30  ;;  %v6851_v31 = vrot.slane %v2116_v51, %v10088_v30  ;;  %v6854_v38 = vrot.slane %v2198_v40, %v10088_v30  ;;  %v2247_v29 = vrot.slane %v10092_v23, %v10084_v22  ;;  %v10093_v51 = vld [vmem:[#allocation39_spill] sm:$0xff] }
 0x238   : >> { %v1898_v0 = vadd.f32 %v1866_v53, %v1767_v46  ;;  %v1900_v42 = vadd.f32 %v1868_v59, %v1769_v26  ;;  %vm1946_vm8 = vcmp.eq.s32.totalorder %v6798_v47, %v6842_v41  ;;  %vm1948_vm9 = vcmp.eq.s32.totalorder %v6802_v55, %v6842_v41 }
 0x239   : >> { %vm2077_vm10 = vcmp.eq.s32.totalorder %v6798_v47, %v6848_v15  ;;  %vm2079_vm11 = vcmp.eq.s32.totalorder %v6802_v55, %v6848_v15  ;;  %v1997_v33 = vsel %vm1946_vm8, %v6845_v63, 0.0  ;;  %v1999_v11 = vsel %vm1948_vm9, %v6845_v63, 0.0 }
 0x23a   : >> { %v2128_v61 = vsel %vm2077_vm10, %v6851_v31, 0.0  ;;  %v2130_v4 = vsel %vm2079_vm11, %v6851_v31, 0.0  ;;  %v2029_v58 = vadd.f32 %v1997_v33, %v1898_v0  ;;  %v2031_v17 = vadd.f32 %v1999_v11, %v1900_v42 }
 0x23b   : >> { %vm2208_vm12 = vcmp.eq.s32.totalorder %v6798_v47, %v6854_v38  ;;  %vm2210_vm13 = vcmp.eq.s32.totalorder %v6802_v55, %v6854_v38  ;;  %v6875_v57 = vrot.slane %v2247_v29, %v10088_v30  ;;  %v2329_v40 = vrot.slane %v10093_v51, %v10084_v22 }
 0x23c   : >> { %v2378_v56 = vrot.slane %v10094_v25, %v10084_v22  ;;  %v1440_v34 = vrot.slane %v10082_v13, %v10088_v30  ;;  %v2160_v52 = vadd.f32 %v2128_v61, %v2029_v58  ;;  %v2162_v60 = vadd.f32 %v2130_v4, %v2031_v17 }
 0x23d   : >> { %v1489_v6 = vrot.slane %v10085_v32, %v10088_v30  ;;  %v1539_v62 = vrot.slane %v10079_v20, %v10088_v30  ;;  %v2259_v50 = vsel %vm2208_vm12, %v6875_v57, 0.0  ;;  %v2261_v46 = vsel %vm2210_vm13, %v6875_v57, 0.0 }
 0x23e   : >> { %v6890_v26 = vrot.slane %v2329_v40, %v10088_v30  ;;  %v6893_v22 = vrot.slane %v2378_v56, %v10088_v30  ;;  %v2291_v53 = vadd.f32 %v2259_v50, %v2160_v52  ;;  %v2293_v59 = vadd.f32 %v2261_v46, %v2162_v60 }
 0x23f   : >> { %v6896_v0 = vrot.slane %v1440_v34, %v10088_v30  ;;  %v6899_v42 = vrot.slane %v1489_v6, %v10088_v30  ;;  %v6906_v29 = vrot.slane %v1539_v62, %v10088_v30  ;;  %v1588_v33 = vrot.slane %v10080_v19, %v10088_v30 }
 0x240   : >> { %vm2339_vm14 = vcmp.eq.s32.totalorder %v6798_v47, %v6890_v26  ;;  %vm2341_vm15 = vcmp.eq.s32.totalorder %v6802_v55, %v6890_v26  ;;  %v1670_v34 = vrot.slane %v10076_v37, %v10088_v30  ;;  %v1719_v60 = vrot.slane %v10086_v24, %v10088_v30 }
 0x241   : >> { %v2390_v11 = vsel %vm2339_vm14, %v6893_v22, 0.0  ;;  %v2392_v61 = vsel %vm2341_vm15, %v6893_v22, 0.0  ;;  %vm1453_vm0 = vcmp.eq.s32.totalorder %v6798_v47, %v6896_v0  ;;  %vm1455_vm1 = vcmp.eq.s32.totalorder %v6802_v55, %v6896_v0 }
 0x242   : >> { %v2422_v4 = vadd.f32 %v2390_v11, %v2291_v53  ;;  %v2424_v58 = vadd.f32 %v2392_v61, %v2293_v59  ;;  %v1504_v17 = vsel %vm1453_vm0, %v6899_v42, 0.0  ;;  %v1506_v40 = vsel %vm1455_vm1, %v6899_v42, 0.0 }
 0x243   : >> { %vm1552_vm2 = vcmp.eq.s32.totalorder %v6798_v47, %v6906_v29  ;;  %vm1554_vm3 = vcmp.eq.s32.totalorder %v6802_v55, %v6906_v29  ;;  %v6923_v56 = vrot.slane %v1588_v33, %v10088_v30  ;;  %v1801_v6 = vrot.slane %v10083_v5, %v10088_v30 }
 0x244   : >> { %v5094_v52 = vpack.c.bf16 %v2424_v58, %v2422_v4  ;;  %v1850_v62 = vrot.slane %v10087_v54, %v10088_v30  ;;  %v6936_v53 = vrot.slane %v1670_v34, %v10088_v30  ;;  %v1932_v59 = vrot.slane %v10078_v21, %v10088_v30 }
 0x245   : >> { %v1603_v50 = vsel %vm1552_vm2, %v6923_v56, 0.0  ;;  %v1605_v46 = vsel %vm1554_vm3, %v6923_v56, 0.0  ;;  %v6941_v61 = vrot.slane %v1719_v60, %v10088_v30  ;;  %v6944_v4 = vrot.slane %v1801_v6, %v10088_v30 }
 0x246   : >> { %5095 = vmatprep.subr.bf16.mxu0 %v5094_v52  ;;  %v1635_v33 = vadd.f32 %v1603_v50, %v1504_v17  ;;  %v1637_v11 = vadd.f32 %v1605_v46, %v1506_v40  ;;  %vm1683_vm4 = vcmp.eq.s32.totalorder %v6798_v47, %v6936_v53  ;;  %vm1685_vm5 = vcmp.eq.s32.totalorder %v6802_v55, %v6936_v53 }
 0x247   : >> { %v6951_v58 = vrot.slane %v1850_v62, %v10088_v30  ;;  %v6954_v34 = vrot.slane %v1932_v59, %v10088_v30  ;;  %v1734_v17 = vsel %vm1683_vm4, %v6941_v61, 0.0  ;;  %v1736_v40 = vsel %vm1685_vm5, %v6941_v61, 0.0 }
 0x248   : >> { %vm1814_vm6 = vcmp.eq.s32.totalorder %v6798_v47, %v6944_v4  ;;  %vm1816_vm7 = vcmp.eq.s32.totalorder %v6802_v55, %v6944_v4  ;;  %v1766_v52 = vadd.f32 %v1734_v17, %v1635_v33  ;;  %v1768_v60 = vadd.f32 %v1736_v40, %v1637_v11 }
 0x249   : >> { %v1865_v6 = vsel %vm1814_vm6, %v6951_v58, 0.0  ;;  %v1867_v62 = vsel %vm1816_vm7, %v6951_v58, 0.0  ;;  %vm1945_vm8 = vcmp.eq.s32.totalorder %v6798_v47, %v6954_v34  ;;  %vm1947_vm9 = vcmp.eq.s32.totalorder %v6802_v55, %v6954_v34 }
 0x24a   : >> { %v1981_v50 = vrot.slane %v10077_v27, %v10088_v30  ;;  %v2063_v46 = vrot.slane %v10081_v14, %v10088_v30  ;;  %v1897_v59 = vadd.f32 %v1865_v6, %v1766_v52  ;;  %v1899_v5 = vadd.f32 %v1867_v62, %v1768_v60  ;;  %v10095_v62 = vld [vmem:[#allocation16_spill] sm:$0xff] }
 0x24b   : >> { %v2112_v33 = vrot.slane %v10090_v49, %v10088_v30  ;;  %v2194_v11 = vrot.slane %v10091_v18, %v10088_v30  ;;  %v2243_v13 = vrot.slane %v10092_v23, %v10088_v30  ;;  %v2325_v14 = vrot.slane %v10093_v51, %v10088_v30 }
 0x24c   : >> { %v6977_v17 = vrot.slane %v1981_v50, %v10088_v30  ;;  %v6980_v40 = vrot.slane %v2063_v46, %v10088_v30  ;;  %v2374_v6 = vrot.slane %v10094_v25, %v10088_v30  ;;  %v6996_v50 = vadd.s32 %v6785_v43, %v10095_v62 }
 0x24d   : >> { %v6987_v52 = vrot.slane %v2112_v33, %v10088_v30  ;;  %v6990_v60 = vrot.slane %v2194_v11, %v10088_v30  ;;  %v7017_v20 = vrot.slane %v2243_v13, %v10088_v30  ;;  %v7020_v21 = vrot.slane %v2325_v14, %v10088_v30 }
 0x24e   : >> { %v1996_v46 = vsel %vm1945_vm8, %v6977_v17, 0.0  ;;  %v1998_v33 = vsel %vm1947_vm9, %v6977_v17, 0.0  ;;  %vm2076_vm10 = vcmp.eq.s32.totalorder %v6798_v47, %v6980_v40  ;;  %vm2078_vm11 = vcmp.eq.s32.totalorder %v6802_v55, %v6980_v40 }
 0x24f   : >> { %v2028_v11 = vadd.f32 %v1996_v46, %v1897_v59  ;;  %v2030_v18 = vadd.f32 %v1998_v33, %v1899_v5  ;;  %v2127_v62 = vsel %vm2076_vm10, %v6987_v52, 0.0  ;;  %v2129_v19 = vsel %vm2078_vm11, %v6987_v52, 0.0  ;;  %v10096_v59 = vld [vmem:[#allocation17_spill] sm:$0xff] }
 0x250   : >> { %vm2207_vm12 = vcmp.eq.s32.totalorder %v6798_v47, %v6990_v60  ;;  %vm2209_vm13 = vcmp.eq.s32.totalorder %v6802_v55, %v6990_v60  ;;  %v7023_v5 = vrot.slane %v2374_v6, %v10088_v30  ;;  %v7027_v46 = vadd.s32 %v6785_v43, %v10096_v59 }
 0x251   : >> { %v2159_v23 = vadd.f32 %v2127_v62, %v2028_v11  ;;  %v2161_v24 = vadd.f32 %v2129_v19, %v2030_v18  ;;  %v2258_v33 = vsel %vm2207_vm12, %v7017_v20, 0.0  ;;  %v2260_v25 = vsel %vm2209_vm13, %v7017_v20, 0.0 }
 0x252   : >> { %vm2338_vm14 = vcmp.eq.s32.totalorder %v6798_v47, %v7020_v21  ;;  %vm2340_vm15 = vcmp.eq.s32.totalorder %v6802_v55, %v7020_v21  ;;  %vm1458_vm0 = vcmp.eq.s32.totalorder %v6996_v50, %v6774_v45  ;;  %vm1460_vm1 = vcmp.eq.s32.totalorder %v7027_v46, %v6774_v45 }
 0x253   : >> { %v2290_v13 = vadd.f32 %v2258_v33, %v2159_v23  ;;  %v2292_v14 = vadd.f32 %v2260_v25, %v2161_v24  ;;  %v2389_v19 = vsel %vm2338_vm14, %v7023_v5, 0.0  ;;  %v2391_v30 = vsel %vm2340_vm15, %v7023_v5, 0.0 }
 0x254   : >> { %vm1557_vm2 = vcmp.eq.s32.totalorder %v6996_v50, %v6780_v28  ;;  %vm1559_vm3 = vcmp.eq.s32.totalorder %v7027_v46, %v6780_v28  ;;  %v1509_v24 = vsel %vm1458_vm0, %v6777_v48, 0.0  ;;  %v1511_v18 = vsel %vm1460_vm1, %v6777_v48, 0.0 }
 0x255   : >> { %v2421_v47 = vadd.f32 %v2389_v19, %v2290_v13  ;;  %v2423_v55 = vadd.f32 %v2391_v30, %v2292_v14  ;;  %v1608_v23 = vsel %vm1557_vm2, %v6783_v3, 0.0  ;;  %v1610_v25 = vsel %vm1559_vm3, %v6783_v3, 0.0 }
 0x256   : >> { %vm1688_vm4 = vcmp.eq.s32.totalorder %v6996_v50, %v6788_v12  ;;  %vm1690_vm5 = vcmp.eq.s32.totalorder %v7027_v46, %v6788_v12  ;;  %v1640_v11 = vadd.f32 %v1608_v23, %v1509_v24  ;;  %v1642_v62 = vadd.f32 %v1610_v25, %v1511_v18 }
 0x257   : >> { %v5096_v6 = vpack.c.bf16 %v2423_v55, %v2421_v47  ;;  %v1739_v59 = vsel %vm1688_vm4, %v6791_v44, 0.0  ;;  %v1741_v33 = vsel %vm1690_vm5, %v6791_v44, 0.0  ;;  %vm1819_vm6 = vcmp.eq.s32.totalorder %v6996_v50, %v6794_v39 }
 0x258   : >> { %vm1821_vm7 = vcmp.eq.s32.totalorder %v7027_v46, %v6794_v39  ;;  %vm1950_vm8 = vcmp.eq.s32.totalorder %v6996_v50, %v6842_v41  ;;  %v1771_v13 = vadd.f32 %v1739_v59, %v1640_v11  ;;  %v1773_v14 = vadd.f32 %v1741_v33, %v1642_v62 }
 0x259   : >> { %5097 = vmatpush1.bf16.msra.mxu0 %v5096_v6  ;;  %v1870_v19 = vsel %vm1819_vm6, %v6805_v10, 0.0  ;;  %v1872_v30 = vsel %vm1821_vm7, %v6805_v10, 0.0  ;;  %vm1952_vm9 = vcmp.eq.s32.totalorder %v7027_v46, %v6842_v41  ;;  %v2001_v47 = vsel %vm1950_vm8, %v6845_v63, 0.0 }
 0x25a   : >> { %vm2081_vm10 = vcmp.eq.s32.totalorder %v6996_v50, %v6848_v15  ;;  %vm2083_vm11 = vcmp.eq.s32.totalorder %v7027_v46, %v6848_v15  ;;  %v1902_v55 = vadd.f32 %v1870_v19, %v1771_v13  ;;  %v1904_v24 = vadd.f32 %v1872_v30, %v1773_v14 }
 0x25b   : >> { %v2003_v18 = vsel %vm1952_vm9, %v6845_v63, 0.0  ;;  %v2132_v23 = vsel %vm2081_vm10, %v6851_v31, 0.0  ;;  %v2134_v25 = vsel %vm2083_vm11, %v6851_v31, 0.0  ;;  %vm2212_vm12 = vcmp.eq.s32.totalorder %v6996_v50, %v6854_v38 }
 0x25c   : >> { %vm2214_vm13 = vcmp.eq.s32.totalorder %v7027_v46, %v6854_v38  ;;  %vm2343_vm14 = vcmp.eq.s32.totalorder %v6996_v50, %v6890_v26  ;;  %v2033_v6 = vadd.f32 %v2001_v47, %v1902_v55  ;;  %v2035_v11 = vadd.f32 %v2003_v18, %v1904_v24 }
 0x25d   : >> { %v2263_v62 = vsel %vm2212_vm12, %v6875_v57, 0.0  ;;  %v2265_v59 = vsel %vm2214_vm13, %v6875_v57, 0.0  ;;  %vm2345_vm15 = vcmp.eq.s32.totalorder %v7027_v46, %v6890_v26  ;;  %v2394_v33 = vsel %vm2343_vm14, %v6893_v22, 0.0 }
 0x25e   : >> { %vm1457_vm0 = vcmp.eq.s32.totalorder %v6996_v50, %v6896_v0  ;;  %vm1459_vm1 = vcmp.eq.s32.totalorder %v7027_v46, %v6896_v0  ;;  %v2164_v13 = vadd.f32 %v2132_v23, %v2033_v6  ;;  %v2166_v14 = vadd.f32 %v2134_v25, %v2035_v11 }
 0x25f   : >> { %v2396_v19 = vsel %vm2345_vm15, %v6893_v22, 0.0  ;;  %v1508_v30 = vsel %vm1457_vm0, %v6899_v42, 0.0  ;;  %v1510_v47 = vsel %vm1459_vm1, %v6899_v42, 0.0  ;;  %vm1556_vm2 = vcmp.eq.s32.totalorder %v6996_v50, %v6906_v29 }
 0x260   : >> { %vm1558_vm3 = vcmp.eq.s32.totalorder %v7027_v46, %v6906_v29  ;;  %vm1687_vm4 = vcmp.eq.s32.totalorder %v6996_v50, %v6936_v53  ;;  %v2295_v55 = vadd.f32 %v2263_v62, %v2164_v13  ;;  %v2297_v24 = vadd.f32 %v2265_v59, %v2166_v14 }
 0x261   : >> { %v1607_v18 = vsel %vm1556_vm2, %v6923_v56, 0.0  ;;  %v1609_v23 = vsel %vm1558_vm3, %v6923_v56, 0.0  ;;  %vm1689_vm5 = vcmp.eq.s32.totalorder %v7027_v46, %v6936_v53  ;;  %v1738_v11 = vsel %vm1687_vm4, %v6941_v61, 0.0 }
 0x262   : >> { %v1639_v25 = vadd.f32 %v1607_v18, %v1508_v30  ;;  %v1641_v6 = vadd.f32 %v1609_v23, %v1510_v47  ;;  %v2426_v27 = vadd.f32 %v2394_v33, %v2295_v55  ;;  %v2428_v32 = vadd.f32 %v2396_v19, %v2297_v24 }
 0x263   : >> { %v1740_v37 = vsel %vm1689_vm5, %v6941_v61, 0.0  ;;  %vm1818_vm6 = vcmp.eq.s32.totalorder %v6996_v50, %v6944_v4  ;;  %vm1820_vm7 = vcmp.eq.s32.totalorder %v7027_v46, %v6944_v4  ;;  %vm1949_vm8 = vcmp.eq.s32.totalorder %v6996_v50, %v6954_v34 }
 0x264   : >> { %v1770_v62 = vadd.f32 %v1738_v11, %v1639_v25  ;;  %v1772_v59 = vadd.f32 %v1740_v37, %v1641_v6  ;;  %v1869_v13 = vsel %vm1818_vm6, %v6951_v58, 0.0  ;;  %v5098_v14 = vpack.c.bf16 %v2428_v32, %v2426_v27 }
 0x265   : >> { %v1871_v30 = vsel %vm1820_vm7, %v6951_v58, 0.0  ;;  %vm1951_vm9 = vcmp.eq.s32.totalorder %v7027_v46, %v6954_v34  ;;  %v2000_v47 = vsel %vm1949_vm8, %v6977_v17, 0.0  ;;  %vm2080_vm10 = vcmp.eq.s32.totalorder %v6996_v50, %v6980_v40 }
 0x266   : >> { %v1901_v33 = vadd.f32 %v1869_v13, %v1770_v62  ;;  %v1903_v19 = vadd.f32 %v1871_v30, %v1772_v59  ;;  %v2002_v37 = vsel %vm1951_vm9, %v6977_v17, 0.0  ;;  %5099 = vmatprep.subr.bf16.mxu0 %v5098_v14  ;;  %vm2082_vm11 = vcmp.eq.s32.totalorder %v7027_v46, %v6980_v40  ;;  %v10097_v59 = vld [vmem:[#allocation18_spill] sm:$0xff]  ;;  %v10098_v14 = vld [vmem:[#allocation19_spill] sm:$0xff] }
 0x267   : >> { %vm2211_vm12 = vcmp.eq.s32.totalorder %v6996_v50, %v6990_v60  ;;  %vm2213_vm13 = vcmp.eq.s32.totalorder %v7027_v46, %v6990_v60  ;;  %v2131_v55 = vsel %vm2080_vm10, %v6987_v52, 0.0  ;;  %v2133_v24 = vsel %vm2082_vm11, %v6987_v52, 0.0 }
 0x268   : >> { %v2032_v27 = vadd.f32 %v2000_v47, %v1901_v33  ;;  %v2034_v32 = vadd.f32 %v2002_v37, %v1903_v19  ;;  %v2262_v18 = vsel %vm2211_vm12, %v7017_v20, 0.0  ;;  %v2264_v23 = vsel %vm2213_vm13, %v7017_v20, 0.0  ;;  %v10099_v33 = vld [vmem:[#allocation20_spill] sm:$0xff]  ;;  %v10100_v19 = vld [vmem:[#allocation21_spill] sm:$0xff] }
 0x269   : >> { %vm2342_vm14 = vcmp.eq.s32.totalorder %v6996_v50, %v7020_v21  ;;  %vm2344_vm15 = vcmp.eq.s32.totalorder %v7027_v46, %v7020_v21  ;;  %v7135_v13 = vadd.s32 %v6785_v43, %v10097_v59  ;;  %v7139_v30 = vadd.s32 %v6785_v43, %v10098_v14 }
 0x26a   : >> { %v2163_v25 = vadd.f32 %v2131_v55, %v2032_v27  ;;  %v2165_v6 = vadd.f32 %v2133_v24, %v2034_v32  ;;  %v2393_v11 = vsel %vm2342_vm14, %v7023_v5, 0.0  ;;  %v2395_v62 = vsel %vm2344_vm15, %v7023_v5, 0.0  ;;  %v10101_v27 = vld [vmem:[#allocation22_spill] sm:$0xff]  ;;  %v10102_v55 = vld [vmem:[#allocation23_spill] sm:$0xff] }
 0x26b   : >> { %v7143_v50 = vadd.s32 %v6785_v43, %v10099_v33  ;;  %v7147_v46 = vadd.s32 %v6785_v43, %v10100_v19  ;;  %v7151_v32 = vadd.s32 %v6785_v43, %v10101_v27  ;;  %v7155_v24 = vadd.s32 %v6785_v43, %v10102_v55 }
 0x26c   : >> { %v2294_v47 = vadd.f32 %v2262_v18, %v2163_v25  ;;  %v2296_v37 = vadd.f32 %v2264_v23, %v2165_v6  ;;  %vm1462_vm0 = vcmp.eq.s32.totalorder %v7135_v13, %v6774_v45  ;;  %vm1464_vm1 = vcmp.eq.s32.totalorder %v7139_v30, %v6774_v45 }
 0x26d   : >> { %vm1561_vm2 = vcmp.eq.s32.totalorder %v7135_v13, %v6780_v28  ;;  %vm1563_vm3 = vcmp.eq.s32.totalorder %v7139_v30, %v6780_v28  ;;  %v1513_v25 = vsel %vm1462_vm0, %v6777_v48, 0.0  ;;  %v1515_v6 = vsel %vm1464_vm1, %v6777_v48, 0.0 }
 0x26e   : >> { %v2425_v18 = vadd.f32 %v2393_v11, %v2294_v47  ;;  %v2427_v23 = vadd.f32 %v2395_v62, %v2296_v37  ;;  %v1612_v59 = vsel %vm1561_vm2, %v6783_v3, 0.0  ;;  %v1614_v14 = vsel %vm1563_vm3, %v6783_v3, 0.0 }
 0x26f   : >> { %vm1692_vm4 = vcmp.eq.s32.totalorder %v7135_v13, %v6788_v12  ;;  %vm1694_vm5 = vcmp.eq.s32.totalorder %v7139_v30, %v6788_v12  ;;  %v1644_v19 = vadd.f32 %v1612_v59, %v1513_v25  ;;  %v1646_v27 = vadd.f32 %v1614_v14, %v1515_v6 }
 0x270   : >> { %v5100_v33 = vpack.c.bf16 %v2427_v23, %v2425_v18  ;;  %v1743_v11 = vsel %vm1692_vm4, %v6791_v44, 0.0  ;;  %v1745_v62 = vsel %vm1694_vm5, %v6791_v44, 0.0  ;;  %vm1823_vm6 = vcmp.eq.s32.totalorder %v7135_v13, %v6794_v39 }
 0x271   : >> { %vm1825_vm7 = vcmp.eq.s32.totalorder %v7139_v30, %v6794_v39  ;;  %vm1954_vm8 = vcmp.eq.s32.totalorder %v7135_v13, %v6842_v41  ;;  %v1775_v47 = vadd.f32 %v1743_v11, %v1644_v19  ;;  %v1777_v37 = vadd.f32 %v1745_v62, %v1646_v27 }
 0x272   : >> { %5101 = vmatpush1.bf16.msra.mxu0 %v5100_v33  ;;  %v1874_v55 = vsel %vm1823_vm6, %v6805_v10, 0.0  ;;  %v1876_v18 = vsel %vm1825_vm7, %v6805_v10, 0.0  ;;  %vm1956_vm9 = vcmp.eq.s32.totalorder %v7139_v30, %v6842_v41  ;;  %v2005_v23 = vsel %vm1954_vm8, %v6845_v63, 0.0 }
 0x273   : >> { %vm2085_vm10 = vcmp.eq.s32.totalorder %v7135_v13, %v6848_v15  ;;  %vm2087_vm11 = vcmp.eq.s32.totalorder %v7139_v30, %v6848_v15  ;;  %v1906_v25 = vadd.f32 %v1874_v55, %v1775_v47  ;;  %v1908_v6 = vadd.f32 %v1876_v18, %v1777_v37 }
 0x274   : >> { %v2007_v59 = vsel %vm1956_vm9, %v6845_v63, 0.0  ;;  %v2136_v14 = vsel %vm2085_vm10, %v6851_v31, 0.0  ;;  %v2138_v33 = vsel %vm2087_vm11, %v6851_v31, 0.0  ;;  %vm2216_vm12 = vcmp.eq.s32.totalorder %v7135_v13, %v6854_v38 }
 0x275   : >> { %vm2218_vm13 = vcmp.eq.s32.totalorder %v7139_v30, %v6854_v38  ;;  %vm2347_vm14 = vcmp.eq.s32.totalorder %v7135_v13, %v6890_v26  ;;  %v2037_v19 = vadd.f32 %v2005_v23, %v1906_v25  ;;  %v2039_v27 = vadd.f32 %v2007_v59, %v1908_v6 }
 0x276   : >> { %v2267_v11 = vsel %vm2216_vm12, %v6875_v57, 0.0  ;;  %v2269_v62 = vsel %vm2218_vm13, %v6875_v57, 0.0  ;;  %vm2349_vm15 = vcmp.eq.s32.totalorder %v7139_v30, %v6890_v26  ;;  %v2398_v47 = vsel %vm2347_vm14, %v6893_v22, 0.0 }
 0x277   : >> { %vm1461_vm0 = vcmp.eq.s32.totalorder %v7135_v13, %v6896_v0  ;;  %vm1463_vm1 = vcmp.eq.s32.totalorder %v7139_v30, %v6896_v0  ;;  %v2168_v37 = vadd.f32 %v2136_v14, %v2037_v19  ;;  %v2170_v55 = vadd.f32 %v2138_v33, %v2039_v27 }
 0x278   : >> { %v2400_v18 = vsel %vm2349_vm15, %v6893_v22, 0.0  ;;  %v1512_v23 = vsel %vm1461_vm0, %v6899_v42, 0.0  ;;  %v1514_v25 = vsel %vm1463_vm1, %v6899_v42, 0.0  ;;  %vm1560_vm2 = vcmp.eq.s32.totalorder %v7135_v13, %v6906_v29 }
 0x279   : >> { %vm1562_vm3 = vcmp.eq.s32.totalorder %v7139_v30, %v6906_v29  ;;  %vm1691_vm4 = vcmp.eq.s32.totalorder %v7135_v13, %v6936_v53  ;;  %v2299_v6 = vadd.f32 %v2267_v11, %v2168_v37  ;;  %v2301_v59 = vadd.f32 %v2269_v62, %v2170_v55 }
 0x27a   : >> { %v1611_v14 = vsel %vm1560_vm2, %v6923_v56, 0.0  ;;  %v1613_v33 = vsel %vm1562_vm3, %v6923_v56, 0.0  ;;  %vm1693_vm5 = vcmp.eq.s32.totalorder %v7139_v30, %v6936_v53  ;;  %v1742_v49 = vsel %vm1691_vm4, %v6941_v61, 0.0 }
 0x27b   : >> { %v1643_v19 = vadd.f32 %v1611_v14, %v1512_v23  ;;  %v1645_v27 = vadd.f32 %v1613_v33, %v1514_v25  ;;  %v2430_v51 = vadd.f32 %v2398_v47, %v2299_v6  ;;  %v2432_v54 = vadd.f32 %v2400_v18, %v2301_v59 }
 0x27c   : >> { %v1744_v9 = vsel %vm1693_vm5, %v6941_v61, 0.0  ;;  %vm1822_vm6 = vcmp.eq.s32.totalorder %v7135_v13, %v6944_v4  ;;  %vm1824_vm7 = vcmp.eq.s32.totalorder %v7139_v30, %v6944_v4  ;;  %vm1953_vm8 = vcmp.eq.s32.totalorder %v7135_v13, %v6954_v34 }
 0x27d   : >> { %v1774_v11 = vadd.f32 %v1742_v49, %v1643_v19  ;;  %v1776_v62 = vadd.f32 %v1744_v9, %v1645_v27  ;;  %v1873_v37 = vsel %vm1822_vm6, %v6951_v58, 0.0  ;;  %v5102_v55 = vpack.c.bf16 %v2432_v54, %v2430_v51 }
 0x27e   : >> { %v1875_v23 = vsel %vm1824_vm7, %v6951_v58, 0.0  ;;  %vm1955_vm9 = vcmp.eq.s32.totalorder %v7139_v30, %v6954_v34  ;;  %v2004_v25 = vsel %vm1953_vm8, %v6977_v17, 0.0  ;;  %vm2084_vm10 = vcmp.eq.s32.totalorder %v7135_v13, %v6980_v40 }
 0x27f   : >> { %v1905_v47 = vadd.f32 %v1873_v37, %v1774_v11  ;;  %v1907_v18 = vadd.f32 %v1875_v23, %v1776_v62  ;;  %v2006_v9 = vsel %vm1955_vm9, %v6977_v17, 0.0  ;;  %5103 = vmatprep.subr.bf16.mxu0 %v5102_v55  ;;  %vm2086_vm11 = vcmp.eq.s32.totalorder %v7139_v30, %v6980_v40 }
 0x280   : >> { %vm2215_vm12 = vcmp.eq.s32.totalorder %v7135_v13, %v6990_v60  ;;  %vm2217_vm13 = vcmp.eq.s32.totalorder %v7139_v30, %v6990_v60  ;;  %v2135_v51 = vsel %vm2084_vm10, %v6987_v52, 0.0  ;;  %v2137_v6 = vsel %vm2086_vm11, %v6987_v52, 0.0 }
 0x281   : >> { %v2036_v54 = vadd.f32 %v2004_v25, %v1905_v47  ;;  %v2038_v49 = vadd.f32 %v2006_v9, %v1907_v18  ;;  %v2266_v59 = vsel %vm2215_vm12, %v7017_v20, 0.0  ;;  %v2268_v14 = vsel %vm2217_vm13, %v7017_v20, 0.0 }
 0x282   : >> { %vm2346_vm14 = vcmp.eq.s32.totalorder %v7135_v13, %v7020_v21  ;;  %vm2348_vm15 = vcmp.eq.s32.totalorder %v7139_v30, %v7020_v21  ;;  %vm1466_vm0 = vcmp.eq.s32.totalorder %v7143_v50, %v6774_v45  ;;  %vm1468_vm1 = vcmp.eq.s32.totalorder %v7147_v46, %v6774_v45 }
 0x283   : >> { %v2167_v33 = vadd.f32 %v2135_v51, %v2036_v54  ;;  %v2169_v19 = vadd.f32 %v2137_v6, %v2038_v49  ;;  %v2397_v27 = vsel %vm2346_vm14, %v7023_v5, 0.0  ;;  %v2399_v11 = vsel %vm2348_vm15, %v7023_v5, 0.0 }
 0x284   : >> { %vm1565_vm2 = vcmp.eq.s32.totalorder %v7143_v50, %v6780_v28  ;;  %vm1567_vm3 = vcmp.eq.s32.totalorder %v7147_v46, %v6780_v28  ;;  %v1517_v62 = vsel %vm1466_vm0, %v6777_v48, 0.0  ;;  %v1519_v37 = vsel %vm1468_vm1, %v6777_v48, 0.0 }
 0x285   : >> { %v2298_v13 = vadd.f32 %v2266_v59, %v2167_v33  ;;  %v2300_v30 = vadd.f32 %v2268_v14, %v2169_v19  ;;  %v1616_v55 = vsel %vm1565_vm2, %v6783_v3, 0.0  ;;  %v1618_v23 = vsel %vm1567_vm3, %v6783_v3, 0.0 }
 0x286   : >> { %vm1696_vm4 = vcmp.eq.s32.totalorder %v7143_v50, %v6788_v12  ;;  %vm1698_vm5 = vcmp.eq.s32.totalorder %v7147_v46, %v6788_v12  ;;  %v1648_v25 = vadd.f32 %v1616_v55, %v1517_v62  ;;  %v1650_v9 = vadd.f32 %v1618_v23, %v1519_v37 }
 0x287   : >> { %v2429_v47 = vadd.f32 %v2397_v27, %v2298_v13  ;;  %v2431_v18 = vadd.f32 %v2399_v11, %v2300_v30  ;;  %v1747_v54 = vsel %vm1696_vm4, %v6791_v44, 0.0  ;;  %v1749_v49 = vsel %vm1698_vm5, %v6791_v44, 0.0 }
 0x288   : >> { %vm1827_vm6 = vcmp.eq.s32.totalorder %v7143_v50, %v6794_v39  ;;  %vm1829_vm7 = vcmp.eq.s32.totalorder %v7147_v46, %v6794_v39  ;;  %v1779_v6 = vadd.f32 %v1747_v54, %v1648_v25  ;;  %v1781_v59 = vadd.f32 %v1749_v49, %v1650_v9 }
 0x289   : >> { %v5104_v51 = vpack.c.bf16 %v2431_v18, %v2429_v47  ;;  %v1878_v14 = vsel %vm1827_vm6, %v6805_v10, 0.0  ;;  %v1880_v33 = vsel %vm1829_vm7, %v6805_v10, 0.0  ;;  %vm1958_vm8 = vcmp.eq.s32.totalorder %v7143_v50, %v6842_v41 }
 0x28a   : >> { %vm1960_vm9 = vcmp.eq.s32.totalorder %v7147_v46, %v6842_v41  ;;  %vm2089_vm10 = vcmp.eq.s32.totalorder %v7143_v50, %v6848_v15  ;;  %v1910_v19 = vadd.f32 %v1878_v14, %v1779_v6  ;;  %v1912_v27 = vadd.f32 %v1880_v33, %v1781_v59 }
 0x28b   : >> { %5105 = vmatpush1.bf16.msra.mxu0 %v5104_v51  ;;  %v2009_v11 = vsel %vm1958_vm8, %v6845_v63, 0.0  ;;  %v2011_v13 = vsel %vm1960_vm9, %v6845_v63, 0.0  ;;  %vm2091_vm11 = vcmp.eq.s32.totalorder %v7147_v46, %v6848_v15  ;;  %v2140_v30 = vsel %vm2089_vm10, %v6851_v31, 0.0 }
 0x28c   : >> { %vm2220_vm12 = vcmp.eq.s32.totalorder %v7143_v50, %v6854_v38  ;;  %vm2222_vm13 = vcmp.eq.s32.totalorder %v7147_v46, %v6854_v38  ;;  %v2041_v62 = vadd.f32 %v2009_v11, %v1910_v19  ;;  %v2043_v37 = vadd.f32 %v2011_v13, %v1912_v27 }
 0x28d   : >> { %v2142_v55 = vsel %vm2091_vm11, %v6851_v31, 0.0  ;;  %v2271_v23 = vsel %vm2220_vm12, %v6875_v57, 0.0  ;;  %v2273_v47 = vsel %vm2222_vm13, %v6875_v57, 0.0  ;;  %vm2351_vm14 = vcmp.eq.s32.totalorder %v7143_v50, %v6890_v26 }
 0x28e   : >> { %vm2353_vm15 = vcmp.eq.s32.totalorder %v7147_v46, %v6890_v26  ;;  %vm1465_vm0 = vcmp.eq.s32.totalorder %v7143_v50, %v6896_v0  ;;  %v2172_v18 = vadd.f32 %v2140_v30, %v2041_v62  ;;  %v2174_v25 = vadd.f32 %v2142_v55, %v2043_v37 }
 0x28f   : >> { %v2402_v9 = vsel %vm2351_vm14, %v6893_v22, 0.0  ;;  %v2404_v54 = vsel %vm2353_vm15, %v6893_v22, 0.0  ;;  %vm1467_vm1 = vcmp.eq.s32.totalorder %v7147_v46, %v6896_v0  ;;  %v1516_v49 = vsel %vm1465_vm0, %v6899_v42, 0.0 }
 0x290   : >> { %vm1564_vm2 = vcmp.eq.s32.totalorder %v7143_v50, %v6906_v29  ;;  %vm1566_vm3 = vcmp.eq.s32.totalorder %v7147_v46, %v6906_v29  ;;  %v2303_v51 = vadd.f32 %v2271_v23, %v2172_v18  ;;  %v2305_v6 = vadd.f32 %v2273_v47, %v2174_v25 }
 0x291   : >> { %v1518_v59 = vsel %vm1467_vm1, %v6899_v42, 0.0  ;;  %v1615_v14 = vsel %vm1564_vm2, %v6923_v56, 0.0  ;;  %v1617_v33 = vsel %vm1566_vm3, %v6923_v56, 0.0  ;;  %vm1695_vm4 = vcmp.eq.s32.totalorder %v7143_v50, %v6936_v53 }
 0x292   : >> { %v1647_v19 = vadd.f32 %v1615_v14, %v1516_v49  ;;  %vm1697_vm5 = vcmp.eq.s32.totalorder %v7147_v46, %v6936_v53  ;;  %v2434_v27 = vadd.f32 %v2402_v9, %v2303_v51  ;;  %v2436_v11 = vadd.f32 %v2404_v54, %v2305_v6 }
 0x293   : >> { %v1649_v13 = vadd.f32 %v1617_v33, %v1518_v59  ;;  %v1746_v30 = vsel %vm1695_vm4, %v6941_v61, 0.0  ;;  %v1748_v62 = vsel %vm1697_vm5, %v6941_v61, 0.0  ;;  %vm1826_vm6 = vcmp.eq.s32.totalorder %v7143_v50, %v6944_v4 }
 0x294   : >> { %v1778_v37 = vadd.f32 %v1746_v30, %v1647_v19  ;;  %vm1828_vm7 = vcmp.eq.s32.totalorder %v7147_v46, %v6944_v4  ;;  %v5106_v55 = vpack.c.bf16 %v2436_v11, %v2434_v27  ;;  %v1877_v47 = vsel %vm1826_vm6, %v6951_v58, 0.0 }
 0x295   : >> { %v1780_v23 = vadd.f32 %v1748_v62, %v1649_v13  ;;  %v1879_v18 = vsel %vm1828_vm7, %v6951_v58, 0.0  ;;  %vm1957_vm8 = vcmp.eq.s32.totalorder %v7143_v50, %v6954_v34  ;;  %vm1959_vm9 = vcmp.eq.s32.totalorder %v7147_v46, %v6954_v34 }
 0x296   : >> { %v1909_v25 = vadd.f32 %v1877_v47, %v1778_v37  ;;  %vm2088_vm10 = vcmp.eq.s32.totalorder %v7143_v50, %v6980_v40  ;;  %5107 = vmatprep.subr.bf16.mxu0 %v5106_v55  ;;  %v2008_v54 = vsel %vm1957_vm8, %v6977_v17, 0.0  ;;  %v2010_v49 = vsel %vm1959_vm9, %v6977_v17, 0.0 }
 0x297   : >> { %v1911_v9 = vadd.f32 %v1879_v18, %v1780_v23  ;;  %vm2090_vm11 = vcmp.eq.s32.totalorder %v7147_v46, %v6980_v40  ;;  %v2139_v6 = vsel %vm2088_vm10, %v6987_v52, 0.0  ;;  %vm2219_vm12 = vcmp.eq.s32.totalorder %v7143_v50, %v6990_v60 }
 0x298   : >> { %v2040_v51 = vadd.f32 %v2008_v54, %v1909_v25  ;;  %v2141_v59 = vsel %vm2090_vm11, %v6987_v52, 0.0  ;;  %vm2221_vm13 = vcmp.eq.s32.totalorder %v7147_v46, %v6990_v60  ;;  %v2270_v33 = vsel %vm2219_vm12, %v7017_v20, 0.0 }
 0x299   : >> { %v2042_v14 = vadd.f32 %v2010_v49, %v1911_v9  ;;  %vm2350_vm14 = vcmp.eq.s32.totalorder %v7143_v50, %v7020_v21  ;;  %v2272_v27 = vsel %vm2221_vm13, %v7017_v20, 0.0  ;;  %vm2352_vm15 = vcmp.eq.s32.totalorder %v7147_v46, %v7020_v21 }
 0x29a   : >> { %v2171_v19 = vadd.f32 %v2139_v6, %v2040_v51  ;;  %v2401_v11 = vsel %vm2350_vm14, %v7023_v5, 0.0  ;;  %v2403_v30 = vsel %vm2352_vm15, %v7023_v5, 0.0  ;;  %vm1470_vm0 = vcmp.eq.s32.totalorder %v7151_v32, %v6774_v45 }
 0x29b   : >> { %v2173_v13 = vadd.f32 %v2141_v59, %v2042_v14  ;;  %vm1472_vm1 = vcmp.eq.s32.totalorder %v7155_v24, %v6774_v45  ;;  %v1521_v50 = vsel %vm1470_vm0, %v6777_v48, 0.0  ;;  %vm1569_vm2 = vcmp.eq.s32.totalorder %v7151_v32, %v6780_v28 }
 0x29c   : >> { %v2302_v62 = vadd.f32 %v2270_v33, %v2171_v19  ;;  %v1523_v37 = vsel %vm1472_vm1, %v6777_v48, 0.0  ;;  %vm1571_vm3 = vcmp.eq.s32.totalorder %v7155_v24, %v6780_v28  ;;  %v1620_v55 = vsel %vm1569_vm2, %v6783_v3, 0.0 }
 0x29d   : >> { %v2304_v46 = vadd.f32 %v2272_v27, %v2173_v13  ;;  %vm1700_vm4 = vcmp.eq.s32.totalorder %v7151_v32, %v6788_v12  ;;  %v1622_v47 = vsel %vm1571_vm3, %v6783_v3, 0.0  ;;  %v1652_v18 = vadd.f32 %v1620_v55, %v1521_v50 }
 0x29e   : >> { %v2433_v23 = vadd.f32 %v2401_v11, %v2302_v62  ;;  %vm1702_vm5 = vcmp.eq.s32.totalorder %v7155_v24, %v6788_v12  ;;  %v1654_v9 = vadd.f32 %v1622_v47, %v1523_v37  ;;  %v1751_v54 = vsel %vm1700_vm4, %v6791_v44, 0.0 }
 0x29f   : >> { %v2435_v25 = vadd.f32 %v2403_v30, %v2304_v46  ;;  %v1753_v49 = vsel %vm1702_vm5, %v6791_v44, 0.0  ;;  %v1783_v51 = vadd.f32 %v1751_v54, %v1652_v18  ;;  %vm1831_vm6 = vcmp.eq.s32.totalorder %v7151_v32, %v6794_v39 }
 0x2a0   : >> { %vm1833_vm7 = vcmp.eq.s32.totalorder %v7155_v24, %v6794_v39  ;;  %vm1962_vm8 = vcmp.eq.s32.totalorder %v7151_v32, %v6842_v41  ;;  %v1785_v59 = vadd.f32 %v1753_v49, %v1654_v9  ;;  %v1882_v14 = vsel %vm1831_vm6, %v6805_v10, 0.0 }
 0x2a1   : >> { %v5108_v6 = vpack.c.bf16 %v2435_v25, %v2433_v23  ;;  %v1884_v33 = vsel %vm1833_vm7, %v6805_v10, 0.0  ;;  %v1914_v19 = vadd.f32 %v1882_v14, %v1783_v51  ;;  %vm1964_vm9 = vcmp.eq.s32.totalorder %v7155_v24, %v6842_v41 }
 0x2a2   : >> { %v2013_v27 = vsel %vm1962_vm8, %v6845_v63, 0.0  ;;  %vm2093_vm10 = vcmp.eq.s32.totalorder %v7151_v32, %v6848_v15  ;;  %v1916_v11 = vadd.f32 %v1884_v33, %v1785_v59  ;;  %v2015_v13 = vsel %vm1964_vm9, %v6845_v63, 0.0 }
 0x2a3   : >> { %5109 = vmatpush1.bf16.msra.mxu0 %v5108_v6  ;;  %vm2095_vm11 = vcmp.eq.s32.totalorder %v7155_v24, %v6848_v15  ;;  %v2144_v30 = vsel %vm2093_vm10, %v6851_v31, 0.0  ;;  %v2045_v62 = vadd.f32 %v2013_v27, %v1914_v19  ;;  %vm2224_vm12 = vcmp.eq.s32.totalorder %v7151_v32, %v6854_v38 }
 0x2a4   : >> { %v2146_v50 = vsel %vm2095_vm11, %v6851_v31, 0.0  ;;  %vm2226_vm13 = vcmp.eq.s32.totalorder %v7155_v24, %v6854_v38  ;;  %v2047_v37 = vadd.f32 %v2015_v13, %v1916_v11  ;;  %v2275_v46 = vsel %vm2224_vm12, %v6875_v57, 0.0 }
 0x2a5   : >> { %v2277_v55 = vsel %vm2226_vm13, %v6875_v57, 0.0  ;;  %vm2355_vm14 = vcmp.eq.s32.totalorder %v7151_v32, %v6890_v26  ;;  %v2176_v23 = vadd.f32 %v2144_v30, %v2045_v62  ;;  %vm2357_vm15 = vcmp.eq.s32.totalorder %v7155_v24, %v6890_v26 }
 0x2a6   : >> { %v2406_v47 = vsel %vm2355_vm14, %v6893_v22, 0.0  ;;  %vm1469_vm0 = vcmp.eq.s32.totalorder %v7151_v32, %v6896_v0  ;;  %v2178_v18 = vadd.f32 %v2146_v50, %v2047_v37  ;;  %v2408_v25 = vsel %vm2357_vm15, %v6893_v22, 0.0 }
 0x2a7   : >> { %vm1471_vm1 = vcmp.eq.s32.totalorder %v7155_v24, %v6896_v0  ;;  %v1520_v9 = vsel %vm1469_vm0, %v6899_v42, 0.0  ;;  %v2307_v54 = vadd.f32 %v2275_v46, %v2176_v23  ;;  %vm1568_vm2 = vcmp.eq.s32.totalorder %v7151_v32, %v6906_v29 }
 0x2a8   : >> { %v1522_v49 = vsel %vm1471_vm1, %v6899_v42, 0.0  ;;  %vm1570_vm3 = vcmp.eq.s32.totalorder %v7155_v24, %v6906_v29  ;;  %v2309_v51 = vadd.f32 %v2277_v55, %v2178_v18  ;;  %v1619_v6 = vsel %vm1568_vm2, %v6923_v56, 0.0 }
 0x2a9   : >> { %v1621_v59 = vsel %vm1570_vm3, %v6923_v56, 0.0  ;;  %vm1699_vm4 = vcmp.eq.s32.totalorder %v7151_v32, %v6936_v53  ;;  %v2438_v14 = vadd.f32 %v2406_v47, %v2307_v54  ;;  %v1651_v33 = vadd.f32 %v1619_v6, %v1520_v9 }
 0x2aa   : >> { %v1653_v19 = vadd.f32 %v1621_v59, %v1522_v49  ;;  %vm1701_vm5 = vcmp.eq.s32.totalorder %v7155_v24, %v6936_v53  ;;  %v2440_v27 = vadd.f32 %v2408_v25, %v2309_v51  ;;  %v1750_v11 = vsel %vm1699_vm4, %v6941_v61, 0.0 }
 0x2ab   : >> { %v1752_v13 = vsel %vm1701_vm5, %v6941_v61, 0.0  ;;  %vm1830_vm6 = vcmp.eq.s32.totalorder %v7151_v32, %v6944_v4  ;;  %v1782_v30 = vadd.f32 %v1750_v11, %v1651_v33  ;;  %vm1832_vm7 = vcmp.eq.s32.totalorder %v7155_v24, %v6944_v4 }
 0x2ac   : >> { %v1784_v62 = vadd.f32 %v1752_v13, %v1653_v19  ;;  %v1881_v50 = vsel %vm1830_vm6, %v6951_v58, 0.0  ;;  %v5110_v37 = vpack.c.bf16 %v2440_v27, %v2438_v14  ;;  %v1883_v46 = vsel %vm1832_vm7, %v6951_v58, 0.0  ;;  %v10103_v27 = vld [vmem:[#allocation40_spill] sm:$0xff]  ;;  %v10104_v13 = vld [vmem:[#allocation41_spill] sm:$0xff] }
 0x2ad   : >> { %vm1961_vm8 = vcmp.eq.s32.totalorder %v7151_v32, %v6954_v34  ;;  %vm1963_vm9 = vcmp.eq.s32.totalorder %v7155_v24, %v6954_v34  ;;  %v1913_v55 = vadd.f32 %v1881_v50, %v1782_v30  ;;  %vm2092_vm10 = vcmp.eq.s32.totalorder %v7151_v32, %v6980_v40 }
 0x2ae   : >> { %v1915_v23 = vadd.f32 %v1883_v46, %v1784_v62  ;;  %v2012_v47 = vsel %vm1961_vm8, %v6977_v17, 0.0  ;;  %v2014_v18 = vsel %vm1963_vm9, %v6977_v17, 0.0  ;;  %5111 = vmatprep.subr.bf16.mxu0 %v5110_v37  ;;  %vm2094_vm11 = vcmp.eq.s32.totalorder %v7155_v24, %v6980_v40 }
 0x2af   : >> { %vm2223_vm12 = vcmp.eq.s32.totalorder %v7151_v32, %v6990_v60  ;;  %vm2225_vm13 = vcmp.eq.s32.totalorder %v7155_v24, %v6990_v60  ;;  %v2044_v25 = vadd.f32 %v2012_v47, %v1913_v55  ;;  %v2143_v54 = vsel %vm2092_vm10, %v6987_v52, 0.0 }
 0x2b0   : >> { %v2046_v9 = vadd.f32 %v2014_v18, %v1915_v23  ;;  %v2145_v49 = vsel %vm2094_vm11, %v6987_v52, 0.0  ;;  %v2274_v51 = vsel %vm2223_vm12, %v7017_v20, 0.0  ;;  %v2276_v6 = vsel %vm2225_vm13, %v7017_v20, 0.0 }
 0x2b1   : >> { %vm2354_vm14 = vcmp.eq.s32.totalorder %v7151_v32, %v7020_v21  ;;  %vm2356_vm15 = vcmp.eq.s32.totalorder %v7155_v24, %v7020_v21  ;;  %v2175_v59 = vadd.f32 %v2143_v54, %v2044_v25  ;;  %v7447_v11 = vadd.s32 %v6785_v43, %v10103_v27 }
 0x2b2   : >> { %v2177_v14 = vadd.f32 %v2145_v49, %v2046_v9  ;;  %v2405_v33 = vsel %vm2354_vm14, %v7023_v5, 0.0  ;;  %v2407_v19 = vsel %vm2356_vm15, %v7023_v5, 0.0  ;;  %v7451_v30 = vadd.s32 %v6785_v43, %v10104_v13 }
 0x2b3   : >> { %v7455_v32 = vadd.s32 %v6785_v43, %v6534_v7  ;;  %v7459_v24 = vadd.s32 %v6785_v43, %v6537_v36  ;;  %v2306_v62 = vadd.f32 %v2274_v51, %v2175_v59  ;;  %v7463_v37 = vadd.s32 %v6785_v43, %v6540_v2 }
 0x2b4   : >> { %v2308_v50 = vadd.f32 %v2276_v6, %v2177_v14  ;;  %v7467_v46 = vadd.s32 %v6785_v43, %v6543_v16  ;;  %vm1474_vm0 = vcmp.eq.s32.totalorder %v7447_v11, %v6774_v45  ;;  %vm1476_vm1 = vcmp.eq.s32.totalorder %v7451_v30, %v6774_v45 }
 0x2b5   : >> { %vm1573_vm2 = vcmp.eq.s32.totalorder %v7447_v11, %v6780_v28  ;;  %vm1575_vm3 = vcmp.eq.s32.totalorder %v7451_v30, %v6780_v28  ;;  %v2437_v55 = vadd.f32 %v2405_v33, %v2306_v62  ;;  %v1525_v47 = vsel %vm1474_vm0, %v6777_v48, 0.0 }
 0x2b6   : >> { %v2439_v23 = vadd.f32 %v2407_v19, %v2308_v50  ;;  %v1527_v18 = vsel %vm1476_vm1, %v6777_v48, 0.0  ;;  %v1624_v43 = vsel %vm1573_vm2, %v6783_v3, 0.0  ;;  %v1626_v25 = vsel %vm1575_vm3, %v6783_v3, 0.0 }
 0x2b7   : >> { %vm1704_vm4 = vcmp.eq.s32.totalorder %v7447_v11, %v6788_v12  ;;  %vm1706_vm5 = vcmp.eq.s32.totalorder %v7451_v30, %v6788_v12  ;;  %v1656_v54 = vadd.f32 %v1624_v43, %v1525_v47  ;;  %v1658_v49 = vadd.f32 %v1626_v25, %v1527_v18 }
 0x2b8   : >> { %v5112_v9 = vpack.c.bf16 %v2439_v23, %v2437_v55  ;;  %v1755_v51 = vsel %vm1704_vm4, %v6791_v44, 0.0  ;;  %v1757_v6 = vsel %vm1706_vm5, %v6791_v44, 0.0  ;;  %vm1835_vm6 = vcmp.eq.s32.totalorder %v7447_v11, %v6794_v39 }
 0x2b9   : >> { %vm1837_vm7 = vcmp.eq.s32.totalorder %v7451_v30, %v6794_v39  ;;  %vm1966_vm8 = vcmp.eq.s32.totalorder %v7447_v11, %v6842_v41  ;;  %v1787_v59 = vadd.f32 %v1755_v51, %v1656_v54  ;;  %v1789_v14 = vadd.f32 %v1757_v6, %v1658_v49 }
 0x2ba   : >> { %5113 = vmatpush1.bf16.msra.mxu0 %v5112_v9  ;;  %v1886_v33 = vsel %vm1835_vm6, %v6805_v10, 0.0  ;;  %v1888_v19 = vsel %vm1837_vm7, %v6805_v10, 0.0  ;;  %vm1968_vm9 = vcmp.eq.s32.totalorder %v7451_v30, %v6842_v41  ;;  %v2017_v27 = vsel %vm1966_vm8, %v6845_v63, 0.0 }
 0x2bb   : >> { %vm2097_vm10 = vcmp.eq.s32.totalorder %v7447_v11, %v6848_v15  ;;  %vm2099_vm11 = vcmp.eq.s32.totalorder %v7451_v30, %v6848_v15  ;;  %v1918_v13 = vadd.f32 %v1886_v33, %v1787_v59  ;;  %v1920_v62 = vadd.f32 %v1888_v19, %v1789_v14 }
 0x2bc   : >> { %v2019_v50 = vsel %vm1968_vm9, %v6845_v63, 0.0  ;;  %v2148_v55 = vsel %vm2097_vm10, %v6851_v31, 0.0  ;;  %v2150_v23 = vsel %vm2099_vm11, %v6851_v31, 0.0  ;;  %vm2228_vm12 = vcmp.eq.s32.totalorder %v7447_v11, %v6854_v38 }
 0x2bd   : >> { %vm2230_vm13 = vcmp.eq.s32.totalorder %v7451_v30, %v6854_v38  ;;  %vm2359_vm14 = vcmp.eq.s32.totalorder %v7447_v11, %v6890_v26  ;;  %v2049_v47 = vadd.f32 %v2017_v27, %v1918_v13  ;;  %v2051_v18 = vadd.f32 %v2019_v50, %v1920_v62 }
 0x2be   : >> { %v2279_v43 = vsel %vm2228_vm12, %v6875_v57, 0.0  ;;  %v2281_v25 = vsel %vm2230_vm13, %v6875_v57, 0.0  ;;  %vm2361_vm15 = vcmp.eq.s32.totalorder %v7451_v30, %v6890_v26  ;;  %v2410_v9 = vsel %vm2359_vm14, %v6893_v22, 0.0 }
 0x2bf   : >> { %vm1473_vm0 = vcmp.eq.s32.totalorder %v7447_v11, %v6896_v0  ;;  %vm1475_vm1 = vcmp.eq.s32.totalorder %v7451_v30, %v6896_v0  ;;  %v2180_v54 = vadd.f32 %v2148_v55, %v2049_v47  ;;  %v2182_v49 = vadd.f32 %v2150_v23, %v2051_v18 }
 0x2c0   : >> { %v2412_v51 = vsel %vm2361_vm15, %v6893_v22, 0.0  ;;  %v1524_v6 = vsel %vm1473_vm0, %v6899_v42, 0.0  ;;  %v1526_v59 = vsel %vm1475_vm1, %v6899_v42, 0.0  ;;  %vm1572_vm2 = vcmp.eq.s32.totalorder %v7447_v11, %v6906_v29 }
 0x2c1   : >> { %vm1574_vm3 = vcmp.eq.s32.totalorder %v7451_v30, %v6906_v29  ;;  %vm1703_vm4 = vcmp.eq.s32.totalorder %v7447_v11, %v6936_v53  ;;  %v2311_v14 = vadd.f32 %v2279_v43, %v2180_v54  ;;  %v2313_v33 = vadd.f32 %v2281_v25, %v2182_v49 }
 0x2c2   : >> { %v1623_v19 = vsel %vm1572_vm2, %v6923_v56, 0.0  ;;  %v1625_v27 = vsel %vm1574_vm3, %v6923_v56, 0.0  ;;  %vm1705_vm5 = vcmp.eq.s32.totalorder %v7451_v30, %v6936_v53  ;;  %v1754_v50 = vsel %vm1703_vm4, %v6941_v61, 0.0 }
 0x2c3   : >> { %v1655_v13 = vadd.f32 %v1623_v19, %v1524_v6  ;;  %v1657_v62 = vadd.f32 %v1625_v27, %v1526_v59  ;;  %v2442_v55 = vadd.f32 %v2410_v9, %v2311_v14  ;;  %v2444_v23 = vadd.f32 %v2412_v51, %v2313_v33 }
 0x2c4   : >> { %v1756_v47 = vsel %vm1705_vm5, %v6941_v61, 0.0  ;;  %vm1834_vm6 = vcmp.eq.s32.totalorder %v7447_v11, %v6944_v4  ;;  %vm1836_vm7 = vcmp.eq.s32.totalorder %v7451_v30, %v6944_v4  ;;  %vm1965_vm8 = vcmp.eq.s32.totalorder %v7447_v11, %v6954_v34 }
 0x2c5   : >> { %v1786_v18 = vadd.f32 %v1754_v50, %v1655_v13  ;;  %v1788_v43 = vadd.f32 %v1756_v47, %v1657_v62  ;;  %v1885_v25 = vsel %vm1834_vm6, %v6951_v58, 0.0  ;;  %v5114_v54 = vpack.c.bf16 %v2444_v23, %v2442_v55 }
 0x2c6   : >> { %v1887_v49 = vsel %vm1836_vm7, %v6951_v58, 0.0  ;;  %vm1967_vm9 = vcmp.eq.s32.totalorder %v7451_v30, %v6954_v34  ;;  %v2016_v6 = vsel %vm1965_vm8, %v6977_v17, 0.0  ;;  %vm2096_vm10 = vcmp.eq.s32.totalorder %v7447_v11, %v6980_v40 }
 0x2c7   : >> { %v1917_v9 = vadd.f32 %v1885_v25, %v1786_v18  ;;  %v1919_v51 = vadd.f32 %v1887_v49, %v1788_v43  ;;  %v2018_v59 = vsel %vm1967_vm9, %v6977_v17, 0.0  ;;  %5115 = vmatprep.subr.bf16.mxu0 %v5114_v54  ;;  %vm2098_vm11 = vcmp.eq.s32.totalorder %v7451_v30, %v6980_v40 }
 0x2c8   : >> { %vm2227_vm12 = vcmp.eq.s32.totalorder %v7447_v11, %v6990_v60  ;;  %vm2229_vm13 = vcmp.eq.s32.totalorder %v7451_v30, %v6990_v60  ;;  %v2147_v19 = vsel %vm2096_vm10, %v6987_v52, 0.0  ;;  %v2149_v27 = vsel %vm2098_vm11, %v6987_v52, 0.0 }
 0x2c9   : >> { %v2048_v14 = vadd.f32 %v2016_v6, %v1917_v9  ;;  %v2050_v33 = vadd.f32 %v2018_v59, %v1919_v51  ;;  %v2278_v13 = vsel %vm2227_vm12, %v7017_v20, 0.0  ;;  %v2280_v62 = vsel %vm2229_vm13, %v7017_v20, 0.0 }
 0x2ca   : >> { %vm2358_vm14 = vcmp.eq.s32.totalorder %v7447_v11, %v7020_v21  ;;  %vm2360_vm15 = vcmp.eq.s32.totalorder %v7451_v30, %v7020_v21  ;;  %vm1478_vm0 = vcmp.eq.s32.totalorder %v7455_v32, %v6774_v45  ;;  %vm1480_vm1 = vcmp.eq.s32.totalorder %v7459_v24, %v6774_v45 }
 0x2cb   : >> { %v2179_v50 = vadd.f32 %v2147_v19, %v2048_v14  ;;  %v2181_v55 = vadd.f32 %v2149_v27, %v2050_v33  ;;  %v2409_v23 = vsel %vm2358_vm14, %v7023_v5, 0.0  ;;  %v2411_v47 = vsel %vm2360_vm15, %v7023_v5, 0.0 }
 0x2cc   : >> { %vm1577_vm2 = vcmp.eq.s32.totalorder %v7455_v32, %v6780_v28  ;;  %vm1579_vm3 = vcmp.eq.s32.totalorder %v7459_v24, %v6780_v28  ;;  %v1529_v18 = vsel %vm1478_vm0, %v6777_v48, 0.0  ;;  %v1531_v43 = vsel %vm1480_vm1, %v6777_v48, 0.0 }
 0x2cd   : >> { %v2310_v11 = vadd.f32 %v2278_v13, %v2179_v50  ;;  %v2312_v30 = vadd.f32 %v2280_v62, %v2181_v55  ;;  %v1628_v25 = vsel %vm1577_vm2, %v6783_v3, 0.0  ;;  %v1630_v54 = vsel %vm1579_vm3, %v6783_v3, 0.0 }
 0x2ce   : >> { %vm1708_vm4 = vcmp.eq.s32.totalorder %v7455_v32, %v6788_v12  ;;  %vm1710_vm5 = vcmp.eq.s32.totalorder %v7459_v24, %v6788_v12  ;;  %v1660_v51 = vadd.f32 %v1628_v25, %v1529_v18  ;;  %v1662_v6 = vadd.f32 %v1630_v54, %v1531_v43 }
 0x2cf   : >> { %v2441_v49 = vadd.f32 %v2409_v23, %v2310_v11  ;;  %v2443_v9 = vadd.f32 %v2411_v47, %v2312_v30  ;;  %v1759_v59 = vsel %vm1708_vm4, %v6791_v44, 0.0  ;;  %v1761_v14 = vsel %vm1710_vm5, %v6791_v44, 0.0 }
 0x2d0   : >> { %vm1839_vm6 = vcmp.eq.s32.totalorder %v7455_v32, %v6794_v39  ;;  %vm1841_vm7 = vcmp.eq.s32.totalorder %v7459_v24, %v6794_v39  ;;  %v1791_v19 = vadd.f32 %v1759_v59, %v1660_v51  ;;  %v1793_v27 = vadd.f32 %v1761_v14, %v1662_v6 }
 0x2d1   : >> { %v5116_v33 = vpack.c.bf16 %v2443_v9, %v2441_v49  ;;  %v1890_v13 = vsel %vm1839_vm6, %v6805_v10, 0.0  ;;  %v1892_v62 = vsel %vm1841_vm7, %v6805_v10, 0.0  ;;  %vm1970_vm8 = vcmp.eq.s32.totalorder %v7455_v32, %v6842_v41 }
 0x2d2   : >> { %vm1972_vm9 = vcmp.eq.s32.totalorder %v7459_v24, %v6842_v41  ;;  %vm2101_vm10 = vcmp.eq.s32.totalorder %v7455_v32, %v6848_v15  ;;  %v1922_v50 = vadd.f32 %v1890_v13, %v1791_v19  ;;  %v1924_v55 = vadd.f32 %v1892_v62, %v1793_v27 }
 0x2d3   : >> { %5117 = vmatpush1.bf16.msra.mxu0 %v5116_v33  ;;  %v2021_v23 = vsel %vm1970_vm8, %v6845_v63, 0.0  ;;  %v2023_v47 = vsel %vm1972_vm9, %v6845_v63, 0.0  ;;  %vm2103_vm11 = vcmp.eq.s32.totalorder %v7459_v24, %v6848_v15  ;;  %v2152_v11 = vsel %vm2101_vm10, %v6851_v31, 0.0 }
 0x2d4   : >> { %vm2232_vm12 = vcmp.eq.s32.totalorder %v7455_v32, %v6854_v38  ;;  %vm2234_vm13 = vcmp.eq.s32.totalorder %v7459_v24, %v6854_v38  ;;  %v2053_v30 = vadd.f32 %v2021_v23, %v1922_v50  ;;  %v2055_v18 = vadd.f32 %v2023_v47, %v1924_v55 }
 0x2d5   : >> { %v2154_v43 = vsel %vm2103_vm11, %v6851_v31, 0.0  ;;  %v2283_v25 = vsel %vm2232_vm12, %v6875_v57, 0.0  ;;  %v2285_v54 = vsel %vm2234_vm13, %v6875_v57, 0.0  ;;  %vm2363_vm14 = vcmp.eq.s32.totalorder %v7455_v32, %v6890_v26 }
 0x2d6   : >> { %vm2365_vm15 = vcmp.eq.s32.totalorder %v7459_v24, %v6890_v26  ;;  %vm1477_vm0 = vcmp.eq.s32.totalorder %v7455_v32, %v6896_v0  ;;  %v2184_v49 = vadd.f32 %v2152_v11, %v2053_v30  ;;  %v2186_v9 = vadd.f32 %v2154_v43, %v2055_v18 }
 0x2d7   : >> { %v2414_v51 = vsel %vm2363_vm14, %v6893_v22, 0.0  ;;  %v2416_v6 = vsel %vm2365_vm15, %v6893_v22, 0.0  ;;  %vm1479_vm1 = vcmp.eq.s32.totalorder %v7459_v24, %v6896_v0  ;;  %v1528_v59 = vsel %vm1477_vm0, %v6899_v42, 0.0 }
 0x2d8   : >> { %vm1576_vm2 = vcmp.eq.s32.totalorder %v7455_v32, %v6906_v29  ;;  %vm1578_vm3 = vcmp.eq.s32.totalorder %v7459_v24, %v6906_v29  ;;  %v2315_v14 = vadd.f32 %v2283_v25, %v2184_v49  ;;  %v2317_v33 = vadd.f32 %v2285_v54, %v2186_v9 }
 0x2d9   : >> { %v1530_v19 = vsel %vm1479_vm1, %v6899_v42, 0.0  ;;  %v1627_v27 = vsel %vm1576_vm2, %v6923_v56, 0.0  ;;  %v1629_v13 = vsel %vm1578_vm3, %v6923_v56, 0.0  ;;  %vm1707_vm4 = vcmp.eq.s32.totalorder %v7455_v32, %v6936_v53 }
 0x2da   : >> { %v1659_v62 = vadd.f32 %v1627_v27, %v1528_v59  ;;  %vm1709_vm5 = vcmp.eq.s32.totalorder %v7459_v24, %v6936_v53  ;;  %v2446_v50 = vadd.f32 %v2414_v51, %v2315_v14  ;;  %v2448_v55 = vadd.f32 %v2416_v6, %v2317_v33 }
 0x2db   : >> { %v1661_v23 = vadd.f32 %v1629_v13, %v1530_v19  ;;  %v1758_v47 = vsel %vm1707_vm4, %v6941_v61, 0.0  ;;  %v1760_v11 = vsel %vm1709_vm5, %v6941_v61, 0.0  ;;  %vm1838_vm6 = vcmp.eq.s32.totalorder %v7455_v32, %v6944_v4 }
 0x2dc   : >> { %v1790_v30 = vadd.f32 %v1758_v47, %v1659_v62  ;;  %vm1840_vm7 = vcmp.eq.s32.totalorder %v7459_v24, %v6944_v4  ;;  %v5118_v18 = vpack.c.bf16 %v2448_v55, %v2446_v50  ;;  %v1889_v25 = vsel %vm1838_vm6, %v6951_v58, 0.0 }
 0x2dd   : >> { %v1792_v43 = vadd.f32 %v1760_v11, %v1661_v23  ;;  %v1891_v54 = vsel %vm1840_vm7, %v6951_v58, 0.0  ;;  %vm1969_vm8 = vcmp.eq.s32.totalorder %v7455_v32, %v6954_v34  ;;  %vm1971_vm9 = vcmp.eq.s32.totalorder %v7459_v24, %v6954_v34 }
 0x2de   : >> { %v1921_v49 = vadd.f32 %v1889_v25, %v1790_v30  ;;  %vm2100_vm10 = vcmp.eq.s32.totalorder %v7455_v32, %v6980_v40  ;;  %5119 = vmatprep.subr.bf16.mxu0 %v5118_v18  ;;  %v2020_v51 = vsel %vm1969_vm8, %v6977_v17, 0.0  ;;  %v2022_v6 = vsel %vm1971_vm9, %v6977_v17, 0.0 }
 0x2df   : >> { %v1923_v9 = vadd.f32 %v1891_v54, %v1792_v43  ;;  %vm2102_vm11 = vcmp.eq.s32.totalorder %v7459_v24, %v6980_v40  ;;  %v2151_v14 = vsel %vm2100_vm10, %v6987_v52, 0.0  ;;  %vm2231_vm12 = vcmp.eq.s32.totalorder %v7455_v32, %v6990_v60 }
 0x2e0   : >> { %v2052_v59 = vadd.f32 %v2020_v51, %v1921_v49  ;;  %v2153_v33 = vsel %vm2102_vm11, %v6987_v52, 0.0  ;;  %vm2233_vm13 = vcmp.eq.s32.totalorder %v7459_v24, %v6990_v60  ;;  %v2282_v27 = vsel %vm2231_vm12, %v7017_v20, 0.0 }
 0x2e1   : >> { %v2054_v19 = vadd.f32 %v2022_v6, %v1923_v9  ;;  %vm2362_vm14 = vcmp.eq.s32.totalorder %v7455_v32, %v7020_v21  ;;  %v2284_v62 = vsel %vm2233_vm13, %v7017_v20, 0.0  ;;  %vm2364_vm15 = vcmp.eq.s32.totalorder %v7459_v24, %v7020_v21 }
 0x2e2   : >> { %v2183_v13 = vadd.f32 %v2151_v14, %v2052_v59  ;;  %v2413_v50 = vsel %vm2362_vm14, %v7023_v5, 0.0  ;;  %v2415_v23 = vsel %vm2364_vm15, %v7023_v5, 0.0  ;;  %vm1482_vm0 = vcmp.eq.s32.totalorder %v7463_v37, %v6774_v45 }
 0x2e3   : >> { %v2185_v55 = vadd.f32 %v2153_v33, %v2054_v19  ;;  %vm1484_vm1 = vcmp.eq.s32.totalorder %v7467_v46, %v6774_v45  ;;  %v1533_v32 = vsel %vm1482_vm0, %v6777_v48, 0.0  ;;  %vm1581_vm2 = vcmp.eq.s32.totalorder %v7463_v37, %v6780_v28 }
 0x2e4   : >> { %v2314_v47 = vadd.f32 %v2282_v27, %v2183_v13  ;;  %v1535_v11 = vsel %vm1484_vm1, %v6777_v48, 0.0  ;;  %vm1583_vm3 = vcmp.eq.s32.totalorder %v7467_v46, %v6780_v28  ;;  %v1632_v30 = vsel %vm1581_vm2, %v6783_v3, 0.0 }
 0x2e5   : >> { %v2316_v24 = vadd.f32 %v2284_v62, %v2185_v55  ;;  %vm1712_vm4 = vcmp.eq.s32.totalorder %v7463_v37, %v6788_v12  ;;  %v1634_v45 = vsel %vm1583_vm3, %v6783_v3, 0.0  ;;  %v1664_v43 = vadd.f32 %v1632_v30, %v1533_v32 }
 0x2e6   : >> { %v2445_v18 = vadd.f32 %v2413_v50, %v2314_v47  ;;  %vm1714_vm5 = vcmp.eq.s32.totalorder %v7467_v46, %v6788_v12  ;;  %v1666_v25 = vadd.f32 %v1634_v45, %v1535_v11  ;;  %v1763_v54 = vsel %vm1712_vm4, %v6791_v44, 0.0 }
 0x2e7   : >> { %v2447_v48 = vadd.f32 %v2415_v23, %v2316_v24  ;;  %v1765_v49 = vsel %vm1714_vm5, %v6791_v44, 0.0  ;;  %v1795_v9 = vadd.f32 %v1763_v54, %v1664_v43  ;;  %vm1843_vm6 = vcmp.eq.s32.totalorder %v7463_v37, %v6794_v39 }
 0x2e8   : >> { %vm1845_vm7 = vcmp.eq.s32.totalorder %v7467_v46, %v6794_v39  ;;  %vm1974_vm8 = vcmp.eq.s32.totalorder %v7463_v37, %v6842_v41  ;;  %v1797_v3 = vadd.f32 %v1765_v49, %v1666_v25  ;;  %v1894_v12 = vsel %vm1843_vm6, %v6805_v10, 0.0 }
 0x2e9   : >> { %v5120_v28 = vpack.c.bf16 %v2447_v48, %v2445_v18  ;;  %v1896_v51 = vsel %vm1845_vm7, %v6805_v10, 0.0  ;;  %v1926_v6 = vadd.f32 %v1894_v12, %v1795_v9  ;;  %vm1976_vm9 = vcmp.eq.s32.totalorder %v7467_v46, %v6842_v41 }
 0x2ea   : >> { %v2025_v44 = vsel %vm1974_vm8, %v6845_v63, 0.0  ;;  %vm2105_vm10 = vcmp.eq.s32.totalorder %v7463_v37, %v6848_v15  ;;  %v1928_v39 = vadd.f32 %v1896_v51, %v1797_v3  ;;  %v2027_v59 = vsel %vm1976_vm9, %v6845_v63, 0.0  ;;  %v10109_v51 = vld [vmem:[#allocation12_spill] sm:$0xff] (%p1413_p4) }
 0x2eb   : >> { %5121 = vmatpush1.bf16.msra.mxu0 %v5120_v28  ;;  %vm2107_vm11 = vcmp.eq.s32.totalorder %v7467_v46, %v6848_v15  ;;  %v2156_v14 = vsel %vm2105_vm10, %v6851_v31, 0.0  ;;  %v2057_v33 = vadd.f32 %v2025_v44, %v1926_v6  ;;  %vm2236_vm12 = vcmp.eq.s32.totalorder %v7463_v37, %v6854_v38 }
 0x2ec   : >> { %v2158_v10 = vsel %vm2107_vm11, %v6851_v31, 0.0  ;;  %vm2238_vm13 = vcmp.eq.s32.totalorder %v7467_v46, %v6854_v38  ;;  %v2059_v41 = vadd.f32 %v2027_v59, %v1928_v39  ;;  %v2287_v19 = vsel %vm2236_vm12, %v6875_v57, 0.0 }
 0x2ed   : >> { %v2289_v27 = vsel %vm2238_vm13, %v6875_v57, 0.0  ;;  %vm2367_vm14 = vcmp.eq.s32.totalorder %v7463_v37, %v6890_v26  ;;  %v2188_v63 = vadd.f32 %v2156_v14, %v2057_v33  ;;  %vm2369_vm15 = vcmp.eq.s32.totalorder %v7467_v46, %v6890_v26 }
 0x2ee   : >> { %v2418_v15 = vsel %vm2367_vm14, %v6893_v22, 0.0  ;;  %vm1481_vm0 = vcmp.eq.s32.totalorder %v7463_v37, %v6896_v0  ;;  %v2190_v31 = vadd.f32 %v2158_v10, %v2059_v41  ;;  %v2420_v38 = vsel %vm2369_vm15, %v6893_v22, 0.0 }
 0x2ef   : >> { %vm1483_vm1 = vcmp.eq.s32.totalorder %v7467_v46, %v6896_v0  ;;  %v1532_v57 = vsel %vm1481_vm0, %v6899_v42, 0.0  ;;  %v2319_v13 = vadd.f32 %v2287_v19, %v2188_v63  ;;  %vm1580_vm2 = vcmp.eq.s32.totalorder %v7463_v37, %v6906_v29 }
 0x2f0   : >> { %v1534_v62 = vsel %vm1483_vm1, %v6899_v42, 0.0  ;;  %vm1582_vm3 = vcmp.eq.s32.totalorder %v7467_v46, %v6906_v29  ;;  %v2321_v26 = vadd.f32 %v2289_v27, %v2190_v31  ;;  %v1631_v50 = vsel %vm1580_vm2, %v6923_v56, 0.0 }
 0x2f1   : >> { %v1633_v55 = vsel %vm1582_vm3, %v6923_v56, 0.0  ;;  %vm1711_vm4 = vcmp.eq.s32.totalorder %v7463_v37, %v6936_v53  ;;  %v2450_v22 = vadd.f32 %v2418_v15, %v2319_v13  ;;  %v1663_v0 = vadd.f32 %v1631_v50, %v1532_v57 }
 0x2f2   : >> { %v1665_v23 = vadd.f32 %v1633_v55, %v1534_v62  ;;  %vm1713_vm5 = vcmp.eq.s32.totalorder %v7467_v46, %v6936_v53  ;;  %v2452_v42 = vadd.f32 %v2420_v38, %v2321_v26  ;;  %v1762_v47 = vsel %vm1711_vm4, %v6941_v61, 0.0 }
 0x2f3   : >> { %v1764_v32 = vsel %vm1713_vm5, %v6941_v61, 0.0  ;;  %vm1842_vm6 = vcmp.eq.s32.totalorder %v7463_v37, %v6944_v4  ;;  %v1794_v29 = vadd.f32 %v1762_v47, %v1663_v0  ;;  %vm1844_vm7 = vcmp.eq.s32.totalorder %v7467_v46, %v6944_v4 }
 0x2f4   : >> { %v1796_v11 = vadd.f32 %v1764_v32, %v1665_v23  ;;  %v1893_v56 = vsel %vm1842_vm6, %v6951_v58, 0.0  ;;  %v5122_v24 = vpack.c.bf16 %v2452_v42, %v2450_v22  ;;  %v1895_v30 = vsel %vm1844_vm7, %v6951_v58, 0.0 }
 0x2f5   : >> { %vm1973_vm8 = vcmp.eq.s32.totalorder %v7463_v37, %v6954_v34  ;;  %vm1975_vm9 = vcmp.eq.s32.totalorder %v7467_v46, %v6954_v34  ;;  %v1925_v53 = vadd.f32 %v1893_v56, %v1794_v29  ;;  %vm2104_vm10 = vcmp.eq.s32.totalorder %v7463_v37, %v6980_v40 }
 0x2f6   : >> { %v1927_v61 = vadd.f32 %v1895_v30, %v1796_v11  ;;  %v2024_v18 = vsel %vm1973_vm8, %v6977_v17, 0.0  ;;  %v2026_v45 = vsel %vm1975_vm9, %v6977_v17, 0.0  ;;  %5123 = vmatprep.subr.bf16.mxu0 %v5122_v24  ;;  %vm2106_vm11 = vcmp.eq.s32.totalorder %v7467_v46, %v6980_v40 }
 0x2f7   : >> { %vm2235_vm12 = vcmp.eq.s32.totalorder %v7463_v37, %v6990_v60  ;;  %vm2237_vm13 = vcmp.eq.s32.totalorder %v7467_v46, %v6990_v60  ;;  %v2056_v4 = vadd.f32 %v2024_v18, %v1925_v53  ;;  %v2155_v34 = vsel %vm2104_vm10, %v6987_v52, 0.0 }
 0x2f8   : >> { %v2058_v58 = vadd.f32 %v2026_v45, %v1927_v61  ;;  %v2157_v17 = vsel %vm2106_vm11, %v6987_v52, 0.0  ;;  %v2286_v43 = vsel %vm2235_vm12, %v7017_v20, 0.0  ;;  %v2288_v48 = vsel %vm2237_vm13, %v7017_v20, 0.0 }
 0x2f9   : >> { %vm2366_vm14 = vcmp.eq.s32.totalorder %v7463_v37, %v7020_v21  ;;  %vm2368_vm15 = vcmp.eq.s32.totalorder %v7467_v46, %v7020_v21  ;;  %v2187_v40 = vadd.f32 %v2155_v34, %v2056_v4  ;;  %v5540_v28 = vmov 0.0   ;;  %v5048_v37 = vld [vmem:[%s4953_s28 + $0x8] sm:$0xff] }
 0x2fa   : >> { %v2189_v25 = vadd.f32 %v2157_v17, %v2058_v58  ;;  %v2417_v60 = vsel %vm2366_vm14, %v7023_v5, 0.0  ;;  %v2419_v54 = vsel %vm2368_vm15, %v7023_v5, 0.0  ;;  %2521 = vmatprep.mubr.f32.mxu0 %v5540_v28  ;;  %v2530_v6 = vmul.f32 (%p1413_p4), 16.0, %v10109_v51 }
 0x2fb   : >> { %v2318_v49 = vadd.f32 %v2286_v43, %v2187_v40 }
 0x2fc   : >> { %v2320_v9 = vadd.f32 %v2288_v48, %v2189_v25  ;;  %v2531_v44 = vfloor.f32 (%p1413_p4), %v2530_v6 }
 0x2fd   : >> { %v2449_v52 = vadd.f32 %v2417_v60, %v2318_v49 }
 0x2fe   : >> { %v2451_v3 = vadd.f32 %v2419_v54, %v2320_v9  ;;  %v5194_v39 = vtrunc.f32 (%p1413_p4), %v2531_v44 }
 0x300   : >> { %v5124_v20 = vpack.c.bf16 %v2451_v3, %v2449_v52  ;;  %v5195_v59 = vcvt.f32.s32 (%p1413_p4), %v5194_v39 }
 0x302   : >> { %5125 = vmatpush1.bf16.msra.mxu0 %v5124_v20  ;;  %v2536_v41 = vmul.u32 (%p1413_p4), 2654435761, %v5195_v59  ;;  %v2538_v19 = vmul.u32 (%p1413_p4), 805459861, %v5195_v59  ;;  %v2534_v63 = vadd.s32 (%p1413_p4), 1, %v5195_v59 }
 0x304   : > { %v2537_v57 = vadd.s32 (%p1413_p4), 2654435761, %v2536_v41  ;;  %v2539_v13 = vadd.s32 (%p1413_p4), 805459861, %v2538_v19  ;;  %v2540_v62 = vrot.slane (%p1413_p4), %v2536_v41, 5 }
 0x305   : >> { %2522 = vmatmul.mubr.f32.vlgmr.msra.gmra.mrb[0].mxu0 %v5048_v37 }
 0x306   : > { %v2541_v0 = vrot.slane (%p1413_p4), %v2540_v62, 4  ;;  %v2561_v47 = vrot.slane (%p1413_p4), %v2537_v57, 5  ;;  %v2577_v56 = vrot.slane (%p1413_p4), %v2539_v13, 6 }
 0x308   : > { %v2542_v24 = vxor.u32 (%p1413_p4), %v5195_v59, %v2541_v0  ;;  %v2556_v53 = vxor.u32 (%p1413_p4), %v2541_v0, %v2534_v63  ;;  %v2562_v18 = vrot.slane (%p1413_p4), %v2561_v47, 4  ;;  %v2578_v45 = vrot.slane (%p1413_p4), %v2577_v56, 4 }
 0x30a   : > { %v2563_v40 = vxor.u32 (%p1413_p4), %v5195_v59, %v2562_v18  ;;  %v2572_v25 = vxor.u32 (%p1413_p4), %v2562_v18, %v2534_v63  ;;  %v2579_v60 = vxor.u32 (%p1413_p4), %v2578_v45, %v2542_v24  ;;  %v2585_v54 = vxor.u32 (%p1413_p4), %v2578_v45, %v2556_v53 }
 0x30c   : > { %v7794_v3 = vand.u32 (%p1413_p4), 4095, %v2579_v60  ;;  %v7796_v20 = vand.u32 (%p1413_p4), 4095, %v2585_v54  ;;  %v2588_v37 = vxor.u32 (%p1413_p4), %v2578_v45, %v2563_v40 }
 0x30e   : > { %10120 = vst [vmem:[#allocation34_spill] sm:$0xff] (%p1413_p4), %v7794_v3  ;;  %10121 = vst [vmem:[#allocation35_spill] sm:$0xff] (%p1413_p4), %v7796_v20 }
 0x3d7   : > { %1415 = sbr.rel (!%p1413_p4) target bundleno = 552 (0x228), region = 101 }
 0x3d8   : >> { %v2523_v12 = vpop.f32.mrb[0].mxu0 }
 0x3d9   : >> { %v7759_v35 = vadd.f32 %v5505_v35, %v2523_v12   ;;  %v2525_v46 = vpop.f32.mrb[1].mxu0  ;;  %v2591_v12 = vxor.u32 (%p1413_p4), %v2578_v45, %v2572_v25 }
 0x3da   : >> { %v7762_v8 = vadd.f32 %v5501_v8, %v2525_v46  }
 0x3db   : >> { %v10105_v21 = vmov %v7759_v35 }
 0x3dc   : >> { %v10106_v5 = vmov %v7762_v8  ;;  %v10108_v35 = vmov %v10105_v21 }
 0x3dd   : >> { %v10107_v8 = vmov %v10106_v5  ;;  %v2532_v35 = vsub.f32 (%p1413_p4), %v2530_v6, %v2531_v44  ;;  %v7802_v6 = vand.u32 (%p1413_p4), 4095, %v2588_v37  ;;  %v7804_v44 = vand.u32 (%p1413_p4), 4095, %v2591_v12 }
 0x3de   : > { %v2548_v8 = vrot.slane %v2538_v19, 6 }
 0x3df   : > { %v2535_v14 = vsub.f32 1.0, %v2532_v35  ;;  %v2565_v33 = vrot.slane %v2532_v35, 5  ;;  %v2580_v10 = vrot.slane %v2532_v35, 6  ;;  %10124 = vst [vmem:[#allocation38_spill] sm:$0xff] %v7802_v6  ;;  %10125 = vst [vmem:[#allocation39_spill] sm:$0xff] %v7804_v44 }
 0x3e0   : > { %v2549_v32 = vrot.slane %v2548_v8, 4 }
 0x3e1   : > { %v2544_v27 = vrot.slane %v2535_v14, 5  ;;  %v2551_v15 = vrot.slane %v2535_v14, 6  ;;  %v2566_v31 = vrot.slane %v2565_v33, 4  ;;  %v2581_v38 = vrot.slane %v2580_v10, 4 }
 0x3e2   : > { %v2550_v34 = vxor.u32 %v2549_v32, %v2542_v24  ;;  %v2558_v17 = vxor.u32 %v2556_v53, %v2549_v32  ;;  %v2569_v28 = vxor.u32 %v2563_v40, %v2549_v32  ;;  %v2574_v52 = vxor.u32 %v2572_v25, %v2549_v32 }
 0x3e3   : > { %v2545_v26 = vrot.slane %v2544_v27, 4  ;;  %v2552_v50 = vrot.slane %v2551_v15, 4  ;;  %v2568_v55 = vmul.f32 %v2566_v31, %v2535_v14  ;;  %v2573_v22 = vmul.f32 %v2566_v31, %v2532_v35 }
 0x3e4   : > { %v7790_v49 = vand.u32 4095, %v2550_v34  ;;  %v7792_v9 = vand.u32 4095, %v2558_v17  ;;  %v7798_v46 = vand.u32 4095, %v2569_v28  ;;  %v7800_v51 = vand.u32 4095, %v2574_v52 }
 0x3e5   : > { %v2547_v23 = vmul.f32 %v2545_v26, %v2535_v14  ;;  %v2557_v42 = vmul.f32 %v2545_v26, %v2532_v35  ;;  %v7774_v29 = vmul.f32 %v2568_v55, %v2552_v50  ;;  %v7776_v11 = vmul.f32 %v2573_v22, %v2552_v50 }
 0x3e6   : > { %v7786_v43 = vmul.f32 %v2581_v38, %v2568_v55  ;;  %v7788_v48 = vmul.f32 %v2581_v38, %v2573_v22  ;;  %10118 = vst [vmem:[#allocation32_spill] sm:$0xff] %v7790_v49  ;;  %10119 = vst [vmem:[#allocation33_spill] sm:$0xff] %v7792_v9 }
 0x3e7   : > { %10110 = vst [vmem:[#allocation24_spill] sm:$0xff] %v7774_v29  ;;  %10111 = vst [vmem:[#allocation25_spill] sm:$0xff] %v7776_v11  ;;  %v7778_v30 = vmul.f32 %v2552_v50, %v2547_v23  ;;  %v7780_v61 = vmul.f32 %v2557_v42, %v2552_v50  ;;  %v7782_v4 = vmul.f32 %v2581_v38, %v2547_v23 }
 0x3e8   : > { %v7784_v58 = vmul.f32 %v2581_v38, %v2557_v42  ;;  %10116 = vst [vmem:[#allocation30_spill] sm:$0xff] %v7786_v43  ;;  %10117 = vst [vmem:[#allocation31_spill] sm:$0xff] %v7788_v48 }
 0x3e9   : > { %10112 = vst [vmem:[#allocation26_spill] sm:$0xff] %v7778_v30  ;;  %10113 = vst [vmem:[#allocation27_spill] sm:$0xff] %v7780_v61 }
 0x3ea   : > { %10114 = vst [vmem:[#allocation28_spill] sm:$0xff] %v7782_v4  ;;  %10115 = vst [vmem:[#allocation29_spill] sm:$0xff] %v7784_v58 }
 0x3eb   : > { %10122 = vst [vmem:[#allocation36_spill] sm:$0xff] %v7798_v46  ;;  %10123 = vst [vmem:[#allocation37_spill] sm:$0xff] %v7800_v51 }
 0x3ec LB: >> { %v10132_v44 = vld [vmem:[#allocation39_spill] sm:$0xff]  ;;  %v10139_v6 = vld [vmem:[#allocation38_spill] sm:$0xff]  ;;  %s5049_s3 = sshll.u32 %s5521_s30, 7  ;;  %v10143_v63 = vld [vmem:[#allocation13_spill] sm:$0xff]  ;;  %s5050_s4 = sshll.u32 %s5521_s30, 3  ;;  %v5513_v5 = vphi %v10106_v5, %v10157_v5   ;;  %s5521_s30 = sphi %s7812_s30, %s2599_s30   ;;  %v5517_v21 = vphi %v10105_v21, %v10158_v21  }
 0x3ed   : >> { %v10129_v49 = vld [vmem:[#allocation32_spill] sm:$0xff]  ;;  %v10136_v20 = vld [vmem:[#allocation35_spill] sm:$0xff]  ;;  %v10138_v9 = vld [vmem:[#allocation33_spill] sm:$0xff]  ;;  %v7852_v13 = vstv %s5049_s3  ;;  %s4956_s5 = scalar_lea.vmem [#allocation5], %s5050_s4  ;;  %s2599_s30 = sadd.s32 1, %s5521_s30  }
 0x3ee   : >> { %v10135_v29 = vld [vmem:[#allocation24_spill] sm:$0xff]  ;;  %v10137_v11 = vld [vmem:[#allocation25_spill] sm:$0xff]  ;;  %v10141_v3 = vld [vmem:[#allocation34_spill] sm:$0xff]  ;;  %v7865_v50 = vadd.s32 %v7852_v13, %v5708_v1  ;;  %p2596_p6 = scmp.ge.s32.totalorder %s2599_s30, 32  }
 0x3ef   : >> { %v10130_v48 = vld [vmem:[#allocation31_spill] sm:$0xff]  ;;  %v10133_v43 = vld [vmem:[#allocation30_spill] sm:$0xff]  ;;  %s8879_s6 = smov (%p2596_p6), 0  }
 0x3f0   : >> { %v10126_v61 = vld [vmem:[#allocation27_spill] sm:$0xff]  ;;  %v10134_v30 = vld [vmem:[#allocation26_spill] sm:$0xff] }
 0x3f1   : >> { %v10127_v58 = vld [vmem:[#allocation29_spill] sm:$0xff]  ;;  %v10140_v4 = vld [vmem:[#allocation28_spill] sm:$0xff]  ;;  %v10142_v35 = vld [vmem:[#allocation14_spill] sm:$0xff] }
 0x3f2   : >> { %v10128_v51 = vld [vmem:[#allocation37_spill] sm:$0xff]  ;;  %v10131_v46 = vld [vmem:[#allocation36_spill] sm:$0xff]  ;;  %v2627_v39 = vrot.slane %v10129_v49, %v10142_v35  ;;  %v2676_v59 = vrot.slane %v10134_v30, %v10142_v35  ;;  %v2726_v14 = vrot.slane %v10138_v9, %v10142_v35  ;;  %v2775_v33 = vrot.slane %v10126_v61, %v10142_v35  ;;  %v10144_v55 = vld [vmem:[#allocation15_spill] sm:$0xff] }
 0x3f3   : >> { %v2857_v10 = vrot.slane %v10131_v46, %v10142_v35  ;;  %v2906_v41 = vrot.slane %v10135_v29, %v10142_v35  ;;  %v2988_v19 = vrot.slane %v10128_v51, %v10142_v35  ;;  %v3037_v27 = vrot.slane %v10137_v11, %v10142_v35 }
 0x3f4   : >> { %v7841_v15 = vrot.slane %v2627_v39, %v10143_v63  ;;  %v7844_v31 = vrot.slane %v2676_v59, %v10143_v63  ;;  %v7847_v38 = vrot.slane %v2726_v14, %v10143_v63  ;;  %v7850_v57 = vrot.slane %v2775_v33, %v10143_v63 }
 0x3f5   : >> { %v7855_v62 = vrot.slane %v2857_v10, %v10143_v63  ;;  %v7858_v26 = vrot.slane %v2906_v41, %v10143_v63  ;;  %v7861_v8 = vrot.slane %v2988_v19, %v10143_v63  ;;  %v7869_v22 = vadd.s32 %v7852_v13, %v10144_v55 }
 0x3f6   : >> { %v7872_v0 = vrot.slane %v3037_v27, %v10143_v63  ;;  %v3119_v23 = vrot.slane %v10141_v3, %v10142_v35  ;;  %v3168_v42 = vrot.slane %v10140_v4, %v10142_v35  ;;  %v3250_v47 = vrot.slane %v10136_v20, %v10142_v35 }
 0x3f7   : >> { %v3299_v32 = vrot.slane %v10127_v58, %v10142_v35  ;;  %v3381_v56 = vrot.slane %v10139_v6, %v10142_v35  ;;  %vm2637_vm0 = vcmp.eq.s32.totalorder %v7865_v50, %v7841_v15  ;;  %vm2639_vm1 = vcmp.eq.s32.totalorder %v7869_v22, %v7841_v15 }
 0x3f8   : >> { %vm2736_vm2 = vcmp.eq.s32.totalorder %v7865_v50, %v7847_v38  ;;  %vm2738_vm3 = vcmp.eq.s32.totalorder %v7869_v22, %v7847_v38  ;;  %v2688_v24 = vsel %vm2637_vm0, %v7844_v31, 0.0  ;;  %v2690_v53 = vsel %vm2639_vm1, %v7844_v31, 0.0 }
 0x3f9   : >> { %v2787_v18 = vsel %vm2736_vm2, %v7850_v57, 0.0  ;;  %v2789_v45 = vsel %vm2738_vm3, %v7850_v57, 0.0  ;;  %vm2867_vm4 = vcmp.eq.s32.totalorder %v7865_v50, %v7855_v62  ;;  %vm2869_vm5 = vcmp.eq.s32.totalorder %v7869_v22, %v7855_v62 }
 0x3fa   : >> { %v2819_v34 = vadd.f32 %v2787_v18, %v2688_v24  ;;  %v2821_v17 = vadd.f32 %v2789_v45, %v2690_v53  ;;  %v2918_v40 = vsel %vm2867_vm4, %v7858_v26, 0.0  ;;  %v2920_v25 = vsel %vm2869_vm5, %v7858_v26, 0.0 }
 0x3fb   : >> { %vm2998_vm6 = vcmp.eq.s32.totalorder %v7865_v50, %v7861_v8  ;;  %vm3000_vm7 = vcmp.eq.s32.totalorder %v7869_v22, %v7861_v8  ;;  %v7909_v37 = vrot.slane %v3119_v23, %v10143_v63  ;;  %v7912_v12 = vrot.slane %v3168_v42, %v10143_v63 }
 0x3fc   : >> { %v2950_v60 = vadd.f32 %v2918_v40, %v2819_v34  ;;  %v2952_v54 = vadd.f32 %v2920_v25, %v2821_v17  ;;  %v3049_v28 = vsel %vm2998_vm6, %v7872_v0, 0.0  ;;  %v3051_v52 = vsel %vm3000_vm7, %v7872_v0, 0.0 }
 0x3fd   : >> { %v7915_v39 = vrot.slane %v3250_v47, %v10143_v63  ;;  %v7918_v59 = vrot.slane %v3299_v32, %v10143_v63  ;;  %v7921_v10 = vrot.slane %v3381_v56, %v10143_v63  ;;  %v3430_v41 = vrot.slane %v10133_v43, %v10142_v35 }
 0x3fe   : >> { %v3081_v14 = vadd.f32 %v3049_v28, %v2950_v60  ;;  %v3083_v33 = vadd.f32 %v3051_v52, %v2952_v54  ;;  %vm3129_vm8 = vcmp.eq.s32.totalorder %v7865_v50, %v7909_v37  ;;  %vm3131_vm9 = vcmp.eq.s32.totalorder %v7869_v22, %v7909_v37 }
 0x3ff   : >> { %vm3260_vm10 = vcmp.eq.s32.totalorder %v7865_v50, %v7915_v39  ;;  %vm3262_vm11 = vcmp.eq.s32.totalorder %v7869_v22, %v7915_v39  ;;  %v3180_v19 = vsel %vm3129_vm8, %v7912_v12, 0.0  ;;  %v3182_v27 = vsel %vm3131_vm9, %v7912_v12, 0.0 }
 0x400   : >> { %v3311_v55 = vsel %vm3260_vm10, %v7918_v59, 0.0  ;;  %v3313_v23 = vsel %vm3262_vm11, %v7918_v59, 0.0  ;;  %v3212_v42 = vadd.f32 %v3180_v19, %v3081_v14  ;;  %v3214_v47 = vadd.f32 %v3182_v27, %v3083_v33 }
 0x401   : >> { %vm3391_vm12 = vcmp.eq.s32.totalorder %v7865_v50, %v7921_v10  ;;  %vm3393_vm13 = vcmp.eq.s32.totalorder %v7869_v22, %v7921_v10  ;;  %v7942_v32 = vrot.slane %v3430_v41, %v10143_v63  ;;  %v3512_v56 = vrot.slane %v10132_v44, %v10142_v35 }
 0x402   : >> { %v3561_v24 = vrot.slane %v10130_v48, %v10142_v35  ;;  %v2623_v53 = vrot.slane %v10129_v49, %v10143_v63  ;;  %v3343_v18 = vadd.f32 %v3311_v55, %v3212_v42  ;;  %v3345_v45 = vadd.f32 %v3313_v23, %v3214_v47 }
 0x403   : >> { %v2672_v34 = vrot.slane %v10134_v30, %v10143_v63  ;;  %v2722_v17 = vrot.slane %v10138_v9, %v10143_v63  ;;  %v3442_v40 = vsel %vm3391_vm12, %v7942_v32, 0.0  ;;  %v3444_v25 = vsel %vm3393_vm13, %v7942_v32, 0.0 }
 0x404   : >> { %v7957_v60 = vrot.slane %v3512_v56, %v10143_v63  ;;  %v7960_v35 = vrot.slane %v3561_v24, %v10143_v63  ;;  %v3474_v54 = vadd.f32 %v3442_v40, %v3343_v18  ;;  %v3476_v28 = vadd.f32 %v3444_v25, %v3345_v45 }
 0x405   : >> { %v7963_v52 = vrot.slane %v2623_v53, %v10143_v63  ;;  %v7966_v14 = vrot.slane %v2672_v34, %v10143_v63  ;;  %v7973_v33 = vrot.slane %v2722_v17, %v10143_v63  ;;  %v2771_v41 = vrot.slane %v10126_v61, %v10143_v63 }
 0x406   : >> { %vm3522_vm14 = vcmp.eq.s32.totalorder %v7865_v50, %v7957_v60  ;;  %vm3524_vm15 = vcmp.eq.s32.totalorder %v7869_v22, %v7957_v60  ;;  %v2853_v24 = vrot.slane %v10131_v46, %v10143_v63  ;;  %v2902_v18 = vrot.slane %v10135_v29, %v10143_v63 }
 0x407   : >> { %v3573_v19 = vsel %vm3522_vm14, %v7960_v35, 0.0  ;;  %v3575_v27 = vsel %vm3524_vm15, %v7960_v35, 0.0  ;;  %vm2636_vm0 = vcmp.eq.s32.totalorder %v7865_v50, %v7963_v52  ;;  %vm2638_vm1 = vcmp.eq.s32.totalorder %v7869_v22, %v7963_v52 }
 0x408   : >> { %v3605_v55 = vadd.f32 %v3573_v19, %v3474_v54  ;;  %v3607_v23 = vadd.f32 %v3575_v27, %v3476_v28  ;;  %v2687_v42 = vsel %vm2636_vm0, %v7966_v14, 0.0  ;;  %v2689_v47 = vsel %vm2638_vm1, %v7966_v14, 0.0 }
 0x409   : >> { %vm2735_vm2 = vcmp.eq.s32.totalorder %v7865_v50, %v7973_v33  ;;  %vm2737_vm3 = vcmp.eq.s32.totalorder %v7869_v22, %v7973_v33  ;;  %v7990_v56 = vrot.slane %v2771_v41, %v10143_v63  ;;  %v2984_v45 = vrot.slane %v10128_v51, %v10143_v63 }
 0x40a   : >> { %v5126_v53 = vpack.c.bf16 %v3607_v23, %v3605_v55  ;;  %v3033_v34 = vrot.slane %v10137_v11, %v10143_v63  ;;  %v8003_v25 = vrot.slane %v2853_v24, %v10143_v63  ;;  %v3115_v54 = vrot.slane %v10141_v3, %v10143_v63 }
 0x40b   : >> { %v2786_v17 = vsel %vm2735_vm2, %v7990_v56, 0.0  ;;  %v2788_v40 = vsel %vm2737_vm3, %v7990_v56, 0.0  ;;  %v8008_v19 = vrot.slane %v2902_v18, %v10143_v63  ;;  %v8011_v27 = vrot.slane %v2984_v45, %v10143_v63 }
 0x40c   : >> { %5127 = vmatprep.subr.bf16.mxu0 %v5126_v53  ;;  %v2818_v28 = vadd.f32 %v2786_v17, %v2687_v42  ;;  %v2820_v41 = vadd.f32 %v2788_v40, %v2689_v47  ;;  %vm2866_vm4 = vcmp.eq.s32.totalorder %v7865_v50, %v8003_v25  ;;  %vm2868_vm5 = vcmp.eq.s32.totalorder %v7869_v22, %v8003_v25 }
 0x40d   : >> { %v8018_v55 = vrot.slane %v3033_v34, %v10143_v63  ;;  %v8021_v23 = vrot.slane %v3115_v54, %v10143_v63  ;;  %v2917_v42 = vsel %vm2866_vm4, %v8008_v19, 0.0  ;;  %v2919_v47 = vsel %vm2868_vm5, %v8008_v19, 0.0 }
 0x40e   : >> { %vm2997_vm6 = vcmp.eq.s32.totalorder %v7865_v50, %v8011_v27  ;;  %vm2999_vm7 = vcmp.eq.s32.totalorder %v7869_v22, %v8011_v27  ;;  %v2949_v24 = vadd.f32 %v2917_v42, %v2818_v28  ;;  %v2951_v53 = vadd.f32 %v2919_v47, %v2820_v41 }
 0x40f   : >> { %v3048_v18 = vsel %vm2997_vm6, %v8018_v55, 0.0  ;;  %v3050_v45 = vsel %vm2999_vm7, %v8018_v55, 0.0  ;;  %vm3128_vm8 = vcmp.eq.s32.totalorder %v7865_v50, %v8021_v23  ;;  %vm3130_vm9 = vcmp.eq.s32.totalorder %v7869_v22, %v8021_v23 }
 0x410   : >> { %v3164_v34 = vrot.slane %v10140_v4, %v10143_v63  ;;  %v3246_v17 = vrot.slane %v10136_v20, %v10143_v63  ;;  %v3080_v40 = vadd.f32 %v3048_v18, %v2949_v24  ;;  %v3082_v54 = vadd.f32 %v3050_v45, %v2951_v53  ;;  %v10145_v45 = vld [vmem:[#allocation16_spill] sm:$0xff] }
 0x411   : >> { %v3295_v28 = vrot.slane %v10127_v58, %v10143_v63  ;;  %v3377_v41 = vrot.slane %v10139_v6, %v10143_v63  ;;  %v3426_v3 = vrot.slane %v10133_v43, %v10143_v63  ;;  %v3508_v4 = vrot.slane %v10132_v44, %v10143_v63 }
 0x412   : >> { %v8044_v42 = vrot.slane %v3164_v34, %v10143_v63  ;;  %v8047_v47 = vrot.slane %v3246_v17, %v10143_v63  ;;  %v3557_v18 = vrot.slane %v10130_v48, %v10143_v63  ;;  %v8063_v34 = vadd.s32 %v7852_v13, %v10145_v45 }
 0x413   : >> { %v8054_v24 = vrot.slane %v3295_v28, %v10143_v63  ;;  %v8057_v53 = vrot.slane %v3377_v41, %v10143_v63  ;;  %v8084_v11 = vrot.slane %v3426_v3, %v10143_v63  ;;  %v8087_v20 = vrot.slane %v3508_v4, %v10143_v63 }
 0x414   : >> { %v3179_v17 = vsel %vm3128_vm8, %v8044_v42, 0.0  ;;  %v3181_v28 = vsel %vm3130_vm9, %v8044_v42, 0.0  ;;  %vm3259_vm10 = vcmp.eq.s32.totalorder %v7865_v50, %v8047_v47  ;;  %vm3261_vm11 = vcmp.eq.s32.totalorder %v7869_v22, %v8047_v47 }
 0x415   : >> { %v3211_v41 = vadd.f32 %v3179_v17, %v3080_v40  ;;  %v3213_v6 = vadd.f32 %v3181_v28, %v3082_v54  ;;  %v3310_v45 = vsel %vm3259_vm10, %v8054_v24, 0.0  ;;  %v3312_v9 = vsel %vm3261_vm11, %v8054_v24, 0.0  ;;  %v10146_v54 = vld [vmem:[#allocation17_spill] sm:$0xff] }
 0x416   : >> { %vm3390_vm12 = vcmp.eq.s32.totalorder %v7865_v50, %v8057_v53  ;;  %vm3392_vm13 = vcmp.eq.s32.totalorder %v7869_v22, %v8057_v53  ;;  %v8090_v40 = vrot.slane %v3557_v18, %v10143_v63  ;;  %v8094_v17 = vadd.s32 %v7852_v13, %v10146_v54 }
 0x417   : >> { %v3342_v29 = vadd.f32 %v3310_v45, %v3211_v41  ;;  %v3344_v30 = vadd.f32 %v3312_v9, %v3213_v6  ;;  %v3441_v28 = vsel %vm3390_vm12, %v8084_v11, 0.0  ;;  %v3443_v43 = vsel %vm3392_vm13, %v8084_v11, 0.0 }
 0x418   : >> { %vm3521_vm14 = vcmp.eq.s32.totalorder %v7865_v50, %v8087_v20  ;;  %vm3523_vm15 = vcmp.eq.s32.totalorder %v7869_v22, %v8087_v20  ;;  %vm2641_vm0 = vcmp.eq.s32.totalorder %v8063_v34, %v7841_v15  ;;  %vm2643_vm1 = vcmp.eq.s32.totalorder %v8094_v17, %v7841_v15 }
 0x419   : >> { %v3473_v4 = vadd.f32 %v3441_v28, %v3342_v29  ;;  %v3475_v3 = vadd.f32 %v3443_v43, %v3344_v30  ;;  %v3572_v9 = vsel %vm3521_vm14, %v8090_v40, 0.0  ;;  %v3574_v6 = vsel %vm3523_vm15, %v8090_v40, 0.0 }
 0x41a   : >> { %vm2740_vm2 = vcmp.eq.s32.totalorder %v8063_v34, %v7847_v38  ;;  %vm2742_vm3 = vcmp.eq.s32.totalorder %v8094_v17, %v7847_v38  ;;  %v2692_v29 = vsel %vm2641_vm0, %v7844_v31, 0.0  ;;  %v2694_v30 = vsel %vm2643_vm1, %v7844_v31, 0.0 }
 0x41b   : >> { %v3604_v63 = vadd.f32 %v3572_v9, %v3473_v4  ;;  %v3606_v50 = vadd.f32 %v3574_v6, %v3475_v3  ;;  %v2791_v43 = vsel %vm2740_vm2, %v7850_v57, 0.0  ;;  %v2793_v22 = vsel %vm2742_vm3, %v7850_v57, 0.0 }
 0x41c   : >> { %vm2871_vm4 = vcmp.eq.s32.totalorder %v8063_v34, %v7855_v62  ;;  %vm2873_vm5 = vcmp.eq.s32.totalorder %v8094_v17, %v7855_v62  ;;  %v2823_v41 = vadd.f32 %v2791_v43, %v2692_v29  ;;  %v2825_v45 = vadd.f32 %v2793_v22, %v2694_v30 }
 0x41d   : >> { %v5128_v18 = vpack.c.bf16 %v3606_v50, %v3604_v63  ;;  %v2922_v54 = vsel %vm2871_vm4, %v7858_v26, 0.0  ;;  %v2924_v28 = vsel %vm2873_vm5, %v7858_v26, 0.0  ;;  %vm3002_vm6 = vcmp.eq.s32.totalorder %v8063_v34, %v7861_v8 }
 0x41e   : >> { %vm3004_vm7 = vcmp.eq.s32.totalorder %v8094_v17, %v7861_v8  ;;  %vm3133_vm8 = vcmp.eq.s32.totalorder %v8063_v34, %v7909_v37  ;;  %v2954_v4 = vadd.f32 %v2922_v54, %v2823_v41  ;;  %v2956_v3 = vadd.f32 %v2924_v28, %v2825_v45 }
 0x41f   : >> { %5129 = vmatpush1.bf16.msra.mxu0 %v5128_v18  ;;  %v3053_v9 = vsel %vm3002_vm6, %v7872_v0, 0.0  ;;  %v3055_v6 = vsel %vm3004_vm7, %v7872_v0, 0.0  ;;  %vm3135_vm9 = vcmp.eq.s32.totalorder %v8094_v17, %v7909_v37  ;;  %v3184_v63 = vsel %vm3133_vm8, %v7912_v12, 0.0 }
 0x420   : >> { %vm3264_vm10 = vcmp.eq.s32.totalorder %v8063_v34, %v7915_v39  ;;  %vm3266_vm11 = vcmp.eq.s32.totalorder %v8094_v17, %v7915_v39  ;;  %v3085_v50 = vadd.f32 %v3053_v9, %v2954_v4  ;;  %v3087_v29 = vadd.f32 %v3055_v6, %v2956_v3 }
 0x421   : >> { %v3186_v30 = vsel %vm3135_vm9, %v7912_v12, 0.0  ;;  %v3315_v43 = vsel %vm3264_vm10, %v7918_v59, 0.0  ;;  %v3317_v22 = vsel %vm3266_vm11, %v7918_v59, 0.0  ;;  %vm3395_vm12 = vcmp.eq.s32.totalorder %v8063_v34, %v7921_v10 }
 0x422   : >> { %vm3397_vm13 = vcmp.eq.s32.totalorder %v8094_v17, %v7921_v10  ;;  %vm3526_vm14 = vcmp.eq.s32.totalorder %v8063_v34, %v7957_v60  ;;  %v3216_v18 = vadd.f32 %v3184_v63, %v3085_v50  ;;  %v3218_v41 = vadd.f32 %v3186_v30, %v3087_v29 }
 0x423   : >> { %v3446_v45 = vsel %vm3395_vm12, %v7942_v32, 0.0  ;;  %v3448_v54 = vsel %vm3397_vm13, %v7942_v32, 0.0  ;;  %vm3528_vm15 = vcmp.eq.s32.totalorder %v8094_v17, %v7957_v60  ;;  %v3577_v28 = vsel %vm3526_vm14, %v7960_v35, 0.0 }
 0x424   : >> { %vm2640_vm0 = vcmp.eq.s32.totalorder %v8063_v34, %v7963_v52  ;;  %vm2642_vm1 = vcmp.eq.s32.totalorder %v8094_v17, %v7963_v52  ;;  %v3347_v4 = vadd.f32 %v3315_v43, %v3216_v18  ;;  %v3349_v3 = vadd.f32 %v3317_v22, %v3218_v41 }
 0x425   : >> { %v3579_v9 = vsel %vm3528_vm15, %v7960_v35, 0.0  ;;  %v2691_v6 = vsel %vm2640_vm0, %v7966_v14, 0.0  ;;  %v2693_v63 = vsel %vm2642_vm1, %v7966_v14, 0.0  ;;  %vm2739_vm2 = vcmp.eq.s32.totalorder %v8063_v34, %v7973_v33 }
 0x426   : >> { %vm2741_vm3 = vcmp.eq.s32.totalorder %v8094_v17, %v7973_v33  ;;  %vm2870_vm4 = vcmp.eq.s32.totalorder %v8063_v34, %v8003_v25  ;;  %v3478_v50 = vadd.f32 %v3446_v45, %v3347_v4  ;;  %v3480_v29 = vadd.f32 %v3448_v54, %v3349_v3 }
 0x427   : >> { %v2790_v30 = vsel %vm2739_vm2, %v7990_v56, 0.0  ;;  %v2792_v43 = vsel %vm2741_vm3, %v7990_v56, 0.0  ;;  %vm2872_vm5 = vcmp.eq.s32.totalorder %v8094_v17, %v8003_v25  ;;  %v2921_v41 = vsel %vm2870_vm4, %v8008_v19, 0.0 }
 0x428   : >> { %v2822_v22 = vadd.f32 %v2790_v30, %v2691_v6  ;;  %v2824_v18 = vadd.f32 %v2792_v43, %v2693_v63  ;;  %v3609_v44 = vadd.f32 %v3577_v28, %v3478_v50  ;;  %v3611_v46 = vadd.f32 %v3579_v9, %v3480_v29 }
 0x429   : >> { %v2923_v48 = vsel %vm2872_vm5, %v8008_v19, 0.0  ;;  %vm3001_vm6 = vcmp.eq.s32.totalorder %v8063_v34, %v8011_v27  ;;  %vm3003_vm7 = vcmp.eq.s32.totalorder %v8094_v17, %v8011_v27  ;;  %vm3132_vm8 = vcmp.eq.s32.totalorder %v8063_v34, %v8021_v23 }
 0x42a   : >> { %v2953_v45 = vadd.f32 %v2921_v41, %v2822_v22  ;;  %v2955_v54 = vadd.f32 %v2923_v48, %v2824_v18  ;;  %v3052_v4 = vsel %vm3001_vm6, %v8018_v55, 0.0  ;;  %v5130_v3 = vpack.c.bf16 %v3611_v46, %v3609_v44 }
 0x42b   : >> { %v3054_v6 = vsel %vm3003_vm7, %v8018_v55, 0.0  ;;  %vm3134_vm9 = vcmp.eq.s32.totalorder %v8094_v17, %v8021_v23  ;;  %v3183_v63 = vsel %vm3132_vm8, %v8044_v42, 0.0  ;;  %vm3263_vm10 = vcmp.eq.s32.totalorder %v8063_v34, %v8047_v47 }
 0x42c   : >> { %v3084_v28 = vadd.f32 %v3052_v4, %v2953_v45  ;;  %v3086_v9 = vadd.f32 %v3054_v6, %v2955_v54  ;;  %v3185_v48 = vsel %vm3134_vm9, %v8044_v42, 0.0  ;;  %5131 = vmatprep.subr.bf16.mxu0 %v5130_v3  ;;  %vm3265_vm11 = vcmp.eq.s32.totalorder %v8094_v17, %v8047_v47  ;;  %v10147_v54 = vld [vmem:[#allocation18_spill] sm:$0xff]  ;;  %v10148_v3 = vld [vmem:[#allocation19_spill] sm:$0xff] }
 0x42d   : >> { %vm3394_vm12 = vcmp.eq.s32.totalorder %v8063_v34, %v8057_v53  ;;  %vm3396_vm13 = vcmp.eq.s32.totalorder %v8094_v17, %v8057_v53  ;;  %v3314_v50 = vsel %vm3263_vm10, %v8054_v24, 0.0  ;;  %v3316_v29 = vsel %vm3265_vm11, %v8054_v24, 0.0 }
 0x42e   : >> { %v3215_v46 = vadd.f32 %v3183_v63, %v3084_v28  ;;  %v3217_v44 = vadd.f32 %v3185_v48, %v3086_v9  ;;  %v3445_v30 = vsel %vm3394_vm12, %v8084_v11, 0.0  ;;  %v3447_v43 = vsel %vm3396_vm13, %v8084_v11, 0.0  ;;  %v10149_v28 = vld [vmem:[#allocation20_spill] sm:$0xff]  ;;  %v10150_v9 = vld [vmem:[#allocation21_spill] sm:$0xff] }
 0x42f   : >> { %vm3525_vm14 = vcmp.eq.s32.totalorder %v8063_v34, %v8087_v20  ;;  %vm3527_vm15 = vcmp.eq.s32.totalorder %v8094_v17, %v8087_v20  ;;  %v8202_v4 = vadd.s32 %v7852_v13, %v10147_v54  ;;  %v8206_v6 = vadd.s32 %v7852_v13, %v10148_v3 }
 0x430   : >> { %v3346_v22 = vadd.f32 %v3314_v50, %v3215_v46  ;;  %v3348_v18 = vadd.f32 %v3316_v29, %v3217_v44  ;;  %v3576_v41 = vsel %vm3525_vm14, %v8090_v40, 0.0  ;;  %v3578_v45 = vsel %vm3527_vm15, %v8090_v40, 0.0  ;;  %v10151_v46 = vld [vmem:[#allocation22_spill] sm:$0xff]  ;;  %v10152_v50 = vld [vmem:[#allocation23_spill] sm:$0xff] }
 0x431   : >> { %v8210_v34 = vadd.s32 %v7852_v13, %v10149_v28  ;;  %v8214_v17 = vadd.s32 %v7852_v13, %v10150_v9  ;;  %v8218_v44 = vadd.s32 %v7852_v13, %v10151_v46  ;;  %v8222_v29 = vadd.s32 %v7852_v13, %v10152_v50 }
 0x432   : >> { %v3477_v63 = vadd.f32 %v3445_v30, %v3346_v22  ;;  %v3479_v48 = vadd.f32 %v3447_v43, %v3348_v18  ;;  %vm2645_vm0 = vcmp.eq.s32.totalorder %v8202_v4, %v7841_v15  ;;  %vm2647_vm1 = vcmp.eq.s32.totalorder %v8206_v6, %v7841_v15 }
 0x433   : >> { %vm2744_vm2 = vcmp.eq.s32.totalorder %v8202_v4, %v7847_v38  ;;  %vm2746_vm3 = vcmp.eq.s32.totalorder %v8206_v6, %v7847_v38  ;;  %v2696_v22 = vsel %vm2645_vm0, %v7844_v31, 0.0  ;;  %v2698_v18 = vsel %vm2647_vm1, %v7844_v31, 0.0 }
 0x434   : >> { %v3608_v30 = vadd.f32 %v3576_v41, %v3477_v63  ;;  %v3610_v43 = vadd.f32 %v3578_v45, %v3479_v48  ;;  %v2795_v54 = vsel %vm2744_vm2, %v7850_v57, 0.0  ;;  %v2797_v3 = vsel %vm2746_vm3, %v7850_v57, 0.0 }
 0x435   : >> { %vm2875_vm4 = vcmp.eq.s32.totalorder %v8202_v4, %v7855_v62  ;;  %vm2877_vm5 = vcmp.eq.s32.totalorder %v8206_v6, %v7855_v62  ;;  %v2827_v9 = vadd.f32 %v2795_v54, %v2696_v22  ;;  %v2829_v46 = vadd.f32 %v2797_v3, %v2698_v18 }
 0x436   : >> { %v5132_v28 = vpack.c.bf16 %v3610_v43, %v3608_v30  ;;  %v2926_v41 = vsel %vm2875_vm4, %v7858_v26, 0.0  ;;  %v2928_v45 = vsel %vm2877_vm5, %v7858_v26, 0.0  ;;  %vm3006_vm6 = vcmp.eq.s32.totalorder %v8202_v4, %v7861_v8 }
 0x437   : >> { %vm3008_vm7 = vcmp.eq.s32.totalorder %v8206_v6, %v7861_v8  ;;  %vm3137_vm8 = vcmp.eq.s32.totalorder %v8202_v4, %v7909_v37  ;;  %v2958_v63 = vadd.f32 %v2926_v41, %v2827_v9  ;;  %v2960_v48 = vadd.f32 %v2928_v45, %v2829_v46 }
 0x438   : >> { %5133 = vmatpush1.bf16.msra.mxu0 %v5132_v28  ;;  %v3057_v50 = vsel %vm3006_vm6, %v7872_v0, 0.0  ;;  %v3059_v30 = vsel %vm3008_vm7, %v7872_v0, 0.0  ;;  %vm3139_vm9 = vcmp.eq.s32.totalorder %v8206_v6, %v7909_v37  ;;  %v3188_v43 = vsel %vm3137_vm8, %v7912_v12, 0.0 }
 0x439   : >> { %vm3268_vm10 = vcmp.eq.s32.totalorder %v8202_v4, %v7915_v39  ;;  %vm3270_vm11 = vcmp.eq.s32.totalorder %v8206_v6, %v7915_v39  ;;  %v3089_v22 = vadd.f32 %v3057_v50, %v2958_v63  ;;  %v3091_v18 = vadd.f32 %v3059_v30, %v2960_v48 }
 0x43a   : >> { %v3190_v54 = vsel %vm3139_vm9, %v7912_v12, 0.0  ;;  %v3319_v3 = vsel %vm3268_vm10, %v7918_v59, 0.0  ;;  %v3321_v28 = vsel %vm3270_vm11, %v7918_v59, 0.0  ;;  %vm3399_vm12 = vcmp.eq.s32.totalorder %v8202_v4, %v7921_v10 }
 0x43b   : >> { %vm3401_vm13 = vcmp.eq.s32.totalorder %v8206_v6, %v7921_v10  ;;  %vm3530_vm14 = vcmp.eq.s32.totalorder %v8202_v4, %v7957_v60  ;;  %v3220_v9 = vadd.f32 %v3188_v43, %v3089_v22  ;;  %v3222_v46 = vadd.f32 %v3190_v54, %v3091_v18 }
 0x43c   : >> { %v3450_v41 = vsel %vm3399_vm12, %v7942_v32, 0.0  ;;  %v3452_v45 = vsel %vm3401_vm13, %v7942_v32, 0.0  ;;  %vm3532_vm15 = vcmp.eq.s32.totalorder %v8206_v6, %v7957_v60  ;;  %v3581_v63 = vsel %vm3530_vm14, %v7960_v35, 0.0 }
 0x43d   : >> { %vm2644_vm0 = vcmp.eq.s32.totalorder %v8202_v4, %v7963_v52  ;;  %vm2646_vm1 = vcmp.eq.s32.totalorder %v8206_v6, %v7963_v52  ;;  %v3351_v48 = vadd.f32 %v3319_v3, %v3220_v9  ;;  %v3353_v50 = vadd.f32 %v3321_v28, %v3222_v46 }
 0x43e   : >> { %v3583_v30 = vsel %vm3532_vm15, %v7960_v35, 0.0  ;;  %v2695_v43 = vsel %vm2644_vm0, %v7966_v14, 0.0  ;;  %v2697_v22 = vsel %vm2646_vm1, %v7966_v14, 0.0  ;;  %vm2743_vm2 = vcmp.eq.s32.totalorder %v8202_v4, %v7973_v33 }
 0x43f   : >> { %vm2745_vm3 = vcmp.eq.s32.totalorder %v8206_v6, %v7973_v33  ;;  %vm2874_vm4 = vcmp.eq.s32.totalorder %v8202_v4, %v8003_v25  ;;  %v3482_v18 = vadd.f32 %v3450_v41, %v3351_v48  ;;  %v3484_v54 = vadd.f32 %v3452_v45, %v3353_v50 }
 0x440   : >> { %v2794_v3 = vsel %vm2743_vm2, %v7990_v56, 0.0  ;;  %v2796_v28 = vsel %vm2745_vm3, %v7990_v56, 0.0  ;;  %vm2876_vm5 = vcmp.eq.s32.totalorder %v8206_v6, %v8003_v25  ;;  %v2925_v49 = vsel %vm2874_vm4, %v8008_v19, 0.0 }
 0x441   : >> { %v2826_v9 = vadd.f32 %v2794_v3, %v2695_v43  ;;  %v2828_v46 = vadd.f32 %v2796_v28, %v2697_v22  ;;  %v3613_v51 = vadd.f32 %v3581_v63, %v3482_v18  ;;  %v3615_v58 = vadd.f32 %v3583_v30, %v3484_v54 }
 0x442   : >> { %v2927_v61 = vsel %vm2876_vm5, %v8008_v19, 0.0  ;;  %vm3005_vm6 = vcmp.eq.s32.totalorder %v8202_v4, %v8011_v27  ;;  %vm3007_vm7 = vcmp.eq.s32.totalorder %v8206_v6, %v8011_v27  ;;  %vm3136_vm8 = vcmp.eq.s32.totalorder %v8202_v4, %v8021_v23 }
 0x443   : >> { %v2957_v41 = vadd.f32 %v2925_v49, %v2826_v9  ;;  %v2959_v45 = vadd.f32 %v2927_v61, %v2828_v46  ;;  %v3056_v48 = vsel %vm3005_vm6, %v8018_v55, 0.0  ;;  %v5134_v50 = vpack.c.bf16 %v3615_v58, %v3613_v51 }
 0x444   : >> { %v3058_v43 = vsel %vm3007_vm7, %v8018_v55, 0.0  ;;  %vm3138_vm9 = vcmp.eq.s32.totalorder %v8206_v6, %v8021_v23  ;;  %v3187_v22 = vsel %vm3136_vm8, %v8044_v42, 0.0  ;;  %vm3267_vm10 = vcmp.eq.s32.totalorder %v8202_v4, %v8047_v47 }
 0x445   : >> { %v3088_v63 = vadd.f32 %v3056_v48, %v2957_v41  ;;  %v3090_v30 = vadd.f32 %v3058_v43, %v2959_v45  ;;  %v3189_v61 = vsel %vm3138_vm9, %v8044_v42, 0.0  ;;  %5135 = vmatprep.subr.bf16.mxu0 %v5134_v50  ;;  %vm3269_vm11 = vcmp.eq.s32.totalorder %v8206_v6, %v8047_v47 }
 0x446   : >> { %vm3398_vm12 = vcmp.eq.s32.totalorder %v8202_v4, %v8057_v53  ;;  %vm3400_vm13 = vcmp.eq.s32.totalorder %v8206_v6, %v8057_v53  ;;  %v3318_v51 = vsel %vm3267_vm10, %v8054_v24, 0.0  ;;  %v3320_v18 = vsel %vm3269_vm11, %v8054_v24, 0.0 }
 0x447   : >> { %v3219_v58 = vadd.f32 %v3187_v22, %v3088_v63  ;;  %v3221_v49 = vadd.f32 %v3189_v61, %v3090_v30  ;;  %v3449_v54 = vsel %vm3398_vm12, %v8084_v11, 0.0  ;;  %v3451_v3 = vsel %vm3400_vm13, %v8084_v11, 0.0 }
 0x448   : >> { %vm3529_vm14 = vcmp.eq.s32.totalorder %v8202_v4, %v8087_v20  ;;  %vm3531_vm15 = vcmp.eq.s32.totalorder %v8206_v6, %v8087_v20  ;;  %vm2649_vm0 = vcmp.eq.s32.totalorder %v8210_v34, %v7841_v15  ;;  %vm2651_vm1 = vcmp.eq.s32.totalorder %v8214_v17, %v7841_v15 }
 0x449   : >> { %v3350_v28 = vadd.f32 %v3318_v51, %v3219_v58  ;;  %v3352_v9 = vadd.f32 %v3320_v18, %v3221_v49  ;;  %v3580_v46 = vsel %vm3529_vm14, %v8090_v40, 0.0  ;;  %v3582_v41 = vsel %vm3531_vm15, %v8090_v40, 0.0 }
 0x44a   : >> { %vm2748_vm2 = vcmp.eq.s32.totalorder %v8210_v34, %v7847_v38  ;;  %vm2750_vm3 = vcmp.eq.s32.totalorder %v8214_v17, %v7847_v38  ;;  %v2700_v45 = vsel %vm2649_vm0, %v7844_v31, 0.0  ;;  %v2702_v48 = vsel %vm2651_vm1, %v7844_v31, 0.0 }
 0x44b   : >> { %v3481_v4 = vadd.f32 %v3449_v54, %v3350_v28  ;;  %v3483_v6 = vadd.f32 %v3451_v3, %v3352_v9  ;;  %v2799_v50 = vsel %vm2748_vm2, %v7850_v57, 0.0  ;;  %v2801_v43 = vsel %vm2750_vm3, %v7850_v57, 0.0 }
 0x44c   : >> { %vm2879_vm4 = vcmp.eq.s32.totalorder %v8210_v34, %v7855_v62  ;;  %vm2881_vm5 = vcmp.eq.s32.totalorder %v8214_v17, %v7855_v62  ;;  %v2831_v22 = vadd.f32 %v2799_v50, %v2700_v45  ;;  %v2833_v61 = vadd.f32 %v2801_v43, %v2702_v48 }
 0x44d   : >> { %v3612_v63 = vadd.f32 %v3580_v46, %v3481_v4  ;;  %v3614_v30 = vadd.f32 %v3582_v41, %v3483_v6  ;;  %v2930_v58 = vsel %vm2879_vm4, %v7858_v26, 0.0  ;;  %v2932_v49 = vsel %vm2881_vm5, %v7858_v26, 0.0 }
 0x44e   : >> { %vm3010_vm6 = vcmp.eq.s32.totalorder %v8210_v34, %v7861_v8  ;;  %vm3012_vm7 = vcmp.eq.s32.totalorder %v8214_v17, %v7861_v8  ;;  %v2962_v18 = vadd.f32 %v2930_v58, %v2831_v22  ;;  %v2964_v54 = vadd.f32 %v2932_v49, %v2833_v61 }
 0x44f   : >> { %v5136_v51 = vpack.c.bf16 %v3614_v30, %v3612_v63  ;;  %v3061_v3 = vsel %vm3010_vm6, %v7872_v0, 0.0  ;;  %v3063_v28 = vsel %vm3012_vm7, %v7872_v0, 0.0  ;;  %vm3141_vm8 = vcmp.eq.s32.totalorder %v8210_v34, %v7909_v37 }
 0x450   : >> { %vm3143_vm9 = vcmp.eq.s32.totalorder %v8214_v17, %v7909_v37  ;;  %vm3272_vm10 = vcmp.eq.s32.totalorder %v8210_v34, %v7915_v39  ;;  %v3093_v9 = vadd.f32 %v3061_v3, %v2962_v18  ;;  %v3095_v46 = vadd.f32 %v3063_v28, %v2964_v54 }
 0x451   : >> { %5137 = vmatpush1.bf16.msra.mxu0 %v5136_v51  ;;  %v3192_v41 = vsel %vm3141_vm8, %v7912_v12, 0.0  ;;  %v3194_v4 = vsel %vm3143_vm9, %v7912_v12, 0.0  ;;  %vm3274_vm11 = vcmp.eq.s32.totalorder %v8214_v17, %v7915_v39  ;;  %v3323_v6 = vsel %vm3272_vm10, %v7918_v59, 0.0 }
 0x452   : >> { %vm3403_vm12 = vcmp.eq.s32.totalorder %v8210_v34, %v7921_v10  ;;  %vm3405_vm13 = vcmp.eq.s32.totalorder %v8214_v17, %v7921_v10  ;;  %v3224_v45 = vadd.f32 %v3192_v41, %v3093_v9  ;;  %v3226_v48 = vadd.f32 %v3194_v4, %v3095_v46 }
 0x453   : >> { %v3325_v50 = vsel %vm3274_vm11, %v7918_v59, 0.0  ;;  %v3454_v43 = vsel %vm3403_vm12, %v7942_v32, 0.0  ;;  %v3456_v63 = vsel %vm3405_vm13, %v7942_v32, 0.0  ;;  %vm3534_vm14 = vcmp.eq.s32.totalorder %v8210_v34, %v7957_v60 }
 0x454   : >> { %vm3536_vm15 = vcmp.eq.s32.totalorder %v8214_v17, %v7957_v60  ;;  %vm2648_vm0 = vcmp.eq.s32.totalorder %v8210_v34, %v7963_v52  ;;  %v3355_v30 = vadd.f32 %v3323_v6, %v3224_v45  ;;  %v3357_v22 = vadd.f32 %v3325_v50, %v3226_v48 }
 0x455   : >> { %v3585_v61 = vsel %vm3534_vm14, %v7960_v35, 0.0  ;;  %v3587_v58 = vsel %vm3536_vm15, %v7960_v35, 0.0  ;;  %vm2650_vm1 = vcmp.eq.s32.totalorder %v8214_v17, %v7963_v52  ;;  %v2699_v49 = vsel %vm2648_vm0, %v7966_v14, 0.0 }
 0x456   : >> { %vm2747_vm2 = vcmp.eq.s32.totalorder %v8210_v34, %v7973_v33  ;;  %vm2749_vm3 = vcmp.eq.s32.totalorder %v8214_v17, %v7973_v33  ;;  %v3486_v51 = vadd.f32 %v3454_v43, %v3355_v30  ;;  %v3488_v18 = vadd.f32 %v3456_v63, %v3357_v22 }
 0x457   : >> { %v2701_v54 = vsel %vm2650_vm1, %v7966_v14, 0.0  ;;  %v2798_v3 = vsel %vm2747_vm2, %v7990_v56, 0.0  ;;  %v2800_v28 = vsel %vm2749_vm3, %v7990_v56, 0.0  ;;  %vm2878_vm4 = vcmp.eq.s32.totalorder %v8210_v34, %v8003_v25 }
 0x458   : >> { %v2830_v9 = vadd.f32 %v2798_v3, %v2699_v49  ;;  %vm2880_vm5 = vcmp.eq.s32.totalorder %v8214_v17, %v8003_v25  ;;  %v3617_v46 = vadd.f32 %v3585_v61, %v3486_v51  ;;  %v3619_v41 = vadd.f32 %v3587_v58, %v3488_v18 }
 0x459   : >> { %v2832_v4 = vadd.f32 %v2800_v28, %v2701_v54  ;;  %v2929_v6 = vsel %vm2878_vm4, %v8008_v19, 0.0  ;;  %v2931_v45 = vsel %vm2880_vm5, %v8008_v19, 0.0  ;;  %vm3009_vm6 = vcmp.eq.s32.totalorder %v8210_v34, %v8011_v27 }
 0x45a   : >> { %v2961_v48 = vadd.f32 %v2929_v6, %v2830_v9  ;;  %vm3011_vm7 = vcmp.eq.s32.totalorder %v8214_v17, %v8011_v27  ;;  %v5138_v50 = vpack.c.bf16 %v3619_v41, %v3617_v46  ;;  %v3060_v63 = vsel %vm3009_vm6, %v8018_v55, 0.0 }
 0x45b   : >> { %v2963_v43 = vadd.f32 %v2931_v45, %v2832_v4  ;;  %v3062_v30 = vsel %vm3011_vm7, %v8018_v55, 0.0  ;;  %vm3140_vm8 = vcmp.eq.s32.totalorder %v8210_v34, %v8021_v23  ;;  %vm3142_vm9 = vcmp.eq.s32.totalorder %v8214_v17, %v8021_v23 }
 0x45c   : >> { %v3092_v22 = vadd.f32 %v3060_v63, %v2961_v48  ;;  %vm3271_vm10 = vcmp.eq.s32.totalorder %v8210_v34, %v8047_v47  ;;  %5139 = vmatprep.subr.bf16.mxu0 %v5138_v50  ;;  %v3191_v58 = vsel %vm3140_vm8, %v8044_v42, 0.0  ;;  %v3193_v49 = vsel %vm3142_vm9, %v8044_v42, 0.0 }
 0x45d   : >> { %v3094_v61 = vadd.f32 %v3062_v30, %v2963_v43  ;;  %vm3273_vm11 = vcmp.eq.s32.totalorder %v8214_v17, %v8047_v47  ;;  %v3322_v18 = vsel %vm3271_vm10, %v8054_v24, 0.0  ;;  %vm3402_vm12 = vcmp.eq.s32.totalorder %v8210_v34, %v8057_v53 }
 0x45e   : >> { %v3223_v51 = vadd.f32 %v3191_v58, %v3092_v22  ;;  %v3324_v54 = vsel %vm3273_vm11, %v8054_v24, 0.0  ;;  %vm3404_vm13 = vcmp.eq.s32.totalorder %v8214_v17, %v8057_v53  ;;  %v3453_v28 = vsel %vm3402_vm12, %v8084_v11, 0.0 }
 0x45f   : >> { %v3225_v3 = vadd.f32 %v3193_v49, %v3094_v61  ;;  %vm3533_vm14 = vcmp.eq.s32.totalorder %v8210_v34, %v8087_v20  ;;  %v3455_v46 = vsel %vm3404_vm13, %v8084_v11, 0.0  ;;  %vm3535_vm15 = vcmp.eq.s32.totalorder %v8214_v17, %v8087_v20 }
 0x460   : >> { %v3354_v9 = vadd.f32 %v3322_v18, %v3223_v51  ;;  %v3584_v41 = vsel %vm3533_vm14, %v8090_v40, 0.0  ;;  %v3586_v6 = vsel %vm3535_vm15, %v8090_v40, 0.0  ;;  %vm2653_vm0 = vcmp.eq.s32.totalorder %v8218_v44, %v7841_v15 }
 0x461   : >> { %v3356_v4 = vadd.f32 %v3324_v54, %v3225_v3  ;;  %vm2655_vm1 = vcmp.eq.s32.totalorder %v8222_v29, %v7841_v15  ;;  %v2704_v34 = vsel %vm2653_vm0, %v7844_v31, 0.0  ;;  %vm2752_vm2 = vcmp.eq.s32.totalorder %v8218_v44, %v7847_v38 }
 0x462   : >> { %v3485_v45 = vadd.f32 %v3453_v28, %v3354_v9  ;;  %v2706_v48 = vsel %vm2655_vm1, %v7844_v31, 0.0  ;;  %vm2754_vm3 = vcmp.eq.s32.totalorder %v8222_v29, %v7847_v38  ;;  %v2803_v50 = vsel %vm2752_vm2, %v7850_v57, 0.0 }
 0x463   : >> { %v3487_v17 = vadd.f32 %v3455_v46, %v3356_v4  ;;  %vm2883_vm4 = vcmp.eq.s32.totalorder %v8218_v44, %v7855_v62  ;;  %v2805_v63 = vsel %vm2754_vm3, %v7850_v57, 0.0  ;;  %v2835_v30 = vadd.f32 %v2803_v50, %v2704_v34 }
 0x464   : >> { %v3616_v43 = vadd.f32 %v3584_v41, %v3485_v45  ;;  %vm2885_vm5 = vcmp.eq.s32.totalorder %v8222_v29, %v7855_v62  ;;  %v2837_v61 = vadd.f32 %v2805_v63, %v2706_v48  ;;  %v2934_v58 = vsel %vm2883_vm4, %v7858_v26, 0.0 }
 0x465   : >> { %v3618_v22 = vadd.f32 %v3586_v6, %v3487_v17  ;;  %v2936_v49 = vsel %vm2885_vm5, %v7858_v26, 0.0  ;;  %v2966_v51 = vadd.f32 %v2934_v58, %v2835_v30  ;;  %vm3014_vm6 = vcmp.eq.s32.totalorder %v8218_v44, %v7861_v8 }
 0x466   : >> { %vm3016_vm7 = vcmp.eq.s32.totalorder %v8222_v29, %v7861_v8  ;;  %vm3145_vm8 = vcmp.eq.s32.totalorder %v8218_v44, %v7909_v37  ;;  %v2968_v54 = vadd.f32 %v2936_v49, %v2837_v61  ;;  %v3065_v3 = vsel %vm3014_vm6, %v7872_v0, 0.0 }
 0x467   : >> { %v5140_v18 = vpack.c.bf16 %v3618_v22, %v3616_v43  ;;  %v3067_v28 = vsel %vm3016_vm7, %v7872_v0, 0.0  ;;  %v3097_v9 = vadd.f32 %v3065_v3, %v2966_v51  ;;  %vm3147_vm9 = vcmp.eq.s32.totalorder %v8222_v29, %v7909_v37 }
 0x468   : >> { %v3196_v46 = vsel %vm3145_vm8, %v7912_v12, 0.0  ;;  %vm3276_vm10 = vcmp.eq.s32.totalorder %v8218_v44, %v7915_v39  ;;  %v3099_v41 = vadd.f32 %v3067_v28, %v2968_v54  ;;  %v3198_v4 = vsel %vm3147_vm9, %v7912_v12, 0.0 }
 0x469   : >> { %5141 = vmatpush1.bf16.msra.mxu0 %v5140_v18  ;;  %vm3278_vm11 = vcmp.eq.s32.totalorder %v8222_v29, %v7915_v39  ;;  %v3327_v6 = vsel %vm3276_vm10, %v7918_v59, 0.0  ;;  %v3228_v45 = vadd.f32 %v3196_v46, %v3097_v9  ;;  %vm3407_vm12 = vcmp.eq.s32.totalorder %v8218_v44, %v7921_v10 }
 0x46a   : >> { %v3329_v34 = vsel %vm3278_vm11, %v7918_v59, 0.0  ;;  %vm3409_vm13 = vcmp.eq.s32.totalorder %v8222_v29, %v7921_v10  ;;  %v3230_v48 = vadd.f32 %v3198_v4, %v3099_v41  ;;  %v3458_v17 = vsel %vm3407_vm12, %v7942_v32, 0.0 }
 0x46b   : >> { %v3460_v50 = vsel %vm3409_vm13, %v7942_v32, 0.0  ;;  %vm3538_vm14 = vcmp.eq.s32.totalorder %v8218_v44, %v7957_v60  ;;  %v3359_v43 = vadd.f32 %v3327_v6, %v3228_v45  ;;  %vm3540_vm15 = vcmp.eq.s32.totalorder %v8222_v29, %v7957_v60 }
 0x46c   : >> { %v3589_v63 = vsel %vm3538_vm14, %v7960_v35, 0.0  ;;  %vm2652_vm0 = vcmp.eq.s32.totalorder %v8218_v44, %v7963_v52  ;;  %v3361_v30 = vadd.f32 %v3329_v34, %v3230_v48  ;;  %v3591_v22 = vsel %vm3540_vm15, %v7960_v35, 0.0 }
 0x46d   : >> { %vm2654_vm1 = vcmp.eq.s32.totalorder %v8222_v29, %v7963_v52  ;;  %v2703_v61 = vsel %vm2652_vm0, %v7966_v14, 0.0  ;;  %v3490_v58 = vadd.f32 %v3458_v17, %v3359_v43  ;;  %vm2751_vm2 = vcmp.eq.s32.totalorder %v8218_v44, %v7973_v33 }
 0x46e   : >> { %v2705_v49 = vsel %vm2654_vm1, %v7966_v14, 0.0  ;;  %vm2753_vm3 = vcmp.eq.s32.totalorder %v8222_v29, %v7973_v33  ;;  %v3492_v51 = vadd.f32 %v3460_v50, %v3361_v30  ;;  %v2802_v18 = vsel %vm2751_vm2, %v7990_v56, 0.0 }
 0x46f   : >> { %v2804_v54 = vsel %vm2753_vm3, %v7990_v56, 0.0  ;;  %vm2882_vm4 = vcmp.eq.s32.totalorder %v8218_v44, %v8003_v25  ;;  %v3621_v3 = vadd.f32 %v3589_v63, %v3490_v58  ;;  %v2834_v28 = vadd.f32 %v2802_v18, %v2703_v61 }
 0x470   : >> { %v2836_v9 = vadd.f32 %v2804_v54, %v2705_v49  ;;  %vm2884_vm5 = vcmp.eq.s32.totalorder %v8222_v29, %v8003_v25  ;;  %v3623_v46 = vadd.f32 %v3591_v22, %v3492_v51  ;;  %v2933_v41 = vsel %vm2882_vm4, %v8008_v19, 0.0 }
 0x471   : >> { %v2935_v4 = vsel %vm2884_vm5, %v8008_v19, 0.0  ;;  %vm3013_vm6 = vcmp.eq.s32.totalorder %v8218_v44, %v8011_v27  ;;  %v2965_v6 = vadd.f32 %v2933_v41, %v2834_v28  ;;  %vm3015_vm7 = vcmp.eq.s32.totalorder %v8222_v29, %v8011_v27 }
 0x472   : >> { %v2967_v45 = vadd.f32 %v2935_v4, %v2836_v9  ;;  %v3064_v34 = vsel %vm3013_vm6, %v8018_v55, 0.0  ;;  %v5142_v48 = vpack.c.bf16 %v3623_v46, %v3621_v3  ;;  %v3066_v17 = vsel %vm3015_vm7, %v8018_v55, 0.0  ;;  %v10153_v46 = vld [vmem:[#allocation40_spill] sm:$0xff]  ;;  %v10154_v4 = vld [vmem:[#allocation41_spill] sm:$0xff] }
 0x473   : >> { %vm3144_vm8 = vcmp.eq.s32.totalorder %v8218_v44, %v8021_v23  ;;  %vm3146_vm9 = vcmp.eq.s32.totalorder %v8222_v29, %v8021_v23  ;;  %v3096_v50 = vadd.f32 %v3064_v34, %v2965_v6  ;;  %vm3275_vm10 = vcmp.eq.s32.totalorder %v8218_v44, %v8047_v47 }
 0x474   : >> { %v3098_v43 = vadd.f32 %v3066_v17, %v2967_v45  ;;  %v3195_v63 = vsel %vm3144_vm8, %v8044_v42, 0.0  ;;  %v3197_v30 = vsel %vm3146_vm9, %v8044_v42, 0.0  ;;  %5143 = vmatprep.subr.bf16.mxu0 %v5142_v48  ;;  %vm3277_vm11 = vcmp.eq.s32.totalorder %v8222_v29, %v8047_v47 }
 0x475   : >> { %vm3406_vm12 = vcmp.eq.s32.totalorder %v8218_v44, %v8057_v53  ;;  %vm3408_vm13 = vcmp.eq.s32.totalorder %v8222_v29, %v8057_v53  ;;  %v3227_v22 = vadd.f32 %v3195_v63, %v3096_v50  ;;  %v3326_v58 = vsel %vm3275_vm10, %v8054_v24, 0.0 }
 0x476   : >> { %v3229_v61 = vadd.f32 %v3197_v30, %v3098_v43  ;;  %v3328_v49 = vsel %vm3277_vm11, %v8054_v24, 0.0  ;;  %v3457_v51 = vsel %vm3406_vm12, %v8084_v11, 0.0  ;;  %v3459_v18 = vsel %vm3408_vm13, %v8084_v11, 0.0 }
 0x477   : >> { %vm3537_vm14 = vcmp.eq.s32.totalorder %v8218_v44, %v8087_v20  ;;  %vm3539_vm15 = vcmp.eq.s32.totalorder %v8222_v29, %v8087_v20  ;;  %v3358_v54 = vadd.f32 %v3326_v58, %v3227_v22  ;;  %v8514_v41 = vadd.s32 %v7852_v13, %v10153_v46 }
 0x478   : >> { %v3360_v3 = vadd.f32 %v3328_v49, %v3229_v61  ;;  %v3588_v28 = vsel %vm3537_vm14, %v8090_v40, 0.0  ;;  %v3590_v9 = vsel %vm3539_vm15, %v8090_v40, 0.0  ;;  %v8518_v6 = vadd.s32 %v7852_v13, %v10154_v4 }
 0x479   : >> { %v8522_v44 = vadd.s32 %v7852_v13, %v6534_v7  ;;  %v8526_v29 = vadd.s32 %v7852_v13, %v6537_v36  ;;  %v3489_v45 = vadd.f32 %v3457_v51, %v3358_v54  ;;  %v8530_v48 = vadd.s32 %v7852_v13, %v6540_v2 }
 0x47a   : >> { %v3491_v34 = vadd.f32 %v3459_v18, %v3360_v3  ;;  %v8534_v17 = vadd.s32 %v7852_v13, %v6543_v16  ;;  %vm2657_vm0 = vcmp.eq.s32.totalorder %v8514_v41, %v7841_v15  ;;  %vm2659_vm1 = vcmp.eq.s32.totalorder %v8518_v6, %v7841_v15 }
 0x47b   : >> { %vm2756_vm2 = vcmp.eq.s32.totalorder %v8514_v41, %v7847_v38  ;;  %vm2758_vm3 = vcmp.eq.s32.totalorder %v8518_v6, %v7847_v38  ;;  %v3620_v50 = vadd.f32 %v3588_v28, %v3489_v45  ;;  %v2708_v63 = vsel %vm2657_vm0, %v7844_v31, 0.0 }
 0x47c   : >> { %v3622_v43 = vadd.f32 %v3590_v9, %v3491_v34  ;;  %v2710_v30 = vsel %vm2659_vm1, %v7844_v31, 0.0  ;;  %v2807_v13 = vsel %vm2756_vm2, %v7850_v57, 0.0  ;;  %v2809_v22 = vsel %vm2758_vm3, %v7850_v57, 0.0 }
 0x47d   : >> { %vm2887_vm4 = vcmp.eq.s32.totalorder %v8514_v41, %v7855_v62  ;;  %vm2889_vm5 = vcmp.eq.s32.totalorder %v8518_v6, %v7855_v62  ;;  %v2839_v58 = vadd.f32 %v2807_v13, %v2708_v63  ;;  %v2841_v49 = vadd.f32 %v2809_v22, %v2710_v30 }
 0x47e   : >> { %v5144_v61 = vpack.c.bf16 %v3622_v43, %v3620_v50  ;;  %v2938_v51 = vsel %vm2887_vm4, %v7858_v26, 0.0  ;;  %v2940_v18 = vsel %vm2889_vm5, %v7858_v26, 0.0  ;;  %vm3018_vm6 = vcmp.eq.s32.totalorder %v8514_v41, %v7861_v8 }
 0x47f   : >> { %vm3020_vm7 = vcmp.eq.s32.totalorder %v8518_v6, %v7861_v8  ;;  %vm3149_vm8 = vcmp.eq.s32.totalorder %v8514_v41, %v7909_v37  ;;  %v2970_v54 = vadd.f32 %v2938_v51, %v2839_v58  ;;  %v2972_v3 = vadd.f32 %v2940_v18, %v2841_v49 }
 0x480   : >> { %5145 = vmatpush1.bf16.msra.mxu0 %v5144_v61  ;;  %v3069_v28 = vsel %vm3018_vm6, %v7872_v0, 0.0  ;;  %v3071_v9 = vsel %vm3020_vm7, %v7872_v0, 0.0  ;;  %vm3151_vm9 = vcmp.eq.s32.totalorder %v8518_v6, %v7909_v37  ;;  %v3200_v46 = vsel %vm3149_vm8, %v7912_v12, 0.0 }
 0x481   : >> { %vm3280_vm10 = vcmp.eq.s32.totalorder %v8514_v41, %v7915_v39  ;;  %vm3282_vm11 = vcmp.eq.s32.totalorder %v8518_v6, %v7915_v39  ;;  %v3101_v4 = vadd.f32 %v3069_v28, %v2970_v54  ;;  %v3103_v45 = vadd.f32 %v3071_v9, %v2972_v3 }
 0x482   : >> { %v3202_v34 = vsel %vm3151_vm9, %v7912_v12, 0.0  ;;  %v3331_v50 = vsel %vm3280_vm10, %v7918_v59, 0.0  ;;  %v3333_v43 = vsel %vm3282_vm11, %v7918_v59, 0.0  ;;  %vm3411_vm12 = vcmp.eq.s32.totalorder %v8514_v41, %v7921_v10 }
 0x483   : >> { %vm3413_vm13 = vcmp.eq.s32.totalorder %v8518_v6, %v7921_v10  ;;  %vm3542_vm14 = vcmp.eq.s32.totalorder %v8514_v41, %v7957_v60  ;;  %v3232_v63 = vadd.f32 %v3200_v46, %v3101_v4  ;;  %v3234_v30 = vadd.f32 %v3202_v34, %v3103_v45 }
 0x484   : >> { %v3462_v13 = vsel %vm3411_vm12, %v7942_v32, 0.0  ;;  %v3464_v22 = vsel %vm3413_vm13, %v7942_v32, 0.0  ;;  %vm3544_vm15 = vcmp.eq.s32.totalorder %v8518_v6, %v7957_v60  ;;  %v3593_v61 = vsel %vm3542_vm14, %v7960_v35, 0.0 }
 0x485   : >> { %vm2656_vm0 = vcmp.eq.s32.totalorder %v8514_v41, %v7963_v52  ;;  %vm2658_vm1 = vcmp.eq.s32.totalorder %v8518_v6, %v7963_v52  ;;  %v3363_v58 = vadd.f32 %v3331_v50, %v3232_v63  ;;  %v3365_v49 = vadd.f32 %v3333_v43, %v3234_v30 }
 0x486   : >> { %v3595_v51 = vsel %vm3544_vm15, %v7960_v35, 0.0  ;;  %v2707_v18 = vsel %vm2656_vm0, %v7966_v14, 0.0  ;;  %v2709_v54 = vsel %vm2658_vm1, %v7966_v14, 0.0  ;;  %vm2755_vm2 = vcmp.eq.s32.totalorder %v8514_v41, %v7973_v33 }
 0x487   : >> { %vm2757_vm3 = vcmp.eq.s32.totalorder %v8518_v6, %v7973_v33  ;;  %vm2886_vm4 = vcmp.eq.s32.totalorder %v8514_v41, %v8003_v25  ;;  %v3494_v3 = vadd.f32 %v3462_v13, %v3363_v58  ;;  %v3496_v28 = vadd.f32 %v3464_v22, %v3365_v49 }
 0x488   : >> { %v2806_v9 = vsel %vm2755_vm2, %v7990_v56, 0.0  ;;  %v2808_v46 = vsel %vm2757_vm3, %v7990_v56, 0.0  ;;  %vm2888_vm5 = vcmp.eq.s32.totalorder %v8518_v6, %v8003_v25  ;;  %v2937_v34 = vsel %vm2886_vm4, %v8008_v19, 0.0 }
 0x489   : >> { %v2838_v4 = vadd.f32 %v2806_v9, %v2707_v18  ;;  %v2840_v45 = vadd.f32 %v2808_v46, %v2709_v54  ;;  %v3625_v50 = vadd.f32 %v3593_v61, %v3494_v3  ;;  %v3627_v43 = vadd.f32 %v3595_v51, %v3496_v28 }
 0x48a   : >> { %v2939_v63 = vsel %vm2888_vm5, %v8008_v19, 0.0  ;;  %vm3017_vm6 = vcmp.eq.s32.totalorder %v8514_v41, %v8011_v27  ;;  %vm3019_vm7 = vcmp.eq.s32.totalorder %v8518_v6, %v8011_v27  ;;  %vm3148_vm8 = vcmp.eq.s32.totalorder %v8514_v41, %v8021_v23 }
 0x48b   : >> { %v2969_v30 = vadd.f32 %v2937_v34, %v2838_v4  ;;  %v2971_v13 = vadd.f32 %v2939_v63, %v2840_v45  ;;  %v3068_v22 = vsel %vm3017_vm6, %v8018_v55, 0.0  ;;  %v5146_v58 = vpack.c.bf16 %v3627_v43, %v3625_v50 }
 0x48c   : >> { %v3070_v49 = vsel %vm3019_vm7, %v8018_v55, 0.0  ;;  %vm3150_vm9 = vcmp.eq.s32.totalorder %v8518_v6, %v8021_v23  ;;  %v3199_v18 = vsel %vm3148_vm8, %v8044_v42, 0.0  ;;  %vm3279_vm10 = vcmp.eq.s32.totalorder %v8514_v41, %v8047_v47 }
 0x48d   : >> { %v3100_v61 = vadd.f32 %v3068_v22, %v2969_v30  ;;  %v3102_v51 = vadd.f32 %v3070_v49, %v2971_v13  ;;  %v3201_v54 = vsel %vm3150_vm9, %v8044_v42, 0.0  ;;  %5147 = vmatprep.subr.bf16.mxu0 %v5146_v58  ;;  %vm3281_vm11 = vcmp.eq.s32.totalorder %v8518_v6, %v8047_v47 }
 0x48e   : >> { %vm3410_vm12 = vcmp.eq.s32.totalorder %v8514_v41, %v8057_v53  ;;  %vm3412_vm13 = vcmp.eq.s32.totalorder %v8518_v6, %v8057_v53  ;;  %v3330_v9 = vsel %vm3279_vm10, %v8054_v24, 0.0  ;;  %v3332_v46 = vsel %vm3281_vm11, %v8054_v24, 0.0 }
 0x48f   : >> { %v3231_v3 = vadd.f32 %v3199_v18, %v3100_v61  ;;  %v3233_v28 = vadd.f32 %v3201_v54, %v3102_v51  ;;  %v3461_v4 = vsel %vm3410_vm12, %v8084_v11, 0.0  ;;  %v3463_v45 = vsel %vm3412_vm13, %v8084_v11, 0.0 }
 0x490   : >> { %vm3541_vm14 = vcmp.eq.s32.totalorder %v8514_v41, %v8087_v20  ;;  %vm3543_vm15 = vcmp.eq.s32.totalorder %v8518_v6, %v8087_v20  ;;  %vm2661_vm0 = vcmp.eq.s32.totalorder %v8522_v44, %v7841_v15  ;;  %vm2663_vm1 = vcmp.eq.s32.totalorder %v8526_v29, %v7841_v15 }
 0x491   : >> { %v3362_v34 = vadd.f32 %v3330_v9, %v3231_v3  ;;  %v3364_v50 = vadd.f32 %v3332_v46, %v3233_v28  ;;  %v3592_v43 = vsel %vm3541_vm14, %v8090_v40, 0.0  ;;  %v3594_v63 = vsel %vm3543_vm15, %v8090_v40, 0.0 }
 0x492   : >> { %vm2760_vm2 = vcmp.eq.s32.totalorder %v8522_v44, %v7847_v38  ;;  %vm2762_vm3 = vcmp.eq.s32.totalorder %v8526_v29, %v7847_v38  ;;  %v2712_v30 = vsel %vm2661_vm0, %v7844_v31, 0.0  ;;  %v2714_v13 = vsel %vm2663_vm1, %v7844_v31, 0.0 }
 0x493   : >> { %v3493_v41 = vadd.f32 %v3461_v4, %v3362_v34  ;;  %v3495_v6 = vadd.f32 %v3463_v45, %v3364_v50  ;;  %v2811_v22 = vsel %vm2760_vm2, %v7850_v57, 0.0  ;;  %v2813_v58 = vsel %vm2762_vm3, %v7850_v57, 0.0 }
 0x494   : >> { %vm2891_vm4 = vcmp.eq.s32.totalorder %v8522_v44, %v7855_v62  ;;  %vm2893_vm5 = vcmp.eq.s32.totalorder %v8526_v29, %v7855_v62  ;;  %v2843_v51 = vadd.f32 %v2811_v22, %v2712_v30  ;;  %v2845_v18 = vadd.f32 %v2813_v58, %v2714_v13 }
 0x495   : >> { %v3624_v49 = vadd.f32 %v3592_v43, %v3493_v41  ;;  %v3626_v61 = vadd.f32 %v3594_v63, %v3495_v6  ;;  %v2942_v54 = vsel %vm2891_vm4, %v7858_v26, 0.0  ;;  %v2944_v3 = vsel %vm2893_vm5, %v7858_v26, 0.0 }
 0x496   : >> { %vm3022_vm6 = vcmp.eq.s32.totalorder %v8522_v44, %v7861_v8  ;;  %vm3024_vm7 = vcmp.eq.s32.totalorder %v8526_v29, %v7861_v8  ;;  %v2974_v9 = vadd.f32 %v2942_v54, %v2843_v51  ;;  %v2976_v46 = vadd.f32 %v2944_v3, %v2845_v18 }
 0x497   : >> { %v5148_v28 = vpack.c.bf16 %v3626_v61, %v3624_v49  ;;  %v3073_v4 = vsel %vm3022_vm6, %v7872_v0, 0.0  ;;  %v3075_v45 = vsel %vm3024_vm7, %v7872_v0, 0.0  ;;  %vm3153_vm8 = vcmp.eq.s32.totalorder %v8522_v44, %v7909_v37 }
 0x498   : >> { %vm3155_vm9 = vcmp.eq.s32.totalorder %v8526_v29, %v7909_v37  ;;  %vm3284_vm10 = vcmp.eq.s32.totalorder %v8522_v44, %v7915_v39  ;;  %v3105_v34 = vadd.f32 %v3073_v4, %v2974_v9  ;;  %v3107_v50 = vadd.f32 %v3075_v45, %v2976_v46 }
 0x499   : >> { %5149 = vmatpush1.bf16.msra.mxu0 %v5148_v28  ;;  %v3204_v43 = vsel %vm3153_vm8, %v7912_v12, 0.0  ;;  %v3206_v63 = vsel %vm3155_vm9, %v7912_v12, 0.0  ;;  %vm3286_vm11 = vcmp.eq.s32.totalorder %v8526_v29, %v7915_v39  ;;  %v3335_v41 = vsel %vm3284_vm10, %v7918_v59, 0.0 }
 0x49a   : >> { %vm3415_vm12 = vcmp.eq.s32.totalorder %v8522_v44, %v7921_v10  ;;  %vm3417_vm13 = vcmp.eq.s32.totalorder %v8526_v29, %v7921_v10  ;;  %v3236_v6 = vadd.f32 %v3204_v43, %v3105_v34  ;;  %v3238_v30 = vadd.f32 %v3206_v63, %v3107_v50 }
 0x49b   : >> { %v3337_v13 = vsel %vm3286_vm11, %v7918_v59, 0.0  ;;  %v3466_v22 = vsel %vm3415_vm12, %v7942_v32, 0.0  ;;  %v3468_v58 = vsel %vm3417_vm13, %v7942_v32, 0.0  ;;  %vm3546_vm14 = vcmp.eq.s32.totalorder %v8522_v44, %v7957_v60 }
 0x49c   : >> { %vm3548_vm15 = vcmp.eq.s32.totalorder %v8526_v29, %v7957_v60  ;;  %vm2660_vm0 = vcmp.eq.s32.totalorder %v8522_v44, %v7963_v52  ;;  %v3367_v49 = vadd.f32 %v3335_v41, %v3236_v6  ;;  %v3369_v61 = vadd.f32 %v3337_v13, %v3238_v30 }
 0x49d   : >> { %v3597_v51 = vsel %vm3546_vm14, %v7960_v35, 0.0  ;;  %v3599_v18 = vsel %vm3548_vm15, %v7960_v35, 0.0  ;;  %vm2662_vm1 = vcmp.eq.s32.totalorder %v8526_v29, %v7963_v52  ;;  %v2711_v54 = vsel %vm2660_vm0, %v7966_v14, 0.0 }
 0x49e   : >> { %vm2759_vm2 = vcmp.eq.s32.totalorder %v8522_v44, %v7973_v33  ;;  %vm2761_vm3 = vcmp.eq.s32.totalorder %v8526_v29, %v7973_v33  ;;  %v3498_v3 = vadd.f32 %v3466_v22, %v3367_v49  ;;  %v3500_v28 = vadd.f32 %v3468_v58, %v3369_v61 }
 0x49f   : >> { %v2713_v9 = vsel %vm2662_vm1, %v7966_v14, 0.0  ;;  %v2810_v46 = vsel %vm2759_vm2, %v7990_v56, 0.0  ;;  %v2812_v4 = vsel %vm2761_vm3, %v7990_v56, 0.0  ;;  %vm2890_vm4 = vcmp.eq.s32.totalorder %v8522_v44, %v8003_v25 }
 0x4a0   : >> { %v2842_v45 = vadd.f32 %v2810_v46, %v2711_v54  ;;  %vm2892_vm5 = vcmp.eq.s32.totalorder %v8526_v29, %v8003_v25  ;;  %v3629_v34 = vadd.f32 %v3597_v51, %v3498_v3  ;;  %v3631_v50 = vadd.f32 %v3599_v18, %v3500_v28 }
 0x4a1   : >> { %v2844_v43 = vadd.f32 %v2812_v4, %v2713_v9  ;;  %v2941_v63 = vsel %vm2890_vm4, %v8008_v19, 0.0  ;;  %v2943_v41 = vsel %vm2892_vm5, %v8008_v19, 0.0  ;;  %vm3021_vm6 = vcmp.eq.s32.totalorder %v8522_v44, %v8011_v27 }
 0x4a2   : >> { %v2973_v6 = vadd.f32 %v2941_v63, %v2842_v45  ;;  %vm3023_vm7 = vcmp.eq.s32.totalorder %v8526_v29, %v8011_v27  ;;  %v5150_v30 = vpack.c.bf16 %v3631_v50, %v3629_v34  ;;  %v3072_v22 = vsel %vm3021_vm6, %v8018_v55, 0.0 }
 0x4a3   : >> { %v2975_v13 = vadd.f32 %v2943_v41, %v2844_v43  ;;  %v3074_v58 = vsel %vm3023_vm7, %v8018_v55, 0.0  ;;  %vm3152_vm8 = vcmp.eq.s32.totalorder %v8522_v44, %v8021_v23  ;;  %vm3154_vm9 = vcmp.eq.s32.totalorder %v8526_v29, %v8021_v23 }
 0x4a4   : >> { %v3104_v49 = vadd.f32 %v3072_v22, %v2973_v6  ;;  %vm3283_vm10 = vcmp.eq.s32.totalorder %v8522_v44, %v8047_v47  ;;  %5151 = vmatprep.subr.bf16.mxu0 %v5150_v30  ;;  %v3203_v51 = vsel %vm3152_vm8, %v8044_v42, 0.0  ;;  %v3205_v18 = vsel %vm3154_vm9, %v8044_v42, 0.0 }
 0x4a5   : >> { %v3106_v61 = vadd.f32 %v3074_v58, %v2975_v13  ;;  %vm3285_vm11 = vcmp.eq.s32.totalorder %v8526_v29, %v8047_v47  ;;  %v3334_v3 = vsel %vm3283_vm10, %v8054_v24, 0.0  ;;  %vm3414_vm12 = vcmp.eq.s32.totalorder %v8522_v44, %v8057_v53 }
 0x4a6   : >> { %v3235_v54 = vadd.f32 %v3203_v51, %v3104_v49  ;;  %v3336_v28 = vsel %vm3285_vm11, %v8054_v24, 0.0  ;;  %vm3416_vm13 = vcmp.eq.s32.totalorder %v8526_v29, %v8057_v53  ;;  %v3465_v46 = vsel %vm3414_vm12, %v8084_v11, 0.0 }
 0x4a7   : >> { %v3237_v9 = vadd.f32 %v3205_v18, %v3106_v61  ;;  %vm3545_vm14 = vcmp.eq.s32.totalorder %v8522_v44, %v8087_v20  ;;  %v3467_v45 = vsel %vm3416_vm13, %v8084_v11, 0.0  ;;  %vm3547_vm15 = vcmp.eq.s32.totalorder %v8526_v29, %v8087_v20 }
 0x4a8   : >> { %v3366_v4 = vadd.f32 %v3334_v3, %v3235_v54  ;;  %v3596_v34 = vsel %vm3545_vm14, %v8090_v40, 0.0  ;;  %v3598_v43 = vsel %vm3547_vm15, %v8090_v40, 0.0  ;;  %vm2665_vm0 = vcmp.eq.s32.totalorder %v8530_v48, %v7841_v15 }
 0x4a9   : >> { %v3368_v50 = vadd.f32 %v3336_v28, %v3237_v9  ;;  %vm2667_vm1 = vcmp.eq.s32.totalorder %v8534_v17, %v7841_v15  ;;  %v2716_v44 = vsel %vm2665_vm0, %v7844_v31, 0.0  ;;  %vm2764_vm2 = vcmp.eq.s32.totalorder %v8530_v48, %v7847_v38 }
 0x4aa   : >> { %v3497_v63 = vadd.f32 %v3465_v46, %v3366_v4  ;;  %v2718_v41 = vsel %vm2667_vm1, %v7844_v31, 0.0  ;;  %vm2766_vm3 = vcmp.eq.s32.totalorder %v8534_v17, %v7847_v38  ;;  %v2815_v6 = vsel %vm2764_vm2, %v7850_v57, 0.0 }
 0x4ab   : >> { %v3499_v29 = vadd.f32 %v3467_v45, %v3368_v50  ;;  %vm2895_vm4 = vcmp.eq.s32.totalorder %v8530_v48, %v7855_v62  ;;  %v2817_v15 = vsel %vm2766_vm3, %v7850_v57, 0.0  ;;  %v2847_v13 = vadd.f32 %v2815_v6, %v2716_v44 }
 0x4ac   : >> { %v3628_v30 = vadd.f32 %v3596_v34, %v3497_v63  ;;  %vm2897_vm5 = vcmp.eq.s32.totalorder %v8534_v17, %v7855_v62  ;;  %v2849_v22 = vadd.f32 %v2817_v15, %v2718_v41  ;;  %v2946_v58 = vsel %vm2895_vm4, %v7858_v26, 0.0 }
 0x4ad   : >> { %v3630_v31 = vadd.f32 %v3598_v43, %v3499_v29  ;;  %v2948_v49 = vsel %vm2897_vm5, %v7858_v26, 0.0  ;;  %v2978_v61 = vadd.f32 %v2946_v58, %v2847_v13  ;;  %vm3026_vm6 = vcmp.eq.s32.totalorder %v8530_v48, %v7861_v8 }
 0x4ae   : >> { %vm3028_vm7 = vcmp.eq.s32.totalorder %v8534_v17, %v7861_v8  ;;  %vm3157_vm8 = vcmp.eq.s32.totalorder %v8530_v48, %v7909_v37  ;;  %v2980_v57 = vadd.f32 %v2948_v49, %v2849_v22  ;;  %v3077_v62 = vsel %vm3026_vm6, %v7872_v0, 0.0 }
 0x4af   : >> { %v5152_v38 = vpack.c.bf16 %v3630_v31, %v3628_v30  ;;  %v3079_v51 = vsel %vm3028_vm7, %v7872_v0, 0.0  ;;  %v3109_v18 = vadd.f32 %v3077_v62, %v2978_v61  ;;  %vm3159_vm9 = vcmp.eq.s32.totalorder %v8534_v17, %v7909_v37 }
 0x4b0   : >> { %v3208_v26 = vsel %vm3157_vm8, %v7912_v12, 0.0  ;;  %vm3288_vm10 = vcmp.eq.s32.totalorder %v8530_v48, %v7915_v39  ;;  %v3111_v8 = vadd.f32 %v3079_v51, %v2980_v57  ;;  %v3210_v54 = vsel %vm3159_vm9, %v7912_v12, 0.0  ;;  %v10159_v51 = vld [vmem:[#allocation12_spill] sm:$0xff] (%p2596_p6) }
 0x4b1   : >> { %5153 = vmatpush1.bf16.msra.mxu0 %v5152_v38  ;;  %vm3290_vm11 = vcmp.eq.s32.totalorder %v8534_v17, %v7915_v39  ;;  %v3339_v3 = vsel %vm3288_vm10, %v7918_v59, 0.0  ;;  %v3240_v28 = vadd.f32 %v3208_v26, %v3109_v18  ;;  %vm3419_vm12 = vcmp.eq.s32.totalorder %v8530_v48, %v7921_v10 }
 0x4b2   : >> { %v3341_v0 = vsel %vm3290_vm11, %v7918_v59, 0.0  ;;  %vm3421_vm13 = vcmp.eq.s32.totalorder %v8534_v17, %v7921_v10  ;;  %v3242_v37 = vadd.f32 %v3210_v54, %v3111_v8  ;;  %v3470_v9 = vsel %vm3419_vm12, %v7942_v32, 0.0 }
 0x4b3   : >> { %v3472_v46 = vsel %vm3421_vm13, %v7942_v32, 0.0  ;;  %vm3550_vm14 = vcmp.eq.s32.totalorder %v8530_v48, %v7957_v60  ;;  %v3371_v12 = vadd.f32 %v3339_v3, %v3240_v28  ;;  %vm3552_vm15 = vcmp.eq.s32.totalorder %v8534_v17, %v7957_v60 }
 0x4b4   : >> { %v3601_v39 = vsel %vm3550_vm14, %v7960_v35, 0.0  ;;  %vm2664_vm0 = vcmp.eq.s32.totalorder %v8530_v48, %v7963_v52  ;;  %v3373_v59 = vadd.f32 %v3341_v0, %v3242_v37  ;;  %v3603_v10 = vsel %vm3552_vm15, %v7960_v35, 0.0 }
 0x4b5   : >> { %vm2666_vm1 = vcmp.eq.s32.totalorder %v8534_v17, %v7963_v52  ;;  %v2715_v32 = vsel %vm2664_vm0, %v7966_v14, 0.0  ;;  %v3502_v4 = vadd.f32 %v3470_v9, %v3371_v12  ;;  %vm2763_vm2 = vcmp.eq.s32.totalorder %v8530_v48, %v7973_v33 }
 0x4b6   : >> { %v2717_v45 = vsel %vm2666_vm1, %v7966_v14, 0.0  ;;  %vm2765_vm3 = vcmp.eq.s32.totalorder %v8534_v17, %v7973_v33  ;;  %v3504_v60 = vadd.f32 %v3472_v46, %v3373_v59  ;;  %v2814_v34 = vsel %vm2763_vm2, %v7990_v56, 0.0 }
 0x4b7   : >> { %v2816_v50 = vsel %vm2765_vm3, %v7990_v56, 0.0  ;;  %vm2894_vm4 = vcmp.eq.s32.totalorder %v8530_v48, %v8003_v25  ;;  %v3633_v35 = vadd.f32 %v3601_v39, %v3502_v4  ;;  %v2846_v52 = vadd.f32 %v2814_v34, %v2715_v32 }
 0x4b8   : >> { %v2848_v43 = vadd.f32 %v2816_v50, %v2717_v45  ;;  %vm2896_vm5 = vcmp.eq.s32.totalorder %v8534_v17, %v8003_v25  ;;  %v3635_v14 = vadd.f32 %v3603_v10, %v3504_v60  ;;  %v2945_v63 = vsel %vm2894_vm4, %v8008_v19, 0.0 }
 0x4b9   : >> { %v2947_v44 = vsel %vm2896_vm5, %v8008_v19, 0.0  ;;  %vm3025_vm6 = vcmp.eq.s32.totalorder %v8530_v48, %v8011_v27  ;;  %v2977_v33 = vadd.f32 %v2945_v63, %v2846_v52  ;;  %vm3027_vm7 = vcmp.eq.s32.totalorder %v8534_v17, %v8011_v27 }
 0x4ba   : >> { %v2979_v41 = vadd.f32 %v2947_v44, %v2848_v43  ;;  %v3076_v56 = vsel %vm3025_vm6, %v8018_v55, 0.0  ;;  %v5154_v29 = vpack.c.bf16 %v3635_v14, %v3633_v35  ;;  %v3078_v6 = vsel %vm3027_vm7, %v8018_v55, 0.0 }
 0x4bb   : >> { %vm3156_vm8 = vcmp.eq.s32.totalorder %v8530_v48, %v8021_v23  ;;  %vm3158_vm9 = vcmp.eq.s32.totalorder %v8534_v17, %v8021_v23  ;;  %v3108_v25 = vadd.f32 %v3076_v56, %v2977_v33  ;;  %vm3287_vm10 = vcmp.eq.s32.totalorder %v8530_v48, %v8047_v47 }
 0x4bc   : >> { %v3110_v19 = vadd.f32 %v3078_v6, %v2979_v41  ;;  %v3207_v30 = vsel %vm3156_vm8, %v8044_v42, 0.0  ;;  %v3209_v15 = vsel %vm3158_vm9, %v8044_v42, 0.0  ;;  %5155 = vmatprep.subr.bf16.mxu0 %v5154_v29  ;;  %vm3289_vm11 = vcmp.eq.s32.totalorder %v8534_v17, %v8047_v47 }
 0x4bd   : >> { %vm3418_vm12 = vcmp.eq.s32.totalorder %v8530_v48, %v8057_v53  ;;  %vm3420_vm13 = vcmp.eq.s32.totalorder %v8534_v17, %v8057_v53  ;;  %v3239_v27 = vadd.f32 %v3207_v30, %v3108_v25  ;;  %v3338_v23 = vsel %vm3287_vm10, %v8054_v24, 0.0 }
 0x4be   : >> { %v3241_v55 = vadd.f32 %v3209_v15, %v3110_v19  ;;  %v3340_v42 = vsel %vm3289_vm11, %v8054_v24, 0.0  ;;  %v3469_v13 = vsel %vm3418_vm12, %v8084_v11, 0.0  ;;  %v3471_v31 = vsel %vm3420_vm13, %v8084_v11, 0.0 }
 0x4bf   : >> { %vm3549_vm14 = vcmp.eq.s32.totalorder %v8530_v48, %v8087_v20  ;;  %vm3551_vm15 = vcmp.eq.s32.totalorder %v8534_v17, %v8087_v20  ;;  %v3370_v47 = vadd.f32 %v3338_v23, %v3239_v27  ;;  %v5541_v38 = vmov 0.0   ;;  %v5051_v48 = vld [vmem:[%s4956_s5 + $0x28] sm:$0xff] }
 0x4c0   : >> { %v3372_v22 = vadd.f32 %v3340_v42, %v3241_v55  ;;  %v3600_v53 = vsel %vm3549_vm14, %v8090_v40, 0.0  ;;  %v3602_v58 = vsel %vm3551_vm15, %v8090_v40, 0.0  ;;  %3704 = vmatprep.mubr.f32.mxu0 %v5541_v38  ;;  %v3713_v18 = vmul.f32 (%p2596_p6), 32.0, %v10159_v51 }
 0x4c1   : >> { %v3501_v49 = vadd.f32 %v3469_v13, %v3370_v47 }
 0x4c2   : >> { %v3503_v61 = vadd.f32 %v3471_v31, %v3372_v22  ;;  %v3714_v26 = vfloor.f32 (%p2596_p6), %v3713_v18 }
 0x4c3   : >> { %v3632_v24 = vadd.f32 %v3600_v53, %v3501_v49 }
 0x4c4   : >> { %v3634_v57 = vadd.f32 %v3602_v58, %v3503_v61  ;;  %v5196_v8 = vtrunc.f32 (%p2596_p6), %v3714_v26 }
 0x4c6   : >> { %v5156_v11 = vpack.c.bf16 %v3634_v57, %v3632_v24  ;;  %v5197_v54 = vcvt.f32.s32 (%p2596_p6), %v5196_v8 }
 0x4c8   : >> { %5157 = vmatpush1.bf16.msra.mxu0 %v5156_v11  ;;  %v3719_v37 = vmul.u32 (%p2596_p6), 2654435761, %v5197_v54  ;;  %v3721_v9 = vmul.u32 (%p2596_p6), 805459861, %v5197_v54  ;;  %v3717_v12 = vadd.s32 (%p2596_p6), 1, %v5197_v54 }
 0x4ca   : > { %v3720_v32 = vadd.s32 (%p2596_p6), 2654435761, %v3719_v37  ;;  %v3722_v4 = vadd.s32 (%p2596_p6), 805459861, %v3721_v9  ;;  %v3723_v45 = vrot.slane (%p2596_p6), %v3719_v37, 5 }
 0x4cb   : >> { %3705 = vmatmul.mubr.f32.vlgmr.msra.gmra.mrb[0].mxu0 %v5051_v48 }
 0x4cc   : > { %v3724_v52 = vrot.slane (%p2596_p6), %v3723_v45, 4  ;;  %v3744_v63 = vrot.slane (%p2596_p6), %v3720_v32, 5  ;;  %v3760_v56 = vrot.slane (%p2596_p6), %v3722_v4, 6 }
 0x4ce   : > { %v3725_v29 = vxor.u32 (%p2596_p6), %v5197_v54, %v3724_v52  ;;  %v3739_v25 = vxor.u32 (%p2596_p6), %v3724_v52, %v3717_v12  ;;  %v3745_v30 = vrot.slane (%p2596_p6), %v3744_v63, 4  ;;  %v3761_v15 = vrot.slane (%p2596_p6), %v3760_v56, 4 }
 0x4d0   : > { %v3746_v47 = vxor.u32 (%p2596_p6), %v5197_v54, %v3745_v30  ;;  %v3755_v22 = vxor.u32 (%p2596_p6), %v3745_v30, %v3717_v12  ;;  %v3762_v53 = vxor.u32 (%p2596_p6), %v3761_v15, %v3725_v29  ;;  %v3768_v58 = vxor.u32 (%p2596_p6), %v3761_v15, %v3739_v25 }
 0x4d2   : > { %v8861_v57 = vand.u32 (%p2596_p6), 4095, %v3762_v53  ;;  %v8863_v11 = vand.u32 (%p2596_p6), 4095, %v3768_v58  ;;  %v3771_v48 = vxor.u32 (%p2596_p6), %v3761_v15, %v3746_v47 }
 0x4d4   : > { %10169 = vst [vmem:[#allocation32_spill] sm:$0xff] (%p2596_p6), %v8861_v57  ;;  %10170 = vst [vmem:[#allocation33_spill] sm:$0xff] (%p2596_p6), %v8863_v11 }
 0x59d   : > { %2598 = sbr.rel (!%p2596_p6) target bundleno = 1004 (0x3ec), region = 112 }
 0x59e   : >> { %v3706_v62 = vpop.f32.mrb[0].mxu0 }
 0x59f   : >> { %v8826_v21 = vadd.f32 %v5517_v21, %v3706_v62   ;;  %v3708_v17 = vpop.f32.mrb[1].mxu0  ;;  %v3774_v62 = vxor.u32 (%p2596_p6), %v3761_v15, %v3755_v22 }
 0x5a0   : >> { %v8829_v5 = vadd.f32 %v5513_v5, %v3708_v17  }
 0x5a1   : >> { %v10155_v20 = vmov %v8826_v21 }
 0x5a2   : >> { %v10156_v40 = vmov %v8829_v5  ;;  %v10158_v21 = vmov %v10155_v20 }
 0x5a3   : >> { %v10157_v5 = vmov %v10156_v40  ;;  %v3715_v21 = vsub.f32 (%p2596_p6), %v3713_v18, %v3714_v26  ;;  %v8869_v18 = vand.u32 (%p2596_p6), 4095, %v3771_v48  ;;  %v8871_v26 = vand.u32 (%p2596_p6), 4095, %v3774_v62 }
 0x5a4   : > { %v3731_v5 = vrot.slane %v3721_v9, 6 }
 0x5a5   : > { %v3718_v3 = vsub.f32 1.0, %v3715_v21  ;;  %v3748_v28 = vrot.slane %v3715_v21, 5  ;;  %v3763_v0 = vrot.slane %v3715_v21, 6  ;;  %10173 = vst [vmem:[#allocation36_spill] sm:$0xff] %v8869_v18  ;;  %10174 = vst [vmem:[#allocation37_spill] sm:$0xff] %v8871_v26 }
 0x5a6   : > { %v3732_v44 = vrot.slane %v3731_v5, 4 }
 0x5a7   : > { %v3727_v46 = vrot.slane %v3718_v3, 5  ;;  %v3734_v39 = vrot.slane %v3718_v3, 6  ;;  %v3749_v59 = vrot.slane %v3748_v28, 4  ;;  %v3764_v10 = vrot.slane %v3763_v0, 4 }
 0x5a8   : > { %v3733_v23 = vxor.u32 %v3732_v44, %v3725_v29  ;;  %v3741_v42 = vxor.u32 %v3739_v25, %v3732_v44  ;;  %v3752_v38 = vxor.u32 %v3746_v47, %v3732_v44  ;;  %v3757_v24 = vxor.u32 %v3755_v22, %v3732_v44 }
 0x5a9   : > { %v3728_v60 = vrot.slane %v3727_v46, 4  ;;  %v3735_v34 = vrot.slane %v3734_v39, 4  ;;  %v3751_v50 = vmul.f32 %v3749_v59, %v3718_v3  ;;  %v3756_v35 = vmul.f32 %v3749_v59, %v3715_v21 }
 0x5aa   : > { %v8857_v49 = vand.u32 4095, %v3733_v23  ;;  %v8859_v61 = vand.u32 4095, %v3741_v42  ;;  %v8865_v17 = vand.u32 4095, %v3752_v38  ;;  %v8867_v51 = vand.u32 4095, %v3757_v24 }
 0x5ab   : > { %v3730_v43 = vmul.f32 %v3728_v60, %v3718_v3  ;;  %v3740_v14 = vmul.f32 %v3728_v60, %v3715_v21  ;;  %v8841_v33 = vmul.f32 %v3751_v50, %v3735_v34  ;;  %v8843_v41 = vmul.f32 %v3756_v35, %v3735_v34 }
 0x5ac   : > { %v8853_v13 = vmul.f32 %v3764_v10, %v3751_v50  ;;  %v8855_v31 = vmul.f32 %v3764_v10, %v3756_v35  ;;  %10168 = vst [vmem:[#allocation31_spill] sm:$0xff] %v8857_v49  ;;  %10171 = vst [vmem:[#allocation34_spill] sm:$0xff] %v8865_v17 }
 0x5ad   : > { %10160 = vst [vmem:[#allocation12_spill] sm:$0xff] %v8841_v33  ;;  %10161 = vst [vmem:[#allocation24_spill] sm:$0xff] %v8843_v41  ;;  %v8845_v6 = vmul.f32 %v3735_v34, %v3730_v43  ;;  %v8847_v19 = vmul.f32 %v3740_v14, %v3735_v34  ;;  %v8849_v27 = vmul.f32 %v3764_v10, %v3730_v43 }
 0x5ae   : > { %v8851_v55 = vmul.f32 %v3764_v10, %v3740_v14  ;;  %10166 = vst [vmem:[#allocation29_spill] sm:$0xff] %v8853_v13  ;;  %10167 = vst [vmem:[#allocation30_spill] sm:$0xff] %v8855_v31 }
 0x5af   : > { %10162 = vst [vmem:[#allocation25_spill] sm:$0xff] %v8845_v6  ;;  %10163 = vst [vmem:[#allocation26_spill] sm:$0xff] %v8847_v19 }
 0x5b0   : > { %10164 = vst [vmem:[#allocation27_spill] sm:$0xff] %v8849_v27  ;;  %10165 = vst [vmem:[#allocation28_spill] sm:$0xff] %v8851_v55 }
 0x5b1   : > { %10172 = vst [vmem:[#allocation35_spill] sm:$0xff] %v8867_v51 }
 0x5b2 LB: >> { %v10175_v57 = vld [vmem:[#allocation32_spill] sm:$0xff]  ;;  %v10183_v26 = vld [vmem:[#allocation37_spill] sm:$0xff]  ;;  %v10190_v21 = vld [vmem:[#allocation14_spill] sm:$0xff]  ;;  %s5052_s7 = sshll.u32 %s5533_s6, 7  ;;  %s5053_s18 = sshll.u32 %s5533_s6, 3  ;;  %s5533_s6 = sphi %s8879_s6, %s3782_s6   ;;  %v5529_v20 = vphi %v10155_v20, %v10205_v20   ;;  %v5525_v40 = vphi %v10156_v40, %v10204_v40  }
 0x5b3   : >> { %v10178_v49 = vld [vmem:[#allocation31_spill] sm:$0xff]  ;;  %v10185_v18 = vld [vmem:[#allocation36_spill] sm:$0xff]  ;;  %v10186_v17 = vld [vmem:[#allocation34_spill] sm:$0xff]  ;;  %v3909_v3 = vrot.slane %v8859_v61, %v10190_v21  ;;  %v8919_v4 = vstv %s5052_s7  ;;  %v4302_v43 = vrot.slane %v10175_v57, %v10190_v21  ;;  %s4959_s24 = scalar_lea.vmem [#allocation5], %s5053_s18  ;;  %s3782_s6 = sadd.s32 1, %s5533_s6  }
 0x5b4   : >> { %v10179_v41 = vld [vmem:[#allocation24_spill] sm:$0xff]  ;;  %v10188_v11 = vld [vmem:[#allocation33_spill] sm:$0xff]  ;;  %v3810_v8 = vrot.slane %v10178_v49, %v10190_v21  ;;  %v4040_v0 = vrot.slane %v10186_v17, %v10190_v21  ;;  %v10192_v1 = vld [vmem:[#allocation11_spill] sm:$0xff]  ;;  %v4564_v56 = vrot.slane %v10185_v18, %v10190_v21  ;;  %p3779_p8 = scmp.ge.s32.totalorder %s3782_s6, 32  }
 0x5b5   : >> { %v10180_v33 = vld [vmem:[#allocation12_spill] sm:$0xff]  ;;  %v10181_v31 = vld [vmem:[#allocation30_spill] sm:$0xff]  ;;  %v10187_v13 = vld [vmem:[#allocation29_spill] sm:$0xff]  ;;  %v4220_v46 = vrot.slane %v10179_v41, %v10190_v21  ;;  %v8932_v34 = vadd.s32 %v8919_v4, %v10192_v1  ;;  %v4433_v63 = vrot.slane %v10188_v11, %v10190_v21  ;;  %s5061_s25 = sshll.u32 (%p3779_p8), %s5580_s13, 8  ;;  %s4913_s17 = sshll.u32 (%p3779_p8), %s6739_s15, 4  ;;  %s4914_s17 = int_to_ptr.vmem [resolvable:$true] %s4913_s17 }
 0x5b6   : >> { %v10184_v19 = vld [vmem:[#allocation26_spill] sm:$0xff]  ;;  %v10189_v6 = vld [vmem:[#allocation25_spill] sm:$0xff]  ;;  %v4089_v37 = vrot.slane %v10180_v33, %v10190_v21  ;;  %v10193_v50 = vld [vmem:[#allocation15_spill] sm:$0xff]  ;;  %s9907_s29 = scalar_lea.hbm (%p3779_p8), %s9948_s2, %s5061_s25  ;;  %s4899_s27 = scalar_lea.sflag (%p3779_p8), [#allocation4], %s5695_s20 }
 0x5b7   : >> { %v10176_v55 = vld [vmem:[#allocation28_spill] sm:$0xff]  ;;  %v10182_v27 = vld [vmem:[#allocation27_spill] sm:$0xff]  ;;  %v3859_v54 = vrot.slane %v10189_v6, %v10190_v21  ;;  %v3958_v28 = vrot.slane %v10184_v19, %v10190_v21  ;;  %v10191_v12 = vld [vmem:[#allocation13_spill] sm:$0xff]  ;;  %v8936_v35 = vadd.s32 %v8919_v4, %v10193_v50  ;;  %s5391_s22 = scalar_lea.vmem (%p3779_p8), %s4914_s17, 256  ;;  %s5543_s23 = smov (%p3779_p8), [#allocation7]  }
 0x5b8   : >> { %v10177_v51 = vld [vmem:[#allocation35_spill] sm:$0xff]  ;;  %v8908_v39 = vrot.slane %v3810_v8, %v10191_v12  ;;  %v8914_v10 = vrot.slane %v3909_v3, %v10191_v12  ;;  %v8922_v45 = vrot.slane %v4040_v0, %v10191_v12  ;;  %v8925_v60 = vrot.slane %v4089_v37, %v10191_v12  ;;  %p5392_p10 = scmp.ne.s32.totalorder (%p3779_p8), %s4914_s17, %s5391_s22  ;;  %s5395_s28 = sshll.u32 (%p3779_p8), %s5543_s23, 4  ;;  %s5396_s28 = int_to_ptr.vmem [resolvable:$false] %s5395_s28 }
 0x5b9   : >> { %v4171_v9 = vrot.slane %v10177_v51, %v10190_v21  ;;  %v8911_v59 = vrot.slane %v3859_v54, %v10191_v12  ;;  %v8917_v32 = vrot.slane %v3958_v28, %v10191_v12  ;;  %v8939_v52 = vrot.slane %v4220_v46, %v10191_v12  ;;  %s5397_s30 = scalar_lea.vmem (%p3779_p8), %s5396_s28, 512  ;;  %p5398_p7 = scmp.lt.s32.totalorder (%p3779_p8), %s4914_s17, %s5396_s28 }
 0x5ba   : >> { %v4351_v14 = vrot.slane %v10182_v27, %v10190_v21  ;;  %v4482_v44 = vrot.slane %v10176_v55, %v10190_v21  ;;  %vm3820_vm0 = vcmp.eq.s32.totalorder %v8932_v34, %v8908_v39  ;;  %vm3822_vm1 = vcmp.eq.s32.totalorder %v8936_v35, %v8908_v39  ;;  %p5393_p13 = pnand (%p3779_p8), %p5392_p10, %p5650_p12  ;;  %p5399_p9 = scmp.lt.s32.totalorder (%p3779_p8), %s5397_s30, %s5391_s22 }
 0x5bb   : >> { %v8928_v5 = vrot.slane %v4171_v9, %v10191_v12  ;;  %vm3919_vm2 = vcmp.eq.s32.totalorder %v8932_v34, %v8914_v10  ;;  %vm3921_vm3 = vcmp.eq.s32.totalorder %v8936_v35, %v8914_v10  ;;  %v3871_v29 = vsel %vm3820_vm0, %v8911_v59, 0.0 }
 0x5bc   : >> { %v3873_v25 = vsel %vm3822_vm1, %v8911_v59, 0.0  ;;  %v3970_v30 = vsel %vm3919_vm2, %v8917_v32, 0.0  ;;  %v3972_v15 = vsel %vm3921_vm3, %v8917_v32, 0.0  ;;  %vm4050_vm4 = vcmp.eq.s32.totalorder %v8932_v34, %v8922_v45  ;;  %p5394_p3 = pneg (%p3779_p8), %p5393_p13  ;;  %p5400_p2 = por (%p3779_p8), %p5399_p9, %p5398_p7 }
 0x5bd   : >> { %v4002_v23 = vadd.f32 %v3970_v30, %v3871_v29  ;;  %v4004_v42 = vadd.f32 %v3972_v15, %v3873_v25  ;;  %vm4052_vm5 = vcmp.eq.s32.totalorder %v8936_v35, %v8922_v45  ;;  %v4101_v47 = vsel %vm4050_vm4, %v8925_v60, 0.0 }
 0x5be   : >> { %v4103_v22 = vsel %vm4052_vm5, %v8925_v60, 0.0  ;;  %vm4181_vm6 = vcmp.eq.s32.totalorder %v8932_v34, %v8928_v5  ;;  %vm4183_vm7 = vcmp.eq.s32.totalorder %v8936_v35, %v8928_v5  ;;  %v8976_v48 = vrot.slane %v4302_v43, %v10191_v12  ;;  %p5401_p5 = pnand (%p3779_p8), %p5400_p2, %p5394_p3 }
 0x5bf   : >> { %v4133_v53 = vadd.f32 %v4101_v47, %v4002_v23  ;;  %v4135_v58 = vadd.f32 %v4103_v22, %v4004_v42  ;;  %v4232_v38 = vsel %vm4181_vm6, %v8939_v52, 0.0  ;;  %v4234_v24 = vsel %vm4183_vm7, %v8939_v52, 0.0 }
 0x5c0   : >> { %v8979_v62 = vrot.slane %v4351_v14, %v10191_v12  ;;  %v8982_v8 = vrot.slane %v4433_v63, %v10191_v12  ;;  %v8985_v54 = vrot.slane %v4482_v44, %v10191_v12  ;;  %v8988_v0 = vrot.slane %v4564_v56, %v10191_v12 }
 0x5c1   : >> { %v4264_v3 = vadd.f32 %v4232_v38, %v4133_v53  ;;  %v4266_v28 = vadd.f32 %v4234_v24, %v4135_v58  ;;  %v4613_v37 = vrot.slane %v10187_v13, %v10190_v21  ;;  %vm4312_vm8 = vcmp.eq.s32.totalorder %v8932_v34, %v8976_v48 }
 0x5c2   : >> { %vm4314_vm9 = vcmp.eq.s32.totalorder %v8936_v35, %v8976_v48  ;;  %vm4443_vm10 = vcmp.eq.s32.totalorder %v8932_v34, %v8982_v8  ;;  %vm4445_vm11 = vcmp.eq.s32.totalorder %v8936_v35, %v8982_v8  ;;  %v4363_v9 = vsel %vm4312_vm8, %v8979_v62, 0.0 }
 0x5c3   : >> { %v4365_v46 = vsel %vm4314_vm9, %v8979_v62, 0.0  ;;  %v4494_v50 = vsel %vm4443_vm10, %v8985_v54, 0.0  ;;  %v4496_v43 = vsel %vm4445_vm11, %v8985_v54, 0.0  ;;  %v4395_v14 = vadd.f32 %v4363_v9, %v4264_v3 }
 0x5c4   : >> { %v4397_v63 = vadd.f32 %v4365_v46, %v4266_v28  ;;  %vm4574_vm12 = vcmp.eq.s32.totalorder %v8932_v34, %v8988_v0  ;;  %vm4576_vm13 = vcmp.eq.s32.totalorder %v8936_v35, %v8988_v0  ;;  %v9009_v44 = vrot.slane %v4613_v37, %v10191_v12 }
 0x5c5   : >> { %v4695_v56 = vrot.slane %v10183_v26, %v10190_v21  ;;  %v4744_v29 = vrot.slane %v10181_v31, %v10190_v21  ;;  %v3806_v25 = vrot.slane %v10178_v49, %v10191_v12  ;;  %v4526_v30 = vadd.f32 %v4494_v50, %v4395_v14 }
 0x5c6   : >> { %v4528_v15 = vadd.f32 %v4496_v43, %v4397_v63  ;;  %v3855_v23 = vrot.slane %v10189_v6, %v10191_v12  ;;  %v3905_v42 = vrot.slane %v8859_v61, %v10191_v12  ;;  %v4625_v47 = vsel %vm4574_vm12, %v9009_v44, 0.0 }
 0x5c7   : >> { %v4627_v22 = vsel %vm4576_vm13, %v9009_v44, 0.0  ;;  %v9024_v53 = vrot.slane %v4695_v56, %v10191_v12  ;;  %v9027_v21 = vrot.slane %v4744_v29, %v10191_v12  ;;  %v4657_v58 = vadd.f32 %v4625_v47, %v4526_v30 }
 0x5c8   : >> { %v4659_v38 = vadd.f32 %v4627_v22, %v4528_v15  ;;  %v9030_v24 = vrot.slane %v3806_v25, %v10191_v12  ;;  %v9033_v3 = vrot.slane %v3855_v23, %v10191_v12  ;;  %v9040_v28 = vrot.slane %v3905_v42, %v10191_v12 }
 0x5c9   : >> { %vm4705_vm14 = vcmp.eq.s32.totalorder %v8932_v34, %v9024_v53  ;;  %vm4707_vm15 = vcmp.eq.s32.totalorder %v8936_v35, %v9024_v53  ;;  %v3954_v37 = vrot.slane %v10184_v19, %v10191_v12  ;;  %v4036_v29 = vrot.slane %v10186_v17, %v10191_v12 }
 0x5ca   : >> { %v4756_v9 = vsel %vm4705_vm14, %v9027_v21, 0.0  ;;  %v4758_v46 = vsel %vm4707_vm15, %v9027_v21, 0.0  ;;  %vm3819_vm0 = vcmp.eq.s32.totalorder %v8932_v34, %v9030_v24  ;;  %vm3821_vm1 = vcmp.eq.s32.totalorder %v8936_v35, %v9030_v24 }
 0x5cb   : >> { %v4788_v50 = vadd.f32 %v4756_v9, %v4657_v58  ;;  %v4790_v43 = vadd.f32 %v4758_v46, %v4659_v38  ;;  %v3870_v14 = vsel %vm3819_vm0, %v9033_v3, 0.0  ;;  %v3872_v63 = vsel %vm3821_vm1, %v9033_v3, 0.0 }
 0x5cc   : >> { %vm3918_vm2 = vcmp.eq.s32.totalorder %v8932_v34, %v9040_v28  ;;  %vm3920_vm3 = vcmp.eq.s32.totalorder %v8936_v35, %v9040_v28  ;;  %v9057_v56 = vrot.slane %v3954_v37, %v10191_v12  ;;  %v4085_v30 = vrot.slane %v10180_v33, %v10191_v12 }
 0x5cd   : >> { %v5158_v25 = vpack.c.bf16 %v4790_v43, %v4788_v50  ;;  %v4167_v15 = vrot.slane %v10177_v51, %v10191_v12  ;;  %v4216_v23 = vrot.slane %v10179_v41, %v10191_v12  ;;  %v9070_v22 = vrot.slane %v4036_v29, %v10191_v12 }
 0x5ce   : >> { %v3969_v42 = vsel %vm3918_vm2, %v9057_v56, 0.0  ;;  %v3971_v47 = vsel %vm3920_vm3, %v9057_v56, 0.0  ;;  %v4298_v58 = vrot.slane %v10175_v57, %v10191_v12  ;;  %v9075_v9 = vrot.slane %v4085_v30, %v10191_v12 }
 0x5cf   : >> { %5159 = vmatprep.subr.bf16.mxu0 %v5158_v25  ;;  %v4001_v38 = vadd.f32 %v3969_v42, %v3870_v14  ;;  %v4003_v37 = vadd.f32 %v3971_v47, %v3872_v63  ;;  %v9078_v46 = vrot.slane %v4167_v15, %v10191_v12  ;;  %vm4049_vm4 = vcmp.eq.s32.totalorder %v8932_v34, %v9070_v22 }
 0x5d0   : >> { %vm4051_vm5 = vcmp.eq.s32.totalorder %v8936_v35, %v9070_v22  ;;  %v9085_v50 = vrot.slane %v4216_v23, %v10191_v12  ;;  %v9088_v43 = vrot.slane %v4298_v58, %v10191_v12  ;;  %v4100_v14 = vsel %vm4049_vm4, %v9075_v9, 0.0 }
 0x5d1   : >> { %v4102_v63 = vsel %vm4051_vm5, %v9075_v9, 0.0  ;;  %vm4180_vm6 = vcmp.eq.s32.totalorder %v8932_v34, %v9078_v46  ;;  %vm4182_vm7 = vcmp.eq.s32.totalorder %v8936_v35, %v9078_v46  ;;  %v4132_v29 = vadd.f32 %v4100_v14, %v4001_v38 }
 0x5d2   : >> { %v4134_v25 = vadd.f32 %v4102_v63, %v4003_v37  ;;  %v4231_v30 = vsel %vm4180_vm6, %v9085_v50, 0.0  ;;  %v4233_v15 = vsel %vm4182_vm7, %v9085_v50, 0.0  ;;  %vm4311_vm8 = vcmp.eq.s32.totalorder %v8932_v34, %v9088_v43 }
 0x5d3   : >> { %vm4313_vm9 = vcmp.eq.s32.totalorder %v8936_v35, %v9088_v43  ;;  %v4347_v23 = vrot.slane %v10182_v27, %v10191_v12  ;;  %v4429_v42 = vrot.slane %v10188_v11, %v10191_v12  ;;  %v4263_v47 = vadd.f32 %v4231_v30, %v4132_v29 }
 0x5d4   : >> { %v4265_v58 = vadd.f32 %v4233_v15, %v4134_v25  ;;  %v4478_v38 = vrot.slane %v10176_v55, %v10191_v12  ;;  %v4560_v37 = vrot.slane %v10185_v18, %v10191_v12  ;;  %v4609_v1 = vrot.slane %v10187_v13, %v10191_v12  ;;  %v10194_v15 = vld [vmem:[#allocation16_spill] sm:$0xff] }
 0x5d5   : >> { %v9111_v14 = vrot.slane %v4347_v23, %v10191_v12  ;;  %v9114_v63 = vrot.slane %v4429_v42, %v10191_v12  ;;  %v4691_v6 = vrot.slane %v10183_v26, %v10191_v12  ;;  %v4740_v30 = vrot.slane %v10181_v31, %v10191_v12 }
 0x5d6   : >> { %v9121_v29 = vrot.slane %v4478_v38, %v10191_v12  ;;  %v9124_v25 = vrot.slane %v4560_v37, %v10191_v12  ;;  %v9130_v23 = vadd.s32 %v8919_v4, %v10194_v15  ;;  %v9151_v17 = vrot.slane %v4609_v1, %v10191_v12 }
 0x5d7   : >> { %v4362_v42 = vsel %vm4311_vm8, %v9111_v14, 0.0  ;;  %v4364_v38 = vsel %vm4313_vm9, %v9111_v14, 0.0  ;;  %vm4442_vm10 = vcmp.eq.s32.totalorder %v8932_v34, %v9114_v63  ;;  %vm4444_vm11 = vcmp.eq.s32.totalorder %v8936_v35, %v9114_v63 }
 0x5d8   : >> { %v4394_v37 = vadd.f32 %v4362_v42, %v4263_v47  ;;  %v4396_v11 = vadd.f32 %v4364_v38, %v4265_v58  ;;  %v4493_v15 = vsel %vm4442_vm10, %v9121_v29, 0.0  ;;  %v4495_v13 = vsel %vm4444_vm11, %v9121_v29, 0.0  ;;  %v10195_v58 = vld [vmem:[#allocation17_spill] sm:$0xff] }
 0x5d9   : >> { %vm4573_vm12 = vcmp.eq.s32.totalorder %v8932_v34, %v9124_v25  ;;  %vm4575_vm13 = vcmp.eq.s32.totalorder %v8936_v35, %v9124_v25  ;;  %v9154_v18 = vrot.slane %v4691_v6, %v10191_v12  ;;  %v9157_v47 = vrot.slane %v4740_v30, %v10191_v12 }
 0x5da   : >> { %v4525_v19 = vadd.f32 %v4493_v15, %v4394_v37  ;;  %v4527_v26 = vadd.f32 %v4495_v13, %v4396_v11  ;;  %v9161_v42 = vadd.s32 %v8919_v4, %v10195_v58  ;;  %v4624_v38 = vsel %vm4573_vm12, %v9151_v17, 0.0 }
 0x5db   : >> { %v4626_v27 = vsel %vm4575_vm13, %v9151_v17, 0.0  ;;  %vm4704_vm14 = vcmp.eq.s32.totalorder %v8932_v34, %v9154_v18  ;;  %vm4706_vm15 = vcmp.eq.s32.totalorder %v8936_v35, %v9154_v18  ;;  %vm3824_vm0 = vcmp.eq.s32.totalorder %v9130_v23, %v8908_v39 }
 0x5dc   : >> { %v4656_v1 = vadd.f32 %v4624_v38, %v4525_v19  ;;  %v4658_v6 = vadd.f32 %v4626_v27, %v4527_v26  ;;  %v4755_v13 = vsel %vm4704_vm14, %v9157_v47, 0.0  ;;  %v4757_v11 = vsel %vm4706_vm15, %v9157_v47, 0.0 }
 0x5dd   : >> { %vm3826_vm1 = vcmp.eq.s32.totalorder %v9161_v42, %v8908_v39  ;;  %vm3923_vm2 = vcmp.eq.s32.totalorder %v9130_v23, %v8914_v10  ;;  %vm3925_vm3 = vcmp.eq.s32.totalorder %v9161_v42, %v8914_v10  ;;  %v3875_v19 = vsel %vm3824_vm0, %v8911_v59, 0.0 }
 0x5de   : >> { %v4787_v12 = vadd.f32 %v4755_v13, %v4656_v1  ;;  %v4789_v34 = vadd.f32 %v4757_v11, %v4658_v6  ;;  %v3877_v27 = vsel %vm3826_vm1, %v8911_v59, 0.0  ;;  %v3974_v26 = vsel %vm3923_vm2, %v8917_v32, 0.0 }
 0x5df   : >> { %v3976_v35 = vsel %vm3925_vm3, %v8917_v32, 0.0  ;;  %vm4054_vm4 = vcmp.eq.s32.totalorder %v9130_v23, %v8922_v45  ;;  %vm4056_vm5 = vcmp.eq.s32.totalorder %v9161_v42, %v8922_v45  ;;  %v4006_v37 = vadd.f32 %v3974_v26, %v3875_v19 }
 0x5e0   : >> { %v5160_v30 = vpack.c.bf16 %v4789_v34, %v4787_v12  ;;  %v4008_v15 = vadd.f32 %v3976_v35, %v3877_v27  ;;  %v4105_v58 = vsel %vm4054_vm4, %v8925_v60, 0.0  ;;  %v4107_v38 = vsel %vm4056_vm5, %v8925_v60, 0.0 }
 0x5e1   : >> { %vm4185_vm6 = vcmp.eq.s32.totalorder %v9130_v23, %v8928_v5  ;;  %vm4187_vm7 = vcmp.eq.s32.totalorder %v9161_v42, %v8928_v5  ;;  %vm4316_vm8 = vcmp.eq.s32.totalorder %v9130_v23, %v8976_v48  ;;  %v4137_v1 = vadd.f32 %v4105_v58, %v4006_v37 }
 0x5e2   : >> { %5161 = vmatpush1.bf16.msra.mxu0 %v5160_v30  ;;  %v4139_v6 = vadd.f32 %v4107_v38, %v4008_v15  ;;  %v4236_v13 = vsel %vm4185_vm6, %v8939_v52, 0.0  ;;  %v4238_v11 = vsel %vm4187_vm7, %v8939_v52, 0.0  ;;  %vm4318_vm9 = vcmp.eq.s32.totalorder %v9161_v42, %v8976_v48 }
 0x5e3   : >> { %v4367_v12 = vsel %vm4316_vm8, %v8979_v62, 0.0  ;;  %vm4447_vm10 = vcmp.eq.s32.totalorder %v9130_v23, %v8982_v8  ;;  %vm4449_vm11 = vcmp.eq.s32.totalorder %v9161_v42, %v8982_v8  ;;  %v4268_v34 = vadd.f32 %v4236_v13, %v4137_v1 }
 0x5e4   : >> { %v4270_v19 = vadd.f32 %v4238_v11, %v4139_v6  ;;  %v4369_v27 = vsel %vm4318_vm9, %v8979_v62, 0.0  ;;  %v4498_v26 = vsel %vm4447_vm10, %v8985_v54, 0.0  ;;  %v4500_v35 = vsel %vm4449_vm11, %v8985_v54, 0.0 }
 0x5e5   : >> { %vm4578_vm12 = vcmp.eq.s32.totalorder %v9130_v23, %v8988_v0  ;;  %vm4580_vm13 = vcmp.eq.s32.totalorder %v9161_v42, %v8988_v0  ;;  %vm4709_vm14 = vcmp.eq.s32.totalorder %v9130_v23, %v9024_v53  ;;  %v4399_v30 = vadd.f32 %v4367_v12, %v4268_v34 }
 0x5e6   : >> { %v4401_v37 = vadd.f32 %v4369_v27, %v4270_v19  ;;  %v4629_v15 = vsel %vm4578_vm12, %v9009_v44, 0.0  ;;  %v4631_v58 = vsel %vm4580_vm13, %v9009_v44, 0.0  ;;  %vm4711_vm15 = vcmp.eq.s32.totalorder %v9161_v42, %v9024_v53 }
 0x5e7   : >> { %v4760_v38 = vsel %vm4709_vm14, %v9027_v21, 0.0  ;;  %vm3823_vm0 = vcmp.eq.s32.totalorder %v9130_v23, %v9030_v24  ;;  %vm3825_vm1 = vcmp.eq.s32.totalorder %v9161_v42, %v9030_v24  ;;  %v4530_v1 = vadd.f32 %v4498_v26, %v4399_v30 }
 0x5e8   : >> { %v4532_v6 = vadd.f32 %v4500_v35, %v4401_v37  ;;  %v4762_v13 = vsel %vm4711_vm15, %v9027_v21, 0.0  ;;  %v3874_v11 = vsel %vm3823_vm0, %v9033_v3, 0.0  ;;  %v3876_v12 = vsel %vm3825_vm1, %v9033_v3, 0.0 }
 0x5e9   : >> { %vm3922_vm2 = vcmp.eq.s32.totalorder %v9130_v23, %v9040_v28  ;;  %vm3924_vm3 = vcmp.eq.s32.totalorder %v9161_v42, %v9040_v28  ;;  %vm4053_vm4 = vcmp.eq.s32.totalorder %v9130_v23, %v9070_v22  ;;  %v4661_v34 = vadd.f32 %v4629_v15, %v4530_v1 }
 0x5ea   : >> { %v4663_v19 = vadd.f32 %v4631_v58, %v4532_v6  ;;  %v3973_v27 = vsel %vm3922_vm2, %v9057_v56, 0.0  ;;  %v3975_v26 = vsel %vm3924_vm3, %v9057_v56, 0.0  ;;  %vm4055_vm5 = vcmp.eq.s32.totalorder %v9161_v42, %v9070_v22 }
 0x5eb   : >> { %v4005_v35 = vadd.f32 %v3973_v27, %v3874_v11  ;;  %v4007_v30 = vadd.f32 %v3975_v26, %v3876_v12  ;;  %v4104_v37 = vsel %vm4053_vm4, %v9075_v9, 0.0  ;;  %v4792_v31 = vadd.f32 %v4760_v38, %v4661_v34 }
 0x5ec   : >> { %v4794_v33 = vadd.f32 %v4762_v13, %v4663_v19  ;;  %v4106_v41 = vsel %vm4055_vm5, %v9075_v9, 0.0  ;;  %vm4184_vm6 = vcmp.eq.s32.totalorder %v9130_v23, %v9078_v46  ;;  %vm4186_vm7 = vcmp.eq.s32.totalorder %v9161_v42, %v9078_v46 }
 0x5ed   : >> { %v4136_v15 = vadd.f32 %v4104_v37, %v4005_v35  ;;  %v4138_v58 = vadd.f32 %v4106_v41, %v4007_v30  ;;  %v4235_v1 = vsel %vm4184_vm6, %v9085_v50, 0.0  ;;  %v4237_v11 = vsel %vm4186_vm7, %v9085_v50, 0.0 }
 0x5ee   : >> { %v5162_v6 = vpack.c.bf16 %v4794_v33, %v4792_v31  ;;  %vm4315_vm8 = vcmp.eq.s32.totalorder %v9130_v23, %v9088_v43  ;;  %vm4317_vm9 = vcmp.eq.s32.totalorder %v9161_v42, %v9088_v43  ;;  %vm4446_vm10 = vcmp.eq.s32.totalorder %v9130_v23, %v9114_v63 }
 0x5ef   : >> { %v4267_v38 = vadd.f32 %v4235_v1, %v4136_v15  ;;  %v4269_v13 = vadd.f32 %v4237_v11, %v4138_v58  ;;  %v4366_v12 = vsel %vm4315_vm8, %v9111_v14, 0.0  ;;  %v4368_v41 = vsel %vm4317_vm9, %v9111_v14, 0.0  ;;  %v10196_v58 = vld [vmem:[#allocation18_spill] sm:$0xff] }
 0x5f0   : >> { %5163 = vmatprep.subr.bf16.mxu0 %v5162_v6  ;;  %vm4448_vm11 = vcmp.eq.s32.totalorder %v9161_v42, %v9114_v63  ;;  %vm4577_vm12 = vcmp.eq.s32.totalorder %v9130_v23, %v9124_v25  ;;  %vm4579_vm13 = vcmp.eq.s32.totalorder %v9161_v42, %v9124_v25  ;;  %v4497_v34 = vsel %vm4446_vm10, %v9121_v29, 0.0  ;;  %v10197_v6 = vld [vmem:[#allocation19_spill] sm:$0xff] }
 0x5f1   : >> { %v4398_v33 = vadd.f32 %v4366_v12, %v4267_v38  ;;  %v4400_v31 = vadd.f32 %v4368_v41, %v4269_v13  ;;  %v4499_v19 = vsel %vm4448_vm11, %v9121_v29, 0.0  ;;  %v4628_v27 = vsel %vm4577_vm12, %v9151_v17, 0.0  ;;  %v10198_v38 = vld [vmem:[#allocation20_spill] sm:$0xff]  ;;  %v10199_v13 = vld [vmem:[#allocation21_spill] sm:$0xff] }
 0x5f2   : >> { %v4630_v26 = vsel %vm4579_vm13, %v9151_v17, 0.0  ;;  %vm4708_vm14 = vcmp.eq.s32.totalorder %v9130_v23, %v9154_v18  ;;  %vm4710_vm15 = vcmp.eq.s32.totalorder %v9161_v42, %v9154_v18  ;;  %v9269_v1 = vadd.s32 %v8919_v4, %v10196_v58 }
 0x5f3   : >> { %v4529_v35 = vadd.f32 %v4497_v34, %v4398_v33  ;;  %v4531_v30 = vadd.f32 %v4499_v19, %v4400_v31  ;;  %v4759_v37 = vsel %vm4708_vm14, %v9157_v47, 0.0  ;;  %v4761_v15 = vsel %vm4710_vm15, %v9157_v47, 0.0  ;;  %v10200_v33 = vld [vmem:[#allocation22_spill] sm:$0xff]  ;;  %v10201_v34 = vld [vmem:[#allocation23_spill] sm:$0xff] }
 0x5f4   : >> { %v9273_v11 = vadd.s32 %v8919_v4, %v10197_v6  ;;  %v9277_v23 = vadd.s32 %v8919_v4, %v10198_v38  ;;  %v9281_v42 = vadd.s32 %v8919_v4, %v10199_v13  ;;  %v9285_v31 = vadd.s32 %v8919_v4, %v10200_v33 }
 0x5f5   : >> { %v4660_v12 = vadd.f32 %v4628_v27, %v4529_v35  ;;  %v4662_v41 = vadd.f32 %v4630_v26, %v4531_v30  ;;  %v9289_v19 = vadd.s32 %v8919_v4, %v10201_v34  ;;  %vm3828_vm0 = vcmp.eq.s32.totalorder %v9269_v1, %v8908_v39 }
 0x5f6   : >> { %vm3830_vm1 = vcmp.eq.s32.totalorder %v9273_v11, %v8908_v39  ;;  %vm3927_vm2 = vcmp.eq.s32.totalorder %v9269_v1, %v8914_v10  ;;  %vm3929_vm3 = vcmp.eq.s32.totalorder %v9273_v11, %v8914_v10  ;;  %v3879_v35 = vsel %vm3828_vm0, %v8911_v59, 0.0 }
 0x5f7   : >> { %v4791_v27 = vadd.f32 %v4759_v37, %v4660_v12  ;;  %v4793_v26 = vadd.f32 %v4761_v15, %v4662_v41  ;;  %v3881_v30 = vsel %vm3830_vm1, %v8911_v59, 0.0  ;;  %v3978_v58 = vsel %vm3927_vm2, %v8917_v32, 0.0 }
 0x5f8   : >> { %v3980_v6 = vsel %vm3929_vm3, %v8917_v32, 0.0  ;;  %vm4058_vm4 = vcmp.eq.s32.totalorder %v9269_v1, %v8922_v45  ;;  %vm4060_vm5 = vcmp.eq.s32.totalorder %v9273_v11, %v8922_v45  ;;  %v4010_v13 = vadd.f32 %v3978_v58, %v3879_v35 }
 0x5f9   : >> { %v5164_v38 = vpack.c.bf16 %v4793_v26, %v4791_v27  ;;  %v4012_v33 = vadd.f32 %v3980_v6, %v3881_v30  ;;  %v4109_v37 = vsel %vm4058_vm4, %v8925_v60, 0.0  ;;  %v4111_v15 = vsel %vm4060_vm5, %v8925_v60, 0.0 }
 0x5fa   : >> { %vm4189_vm6 = vcmp.eq.s32.totalorder %v9269_v1, %v8928_v5  ;;  %vm4191_vm7 = vcmp.eq.s32.totalorder %v9273_v11, %v8928_v5  ;;  %vm4320_vm8 = vcmp.eq.s32.totalorder %v9269_v1, %v8976_v48  ;;  %v4141_v12 = vadd.f32 %v4109_v37, %v4010_v13 }
 0x5fb   : >> { %5165 = vmatpush1.bf16.msra.mxu0 %v5164_v38  ;;  %v4143_v41 = vadd.f32 %v4111_v15, %v4012_v33  ;;  %v4240_v34 = vsel %vm4189_vm6, %v8939_v52, 0.0  ;;  %v4242_v27 = vsel %vm4191_vm7, %v8939_v52, 0.0  ;;  %vm4322_vm9 = vcmp.eq.s32.totalorder %v9273_v11, %v8976_v48 }
 0x5fc   : >> { %v4371_v26 = vsel %vm4320_vm8, %v8979_v62, 0.0  ;;  %vm4451_vm10 = vcmp.eq.s32.totalorder %v9269_v1, %v8982_v8  ;;  %vm4453_vm11 = vcmp.eq.s32.totalorder %v9273_v11, %v8982_v8  ;;  %v4272_v35 = vadd.f32 %v4240_v34, %v4141_v12 }
 0x5fd   : >> { %v4274_v30 = vadd.f32 %v4242_v27, %v4143_v41  ;;  %v4373_v58 = vsel %vm4322_vm9, %v8979_v62, 0.0  ;;  %v4502_v6 = vsel %vm4451_vm10, %v8985_v54, 0.0  ;;  %v4504_v38 = vsel %vm4453_vm11, %v8985_v54, 0.0 }
 0x5fe   : >> { %vm4582_vm12 = vcmp.eq.s32.totalorder %v9269_v1, %v8988_v0  ;;  %vm4584_vm13 = vcmp.eq.s32.totalorder %v9273_v11, %v8988_v0  ;;  %vm4713_vm14 = vcmp.eq.s32.totalorder %v9269_v1, %v9024_v53  ;;  %v4403_v13 = vadd.f32 %v4371_v26, %v4272_v35 }
 0x5ff   : >> { %v4405_v33 = vadd.f32 %v4373_v58, %v4274_v30  ;;  %v4633_v37 = vsel %vm4582_vm12, %v9009_v44, 0.0  ;;  %v4635_v15 = vsel %vm4584_vm13, %v9009_v44, 0.0  ;;  %vm4715_vm15 = vcmp.eq.s32.totalorder %v9273_v11, %v9024_v53 }
 0x600   : >> { %v4764_v12 = vsel %vm4713_vm14, %v9027_v21, 0.0  ;;  %vm3827_vm0 = vcmp.eq.s32.totalorder %v9269_v1, %v9030_v24  ;;  %vm3829_vm1 = vcmp.eq.s32.totalorder %v9273_v11, %v9030_v24  ;;  %v4534_v41 = vadd.f32 %v4502_v6, %v4403_v13 }
 0x601   : >> { %v4536_v34 = vadd.f32 %v4504_v38, %v4405_v33  ;;  %v4766_v27 = vsel %vm4715_vm15, %v9027_v21, 0.0  ;;  %v3878_v26 = vsel %vm3827_vm0, %v9033_v3, 0.0  ;;  %v3880_v35 = vsel %vm3829_vm1, %v9033_v3, 0.0 }
 0x602   : >> { %vm3926_vm2 = vcmp.eq.s32.totalorder %v9269_v1, %v9040_v28  ;;  %vm3928_vm3 = vcmp.eq.s32.totalorder %v9273_v11, %v9040_v28  ;;  %vm4057_vm4 = vcmp.eq.s32.totalorder %v9269_v1, %v9070_v22  ;;  %v4665_v30 = vadd.f32 %v4633_v37, %v4534_v41 }
 0x603   : >> { %v4667_v58 = vadd.f32 %v4635_v15, %v4536_v34  ;;  %v3977_v6 = vsel %vm3926_vm2, %v9057_v56, 0.0  ;;  %v3979_v38 = vsel %vm3928_vm3, %v9057_v56, 0.0  ;;  %vm4059_vm5 = vcmp.eq.s32.totalorder %v9273_v11, %v9070_v22 }
 0x604   : >> { %v4009_v13 = vadd.f32 %v3977_v6, %v3878_v26  ;;  %v4011_v33 = vadd.f32 %v3979_v38, %v3880_v35  ;;  %v4108_v49 = vsel %vm4057_vm4, %v9075_v9, 0.0  ;;  %v4796_v51 = vadd.f32 %v4764_v12, %v4665_v30 }
 0x605   : >> { %v4798_v55 = vadd.f32 %v4766_v27, %v4667_v58  ;;  %v4110_v57 = vsel %vm4059_vm5, %v9075_v9, 0.0  ;;  %vm4188_vm6 = vcmp.eq.s32.totalorder %v9269_v1, %v9078_v46  ;;  %vm4190_vm7 = vcmp.eq.s32.totalorder %v9273_v11, %v9078_v46 }
 0x606   : >> { %v4140_v37 = vadd.f32 %v4108_v49, %v4009_v13  ;;  %v4142_v15 = vadd.f32 %v4110_v57, %v4011_v33  ;;  %v4239_v41 = vsel %vm4188_vm6, %v9085_v50, 0.0  ;;  %v4241_v26 = vsel %vm4190_vm7, %v9085_v50, 0.0 }
 0x607   : >> { %v5166_v34 = vpack.c.bf16 %v4798_v55, %v4796_v51  ;;  %vm4319_vm8 = vcmp.eq.s32.totalorder %v9269_v1, %v9088_v43  ;;  %vm4321_vm9 = vcmp.eq.s32.totalorder %v9273_v11, %v9088_v43  ;;  %vm4450_vm10 = vcmp.eq.s32.totalorder %v9269_v1, %v9114_v63 }
 0x608   : >> { %v4271_v12 = vadd.f32 %v4239_v41, %v4140_v37  ;;  %v4273_v27 = vadd.f32 %v4241_v26, %v4142_v15  ;;  %v4370_v35 = vsel %vm4319_vm8, %v9111_v14, 0.0  ;;  %v4372_v49 = vsel %vm4321_vm9, %v9111_v14, 0.0 }
 0x609   : >> { %5167 = vmatprep.subr.bf16.mxu0 %v5166_v34  ;;  %vm4452_vm11 = vcmp.eq.s32.totalorder %v9273_v11, %v9114_v63  ;;  %vm4581_vm12 = vcmp.eq.s32.totalorder %v9269_v1, %v9124_v25  ;;  %vm4583_vm13 = vcmp.eq.s32.totalorder %v9273_v11, %v9124_v25  ;;  %v4501_v51 = vsel %vm4450_vm10, %v9121_v29, 0.0 }
 0x60a   : >> { %v4402_v55 = vadd.f32 %v4370_v35, %v4271_v12  ;;  %v4404_v57 = vadd.f32 %v4372_v49, %v4273_v27  ;;  %v4503_v30 = vsel %vm4452_vm11, %v9121_v29, 0.0  ;;  %v4632_v58 = vsel %vm4581_vm12, %v9151_v17, 0.0 }
 0x60b   : >> { %v4634_v6 = vsel %vm4583_vm13, %v9151_v17, 0.0  ;;  %vm4712_vm14 = vcmp.eq.s32.totalorder %v9269_v1, %v9154_v18  ;;  %vm4714_vm15 = vcmp.eq.s32.totalorder %v9273_v11, %v9154_v18  ;;  %vm3832_vm0 = vcmp.eq.s32.totalorder %v9277_v23, %v8908_v39 }
 0x60c   : >> { %v4533_v38 = vadd.f32 %v4501_v51, %v4402_v55  ;;  %v4535_v13 = vadd.f32 %v4503_v30, %v4404_v57  ;;  %v4763_v33 = vsel %vm4712_vm14, %v9157_v47, 0.0  ;;  %v4765_v37 = vsel %vm4714_vm15, %v9157_v47, 0.0 }
 0x60d   : >> { %vm3834_vm1 = vcmp.eq.s32.totalorder %v9281_v42, %v8908_v39  ;;  %vm3931_vm2 = vcmp.eq.s32.totalorder %v9277_v23, %v8914_v10  ;;  %vm3933_vm3 = vcmp.eq.s32.totalorder %v9281_v42, %v8914_v10  ;;  %v3883_v15 = vsel %vm3832_vm0, %v8911_v59, 0.0 }
 0x60e   : >> { %v4664_v1 = vadd.f32 %v4632_v58, %v4533_v38  ;;  %v4666_v11 = vadd.f32 %v4634_v6, %v4535_v13  ;;  %v3885_v41 = vsel %vm3834_vm1, %v8911_v59, 0.0  ;;  %v3982_v34 = vsel %vm3931_vm2, %v8917_v32, 0.0 }
 0x60f   : >> { %v3984_v26 = vsel %vm3933_vm3, %v8917_v32, 0.0  ;;  %vm4062_vm4 = vcmp.eq.s32.totalorder %v9277_v23, %v8922_v45  ;;  %vm4064_vm5 = vcmp.eq.s32.totalorder %v9281_v42, %v8922_v45  ;;  %v4014_v35 = vadd.f32 %v3982_v34, %v3883_v15 }
 0x610   : >> { %v4795_v12 = vadd.f32 %v4763_v33, %v4664_v1  ;;  %v4797_v27 = vadd.f32 %v4765_v37, %v4666_v11  ;;  %v4016_v49 = vadd.f32 %v3984_v26, %v3885_v41  ;;  %v4113_v55 = vsel %vm4062_vm4, %v8925_v60, 0.0 }
 0x611   : >> { %v4115_v57 = vsel %vm4064_vm5, %v8925_v60, 0.0  ;;  %vm4193_vm6 = vcmp.eq.s32.totalorder %v9277_v23, %v8928_v5  ;;  %vm4195_vm7 = vcmp.eq.s32.totalorder %v9281_v42, %v8928_v5  ;;  %v4145_v30 = vadd.f32 %v4113_v55, %v4014_v35 }
 0x612   : >> { %v5168_v51 = vpack.c.bf16 %v4797_v27, %v4795_v12  ;;  %v4147_v58 = vadd.f32 %v4115_v57, %v4016_v49  ;;  %v4244_v6 = vsel %vm4193_vm6, %v8939_v52, 0.0  ;;  %v4246_v38 = vsel %vm4195_vm7, %v8939_v52, 0.0 }
 0x613   : >> { %vm4324_vm8 = vcmp.eq.s32.totalorder %v9277_v23, %v8976_v48  ;;  %vm4326_vm9 = vcmp.eq.s32.totalorder %v9281_v42, %v8976_v48  ;;  %vm4455_vm10 = vcmp.eq.s32.totalorder %v9277_v23, %v8982_v8  ;;  %v4276_v13 = vadd.f32 %v4244_v6, %v4145_v30 }
 0x614   : >> { %5169 = vmatpush1.bf16.msra.mxu0 %v5168_v51  ;;  %v4278_v33 = vadd.f32 %v4246_v38, %v4147_v58  ;;  %v4375_v37 = vsel %vm4324_vm8, %v8979_v62, 0.0  ;;  %v4377_v1 = vsel %vm4326_vm9, %v8979_v62, 0.0  ;;  %vm4457_vm11 = vcmp.eq.s32.totalorder %v9281_v42, %v8982_v8 }
 0x615   : >> { %v4506_v11 = vsel %vm4455_vm10, %v8985_v54, 0.0  ;;  %vm4586_vm12 = vcmp.eq.s32.totalorder %v9277_v23, %v8988_v0  ;;  %vm4588_vm13 = vcmp.eq.s32.totalorder %v9281_v42, %v8988_v0  ;;  %v4407_v15 = vadd.f32 %v4375_v37, %v4276_v13 }
 0x616   : >> { %v4409_v41 = vadd.f32 %v4377_v1, %v4278_v33  ;;  %v4508_v34 = vsel %vm4457_vm11, %v8985_v54, 0.0  ;;  %v4637_v26 = vsel %vm4586_vm12, %v9009_v44, 0.0  ;;  %v4639_v12 = vsel %vm4588_vm13, %v9009_v44, 0.0 }
 0x617   : >> { %vm4717_vm14 = vcmp.eq.s32.totalorder %v9277_v23, %v9024_v53  ;;  %vm4719_vm15 = vcmp.eq.s32.totalorder %v9281_v42, %v9024_v53  ;;  %vm3831_vm0 = vcmp.eq.s32.totalorder %v9277_v23, %v9030_v24  ;;  %v4538_v27 = vadd.f32 %v4506_v11, %v4407_v15 }
 0x618   : >> { %v4540_v35 = vadd.f32 %v4508_v34, %v4409_v41  ;;  %v4768_v49 = vsel %vm4717_vm14, %v9027_v21, 0.0  ;;  %v4770_v55 = vsel %vm4719_vm15, %v9027_v21, 0.0  ;;  %vm3833_vm1 = vcmp.eq.s32.totalorder %v9281_v42, %v9030_v24 }
 0x619   : >> { %v3882_v57 = vsel %vm3831_vm0, %v9033_v3, 0.0  ;;  %vm3930_vm2 = vcmp.eq.s32.totalorder %v9277_v23, %v9040_v28  ;;  %vm3932_vm3 = vcmp.eq.s32.totalorder %v9281_v42, %v9040_v28  ;;  %v4669_v51 = vadd.f32 %v4637_v26, %v4538_v27 }
 0x61a   : >> { %v4671_v30 = vadd.f32 %v4639_v12, %v4540_v35  ;;  %v3884_v58 = vsel %vm3833_vm1, %v9033_v3, 0.0  ;;  %v3981_v6 = vsel %vm3930_vm2, %v9057_v56, 0.0  ;;  %v3983_v38 = vsel %vm3932_vm3, %v9057_v56, 0.0 }
 0x61b   : >> { %v4013_v13 = vadd.f32 %v3981_v6, %v3882_v57  ;;  %vm4061_vm4 = vcmp.eq.s32.totalorder %v9277_v23, %v9070_v22  ;;  %vm4063_vm5 = vcmp.eq.s32.totalorder %v9281_v42, %v9070_v22  ;;  %v4800_v33 = vadd.f32 %v4768_v49, %v4669_v51 }
 0x61c   : >> { %v4802_v37 = vadd.f32 %v4770_v55, %v4671_v30  ;;  %v4015_v1 = vadd.f32 %v3983_v38, %v3884_v58  ;;  %v4112_v11 = vsel %vm4061_vm4, %v9075_v9, 0.0  ;;  %v4114_v15 = vsel %vm4063_vm5, %v9075_v9, 0.0 }
 0x61d   : >> { %v4144_v41 = vadd.f32 %v4112_v11, %v4013_v13  ;;  %vm4192_vm6 = vcmp.eq.s32.totalorder %v9277_v23, %v9078_v46  ;;  %vm4194_vm7 = vcmp.eq.s32.totalorder %v9281_v42, %v9078_v46  ;;  %vm4323_vm8 = vcmp.eq.s32.totalorder %v9277_v23, %v9088_v43 }
 0x61e   : >> { %v5170_v34 = vpack.c.bf16 %v4802_v37, %v4800_v33  ;;  %v4146_v26 = vadd.f32 %v4114_v15, %v4015_v1  ;;  %v4243_v12 = vsel %vm4192_vm6, %v9085_v50, 0.0  ;;  %v4245_v27 = vsel %vm4194_vm7, %v9085_v50, 0.0 }
 0x61f   : >> { %v4275_v35 = vadd.f32 %v4243_v12, %v4144_v41  ;;  %vm4325_vm9 = vcmp.eq.s32.totalorder %v9281_v42, %v9088_v43  ;;  %vm4454_vm10 = vcmp.eq.s32.totalorder %v9277_v23, %v9114_v63  ;;  %v4374_v55 = vsel %vm4323_vm8, %v9111_v14, 0.0 }
 0x620   : >> { %5171 = vmatprep.subr.bf16.mxu0 %v5170_v34  ;;  %v4277_v49 = vadd.f32 %v4245_v27, %v4146_v26  ;;  %v4376_v57 = vsel %vm4325_vm9, %v9111_v14, 0.0  ;;  %vm4456_vm11 = vcmp.eq.s32.totalorder %v9281_v42, %v9114_v63  ;;  %v4505_v30 = vsel %vm4454_vm10, %v9121_v29, 0.0 }
 0x621   : >> { %v4406_v51 = vadd.f32 %v4374_v55, %v4275_v35  ;;  %v4507_v58 = vsel %vm4456_vm11, %v9121_v29, 0.0  ;;  %vm4585_vm12 = vcmp.eq.s32.totalorder %v9277_v23, %v9124_v25  ;;  %vm4587_vm13 = vcmp.eq.s32.totalorder %v9281_v42, %v9124_v25 }
 0x622   : >> { %v4408_v6 = vadd.f32 %v4376_v57, %v4277_v49  ;;  %v4636_v38 = vsel %vm4585_vm12, %v9151_v17, 0.0  ;;  %vm4716_vm14 = vcmp.eq.s32.totalorder %v9277_v23, %v9154_v18  ;;  %v4638_v33 = vsel %vm4587_vm13, %v9151_v17, 0.0 }
 0x623   : >> { %v4537_v13 = vadd.f32 %v4505_v30, %v4406_v51  ;;  %vm4718_vm15 = vcmp.eq.s32.totalorder %v9281_v42, %v9154_v18  ;;  %v4767_v37 = vsel %vm4716_vm14, %v9157_v47, 0.0  ;;  %vm3836_vm0 = vcmp.eq.s32.totalorder %v9285_v31, %v8908_v39 }
 0x624   : >> { %v4539_v1 = vadd.f32 %v4507_v58, %v4408_v6  ;;  %v4769_v11 = vsel %vm4718_vm15, %v9157_v47, 0.0  ;;  %vm3838_vm1 = vcmp.eq.s32.totalorder %v9289_v19, %v8908_v39  ;;  %v3887_v23 = vsel %vm3836_vm0, %v8911_v59, 0.0 }
 0x625   : >> { %v4668_v15 = vadd.f32 %v4636_v38, %v4537_v13  ;;  %v3889_v41 = vsel %vm3838_vm1, %v8911_v59, 0.0  ;;  %vm3935_vm2 = vcmp.eq.s32.totalorder %v9285_v31, %v8914_v10  ;;  %vm3937_vm3 = vcmp.eq.s32.totalorder %v9289_v19, %v8914_v10 }
 0x626   : >> { %v4670_v42 = vadd.f32 %v4638_v33, %v4539_v1  ;;  %v3986_v34 = vsel %vm3935_vm2, %v8917_v32, 0.0  ;;  %vm4066_vm4 = vcmp.eq.s32.totalorder %v9285_v31, %v8922_v45  ;;  %v3988_v12 = vsel %vm3937_vm3, %v8917_v32, 0.0 }
 0x627   : >> { %v4799_v26 = vadd.f32 %v4767_v37, %v4668_v15  ;;  %v4018_v27 = vadd.f32 %v3986_v34, %v3887_v23  ;;  %vm4068_vm5 = vcmp.eq.s32.totalorder %v9289_v19, %v8922_v45  ;;  %v4020_v49 = vadd.f32 %v3988_v12, %v3889_v41 }
 0x628   : >> { %v4801_v35 = vadd.f32 %v4769_v11, %v4670_v42  ;;  %v4117_v55 = vsel %vm4066_vm4, %v8925_v60, 0.0  ;;  %v4119_v57 = vsel %vm4068_vm5, %v8925_v60, 0.0  ;;  %vm4197_vm6 = vcmp.eq.s32.totalorder %v9285_v31, %v8928_v5 }
 0x629   : >> { %v4149_v51 = vadd.f32 %v4117_v55, %v4018_v27  ;;  %vm4199_vm7 = vcmp.eq.s32.totalorder %v9289_v19, %v8928_v5  ;;  %vm4328_vm8 = vcmp.eq.s32.totalorder %v9285_v31, %v8976_v48  ;;  %v4151_v58 = vadd.f32 %v4119_v57, %v4020_v49 }
 0x62a   : >> { %v5172_v30 = vpack.c.bf16 %v4801_v35, %v4799_v26  ;;  %v4248_v6 = vsel %vm4197_vm6, %v8939_v52, 0.0  ;;  %v4250_v38 = vsel %vm4199_vm7, %v8939_v52, 0.0  ;;  %vm4330_vm9 = vcmp.eq.s32.totalorder %v9289_v19, %v8976_v48 }
 0x62b   : >> { %v4280_v13 = vadd.f32 %v4248_v6, %v4149_v51  ;;  %v4379_v33 = vsel %vm4328_vm8, %v8979_v62, 0.0  ;;  %vm4459_vm10 = vcmp.eq.s32.totalorder %v9285_v31, %v8982_v8  ;;  %v4282_v37 = vadd.f32 %v4250_v38, %v4151_v58 }
 0x62c   : >> { %5173 = vmatpush1.bf16.msra.mxu0 %v5172_v30  ;;  %v4381_v1 = vsel %vm4330_vm9, %v8979_v62, 0.0  ;;  %vm4461_vm11 = vcmp.eq.s32.totalorder %v9289_v19, %v8982_v8  ;;  %v4510_v11 = vsel %vm4459_vm10, %v8985_v54, 0.0  ;;  %vm4590_vm12 = vcmp.eq.s32.totalorder %v9285_v31, %v8988_v0 }
 0x62d   : >> { %v4411_v15 = vadd.f32 %v4379_v33, %v4280_v13  ;;  %v4512_v23 = vsel %vm4461_vm11, %v8985_v54, 0.0  ;;  %vm4592_vm13 = vcmp.eq.s32.totalorder %v9289_v19, %v8988_v0  ;;  %v4413_v41 = vadd.f32 %v4381_v1, %v4282_v37 }
 0x62e   : >> { %v4641_v42 = vsel %vm4590_vm12, %v9009_v44, 0.0  ;;  %v4643_v34 = vsel %vm4592_vm13, %v9009_v44, 0.0  ;;  %vm4721_vm14 = vcmp.eq.s32.totalorder %v9285_v31, %v9024_v53  ;;  %vm4723_vm15 = vcmp.eq.s32.totalorder %v9289_v19, %v9024_v53 }
 0x62f   : >> { %v4542_v26 = vadd.f32 %v4510_v11, %v4411_v15  ;;  %v4772_v12 = vsel %vm4721_vm14, %v9027_v21, 0.0  ;;  %vm3835_vm0 = vcmp.eq.s32.totalorder %v9285_v31, %v9030_v24  ;;  %v4544_v27 = vadd.f32 %v4512_v23, %v4413_v41 }
 0x630   : >> { %v4774_v35 = vsel %vm4723_vm15, %v9027_v21, 0.0  ;;  %vm3837_vm1 = vcmp.eq.s32.totalorder %v9289_v19, %v9030_v24  ;;  %v3886_v49 = vsel %vm3835_vm0, %v9033_v3, 0.0  ;;  %vm3934_vm2 = vcmp.eq.s32.totalorder %v9285_v31, %v9040_v28 }
 0x631   : >> { %v4673_v55 = vadd.f32 %v4641_v42, %v4542_v26  ;;  %v3888_v57 = vsel %vm3837_vm1, %v9033_v3, 0.0  ;;  %vm3936_vm3 = vcmp.eq.s32.totalorder %v9289_v19, %v9040_v28  ;;  %v4675_v51 = vadd.f32 %v4643_v34, %v4544_v27 }
 0x632   : >> { %v3985_v30 = vsel %vm3934_vm2, %v9057_v56, 0.0  ;;  %v3987_v58 = vsel %vm3936_vm3, %v9057_v56, 0.0  ;;  %vm4065_vm4 = vcmp.eq.s32.totalorder %v9285_v31, %v9070_v22  ;;  %vm4067_vm5 = vcmp.eq.s32.totalorder %v9289_v19, %v9070_v22 }
 0x633   : >> { %v4804_v6 = vadd.f32 %v4772_v12, %v4673_v55  ;;  %v4017_v38 = vadd.f32 %v3985_v30, %v3886_v49  ;;  %v4019_v13 = vadd.f32 %v3987_v58, %v3888_v57  ;;  %v4806_v33 = vadd.f32 %v4774_v35, %v4675_v51 }
 0x634   : >> { %v4116_v37 = vsel %vm4065_vm4, %v9075_v9, 0.0  ;;  %v4118_v1 = vsel %vm4067_vm5, %v9075_v9, 0.0  ;;  %vm4196_vm6 = vcmp.eq.s32.totalorder %v9285_v31, %v9078_v46  ;;  %vm4198_vm7 = vcmp.eq.s32.totalorder %v9289_v19, %v9078_v46 }
 0x635   : >> { %v4148_v11 = vadd.f32 %v4116_v37, %v4017_v38  ;;  %v4150_v15 = vadd.f32 %v4118_v1, %v4019_v13  ;;  %v4247_v23 = vsel %vm4196_vm6, %v9085_v50, 0.0  ;;  %v5174_v41 = vpack.c.bf16 %v4806_v33, %v4804_v6  ;;  %v10202_v33 = vld [vmem:[#allocation40_spill] sm:$0xff]  ;;  %v10203_v1 = vld [vmem:[#allocation41_spill] sm:$0xff] }
 0x636   : >> { %v4249_v42 = vsel %vm4198_vm7, %v9085_v50, 0.0  ;;  %vm4327_vm8 = vcmp.eq.s32.totalorder %v9285_v31, %v9088_v43  ;;  %vm4329_vm9 = vcmp.eq.s32.totalorder %v9289_v19, %v9088_v43  ;;  %vm4458_vm10 = vcmp.eq.s32.totalorder %v9285_v31, %v9114_v63 }
 0x637   : >> { %v4279_v34 = vadd.f32 %v4247_v23, %v4148_v11  ;;  %v4281_v26 = vadd.f32 %v4249_v42, %v4150_v15  ;;  %v4378_v12 = vsel %vm4327_vm8, %v9111_v14, 0.0  ;;  %v4380_v27 = vsel %vm4329_vm9, %v9111_v14, 0.0  ;;  %5175 = vmatprep.subr.bf16.mxu0 %v5174_v41 }
 0x638   : >> { %vm4460_vm11 = vcmp.eq.s32.totalorder %v9289_v19, %v9114_v63  ;;  %vm4589_vm12 = vcmp.eq.s32.totalorder %v9285_v31, %v9124_v25  ;;  %vm4591_vm13 = vcmp.eq.s32.totalorder %v9289_v19, %v9124_v25  ;;  %v4509_v55 = vsel %vm4458_vm10, %v9121_v29, 0.0 }
 0x639   : >> { %v4410_v35 = vadd.f32 %v4378_v12, %v4279_v34  ;;  %v4412_v49 = vadd.f32 %v4380_v27, %v4281_v26  ;;  %v4511_v57 = vsel %vm4460_vm11, %v9121_v29, 0.0  ;;  %v4640_v51 = vsel %vm4589_vm12, %v9151_v17, 0.0 }
 0x63a   : >> { %v4642_v30 = vsel %vm4591_vm13, %v9151_v17, 0.0  ;;  %vm4720_vm14 = vcmp.eq.s32.totalorder %v9285_v31, %v9154_v18  ;;  %vm4722_vm15 = vcmp.eq.s32.totalorder %v9289_v19, %v9154_v18  ;;  %v9581_v37 = vadd.s32 %v8919_v4, %v10202_v33 }
 0x63b   : >> { %v4541_v58 = vadd.f32 %v4509_v55, %v4410_v35  ;;  %v4543_v6 = vadd.f32 %v4511_v57, %v4412_v49  ;;  %v4771_v38 = vsel %vm4720_vm14, %v9157_v47, 0.0  ;;  %v4773_v13 = vsel %vm4722_vm15, %v9157_v47, 0.0 }
 0x63c   : >> { %v9585_v11 = vadd.s32 %v8919_v4, %v10203_v1  ;;  %v9589_v31 = vadd.s32 %v8919_v4, %v6534_v7  ;;  %v9593_v19 = vadd.s32 %v8919_v4, %v6537_v36  ;;  %v9597_v41 = vadd.s32 %v8919_v4, %v6540_v2 }
 0x63d   : >> { %v4672_v15 = vadd.f32 %v4640_v51, %v4541_v58  ;;  %v4674_v23 = vadd.f32 %v4642_v30, %v4543_v6  ;;  %v9601_v42 = vadd.s32 %v8919_v4, %v6543_v16  ;;  %vm3840_vm0 = vcmp.eq.s32.totalorder %v9581_v37, %v8908_v39 }
 0x63e   : >> { %vm3842_vm1 = vcmp.eq.s32.totalorder %v9585_v11, %v8908_v39  ;;  %vm3939_vm2 = vcmp.eq.s32.totalorder %v9581_v37, %v8914_v10  ;;  %vm3941_vm3 = vcmp.eq.s32.totalorder %v9585_v11, %v8914_v10  ;;  %v3891_v12 = vsel %vm3840_vm0, %v8911_v59, 0.0 }
 0x63f   : >> { %v4803_v34 = vadd.f32 %v4771_v38, %v4672_v15  ;;  %v4805_v26 = vadd.f32 %v4773_v13, %v4674_v23  ;;  %v3893_v27 = vsel %vm3842_vm1, %v8911_v59, 0.0  ;;  %v3990_v4 = vsel %vm3939_vm2, %v8917_v32, 0.0 }
 0x640   : >> { %v3992_v35 = vsel %vm3941_vm3, %v8917_v32, 0.0  ;;  %vm4070_vm4 = vcmp.eq.s32.totalorder %v9581_v37, %v8922_v45  ;;  %vm4072_vm5 = vcmp.eq.s32.totalorder %v9585_v11, %v8922_v45  ;;  %v4022_v55 = vadd.f32 %v3990_v4, %v3891_v12 }
 0x641   : >> { %v5176_v49 = vpack.c.bf16 %v4805_v26, %v4803_v34  ;;  %v4024_v57 = vadd.f32 %v3992_v35, %v3893_v27  ;;  %v4121_v51 = vsel %vm4070_vm4, %v8925_v60, 0.0  ;;  %v4123_v30 = vsel %vm4072_vm5, %v8925_v60, 0.0 }
 0x642   : >> { %vm4201_vm6 = vcmp.eq.s32.totalorder %v9581_v37, %v8928_v5  ;;  %vm4203_vm7 = vcmp.eq.s32.totalorder %v9585_v11, %v8928_v5  ;;  %vm4332_vm8 = vcmp.eq.s32.totalorder %v9581_v37, %v8976_v48  ;;  %v4153_v58 = vadd.f32 %v4121_v51, %v4022_v55 }
 0x643   : >> { %5177 = vmatpush1.bf16.msra.mxu0 %v5176_v49  ;;  %v4155_v6 = vadd.f32 %v4123_v30, %v4024_v57  ;;  %v4252_v38 = vsel %vm4201_vm6, %v8939_v52, 0.0  ;;  %v4254_v13 = vsel %vm4203_vm7, %v8939_v52, 0.0  ;;  %vm4334_vm9 = vcmp.eq.s32.totalorder %v9585_v11, %v8976_v48 }
 0x644   : >> { %v4383_v33 = vsel %vm4332_vm8, %v8979_v62, 0.0  ;;  %vm4463_vm10 = vcmp.eq.s32.totalorder %v9581_v37, %v8982_v8  ;;  %vm4465_vm11 = vcmp.eq.s32.totalorder %v9585_v11, %v8982_v8  ;;  %v4284_v1 = vadd.f32 %v4252_v38, %v4153_v58 }
 0x645   : >> { %v4286_v15 = vadd.f32 %v4254_v13, %v4155_v6  ;;  %v4385_v23 = vsel %vm4334_vm9, %v8979_v62, 0.0  ;;  %v4514_v34 = vsel %vm4463_vm10, %v8985_v54, 0.0  ;;  %v4516_v26 = vsel %vm4465_vm11, %v8985_v54, 0.0 }
 0x646   : >> { %vm4594_vm12 = vcmp.eq.s32.totalorder %v9581_v37, %v8988_v0  ;;  %vm4596_vm13 = vcmp.eq.s32.totalorder %v9585_v11, %v8988_v0  ;;  %vm4725_vm14 = vcmp.eq.s32.totalorder %v9581_v37, %v9024_v53  ;;  %v4415_v12 = vadd.f32 %v4383_v33, %v4284_v1 }
 0x647   : >> { %v4417_v27 = vadd.f32 %v4385_v23, %v4286_v15  ;;  %v4645_v4 = vsel %vm4594_vm12, %v9009_v44, 0.0  ;;  %v4647_v35 = vsel %vm4596_vm13, %v9009_v44, 0.0  ;;  %vm4727_vm15 = vcmp.eq.s32.totalorder %v9585_v11, %v9024_v53 }
 0x648   : >> { %v4776_v49 = vsel %vm4725_vm14, %v9027_v21, 0.0  ;;  %vm3839_vm0 = vcmp.eq.s32.totalorder %v9581_v37, %v9030_v24  ;;  %vm3841_vm1 = vcmp.eq.s32.totalorder %v9585_v11, %v9030_v24  ;;  %v4546_v55 = vadd.f32 %v4514_v34, %v4415_v12 }
 0x649   : >> { %v4548_v57 = vadd.f32 %v4516_v26, %v4417_v27  ;;  %v4778_v51 = vsel %vm4727_vm15, %v9027_v21, 0.0  ;;  %v3890_v30 = vsel %vm3839_vm0, %v9033_v3, 0.0  ;;  %v3892_v58 = vsel %vm3841_vm1, %v9033_v3, 0.0 }
 0x64a   : >> { %vm3938_vm2 = vcmp.eq.s32.totalorder %v9581_v37, %v9040_v28  ;;  %vm3940_vm3 = vcmp.eq.s32.totalorder %v9585_v11, %v9040_v28  ;;  %vm4069_vm4 = vcmp.eq.s32.totalorder %v9581_v37, %v9070_v22  ;;  %v4677_v6 = vadd.f32 %v4645_v4, %v4546_v55 }
 0x64b   : >> { %v4679_v38 = vadd.f32 %v4647_v35, %v4548_v57  ;;  %v3989_v13 = vsel %vm3938_vm2, %v9057_v56, 0.0  ;;  %v3991_v33 = vsel %vm3940_vm3, %v9057_v56, 0.0  ;;  %vm4071_vm5 = vcmp.eq.s32.totalorder %v9585_v11, %v9070_v22 }
 0x64c   : >> { %v4021_v1 = vadd.f32 %v3989_v13, %v3890_v30  ;;  %v4023_v15 = vadd.f32 %v3991_v33, %v3892_v58  ;;  %v4120_v23 = vsel %vm4069_vm4, %v9075_v9, 0.0  ;;  %v4808_v34 = vadd.f32 %v4776_v49, %v4677_v6 }
 0x64d   : >> { %v4810_v26 = vadd.f32 %v4778_v51, %v4679_v38  ;;  %v4122_v12 = vsel %vm4071_vm5, %v9075_v9, 0.0  ;;  %vm4200_vm6 = vcmp.eq.s32.totalorder %v9581_v37, %v9078_v46  ;;  %vm4202_vm7 = vcmp.eq.s32.totalorder %v9585_v11, %v9078_v46 }
 0x64e   : >> { %v4152_v27 = vadd.f32 %v4120_v23, %v4021_v1  ;;  %v4154_v4 = vadd.f32 %v4122_v12, %v4023_v15  ;;  %v4251_v35 = vsel %vm4200_vm6, %v9085_v50, 0.0  ;;  %v4253_v57 = vsel %vm4202_vm7, %v9085_v50, 0.0 }
 0x64f   : >> { %v5178_v55 = vpack.c.bf16 %v4810_v26, %v4808_v34  ;;  %vm4331_vm8 = vcmp.eq.s32.totalorder %v9581_v37, %v9088_v43  ;;  %vm4333_vm9 = vcmp.eq.s32.totalorder %v9585_v11, %v9088_v43  ;;  %vm4462_vm10 = vcmp.eq.s32.totalorder %v9581_v37, %v9114_v63 }
 0x650   : >> { %v4283_v49 = vadd.f32 %v4251_v35, %v4152_v27  ;;  %v4285_v51 = vadd.f32 %v4253_v57, %v4154_v4  ;;  %v4382_v30 = vsel %vm4331_vm8, %v9111_v14, 0.0  ;;  %v4384_v58 = vsel %vm4333_vm9, %v9111_v14, 0.0 }
 0x651   : >> { %5179 = vmatprep.subr.bf16.mxu0 %v5178_v55  ;;  %vm4464_vm11 = vcmp.eq.s32.totalorder %v9585_v11, %v9114_v63  ;;  %vm4593_vm12 = vcmp.eq.s32.totalorder %v9581_v37, %v9124_v25  ;;  %vm4595_vm13 = vcmp.eq.s32.totalorder %v9585_v11, %v9124_v25  ;;  %v4513_v13 = vsel %vm4462_vm10, %v9121_v29, 0.0 }
 0x652   : >> { %v4414_v6 = vadd.f32 %v4382_v30, %v4283_v49  ;;  %v4416_v38 = vadd.f32 %v4384_v58, %v4285_v51  ;;  %v4515_v33 = vsel %vm4464_vm11, %v9121_v29, 0.0  ;;  %v4644_v1 = vsel %vm4593_vm12, %v9151_v17, 0.0 }
 0x653   : >> { %v4646_v15 = vsel %vm4595_vm13, %v9151_v17, 0.0  ;;  %vm4724_vm14 = vcmp.eq.s32.totalorder %v9581_v37, %v9154_v18  ;;  %vm4726_vm15 = vcmp.eq.s32.totalorder %v9585_v11, %v9154_v18  ;;  %vm3844_vm0 = vcmp.eq.s32.totalorder %v9589_v31, %v8908_v39 }
 0x654   : >> { %v4545_v23 = vadd.f32 %v4513_v13, %v4414_v6  ;;  %v4547_v34 = vadd.f32 %v4515_v33, %v4416_v38  ;;  %v4775_v26 = vsel %vm4724_vm14, %v9157_v47, 0.0  ;;  %v4777_v12 = vsel %vm4726_vm15, %v9157_v47, 0.0 }
 0x655   : >> { %vm3846_vm1 = vcmp.eq.s32.totalorder %v9593_v19, %v8908_v39  ;;  %vm3943_vm2 = vcmp.eq.s32.totalorder %v9589_v31, %v8914_v10  ;;  %vm3945_vm3 = vcmp.eq.s32.totalorder %v9593_v19, %v8914_v10  ;;  %v3895_v27 = vsel %vm3844_vm0, %v8911_v59, 0.0 }
 0x656   : >> { %v4676_v37 = vadd.f32 %v4644_v1, %v4545_v23  ;;  %v4678_v11 = vadd.f32 %v4646_v15, %v4547_v34  ;;  %v3897_v4 = vsel %vm3846_vm1, %v8911_v59, 0.0  ;;  %v3994_v35 = vsel %vm3943_vm2, %v8917_v32, 0.0 }
 0x657   : >> { %v3996_v55 = vsel %vm3945_vm3, %v8917_v32, 0.0  ;;  %vm4074_vm4 = vcmp.eq.s32.totalorder %v9589_v31, %v8922_v45  ;;  %vm4076_vm5 = vcmp.eq.s32.totalorder %v9593_v19, %v8922_v45  ;;  %v4026_v51 = vadd.f32 %v3994_v35, %v3895_v27 }
 0x658   : >> { %v4807_v57 = vadd.f32 %v4775_v26, %v4676_v37  ;;  %v4809_v49 = vadd.f32 %v4777_v12, %v4678_v11  ;;  %v4028_v30 = vadd.f32 %v3996_v55, %v3897_v4  ;;  %v4125_v58 = vsel %vm4074_vm4, %v8925_v60, 0.0 }
 0x659   : >> { %v4127_v6 = vsel %vm4076_vm5, %v8925_v60, 0.0  ;;  %vm4205_vm6 = vcmp.eq.s32.totalorder %v9589_v31, %v8928_v5  ;;  %vm4207_vm7 = vcmp.eq.s32.totalorder %v9593_v19, %v8928_v5  ;;  %v4157_v13 = vadd.f32 %v4125_v58, %v4026_v51 }
 0x65a   : >> { %v5180_v38 = vpack.c.bf16 %v4809_v49, %v4807_v57  ;;  %v4159_v33 = vadd.f32 %v4127_v6, %v4028_v30  ;;  %v4256_v1 = vsel %vm4205_vm6, %v8939_v52, 0.0  ;;  %v4258_v15 = vsel %vm4207_vm7, %v8939_v52, 0.0 }
 0x65b   : >> { %vm4336_vm8 = vcmp.eq.s32.totalorder %v9589_v31, %v8976_v48  ;;  %vm4338_vm9 = vcmp.eq.s32.totalorder %v9593_v19, %v8976_v48  ;;  %vm4467_vm10 = vcmp.eq.s32.totalorder %v9589_v31, %v8982_v8  ;;  %v4288_v23 = vadd.f32 %v4256_v1, %v4157_v13 }
 0x65c   : >> { %5181 = vmatpush1.bf16.msra.mxu0 %v5180_v38  ;;  %v4290_v34 = vadd.f32 %v4258_v15, %v4159_v33  ;;  %v4387_v26 = vsel %vm4336_vm8, %v8979_v62, 0.0  ;;  %v4389_v12 = vsel %vm4338_vm9, %v8979_v62, 0.0  ;;  %vm4469_vm11 = vcmp.eq.s32.totalorder %v9593_v19, %v8982_v8 }
 0x65d   : >> { %v4518_v37 = vsel %vm4467_vm10, %v8985_v54, 0.0  ;;  %vm4598_vm12 = vcmp.eq.s32.totalorder %v9589_v31, %v8988_v0  ;;  %vm4600_vm13 = vcmp.eq.s32.totalorder %v9593_v19, %v8988_v0  ;;  %v4419_v11 = vadd.f32 %v4387_v26, %v4288_v23 }
 0x65e   : >> { %v4421_v27 = vadd.f32 %v4389_v12, %v4290_v34  ;;  %v4520_v4 = vsel %vm4469_vm11, %v8985_v54, 0.0  ;;  %v4649_v35 = vsel %vm4598_vm12, %v9009_v44, 0.0  ;;  %v4651_v55 = vsel %vm4600_vm13, %v9009_v44, 0.0 }
 0x65f   : >> { %vm4729_vm14 = vcmp.eq.s32.totalorder %v9589_v31, %v9024_v53  ;;  %vm4731_vm15 = vcmp.eq.s32.totalorder %v9593_v19, %v9024_v53  ;;  %vm3843_vm0 = vcmp.eq.s32.totalorder %v9589_v31, %v9030_v24  ;;  %v4550_v57 = vadd.f32 %v4518_v37, %v4419_v11 }
 0x660   : >> { %v4552_v49 = vadd.f32 %v4520_v4, %v4421_v27  ;;  %v4780_v51 = vsel %vm4729_vm14, %v9027_v21, 0.0  ;;  %v4782_v30 = vsel %vm4731_vm15, %v9027_v21, 0.0  ;;  %vm3845_vm1 = vcmp.eq.s32.totalorder %v9593_v19, %v9030_v24 }
 0x661   : >> { %v3894_v58 = vsel %vm3843_vm0, %v9033_v3, 0.0  ;;  %vm3942_vm2 = vcmp.eq.s32.totalorder %v9589_v31, %v9040_v28  ;;  %vm3944_vm3 = vcmp.eq.s32.totalorder %v9593_v19, %v9040_v28  ;;  %v4681_v6 = vadd.f32 %v4649_v35, %v4550_v57 }
 0x662   : >> { %v4683_v38 = vadd.f32 %v4651_v55, %v4552_v49  ;;  %v3896_v13 = vsel %vm3845_vm1, %v9033_v3, 0.0  ;;  %v3993_v33 = vsel %vm3942_vm2, %v9057_v56, 0.0  ;;  %v3995_v1 = vsel %vm3944_vm3, %v9057_v56, 0.0 }
 0x663   : >> { %v4025_v15 = vadd.f32 %v3993_v33, %v3894_v58  ;;  %vm4073_vm4 = vcmp.eq.s32.totalorder %v9589_v31, %v9070_v22  ;;  %vm4075_vm5 = vcmp.eq.s32.totalorder %v9593_v19, %v9070_v22  ;;  %v4812_v23 = vadd.f32 %v4780_v51, %v4681_v6 }
 0x664   : >> { %v4814_v34 = vadd.f32 %v4782_v30, %v4683_v38  ;;  %v4027_v26 = vadd.f32 %v3995_v1, %v3896_v13  ;;  %v4124_v12 = vsel %vm4073_vm4, %v9075_v9, 0.0  ;;  %v4126_v37 = vsel %vm4075_vm5, %v9075_v9, 0.0 }
 0x665   : >> { %v4156_v11 = vadd.f32 %v4124_v12, %v4025_v15  ;;  %vm4204_vm6 = vcmp.eq.s32.totalorder %v9589_v31, %v9078_v46  ;;  %vm4206_vm7 = vcmp.eq.s32.totalorder %v9593_v19, %v9078_v46  ;;  %vm4335_vm8 = vcmp.eq.s32.totalorder %v9589_v31, %v9088_v43 }
 0x666   : >> { %v5182_v27 = vpack.c.bf16 %v4814_v34, %v4812_v23  ;;  %v4158_v4 = vadd.f32 %v4126_v37, %v4027_v26  ;;  %v4255_v35 = vsel %vm4204_vm6, %v9085_v50, 0.0  ;;  %v4257_v55 = vsel %vm4206_vm7, %v9085_v50, 0.0 }
 0x667   : >> { %v4287_v57 = vadd.f32 %v4255_v35, %v4156_v11  ;;  %vm4337_vm9 = vcmp.eq.s32.totalorder %v9593_v19, %v9088_v43  ;;  %vm4466_vm10 = vcmp.eq.s32.totalorder %v9589_v31, %v9114_v63  ;;  %v4386_v51 = vsel %vm4335_vm8, %v9111_v14, 0.0 }
 0x668   : >> { %5183 = vmatprep.subr.bf16.mxu0 %v5182_v27  ;;  %v4289_v49 = vadd.f32 %v4257_v55, %v4158_v4  ;;  %v4388_v30 = vsel %vm4337_vm9, %v9111_v14, 0.0  ;;  %vm4468_vm11 = vcmp.eq.s32.totalorder %v9593_v19, %v9114_v63  ;;  %v4517_v6 = vsel %vm4466_vm10, %v9121_v29, 0.0 }
 0x669   : >> { %v4418_v58 = vadd.f32 %v4386_v51, %v4287_v57  ;;  %v4519_v38 = vsel %vm4468_vm11, %v9121_v29, 0.0  ;;  %vm4597_vm12 = vcmp.eq.s32.totalorder %v9589_v31, %v9124_v25  ;;  %vm4599_vm13 = vcmp.eq.s32.totalorder %v9593_v19, %v9124_v25 }
 0x66a   : >> { %v4420_v13 = vadd.f32 %v4388_v30, %v4289_v49  ;;  %v4648_v33 = vsel %vm4597_vm12, %v9151_v17, 0.0  ;;  %vm4728_vm14 = vcmp.eq.s32.totalorder %v9589_v31, %v9154_v18  ;;  %v4650_v15 = vsel %vm4599_vm13, %v9151_v17, 0.0 }
 0x66b   : >> { %v4549_v1 = vadd.f32 %v4517_v6, %v4418_v58  ;;  %vm4730_vm15 = vcmp.eq.s32.totalorder %v9593_v19, %v9154_v18  ;;  %v4779_v23 = vsel %vm4728_vm14, %v9157_v47, 0.0  ;;  %vm3848_vm0 = vcmp.eq.s32.totalorder %v9597_v41, %v8908_v39 }
 0x66c   : >> { %v4551_v34 = vadd.f32 %v4519_v38, %v4420_v13  ;;  %v4781_v26 = vsel %vm4730_vm15, %v9157_v47, 0.0  ;;  %vm3850_vm1 = vcmp.eq.s32.totalorder %v9601_v42, %v8908_v39  ;;  %v3899_v31 = vsel %vm3848_vm0, %v8911_v59, 0.0 }
 0x66d   : >> { %v4680_v12 = vadd.f32 %v4648_v33, %v4549_v1  ;;  %v3901_v37 = vsel %vm3850_vm1, %v8911_v59, 0.0  ;;  %vm3947_vm2 = vcmp.eq.s32.totalorder %v9597_v41, %v8914_v10  ;;  %vm3949_vm3 = vcmp.eq.s32.totalorder %v9601_v42, %v8914_v10 }
 0x66e   : >> { %v4682_v19 = vadd.f32 %v4650_v15, %v4551_v34  ;;  %v3998_v11 = vsel %vm3947_vm2, %v8917_v32, 0.0  ;;  %vm4078_vm4 = vcmp.eq.s32.totalorder %v9597_v41, %v8922_v45  ;;  %v4000_v39 = vsel %vm3949_vm3, %v8917_v32, 0.0 }
 0x66f   : >> { %v4811_v27 = vadd.f32 %v4779_v23, %v4680_v12  ;;  %v4030_v4 = vadd.f32 %v3998_v11, %v3899_v31  ;;  %vm4080_vm5 = vcmp.eq.s32.totalorder %v9601_v42, %v8922_v45  ;;  %v4032_v35 = vadd.f32 %v4000_v39, %v3901_v37 }
 0x670   : >> { %v4813_v59 = vadd.f32 %v4781_v26, %v4682_v19  ;;  %v4129_v55 = vsel %vm4078_vm4, %v8925_v60, 0.0  ;;  %v4131_v57 = vsel %vm4080_vm5, %v8925_v60, 0.0  ;;  %vm4209_vm6 = vcmp.eq.s32.totalorder %v9597_v41, %v8928_v5 }
 0x671   : >> { %v4161_v49 = vadd.f32 %v4129_v55, %v4030_v4  ;;  %vm4211_vm7 = vcmp.eq.s32.totalorder %v9601_v42, %v8928_v5  ;;  %vm4340_vm8 = vcmp.eq.s32.totalorder %v9597_v41, %v8976_v48  ;;  %v4163_v32 = vadd.f32 %v4131_v57, %v4032_v35 }
 0x672   : >> { %v5184_v10 = vpack.c.bf16 %v4813_v59, %v4811_v27  ;;  %v4260_v45 = vsel %vm4209_vm6, %v8939_v52, 0.0  ;;  %v4262_v51 = vsel %vm4211_vm7, %v8939_v52, 0.0  ;;  %vm4342_vm9 = vcmp.eq.s32.totalorder %v9601_v42, %v8976_v48 }
 0x673   : >> { %v4292_v30 = vadd.f32 %v4260_v45, %v4161_v49  ;;  %v4391_v60 = vsel %vm4340_vm8, %v8979_v62, 0.0  ;;  %vm4471_vm10 = vcmp.eq.s32.totalorder %v9597_v41, %v8982_v8  ;;  %v4294_v5 = vadd.f32 %v4262_v51, %v4163_v32 }
 0x674   : >> { %5185 = vmatpush1.bf16.msra.mxu0 %v5184_v10  ;;  %v4393_v58 = vsel %vm4342_vm9, %v8979_v62, 0.0  ;;  %vm4473_vm11 = vcmp.eq.s32.totalorder %v9601_v42, %v8982_v8  ;;  %v4522_v6 = vsel %vm4471_vm10, %v8985_v54, 0.0  ;;  %vm4602_vm12 = vcmp.eq.s32.totalorder %v9597_v41, %v8988_v0 }
 0x675   : >> { %v4423_v38 = vadd.f32 %v4391_v60, %v4292_v30  ;;  %v4524_v52 = vsel %vm4473_vm11, %v8985_v54, 0.0  ;;  %vm4604_vm13 = vcmp.eq.s32.totalorder %v9601_v42, %v8988_v0  ;;  %v4425_v48 = vadd.f32 %v4393_v58, %v4294_v5 }
 0x676   : >> { %v4653_v13 = vsel %vm4602_vm12, %v9009_v44, 0.0  ;;  %v4655_v33 = vsel %vm4604_vm13, %v9009_v44, 0.0  ;;  %vm4733_vm14 = vcmp.eq.s32.totalorder %v9597_v41, %v9024_v53  ;;  %vm4735_vm15 = vcmp.eq.s32.totalorder %v9601_v42, %v9024_v53 }
 0x677   : >> { %v4554_v62 = vadd.f32 %v4522_v6, %v4423_v38  ;;  %v4784_v8 = vsel %vm4733_vm14, %v9027_v21, 0.0  ;;  %vm3847_vm0 = vcmp.eq.s32.totalorder %v9597_v41, %v9030_v24  ;;  %v4556_v54 = vadd.f32 %v4524_v52, %v4425_v48 }
 0x678   : >> { %v4786_v0 = vsel %vm4735_vm15, %v9027_v21, 0.0  ;;  %vm3849_vm1 = vcmp.eq.s32.totalorder %v9601_v42, %v9030_v24  ;;  %v3898_v44 = vsel %vm3847_vm0, %v9033_v3, 0.0  ;;  %vm3946_vm2 = vcmp.eq.s32.totalorder %v9597_v41, %v9040_v28 }
 0x679   : >> { %v4685_v1 = vadd.f32 %v4653_v13, %v4554_v62  ;;  %v3900_v15 = vsel %vm3849_vm1, %v9033_v3, 0.0  ;;  %vm3948_vm3 = vcmp.eq.s32.totalorder %v9601_v42, %v9040_v28  ;;  %v4687_v53 = vadd.f32 %v4655_v33, %v4556_v54 }
 0x67a   : >> { %v3997_v23 = vsel %vm3946_vm2, %v9057_v56, 0.0  ;;  %v3999_v34 = vsel %vm3948_vm3, %v9057_v56, 0.0  ;;  %vm4077_vm4 = vcmp.eq.s32.totalorder %v9597_v41, %v9070_v22  ;;  %vm4079_vm5 = vcmp.eq.s32.totalorder %v9601_v42, %v9070_v22 }
 0x67b   : >> { %v4816_v21 = vadd.f32 %v4784_v8, %v4685_v1  ;;  %v4029_v24 = vadd.f32 %v3997_v23, %v3898_v44  ;;  %v4031_v26 = vadd.f32 %v3999_v34, %v3900_v15  ;;  %v4818_v3 = vadd.f32 %v4786_v0, %v4687_v53 }
 0x67c   : >> { %v4128_v12 = vsel %vm4077_vm4, %v9075_v9, 0.0  ;;  %v4130_v31 = vsel %vm4079_vm5, %v9075_v9, 0.0  ;;  %vm4208_vm6 = vcmp.eq.s32.totalorder %v9597_v41, %v9078_v46  ;;  %vm4210_vm7 = vcmp.eq.s32.totalorder %v9601_v42, %v9078_v46 }
 0x67d   : >> { %v4160_v28 = vadd.f32 %v4128_v12, %v4029_v24  ;;  %v4162_v37 = vadd.f32 %v4130_v31, %v4031_v26  ;;  %v4259_v56 = vsel %vm4208_vm6, %v9085_v50, 0.0  ;;  %v5186_v19 = vpack.c.bf16 %v4818_v3, %v4816_v21 }
 0x67e   : >> { %v4261_v11 = vsel %vm4210_vm7, %v9085_v50, 0.0  ;;  %vm4339_vm8 = vcmp.eq.s32.totalorder %v9597_v41, %v9088_v43  ;;  %vm4341_vm9 = vcmp.eq.s32.totalorder %v9601_v42, %v9088_v43  ;;  %vm4470_vm10 = vcmp.eq.s32.totalorder %v9597_v41, %v9114_v63 }
 0x67f   : >> { %v4291_v22 = vadd.f32 %v4259_v56, %v4160_v28  ;;  %v4293_v9 = vadd.f32 %v4261_v11, %v4162_v37  ;;  %v4390_v27 = vsel %vm4339_vm8, %v9111_v14, 0.0  ;;  %v4392_v39 = vsel %vm4341_vm9, %v9111_v14, 0.0  ;;  %5187 = vmatprep.subr.bf16.mxu0 %v5186_v19 }
 0x680   : >> { %vm4472_vm11 = vcmp.eq.s32.totalorder %v9601_v42, %v9114_v63  ;;  %vm4601_vm12 = vcmp.eq.s32.totalorder %v9597_v41, %v9124_v25  ;;  %vm4603_vm13 = vcmp.eq.s32.totalorder %v9601_v42, %v9124_v25  ;;  %v4521_v43 = vsel %vm4470_vm10, %v9121_v29, 0.0 }
 0x681   : >> { %v4422_v46 = vadd.f32 %v4390_v27, %v4291_v22  ;;  %v4424_v50 = vadd.f32 %v4392_v39, %v4293_v9  ;;  %v4523_v14 = vsel %vm4472_vm11, %v9121_v29, 0.0  ;;  %v4652_v4 = vsel %vm4601_vm12, %v9151_v17, 0.0 }
 0x682   : >> { %v4654_v59 = vsel %vm4603_vm13, %v9151_v17, 0.0  ;;  %vm4732_vm14 = vcmp.eq.s32.totalorder %v9597_v41, %v9154_v18  ;;  %vm4734_vm15 = vcmp.eq.s32.totalorder %v9601_v42, %v9154_v18  ;;  %v5542_v10 = vmov 0.0   ;;  %v5054_v41 = vld [vmem:[%s4959_s24 + $0x128] sm:$0xff] }
 0x683   : >> { %v4553_v63 = vadd.f32 %v4521_v43, %v4422_v46  ;;  %v4555_v35 = vadd.f32 %v4523_v14, %v4424_v50  ;;  %v4783_v25 = vsel %vm4732_vm14, %v9157_v47, 0.0  ;;  %v4785_v55 = vsel %vm4734_vm15, %v9157_v47, 0.0  ;;  %4887 = vmatprep.mubr.f32.mxu0 %v5542_v10 }
 0x685   : >> { %v4684_v57 = vadd.f32 %v4652_v4, %v4553_v63  ;;  %v4686_v49 = vadd.f32 %v4654_v59, %v4555_v35 }
 0x687   : >> { %v4815_v29 = vadd.f32 %v4783_v25, %v4684_v57  ;;  %v4817_v32 = vadd.f32 %v4785_v55, %v4686_v49 }
 0x689   : >> { %v5188_v17 = vpack.c.bf16 %v4817_v32, %v4815_v29 }
 0x68b   : >> { %5189 = vmatpush1.bf16.msra.mxu0 %v5188_v17 }
 0x68e   : >> { %4888 = vmatmul.mubr.f32.vlgmr.msra.gmra.mrb[0].mxu0 %v5054_v41 }
 0x75f   : > { %3781 = sbr.rel (!%p3779_p8) target bundleno = 1458 (0x5b2), region = 123 }
 0x761   : >> { %v4889_v45 = vpop.f32.mrb[0].mxu0 }
 0x762   : >> { %v4894_v18 = vadd.f32 %v5529_v20, %v4889_v45   ;;  %v4891_v42 = vpop.f32.mrb[1].mxu0 }
 0x763   : >> { %v4895_v51 = vadd.f32 %v5525_v40, %v4891_v42  }
 0x764   : >> { %v10205_v20 = vmov %v4894_v18  ;;  %4896 = vst [vmem:[%s6739_s15] sm:$0xff] (%p3779_p8), %v4894_v18 }
 0x765   : >> { %v10204_v40 = vmov %v4895_v51  ;;  %4897 = vst [vmem:[%s6739_s15 + $0x8] sm:$0xff] (%p3779_p8), %v4895_v51 }
 0x766   : > { %5404 = shalt.err (!%p5401_p5)
}
 0x767   : > { %s5405_s13 = scalar_lea.hbm %s9907_s29, 256  ;;  %s5409_s3 = scalar_lea.hbm %s9948_s2, 512 }
 0x768   : > { %p5406_p0 = scmp.ne.s32.totalorder %s9907_s29, %s5405_s13  ;;  %p5410_p4 = scmp.lt.u32.totalorder %s9907_s29, %s9948_s2 }
 0x769   : > { %p5411_p6 = scmp.lt.u32.totalorder %s5409_s3, %s5405_s13  ;;  %p5413_p10 = scmp.lt.u32.totalorder %s5405_s13, %s9907_s29 }
 0x76a   : > { %p5407_p1 = pnand %p5406_p0, %p5650_p12 }
 0x76b   : > { %p5412_p8 = por %p5411_p6, %p5410_p4 }
 0x76c   : > { %p5408_p11 = pneg %p5407_p1 }
 0x76d   : > { %p5414_p13 = por %p5413_p10, %p5412_p8 }
 0x76f   : > { %p5415_p3 = pnand %p5414_p13, %p5408_p11 }
 0x771   : > { %5418 = shalt.err (!%p5415_p3)
}
 0x772   : > { %5204 = dma.vmem_to_hbm [thread:$0]  (%p5650_p12), %s4914_s17, 256, %s9907_s29, %s4899_s27  }
 0x773 PF: > { %s4925_s6 = sand.u32 1, %s5485_s9   ;;  %p10206_p7 = scmp.ne.s32.totalorder %s10029_s16, 0 }
 0x774   : > { %p10207_p9 = scmp.ge.s32.totalorder %s5497_s12, 2  ;;  %s4926_s7 = scalar_lea.sflag [#allocation4], %s4925_s6 }
 0x776   : > { %p5215_p2 = pnand %p10207_p9, %p10206_p7 }
 0x778   : > { %5480 = dma.done.wait (!%p5215_p2), %s4926_s7, 256  }
 0x779   : > { %5482 = vsyncadd (!%p5215_p2), %s4926_s7, 4294967040  ;;  %p16_p5 = scmp.ge.s32.totalorder %s5615_s21, 4   ;;  %s10208_s9 = smov %s5489_s10 }
 0x77a   : > { %s10209_s10 = smov %s5493_s11  ;;  %s10210_s11 = smov %s5646_s8 }
 0x77b   : > { %s10211_s12 = smov %s5615_s21  ;;  %18 = sbr.rel (!%p16_p5) target bundleno = 6 (0x6), region = 134 }
 0x782   :  { %4931 = vsyncpa [#allocation3], 1 }
 0x783   :  { %4933 = vsyncpa [#allocation3 + $0x1], 1 }
 0x784   :  { %4934 = vsyncpa [#allocation6], 1 }
 0x785   :  { %4935 = vsyncpa [#allocation4], 1 }
 0x786   :  { %4937 = vsyncpa [#allocation4 + $0x1], 1 }

</bundles_post_ra>
